<compile_context>
chip_gen: v6e
topology: v6e:2x2x1
jax: 0.10.0
libtpu: 0.0.40
codegen_flags: <defaults>
</compile_context>

<pallas_src>
import functools

import numpy as np
import jax
import jax.numpy as jnp
from jax.experimental import pallas as pl
from jax.experimental.pallas import tpu as pltpu

N = 128          # spatial size (fixed by the module: parameters are 128x128)
N_MOD = 6        # modulation stages per layer
N_LAYERS = 10    # Net builds 10 `layer` blocks
_EPS = 1e-30     # |x|^2 guard for the unit-phase rsqrt


# ------------------------------- the kernel --------------------------------

def net_kernel(xr_ref, xi_ref, wr_ref, wi_ref, br_ref, bi_ref,
               mlf_ref, mrf_ref, mlg_ref, mrg_ref,
               or_ref, oi_ref, *, bt, block_complex):
    """Layer `l` applied to one batch tile of `bt` images.

    grid = (batch_tiles, N_LAYERS).  The complex activation of the current
    batch tile is carried in (or_ref, oi_ref): their block index is constant
    over the layer axis, so they stay resident in VMEM and are written back
    to HBM only once per batch tile.
    """
    l = pl.program_id(1)

    @pl.when(l == 0)
    def _():                                  # seed the carry with the input
        or_ref[...] = xr_ref[...]
        oi_ref[...] = xi_ref[...]

    if block_complex:
        # v6e / v7x: one K=256 matmul per complex product (full 256x256 MXU).
        mlf, mrf = mlf_ref[...], mrf_ref[...]
        mlg, mrg = mlg_ref[...], mrg_ref[...]

        def dft2(r, i, ml, mr):               # (N,N),(N,N) -> (N,N),(N,N)
            xs = jnp.concatenate([r, i], axis=0)                     # (2N, N)
            t = jnp.dot(ml, xs, preferred_element_type=jnp.float32)  # (2N, N)
            tc = jnp.concatenate([t[:N, :], t[N:, :]], axis=1)       # (N, 2N)
            y = jnp.dot(tc, mr, preferred_element_type=jnp.float32)  # (N, 2N)
            return y[:, :N], y[:, N:]

        dft_f = lambda r, i: dft2(r, i, mlf, mrf)
        dft_g = lambda r, i: dft2(r, i, mlg, mrg)
    else:
        # v5e: 128x128 MXUs are already saturated at K=128 -> Karatsuba
        # (6 real matmuls per DFT instead of 8).
        mlf = mlf_ref[...]
        mlg = mlg_ref[...]
        fr, fi = mlf[:N, :N], mlf[N:, :N]
        gr, gi = mlg[:N, :N], mlg[N:, :N]
        fs = fr + fi
        gs = gr + gi

        def dft2_k(r, i, cr, ci, cs):
            t1 = jnp.dot(cr, r, preferred_element_type=jnp.float32)
            t2 = jnp.dot(ci, i, preferred_element_type=jnp.float32)
            t3 = jnp.dot(cs, r + i, preferred_element_type=jnp.float32)
            tr, ti = t1 - t2, t3 - t1 - t2                            # C @ X
            s1 = jnp.dot(tr, cr, preferred_element_type=jnp.float32)
            s2 = jnp.dot(ti, ci, preferred_element_type=jnp.float32)
            s3 = jnp.dot(tr + ti, cs, preferred_element_type=jnp.float32)
            return s1 - s2, s3 - s1 - s2                              # T @ C

        dft_f = lambda r, i: dft2_k(r, i, fr, fi, fs)
        dft_g = lambda r, i: dft2_k(r, i, gr, gi, gs)

    def unit_phase(r, i):
        """cos(angle(x)) + i*sin(angle(x)) == x/|x|  (angle(0)=0 -> 1+0j)."""
        m2 = r * r + i * i
        inv = jax.lax.rsqrt(jnp.maximum(m2, _EPS))
        tiny = m2 < _EPS
        return jnp.where(tiny, 1.0, r * inv), jnp.where(tiny, 0.0, i * inv)

    # Per-image loop: the same untiled (128,128) weights are reused for every
    # image of the batch tile (bt only amortises weight DMA / step overhead).
    for b in range(bt):

        def mod(k, r, i):                     # elementwise x*w[k] + b[k]
            wr, wi = wr_ref[0, k], wi_ref[0, k]
            brv, biv = br_ref[0, k], bi_ref[0, k]
            return r * wr - i * wi + brv, r * wi + i * wr + biv

        r = or_ref[b]
        i = oi_ref[b]

        r, i = mod(0, r, i); r, i = dft_f(r, i)     # fft2
        r, i = mod(1, r, i); r, i = dft_f(r, i)     # fft2
        r, i = mod(2, r, i); r, i = dft_g(r, i)     # ifft2
        r, i = unit_phase(r, i)                     # angle -> cos + i*sin
        r, i = mod(3, r, i); r, i = dft_f(r, i)     # fft2
        r, i = mod(4, r, i); r, i = dft_g(r, i)     # ifft2
        r, i = mod(5, r, i); r, i = dft_g(r, i)     # ifft2
        r, i = unit_phase(r, i)                     # angle -> cos + i*sin

        # |layer input| recomputed from the still-unmodified carry refs right
        # before the final store (keeps it out of the matmul-heavy live range).
        xr0 = or_ref[b]
        xi0 = oi_ref[b]
        in_abs = jnp.sqrt(xr0 * xr0 + xi0 * xi0)

        or_ref[b] = in_abs * r                # inputs.abs() * unit phase
        oi_ref[b] = in_abs * i


# ------------------------------ host helpers --------------------------------

def make_dft_matrices():
    """Block-complex DFT constants.

    F is the 128-point DFT matrix (fft2 = F@X@F), G = conj(F)/N (ifft2 =
    G@X@G, the 1/N^2 folded in).  For each, the 256x256 left/right block-real
    forms:  [Yr;Yi] = ML @ [Xr;Xi]   and   [Yr|Yi] = [Xr|Xi] @ MR.
    The v5e Karatsuba path slices Fr/Fi (Gr/Gi) back out of ML.
    """
    k = np.arange(N)
    f = np.exp(-2j * np.pi * np.outer(k, k) / N)
    g = np.conj(f) / N

    def blk(c):
        cr, ci = np.real(c), np.imag(c)
        ml = np.block([[cr, -ci], [ci, cr]])
        mr = np.block([[cr, ci], [-ci, cr]])
        return (jnp.asarray(ml, jnp.float32), jnp.asarray(mr, jnp.float32))

    return blk(f) + blk(g)        # (ML_F, MR_F, ML_G, MR_G)


def init_params(key):
    """Stacked params: w_re, w_im, b_re, b_im each (N_LAYERS, N_MOD, 128, 128),
    normal init (matches torch.nn.init.normal_ on cfloat w (6,1,128,128), b)."""
    ks = jax.random.split(key, 4)
    shape = (N_LAYERS, N_MOD, N, N)
    return tuple(jax.random.normal(k, shape, jnp.float32) for k in ks)


def _pick_bt(batch):
    """Largest batch tile <= 8 dividing B, but keep nbt >= 2 when possible so
    the 'parallel' batch axis can be sharded across v7x's two TensorCores."""
    bt = 1
    for cand in (8, 4, 2):
        if batch % cand == 0:
            bt = cand
            break
    while bt > 1 and batch // bt < 2:
        bt //= 2
    return bt


# ------------------------------ Net forward --------------------------------

@functools.partial(jax.jit, static_argnames=("bt", "block_complex"))
def _net_pallas(x_re, x_im, w_re, w_im, b_re, b_im,
                ml_f, mr_f, ml_g, mr_g, *, bt, block_complex):
    B = x_re.shape[0]
    nbt = B // bt

    act_blk = lambda bi, l: (bi, 0, 0)          # resident across the layer axis
    wgt_blk = lambda bi, l: (l, 0, 0, 0)        # one layer's weights per step
    cst_blk = lambda bi, l: (0, 0)              # DFT constants, fetched once

    yr, yi = pl.pallas_call(
        functools.partial(net_kernel, bt=bt, block_complex=block_complex),
        out_shape=(jax.ShapeDtypeStruct((B, N, N), jnp.float32),
                   jax.ShapeDtypeStruct((B, N, N), jnp.float32)),
        grid=(nbt, N_LAYERS),
        in_specs=[
            pl.BlockSpec((bt, N, N), act_blk),           # x_re
            pl.BlockSpec((bt, N, N), act_blk),           # x_im
            pl.BlockSpec((1, N_MOD, N, N), wgt_blk),     # w_re  (untiled)
            pl.BlockSpec((1, N_MOD, N, N), wgt_blk),     # w_im
            pl.BlockSpec((1, N_MOD, N, N), wgt_blk),     # b_re
            pl.BlockSpec((1, N_MOD, N, N), wgt_blk),     # b_im
            pl.BlockSpec((2 * N, 2 * N), cst_blk),       # ML_F
            pl.BlockSpec((2 * N, 2 * N), cst_blk),       # MR_F
            pl.BlockSpec((2 * N, 2 * N), cst_blk),       # ML_G
            pl.BlockSpec((2 * N, 2 * N), cst_blk),       # MR_G
        ],
        out_specs=[
            pl.BlockSpec((bt, N, N), act_blk),
            pl.BlockSpec((bt, N, N), act_blk),
        ],
        compiler_params=pltpu.CompilerParams(
            dimension_semantics=("parallel", "arbitrary"),
            # ~10 MiB actually used; 48 MiB leaves headroom for larger bt while
            # staying inside v7x's 64 MiB per-core VMEM.
            vmem_limit_bytes=48 * 1024 * 1024),
    )(x_re, x_im, w_re, w_im, b_re, b_im, ml_f, mr_f, ml_g, mr_g)

    # Final Net epilogue: (x.angle() + 3.14) / 2.68  (literals as in the spec).
    # TODO(synk): kept as a single fused XLA elementwise op outside the kernel
    # because Mosaic's atan2 lowering is not relied upon; it is second-order.
    return (jnp.arctan2(yi, yr) + 3.14) / 2.68


def net_forward(x_re, x_im, params, dft_mats, bt=None):
    B = x_re.shape[0]
    if bt is None:
        bt = _pick_bt(B)
    assert B % bt == 0, "batch must be divisible by the batch tile"

    # Karatsuba on v5e and older (128x128 MXUs); block-complex K=256 otherwise.
    kind = jax.devices()[0].device_kind.lower()
    block_complex = not any(t in kind for t in ("v2", "v3", "v4", "v5"))

    w_re, w_im, b_re, b_im = params
    ml_f, mr_f, ml_g, mr_g = dft_mats
    return _net_pallas(x_re, x_im, w_re, w_im, b_re, b_im,
                       ml_f, mr_f, ml_g, mr_g,
                       bt=bt, block_complex=block_complex)


# ---------------------------------- main ------------------------------------

if __name__ == "__main__":
    key = jax.random.PRNGKey(0)
    k_xr, k_xi, k_p = jax.random.split(key, 3)

    B = 2
    x_re = jax.random.normal(k_xr, (B, N, N), jnp.float32)
    x_im = jax.random.normal(k_xi, (B, N, N), jnp.float32)

    params = init_params(k_p)
    dft_mats = make_dft_matrices()

    out = net_forward(x_re, x_im, params, dft_mats)
    out = jax.block_until_ready(out)

    assert out.shape == (B, N, N) and out.dtype == jnp.float32
    assert bool(jnp.all(jnp.isfinite(out)))
    print("KERNEL_OK")
</pallas_src>

<mosaic_0001>
module attributes {stable_mosaic.version = 11 : i64} {
  func.func @net_kernel(%arg0: i32, %arg1: i32, %arg2: memref<1x128x128xf32, #tpu.memory_space<vmem>>, %arg3: memref<1x128x128xf32, #tpu.memory_space<vmem>>, %arg4: memref<1x6x128x128xf32, #tpu.memory_space<vmem>>, %arg5: memref<1x6x128x128xf32, #tpu.memory_space<vmem>>, %arg6: memref<1x6x128x128xf32, #tpu.memory_space<vmem>>, %arg7: memref<1x6x128x128xf32, #tpu.memory_space<vmem>>, %arg8: memref<256x256xf32, #tpu.memory_space<vmem>>, %arg9: memref<256x256xf32, #tpu.memory_space<vmem>>, %arg10: memref<256x256xf32, #tpu.memory_space<vmem>>, %arg11: memref<256x256xf32, #tpu.memory_space<vmem>>, %arg12: memref<1x128x128xf32, #tpu.memory_space<vmem>>, %arg13: memref<1x128x128xf32, #tpu.memory_space<vmem>>) attributes {dimension_semantics = [#tpu.dimension_semantics<parallel>, #tpu.dimension_semantics<arbitrary>], iteration_bounds = array<i64: 2, 10>, scalar_prefetch = 0 : i64, scratch_operands = 0 : i64, tpu.core_type = #tpu.core_type<tc>, window_params = [{transform_indices = @transform_0, window_bounds = array<i64: 1, 128, 128>}, {transform_indices = @transform_1, window_bounds = array<i64: 1, 128, 128>}, {transform_indices = @transform_2, window_bounds = array<i64: 1, 6, 128, 128>}, {transform_indices = @transform_3, window_bounds = array<i64: 1, 6, 128, 128>}, {transform_indices = @transform_4, window_bounds = array<i64: 1, 6, 128, 128>}, {transform_indices = @transform_5, window_bounds = array<i64: 1, 6, 128, 128>}, {pipeline_mode = #tpu.pipeline_mode<synchronous>, transform_indices = @transform_6, window_bounds = array<i64: 256, 256>}, {pipeline_mode = #tpu.pipeline_mode<synchronous>, transform_indices = @transform_7, window_bounds = array<i64: 256, 256>}, {pipeline_mode = #tpu.pipeline_mode<synchronous>, transform_indices = @transform_8, window_bounds = array<i64: 256, 256>}, {pipeline_mode = #tpu.pipeline_mode<synchronous>, transform_indices = @transform_9, window_bounds = array<i64: 256, 256>}, {transform_indices = @transform_10, window_bounds = array<i64: 1, 128, 128>}, {transform_indices = @transform_11, window_bounds = array<i64: 1, 128, 128>}]} {
    %c0_i32 = arith.constant 0 : i32
    %0 = arith.cmpi eq, %arg1, %c0_i32 : i32
    %1 = arith.extui %0 : i1 to i32
    %c0_i32_0 = arith.constant 0 : i32
    %2 = arith.cmpi ne, %1, %c0_i32_0 : i32
    scf.if %2 {
      %c0_136 = arith.constant 0 : index
      %c0_137 = arith.constant 0 : index
      %c0_138 = arith.constant 0 : index
      %199 = vector.load %arg2[%c0_136, %c0_137, %c0_138] : memref<1x128x128xf32, #tpu.memory_space<vmem>>, vector<1x128x128xf32>
      %c0_139 = arith.constant 0 : index
      %c0_140 = arith.constant 0 : index
      %c0_141 = arith.constant 0 : index
      %200 = vector.load %arg12[%c0_139, %c0_140, %c0_141] : memref<1x128x128xf32, #tpu.memory_space<vmem>>, vector<1x128x128xf32>
      tpu.vector_store %arg12[%c0_139, %c0_140, %c0_141], %199 {strides = array<i32>} : memref<1x128x128xf32, #tpu.memory_space<vmem>>, vector<1x128x128xf32>,
      %c0_142 = arith.constant 0 : index
      %c0_143 = arith.constant 0 : index
      %c0_144 = arith.constant 0 : index
      %201 = vector.load %arg3[%c0_142, %c0_143, %c0_144] : memref<1x128x128xf32, #tpu.memory_space<vmem>>, vector<1x128x128xf32>
      %c0_145 = arith.constant 0 : index
      %c0_146 = arith.constant 0 : index
      %c0_147 = arith.constant 0 : index
      %202 = vector.load %arg13[%c0_145, %c0_146, %c0_147] : memref<1x128x128xf32, #tpu.memory_space<vmem>>, vector<1x128x128xf32>
      tpu.vector_store %arg13[%c0_145, %c0_146, %c0_147], %201 {strides = array<i32>} : memref<1x128x128xf32, #tpu.memory_space<vmem>>, vector<1x128x128xf32>,
    } else {
    }
    %c0 = arith.constant 0 : index
    %c0_1 = arith.constant 0 : index
    %3 = vector.load %arg8[%c0, %c0_1] : memref<256x256xf32, #tpu.memory_space<vmem>>, vector<256x256xf32>
    %c0_2 = arith.constant 0 : index
    %c0_3 = arith.constant 0 : index
    %4 = vector.load %arg9[%c0_2, %c0_3] : memref<256x256xf32, #tpu.memory_space<vmem>>, vector<256x256xf32>
    %c0_4 = arith.constant 0 : index
    %c0_5 = arith.constant 0 : index
    %5 = vector.load %arg10[%c0_4, %c0_5] : memref<256x256xf32, #tpu.memory_space<vmem>>, vector<256x256xf32>
    %c0_6 = arith.constant 0 : index
    %c0_7 = arith.constant 0 : index
    %6 = vector.load %arg11[%c0_6, %c0_7] : memref<256x256xf32, #tpu.memory_space<vmem>>, vector<256x256xf32>
    %c0_8 = arith.constant 0 : index
    %c0_9 = arith.constant 0 : index
    %c0_10 = arith.constant 0 : index
    %7 = vector.load %arg12[%c0_8, %c0_9, %c0_10] : memref<1x128x128xf32, #tpu.memory_space<vmem>>, vector<1x128x128xf32>
    %8 = vector.shape_cast %7 : vector<1x128x128xf32> to vector<128x128xf32>
    %c0_11 = arith.constant 0 : index
    %c0_12 = arith.constant 0 : index
    %c0_13 = arith.constant 0 : index
    %9 = vector.load %arg13[%c0_11, %c0_12, %c0_13] : memref<1x128x128xf32, #tpu.memory_space<vmem>>, vector<1x128x128xf32>
    %10 = vector.shape_cast %9 : vector<1x128x128xf32> to vector<128x128xf32>
    %c0_14 = arith.constant 0 : index
    %c0_15 = arith.constant 0 : index
    %c0_16 = arith.constant 0 : index
    %c0_17 = arith.constant 0 : index
    %11 = vector.load %arg4[%c0_14, %c0_15, %c0_16, %c0_17] : memref<1x6x128x128xf32, #tpu.memory_space<vmem>>, vector<1x1x128x128xf32>
    %12 = vector.shape_cast %11 : vector<1x1x128x128xf32> to vector<128x128xf32>
    %c0_18 = arith.constant 0 : index
    %c0_19 = arith.constant 0 : index
    %c0_20 = arith.constant 0 : index
    %c0_21 = arith.constant 0 : index
    %13 = vector.load %arg5[%c0_18, %c0_19, %c0_20, %c0_21] : memref<1x6x128x128xf32, #tpu.memory_space<vmem>>, vector<1x1x128x128xf32>
    %14 = vector.shape_cast %13 : vector<1x1x128x128xf32> to vector<128x128xf32>
    %c0_22 = arith.constant 0 : index
    %c0_23 = arith.constant 0 : index
    %c0_24 = arith.constant 0 : index
    %c0_25 = arith.constant 0 : index
    %15 = vector.load %arg6[%c0_22, %c0_23, %c0_24, %c0_25] : memref<1x6x128x128xf32, #tpu.memory_space<vmem>>, vector<1x1x128x128xf32>
    %16 = vector.shape_cast %15 : vector<1x1x128x128xf32> to vector<128x128xf32>
    %c0_26 = arith.constant 0 : index
    %c0_27 = arith.constant 0 : index
    %c0_28 = arith.constant 0 : index
    %c0_29 = arith.constant 0 : index
    %17 = vector.load %arg7[%c0_26, %c0_27, %c0_28, %c0_29] : memref<1x6x128x128xf32, #tpu.memory_space<vmem>>, vector<1x1x128x128xf32>
    %18 = vector.shape_cast %17 : vector<1x1x128x128xf32> to vector<128x128xf32>
    %19 = arith.mulf %8, %12 : vector<128x128xf32>
    %20 = arith.mulf %10, %14 : vector<128x128xf32>
    %21 = arith.subf %19, %20 : vector<128x128xf32>
    %22 = arith.addf %21, %16 : vector<128x128xf32>
    %23 = arith.mulf %8, %14 : vector<128x128xf32>
    %24 = arith.mulf %10, %12 : vector<128x128xf32>
    %25 = arith.addf %23, %24 : vector<128x128xf32>
    %26 = arith.addf %25, %18 : vector<128x128xf32>
    %27 = tpu.concatenate %22, %26 in 0 : vector<128x128xf32>, vector<128x128xf32> -> vector<256x128xf32>
    %cst = arith.constant dense<0.000000e+00> : vector<256x128xf32>
    %28 = tpu.matmul %3, %27, %cst {dimension_numbers = #tpu.dot_dimension_numbers<[1], [0], [0], [1], [0, 0, 1, 1], [], []>} : vector<256x256xf32>, vector<256x128xf32>, vector<256x128xf32> -> vector<256x128xf32>
    %29 = vector.extract_strided_slice %28 {offsets = [0, 0], sizes = [128, 128], strides = [1, 1]} : vector<256x128xf32> to vector<128x128xf32>
    %30 = vector.extract_strided_slice %28 {offsets = [128, 0], sizes = [128, 128], strides = [1, 1]} : vector<256x128xf32> to vector<128x128xf32>
    %31 = tpu.concatenate %29, %30 in 1 : vector<128x128xf32>, vector<128x128xf32> -> vector<128x256xf32>
    %cst_30 = arith.constant dense<0.000000e+00> : vector<128x256xf32>
    %32 = tpu.matmul %31, %4, %cst_30 {dimension_numbers = #tpu.dot_dimension_numbers<[1], [0], [0], [1], [0, 0, 1, 1], [], []>} : vector<128x256xf32>, vector<256x256xf32>, vector<128x256xf32> -> vector<128x256xf32>
    %33 = vector.extract_strided_slice %32 {offsets = [0, 0], sizes = [128, 128], strides = [1, 1]} : vector<128x256xf32> to vector<128x128xf32>
    %34 = vector.extract_strided_slice %32 {offsets = [0, 128], sizes = [128, 128], strides = [1, 1]} : vector<128x256xf32> to vector<128x128xf32>
    %c0_31 = arith.constant 0 : index
    %c1 = arith.constant 1 : index
    %c0_32 = arith.constant 0 : index
    %c0_33 = arith.constant 0 : index
    %35 = vector.load %arg4[%c0_31, %c1, %c0_32, %c0_33] : memref<1x6x128x128xf32, #tpu.memory_space<vmem>>, vector<1x1x128x128xf32>
    %36 = vector.shape_cast %35 : vector<1x1x128x128xf32> to vector<128x128xf32>
    %c0_34 = arith.constant 0 : index
    %c1_35 = arith.constant 1 : index
    %c0_36 = arith.constant 0 : index
    %c0_37 = arith.constant 0 : index
    %37 = vector.load %arg5[%c0_34, %c1_35, %c0_36, %c0_37] : memref<1x6x128x128xf32, #tpu.memory_space<vmem>>, vector<1x1x128x128xf32>
    %38 = vector.shape_cast %37 : vector<1x1x128x128xf32> to vector<128x128xf32>
    %c0_38 = arith.constant 0 : index
    %c1_39 = arith.constant 1 : index
    %c0_40 = arith.constant 0 : index
    %c0_41 = arith.constant 0 : index
    %39 = vector.load %arg6[%c0_38, %c1_39, %c0_40, %c0_41] : memref<1x6x128x128xf32, #tpu.memory_space<vmem>>, vector<1x1x128x128xf32>
    %40 = vector.shape_cast %39 : vector<1x1x128x128xf32> to vector<128x128xf32>
    %c0_42 = arith.constant 0 : index
    %c1_43 = arith.constant 1 : index
    %c0_44 = arith.constant 0 : index
    %c0_45 = arith.constant 0 : index
    %41 = vector.load %arg7[%c0_42, %c1_43, %c0_44, %c0_45] : memref<1x6x128x128xf32, #tpu.memory_space<vmem>>, vector<1x1x128x128xf32>
    %42 = vector.shape_cast %41 : vector<1x1x128x128xf32> to vector<128x128xf32>
    %43 = arith.mulf %33, %36 : vector<128x128xf32>
    %44 = arith.mulf %34, %38 : vector<128x128xf32>
    %45 = arith.subf %43, %44 : vector<128x128xf32>
    %46 = arith.addf %45, %40 : vector<128x128xf32>
    %47 = arith.mulf %33, %38 : vector<128x128xf32>
    %48 = arith.mulf %34, %36 : vector<128x128xf32>
    %49 = arith.addf %47, %48 : vector<128x128xf32>
    %50 = arith.addf %49, %42 : vector<128x128xf32>
    %51 = tpu.concatenate %46, %50 in 0 : vector<128x128xf32>, vector<128x128xf32> -> vector<256x128xf32>
    %cst_46 = arith.constant dense<0.000000e+00> : vector<256x128xf32>
    %52 = tpu.matmul %3, %51, %cst_46 {dimension_numbers = #tpu.dot_dimension_numbers<[1], [0], [0], [1], [0, 0, 1, 1], [], []>} : vector<256x256xf32>, vector<256x128xf32>, vector<256x128xf32> -> vector<256x128xf32>
    %53 = vector.extract_strided_slice %52 {offsets = [0, 0], sizes = [128, 128], strides = [1, 1]} : vector<256x128xf32> to vector<128x128xf32>
    %54 = vector.extract_strided_slice %52 {offsets = [128, 0], sizes = [128, 128], strides = [1, 1]} : vector<256x128xf32> to vector<128x128xf32>
    %55 = tpu.concatenate %53, %54 in 1 : vector<128x128xf32>, vector<128x128xf32> -> vector<128x256xf32>
    %cst_47 = arith.constant dense<0.000000e+00> : vector<128x256xf32>
    %56 = tpu.matmul %55, %4, %cst_47 {dimension_numbers = #tpu.dot_dimension_numbers<[1], [0], [0], [1], [0, 0, 1, 1], [], []>} : vector<128x256xf32>, vector<256x256xf32>, vector<128x256xf32> -> vector<128x256xf32>
    %57 = vector.extract_strided_slice %56 {offsets = [0, 0], sizes = [128, 128], strides = [1, 1]} : vector<128x256xf32> to vector<128x128xf32>
    %58 = vector.extract_strided_slice %56 {offsets = [0, 128], sizes = [128, 128], strides = [1, 1]} : vector<128x256xf32> to vector<128x128xf32>
    %c0_48 = arith.constant 0 : index
    %c2 = arith.constant 2 : index
    %c0_49 = arith.constant 0 : index
    %c0_50 = arith.constant 0 : index
    %59 = vector.load %arg4[%c0_48, %c2, %c0_49, %c0_50] : memref<1x6x128x128xf32, #tpu.memory_space<vmem>>, vector<1x1x128x128xf32>
    %60 = vector.shape_cast %59 : vector<1x1x128x128xf32> to vector<128x128xf32>
    %c0_51 = arith.constant 0 : index
    %c2_52 = arith.constant 2 : index
    %c0_53 = arith.constant 0 : index
    %c0_54 = arith.constant 0 : index
    %61 = vector.load %arg5[%c0_51, %c2_52, %c0_53, %c0_54] : memref<1x6x128x128xf32, #tpu.memory_space<vmem>>, vector<1x1x128x128xf32>
    %62 = vector.shape_cast %61 : vector<1x1x128x128xf32> to vector<128x128xf32>
    %c0_55 = arith.constant 0 : index
    %c2_56 = arith.constant 2 : index
    %c0_57 = arith.constant 0 : index
    %c0_58 = arith.constant 0 : index
    %63 = vector.load %arg6[%c0_55, %c2_56, %c0_57, %c0_58] : memref<1x6x128x128xf32, #tpu.memory_space<vmem>>, vector<1x1x128x128xf32>
    %64 = vector.shape_cast %63 : vector<1x1x128x128xf32> to vector<128x128xf32>
    %c0_59 = arith.constant 0 : index
    %c2_60 = arith.constant 2 : index
    %c0_61 = arith.constant 0 : index
    %c0_62 = arith.constant 0 : index
    %65 = vector.load %arg7[%c0_59, %c2_60, %c0_61, %c0_62] : memref<1x6x128x128xf32, #tpu.memory_space<vmem>>, vector<1x1x128x128xf32>
    %66 = vector.shape_cast %65 : vector<1x1x128x128xf32> to vector<128x128xf32>
    %67 = arith.mulf %57, %60 : vector<128x128xf32>
    %68 = arith.mulf %58, %62 : vector<128x128xf32>
    %69 = arith.subf %67, %68 : vector<128x128xf32>
    %70 = arith.addf %69, %64 : vector<128x128xf32>
    %71 = arith.mulf %57, %62 : vector<128x128xf32>
    %72 = arith.mulf %58, %60 : vector<128x128xf32>
    %73 = arith.addf %71, %72 : vector<128x128xf32>
    %74 = arith.addf %73, %66 : vector<128x128xf32>
    %75 = tpu.concatenate %70, %74 in 0 : vector<128x128xf32>, vector<128x128xf32> -> vector<256x128xf32>
    %cst_63 = arith.constant dense<0.000000e+00> : vector<256x128xf32>
    %76 = tpu.matmul %5, %75, %cst_63 {dimension_numbers = #tpu.dot_dimension_numbers<[1], [0], [0], [1], [0, 0, 1, 1], [], []>} : vector<256x256xf32>, vector<256x128xf32>, vector<256x128xf32> -> vector<256x128xf32>
    %77 = vector.extract_strided_slice %76 {offsets = [0, 0], sizes = [128, 128], strides = [1, 1]} : vector<256x128xf32> to vector<128x128xf32>
    %78 = vector.extract_strided_slice %76 {offsets = [128, 0], sizes = [128, 128], strides = [1, 1]} : vector<256x128xf32> to vector<128x128xf32>
    %79 = tpu.concatenate %77, %78 in 1 : vector<128x128xf32>, vector<128x128xf32> -> vector<128x256xf32>
    %cst_64 = arith.constant dense<0.000000e+00> : vector<128x256xf32>
    %80 = tpu.matmul %79, %6, %cst_64 {dimension_numbers = #tpu.dot_dimension_numbers<[1], [0], [0], [1], [0, 0, 1, 1], [], []>} : vector<128x256xf32>, vector<256x256xf32>, vector<128x256xf32> -> vector<128x256xf32>
    %81 = vector.extract_strided_slice %80 {offsets = [0, 0], sizes = [128, 128], strides = [1, 1]} : vector<128x256xf32> to vector<128x128xf32>
    %82 = vector.extract_strided_slice %80 {offsets = [0, 128], sizes = [128, 128], strides = [1, 1]} : vector<128x256xf32> to vector<128x128xf32>
    %83 = arith.mulf %81, %81 : vector<128x128xf32>
    %84 = arith.mulf %82, %82 : vector<128x128xf32>
    %85 = arith.addf %83, %84 : vector<128x128xf32>
    %cst_65 = arith.constant 1.000000e-30 : f32
    %86 = vector.broadcast %cst_65 : f32 to vector<128x128xf32>
    %87 = arith.maximumf %85, %86 : vector<128x128xf32>
    %88 = math.rsqrt %87 : vector<128x128xf32>
    %cst_66 = arith.constant 1.000000e-30 : f32
    %89 = vector.broadcast %cst_66 : f32 to vector<128x128xf32>
    %90 = arith.cmpf olt, %85, %89 : vector<128x128xf32>
    %91 = arith.mulf %81, %88 : vector<128x128xf32>
    %cst_67 = arith.constant 1.000000e+00 : f32
    %92 = vector.broadcast %cst_67 : f32 to vector<128x128xf32>
    %93 = arith.select %90, %92, %91 : vector<128x128xi1>, vector<128x128xf32>
    %94 = arith.mulf %82, %88 : vector<128x128xf32>
    %cst_68 = arith.constant 0.000000e+00 : f32
    %95 = vector.broadcast %cst_68 : f32 to vector<128x128xf32>
    %96 = arith.select %90, %95, %94 : vector<128x128xi1>, vector<128x128xf32>
    %c0_69 = arith.constant 0 : index
    %c3 = arith.constant 3 : index
    %c0_70 = arith.constant 0 : index
    %c0_71 = arith.constant 0 : index
    %97 = vector.load %arg4[%c0_69, %c3, %c0_70, %c0_71] : memref<1x6x128x128xf32, #tpu.memory_space<vmem>>, vector<1x1x128x128xf32>
    %98 = vector.shape_cast %97 : vector<1x1x128x128xf32> to vector<128x128xf32>
    %c0_72 = arith.constant 0 : index
    %c3_73 = arith.constant 3 : index
    %c0_74 = arith.constant 0 : index
    %c0_75 = arith.constant 0 : index
    %99 = vector.load %arg5[%c0_72, %c3_73, %c0_74, %c0_75] : memref<1x6x128x128xf32, #tpu.memory_space<vmem>>, vector<1x1x128x128xf32>
    %100 = vector.shape_cast %99 : vector<1x1x128x128xf32> to vector<128x128xf32>
    %c0_76 = arith.constant 0 : index
    %c3_77 = arith.constant 3 : index
    %c0_78 = arith.constant 0 : index
    %c0_79 = arith.constant 0 : index
    %101 = vector.load %arg6[%c0_76, %c3_77, %c0_78, %c0_79] : memref<1x6x128x128xf32, #tpu.memory_space<vmem>>, vector<1x1x128x128xf32>
    %102 = vector.shape_cast %101 : vector<1x1x128x128xf32> to vector<128x128xf32>
    %c0_80 = arith.constant 0 : index
    %c3_81 = arith.constant 3 : index
    %c0_82 = arith.constant 0 : index
    %c0_83 = arith.constant 0 : index
    %103 = vector.load %arg7[%c0_80, %c3_81, %c0_82, %c0_83] : memref<1x6x128x128xf32, #tpu.memory_space<vmem>>, vector<1x1x128x128xf32>
    %104 = vector.shape_cast %103 : vector<1x1x128x128xf32> to vector<128x128xf32>
    %105 = arith.mulf %93, %98 : vector<128x128xf32>
    %106 = arith.mulf %96, %100 : vector<128x128xf32>
    %107 = arith.subf %105, %106 : vector<128x128xf32>
    %108 = arith.addf %107, %102 : vector<128x128xf32>
    %109 = arith.mulf %93, %100 : vector<128x128xf32>
    %110 = arith.mulf %96, %98 : vector<128x128xf32>
    %111 = arith.addf %109, %110 : vector<128x128xf32>
    %112 = arith.addf %111, %104 : vector<128x128xf32>
    %113 = tpu.concatenate %108, %112 in 0 : vector<128x128xf32>, vector<128x128xf32> -> vector<256x128xf32>
    %cst_84 = arith.constant dense<0.000000e+00> : vector<256x128xf32>
    %114 = tpu.matmul %3, %113, %cst_84 {dimension_numbers = #tpu.dot_dimension_numbers<[1], [0], [0], [1], [0, 0, 1, 1], [], []>} : vector<256x256xf32>, vector<256x128xf32>, vector<256x128xf32> -> vector<256x128xf32>
    %115 = vector.extract_strided_slice %114 {offsets = [0, 0], sizes = [128, 128], strides = [1, 1]} : vector<256x128xf32> to vector<128x128xf32>
    %116 = vector.extract_strided_slice %114 {offsets = [128, 0], sizes = [128, 128], strides = [1, 1]} : vector<256x128xf32> to vector<128x128xf32>
    %117 = tpu.concatenate %115, %116 in 1 : vector<128x128xf32>, vector<128x128xf32> -> vector<128x256xf32>
    %cst_85 = arith.constant dense<0.000000e+00> : vector<128x256xf32>
    %118 = tpu.matmul %117, %4, %cst_85 {dimension_numbers = #tpu.dot_dimension_numbers<[1], [0], [0], [1], [0, 0, 1, 1], [], []>} : vector<128x256xf32>, vector<256x256xf32>, vector<128x256xf32> -> vector<128x256xf32>
    %119 = vector.extract_strided_slice %118 {offsets = [0, 0], sizes = [128, 128], strides = [1, 1]} : vector<128x256xf32> to vector<128x128xf32>
    %120 = vector.extract_strided_slice %118 {offsets = [0, 128], sizes = [128, 128], strides = [1, 1]} : vector<128x256xf32> to vector<128x128xf32>
    %c0_86 = arith.constant 0 : index
    %c4 = arith.constant 4 : index
    %c0_87 = arith.constant 0 : index
    %c0_88 = arith.constant 0 : index
    %121 = vector.load %arg4[%c0_86, %c4, %c0_87, %c0_88] : memref<1x6x128x128xf32, #tpu.memory_space<vmem>>, vector<1x1x128x128xf32>
    %122 = vector.shape_cast %121 : vector<1x1x128x128xf32> to vector<128x128xf32>
    %c0_89 = arith.constant 0 : index
    %c4_90 = arith.constant 4 : index
    %c0_91 = arith.constant 0 : index
    %c0_92 = arith.constant 0 : index
    %123 = vector.load %arg5[%c0_89, %c4_90, %c0_91, %c0_92] : memref<1x6x128x128xf32, #tpu.memory_space<vmem>>, vector<1x1x128x128xf32>
    %124 = vector.shape_cast %123 : vector<1x1x128x128xf32> to vector<128x128xf32>
    %c0_93 = arith.constant 0 : index
    %c4_94 = arith.constant 4 : index
    %c0_95 = arith.constant 0 : index
    %c0_96 = arith.constant 0 : index
    %125 = vector.load %arg6[%c0_93, %c4_94, %c0_95, %c0_96] : memref<1x6x128x128xf32, #tpu.memory_space<vmem>>, vector<1x1x128x128xf32>
    %126 = vector.shape_cast %125 : vector<1x1x128x128xf32> to vector<128x128xf32>
    %c0_97 = arith.constant 0 : index
    %c4_98 = arith.constant 4 : index
    %c0_99 = arith.constant 0 : index
    %c0_100 = arith.constant 0 : index
    %127 = vector.load %arg7[%c0_97, %c4_98, %c0_99, %c0_100] : memref<1x6x128x128xf32, #tpu.memory_space<vmem>>, vector<1x1x128x128xf32>
    %128 = vector.shape_cast %127 : vector<1x1x128x128xf32> to vector<128x128xf32>
    %129 = arith.mulf %119, %122 : vector<128x128xf32>
    %130 = arith.mulf %120, %124 : vector<128x128xf32>
    %131 = arith.subf %129, %130 : vector<128x128xf32>
    %132 = arith.addf %131, %126 : vector<128x128xf32>
    %133 = arith.mulf %119, %124 : vector<128x128xf32>
    %134 = arith.mulf %120, %122 : vector<128x128xf32>
    %135 = arith.addf %133, %134 : vector<128x128xf32>
    %136 = arith.addf %135, %128 : vector<128x128xf32>
    %137 = tpu.concatenate %132, %136 in 0 : vector<128x128xf32>, vector<128x128xf32> -> vector<256x128xf32>
    %cst_101 = arith.constant dense<0.000000e+00> : vector<256x128xf32>
    %138 = tpu.matmul %5, %137, %cst_101 {dimension_numbers = #tpu.dot_dimension_numbers<[1], [0], [0], [1], [0, 0, 1, 1], [], []>} : vector<256x256xf32>, vector<256x128xf32>, vector<256x128xf32> -> vector<256x128xf32>
    %139 = vector.extract_strided_slice %138 {offsets = [0, 0], sizes = [128, 128], strides = [1, 1]} : vector<256x128xf32> to vector<128x128xf32>
    %140 = vector.extract_strided_slice %138 {offsets = [128, 0], sizes = [128, 128], strides = [1, 1]} : vector<256x128xf32> to vector<128x128xf32>
    %141 = tpu.concatenate %139, %140 in 1 : vector<128x128xf32>, vector<128x128xf32> -> vector<128x256xf32>
    %cst_102 = arith.constant dense<0.000000e+00> : vector<128x256xf32>
    %142 = tpu.matmul %141, %6, %cst_102 {dimension_numbers = #tpu.dot_dimension_numbers<[1], [0], [0], [1], [0, 0, 1, 1], [], []>} : vector<128x256xf32>, vector<256x256xf32>, vector<128x256xf32> -> vector<128x256xf32>
    %143 = vector.extract_strided_slice %142 {offsets = [0, 0], sizes = [128, 128], strides = [1, 1]} : vector<128x256xf32> to vector<128x128xf32>
    %144 = vector.extract_strided_slice %142 {offsets = [0, 128], sizes = [128, 128], strides = [1, 1]} : vector<128x256xf32> to vector<128x128xf32>
    %c0_103 = arith.constant 0 : index
    %c5 = arith.constant 5 : index
    %c0_104 = arith.constant 0 : index
    %c0_105 = arith.constant 0 : index
    %145 = vector.load %arg4[%c0_103, %c5, %c0_104, %c0_105] : memref<1x6x128x128xf32, #tpu.memory_space<vmem>>, vector<1x1x128x128xf32>
    %146 = vector.shape_cast %145 : vector<1x1x128x128xf32> to vector<128x128xf32>
    %c0_106 = arith.constant 0 : index
    %c5_107 = arith.constant 5 : index
    %c0_108 = arith.constant 0 : index
    %c0_109 = arith.constant 0 : index
    %147 = vector.load %arg5[%c0_106, %c5_107, %c0_108, %c0_109] : memref<1x6x128x128xf32, #tpu.memory_space<vmem>>, vector<1x1x128x128xf32>
    %148 = vector.shape_cast %147 : vector<1x1x128x128xf32> to vector<128x128xf32>
    %c0_110 = arith.constant 0 : index
    %c5_111 = arith.constant 5 : index
    %c0_112 = arith.constant 0 : index
    %c0_113 = arith.constant 0 : index
    %149 = vector.load %arg6[%c0_110, %c5_111, %c0_112, %c0_113] : memref<1x6x128x128xf32, #tpu.memory_space<vmem>>, vector<1x1x128x128xf32>
    %150 = vector.shape_cast %149 : vector<1x1x128x128xf32> to vector<128x128xf32>
    %c0_114 = arith.constant 0 : index
    %c5_115 = arith.constant 5 : index
    %c0_116 = arith.constant 0 : index
    %c0_117 = arith.constant 0 : index
    %151 = vector.load %arg7[%c0_114, %c5_115, %c0_116, %c0_117] : memref<1x6x128x128xf32, #tpu.memory_space<vmem>>, vector<1x1x128x128xf32>
    %152 = vector.shape_cast %151 : vector<1x1x128x128xf32> to vector<128x128xf32>
    %153 = arith.mulf %143, %146 : vector<128x128xf32>
    %154 = arith.mulf %144, %148 : vector<128x128xf32>
    %155 = arith.subf %153, %154 : vector<128x128xf32>
    %156 = arith.addf %155, %150 : vector<128x128xf32>
    %157 = arith.mulf %143, %148 : vector<128x128xf32>
    %158 = arith.mulf %144, %146 : vector<128x128xf32>
    %159 = arith.addf %157, %158 : vector<128x128xf32>
    %160 = arith.addf %159, %152 : vector<128x128xf32>
    %161 = tpu.concatenate %156, %160 in 0 : vector<128x128xf32>, vector<128x128xf32> -> vector<256x128xf32>
    %cst_118 = arith.constant dense<0.000000e+00> : vector<256x128xf32>
    %162 = tpu.matmul %5, %161, %cst_118 {dimension_numbers = #tpu.dot_dimension_numbers<[1], [0], [0], [1], [0, 0, 1, 1], [], []>} : vector<256x256xf32>, vector<256x128xf32>, vector<256x128xf32> -> vector<256x128xf32>
    %163 = vector.extract_strided_slice %162 {offsets = [0, 0], sizes = [128, 128], strides = [1, 1]} : vector<256x128xf32> to vector<128x128xf32>
    %164 = vector.extract_strided_slice %162 {offsets = [128, 0], sizes = [128, 128], strides = [1, 1]} : vector<256x128xf32> to vector<128x128xf32>
    %165 = tpu.concatenate %163, %164 in 1 : vector<128x128xf32>, vector<128x128xf32> -> vector<128x256xf32>
    %cst_119 = arith.constant dense<0.000000e+00> : vector<128x256xf32>
    %166 = tpu.matmul %165, %6, %cst_119 {dimension_numbers = #tpu.dot_dimension_numbers<[1], [0], [0], [1], [0, 0, 1, 1], [], []>} : vector<128x256xf32>, vector<256x256xf32>, vector<128x256xf32> -> vector<128x256xf32>
    %167 = vector.extract_strided_slice %166 {offsets = [0, 0], sizes = [128, 128], strides = [1, 1]} : vector<128x256xf32> to vector<128x128xf32>
    %168 = vector.extract_strided_slice %166 {offsets = [0, 128], sizes = [128, 128], strides = [1, 1]} : vector<128x256xf32> to vector<128x128xf32>
    %169 = arith.mulf %167, %167 : vector<128x128xf32>
    %170 = arith.mulf %168, %168 : vector<128x128xf32>
    %171 = arith.addf %169, %170 : vector<128x128xf32>
    %cst_120 = arith.constant 1.000000e-30 : f32
    %172 = vector.broadcast %cst_120 : f32 to vector<128x128xf32>
    %173 = arith.maximumf %171, %172 : vector<128x128xf32>
    %174 = math.rsqrt %173 : vector<128x128xf32>
    %cst_121 = arith.constant 1.000000e-30 : f32
    %175 = vector.broadcast %cst_121 : f32 to vector<128x128xf32>
    %176 = arith.cmpf olt, %171, %175 : vector<128x128xf32>
    %177 = arith.mulf %167, %174 : vector<128x128xf32>
    %cst_122 = arith.constant 1.000000e+00 : f32
    %178 = vector.broadcast %cst_122 : f32 to vector<128x128xf32>
    %179 = arith.select %176, %178, %177 : vector<128x128xi1>, vector<128x128xf32>
    %180 = arith.mulf %168, %174 : vector<128x128xf32>
    %cst_123 = arith.constant 0.000000e+00 : f32
    %181 = vector.broadcast %cst_123 : f32 to vector<128x128xf32>
    %182 = arith.select %176, %181, %180 : vector<128x128xi1>, vector<128x128xf32>
    %c0_124 = arith.constant 0 : index
    %c0_125 = arith.constant 0 : index
    %c0_126 = arith.constant 0 : index
    %183 = vector.load %arg12[%c0_124, %c0_125, %c0_126] : memref<1x128x128xf32, #tpu.memory_space<vmem>>, vector<1x128x128xf32>
    %184 = vector.shape_cast %183 : vector<1x128x128xf32> to vector<128x128xf32>
    %c0_127 = arith.constant 0 : index
    %c0_128 = arith.constant 0 : index
    %c0_129 = arith.constant 0 : index
    %185 = vector.load %arg13[%c0_127, %c0_128, %c0_129] : memref<1x128x128xf32, #tpu.memory_space<vmem>>, vector<1x128x128xf32>
    %186 = vector.shape_cast %185 : vector<1x128x128xf32> to vector<128x128xf32>
    %187 = arith.mulf %184, %184 : vector<128x128xf32>
    %188 = arith.mulf %186, %186 : vector<128x128xf32>
    %189 = arith.addf %187, %188 : vector<128x128xf32>
    %190 = math.sqrt %189 : vector<128x128xf32>
    %191 = arith.mulf %190, %179 : vector<128x128xf32>
    %c0_130 = arith.constant 0 : index
    %c0_131 = arith.constant 0 : index
    %c0_132 = arith.constant 0 : index
    %192 = vector.load %arg12[%c0_130, %c0_131, %c0_132] : memref<1x128x128xf32, #tpu.memory_space<vmem>>, vector<1x128x128xf32>
    %193 = vector.shape_cast %192 : vector<1x128x128xf32> to vector<128x128xf32>
    %194 = vector.shape_cast %191 : vector<128x128xf32> to vector<1x128x128xf32>
    tpu.vector_store %arg12[%c0_130, %c0_131, %c0_132], %194 {strides = array<i32>} : memref<1x128x128xf32, #tpu.memory_space<vmem>>, vector<1x128x128xf32>,
    %195 = arith.mulf %190, %182 : vector<128x128xf32>
    %c0_133 = arith.constant 0 : index
    %c0_134 = arith.constant 0 : index
    %c0_135 = arith.constant 0 : index
    %196 = vector.load %arg13[%c0_133, %c0_134, %c0_135] : memref<1x128x128xf32, #tpu.memory_space<vmem>>, vector<1x128x128xf32>
    %197 = vector.shape_cast %196 : vector<1x128x128xf32> to vector<128x128xf32>
    %198 = vector.shape_cast %195 : vector<128x128xf32> to vector<1x128x128xf32>
    tpu.vector_store %arg13[%c0_133, %c0_134, %c0_135], %198 {strides = array<i32>} : memref<1x128x128xf32, #tpu.memory_space<vmem>>, vector<1x128x128xf32>,
    return
  }
  func.func @transform_0(%arg0: i32, %arg1: i32) -> (i32, i32, i32) {
    %c0_i32 = arith.constant 0 : i32
    %c0_i32_0 = arith.constant 0 : i32
    %c0_i32_1 = arith.constant 0 : i32
    return %arg0, %c0_i32, %c0_i32_0 : i32, i32, i32
  }
  func.func @transform_1(%arg0: i32, %arg1: i32) -> (i32, i32, i32) {
    %c0_i32 = arith.constant 0 : i32
    %c0_i32_0 = arith.constant 0 : i32
    %c0_i32_1 = arith.constant 0 : i32
    return %arg0, %c0_i32, %c0_i32_0 : i32, i32, i32
  }
  func.func @transform_2(%arg0: i32, %arg1: i32) -> (i32, i32, i32, i32) {
    %c0_i32 = arith.constant 0 : i32
    %c0_i32_0 = arith.constant 0 : i32
    %c0_i32_1 = arith.constant 0 : i32
    %c0_i32_2 = arith.constant 0 : i32
    return %arg1, %c0_i32, %c0_i32_0, %c0_i32_1 : i32, i32, i32, i32
  }
  func.func @transform_3(%arg0: i32, %arg1: i32) -> (i32, i32, i32, i32) {
    %c0_i32 = arith.constant 0 : i32
    %c0_i32_0 = arith.constant 0 : i32
    %c0_i32_1 = arith.constant 0 : i32
    %c0_i32_2 = arith.constant 0 : i32
    return %arg1, %c0_i32, %c0_i32_0, %c0_i32_1 : i32, i32, i32, i32
  }
  func.func @transform_4(%arg0: i32, %arg1: i32) -> (i32, i32, i32, i32) {
    %c0_i32 = arith.constant 0 : i32
    %c0_i32_0 = arith.constant 0 : i32
    %c0_i32_1 = arith.constant 0 : i32
    %c0_i32_2 = arith.constant 0 : i32
    return %arg1, %c0_i32, %c0_i32_0, %c0_i32_1 : i32, i32, i32, i32
  }
  func.func @transform_5(%arg0: i32, %arg1: i32) -> (i32, i32, i32, i32) {
    %c0_i32 = arith.constant 0 : i32
    %c0_i32_0 = arith.constant 0 : i32
    %c0_i32_1 = arith.constant 0 : i32
    %c0_i32_2 = arith.constant 0 : i32
    return %arg1, %c0_i32, %c0_i32_0, %c0_i32_1 : i32, i32, i32, i32
  }
  func.func @transform_6(%arg0: i32, %arg1: i32) -> (i32, i32) {
    %c0_i32 = arith.constant 0 : i32
    %c0_i32_0 = arith.constant 0 : i32
    %c0_i32_1 = arith.constant 0 : i32
    return %c0_i32, %c0_i32_0 : i32, i32
  }
  func.func @transform_7(%arg0: i32, %arg1: i32) -> (i32, i32) {
    %c0_i32 = arith.constant 0 : i32
    %c0_i32_0 = arith.constant 0 : i32
    %c0_i32_1 = arith.constant 0 : i32
    return %c0_i32, %c0_i32_0 : i32, i32
  }
  func.func @transform_8(%arg0: i32, %arg1: i32) -> (i32, i32) {
    %c0_i32 = arith.constant 0 : i32
    %c0_i32_0 = arith.constant 0 : i32
    %c0_i32_1 = arith.constant 0 : i32
    return %c0_i32, %c0_i32_0 : i32, i32
  }
  func.func @transform_9(%arg0: i32, %arg1: i32) -> (i32, i32) {
    %c0_i32 = arith.constant 0 : i32
    %c0_i32_0 = arith.constant 0 : i32
    %c0_i32_1 = arith.constant 0 : i32
    return %c0_i32, %c0_i32_0 : i32, i32
  }
  func.func @transform_10(%arg0: i32, %arg1: i32) -> (i32, i32, i32) {
    %c0_i32 = arith.constant 0 : i32
    %c0_i32_0 = arith.constant 0 : i32
    %c0_i32_1 = arith.constant 0 : i32
    return %arg0, %c0_i32, %c0_i32_0 : i32, i32, i32
  }
  func.func @transform_11(%arg0: i32, %arg1: i32) -> (i32, i32, i32) {
    %c0_i32 = arith.constant 0 : i32
    %c0_i32_0 = arith.constant 0 : i32
    %c0_i32_1 = arith.constant 0 : i32
    return %arg0, %c0_i32, %c0_i32_0 : i32, i32, i32
  }
}

</mosaic_0001>

<bundles_post_ra>
// kernel: _net_pallas.1
= control target key start
LH: loop header
LB: loop body
LE: loop exit
PB: predicated region body
PF: predicated region fallthrough
CT: control target
= control target key end

     0   :  { %s10613_s0 = inlined_call_operand.hbm [shape: f32[2,128,128], index: 0, kind: input, shape index: {}]   ;;  %s10614_s1 = inlined_call_operand.hbm [shape: f32[2,128,128], index: 1, kind: input, shape index: {}]   ;;  %s10615_s2 = inlined_call_operand.hbm [shape: f32[10,6,128,128], index: 2, kind: input, shape index: {}]   ;;  %s10616_s3 = inlined_call_operand.hbm [shape: f32[10,6,128,128], index: 3, kind: input, shape index: {}]   ;;  %s10617_s4 = inlined_call_operand.hbm [shape: f32[10,6,128,128], index: 4, kind: input, shape index: {}]   ;;  %s10618_s5 = inlined_call_operand.hbm [shape: f32[10,6,128,128], index: 5, kind: input, shape index: {}]   ;;  %s10619_s6 = inlined_call_operand.hbm [shape: f32[256,256], index: 6, kind: input, shape index: {}]   ;;  %s10620_s7 = inlined_call_operand.hbm [shape: f32[256,256], index: 7, kind: input, shape index: {}]   ;;  %s10621_s8 = inlined_call_operand.hbm [shape: f32[256,256], index: 8, kind: input, shape index: {}]   ;;  %s10622_s9 = inlined_call_operand.hbm [shape: f32[256,256], index: 9, kind: input, shape index: {}]   ;;  %s10623_s10 = inlined_call_operand.vmem [shape: f32[2,128,128], index: 10, kind: output, shape index: {0}]   ;;  %s10624_s11 = inlined_call_operand.vmem [shape: f32[2,128,128], index: 11, kind: output, shape index: {1}]  }
   0x1   :  { %10828 = sst [smem:[#allocation121_spill]] %s10613_s0 }
   0x2   :  { %10829 = sst [smem:[#allocation122_spill]] %s10614_s1 }
   0x3   :  { %10830 = sst [smem:[#allocation123_spill]] %s10616_s3 }
   0x4   :  { %10831 = sst [smem:[#allocation124_spill]] %s10619_s6 }
   0x5   :  { %10832 = sst [smem:[#allocation125_spill]] %s10620_s7 }
   0x6   :  { %10833 = sst [smem:[#allocation126_spill]] %s10621_s8 }
   0x7   :  { %10834 = sst [smem:[#allocation127_spill]] %s10623_s10 }
   0x8   :  { %10835 = sst [smem:[#allocation128_spill]] %s10624_s11 }
   0x9   :  { %17 = vsyncpa [#allocation3], 0 }
   0xa   :  { %19 = vsyncpa [#allocation3 + $0x1], 0 }
   0xb   :  { %20 = vsyncpa [#allocation5], 0 }
   0xc   :  { %22 = vsyncpa [#allocation5 + $0x1], 0 }
   0xd   :  { %23 = vsyncpa [#allocation8], 0 }
   0xe   :  { %25 = vsyncpa [#allocation8 + $0x1], 0 }
   0xf   :  { %26 = vsyncpa [#allocation11], 0 }
  0x10   :  { %28 = vsyncpa [#allocation11 + $0x1], 0 }
  0x11   :  { %29 = vsyncpa [#allocation14], 0 }
  0x12   :  { %30 = vsyncpa [#allocation17], 0  ;;  %s6838_s17 = smov 0   ;;  %s6840_s18 = smov 0  }
  0x13   :  { %s6842_s19 = smov 0   ;;  %s6844_s20 = smov 0  }
  0x14   :  { %s6846_s21 = smov 0   ;;  %s6848_s22 = smov 0  }
  0x15   :  { %s6850_s23 = smov 0   ;;  %s6852_s24 = smov 0  }
  0x16   :  { %s6854_s25 = smov 0   ;;  %s6856_s26 = smov 0  }
  0x17   :  { %s6858_s27 = smov 0  }
  0x18 LB: > { %10836 = sst [smem:[#allocation26_spill]] %s6725_s18  ;;  %s10625_s28 = sadd.s32 4294967295, %s6761_s27   ;;  %s6761_s27 = sphi %s6858_s27, %s36_s27   ;;  %s6757_s26 = sphi %s6856_s26, %s11268_s26   ;;  %s6753_s25 = sphi %s6854_s25, %s11263_s25   ;;  %s6749_s24 = sphi %s6852_s24, %s11267_s24   ;;  %s6745_s23 = sphi %s6850_s23, %s11262_s23   ;;  %s6741_s22 = sphi %s6848_s22, %s11266_s22   ;;  %s6737_s21 = sphi %s6846_s21, %s11265_s21   ;;  %s6733_s20 = sphi %s6844_s20, %s11260_s20   ;;  %s6729_s19 = sphi %s6842_s19, %s11259_s19   ;;  %s6725_s18 = sphi %s6840_s18, %s11258_s18   ;;  %s6721_s17 = sphi %s6838_s17, %s11257_s17  }
  0x19   : > { %10837 = sst [smem:[#allocation27_spill]] %s6729_s19  ;;  %p120_p0 = scmp.ne.s32.totalorder %s6725_s18, %s6721_s17 }
  0x1a   : > { %10838 = sst [smem:[#allocation28_spill]] %s6737_s21  ;;  %p6895_p1 = scmp.eq.s32.totalorder %s10625_s28, 0 }
  0x1b   : > { %10839 = sst [smem:[#allocation29_spill]] %s6745_s23  ;;  %p5332_p2 = scmp.ge.s32.totalorder %s6761_s27, 1 }
  0x1c   : > { %10840 = sst [smem:[#allocation30_spill]] %s6749_s24  ;;  %p345_p3 = scmp.lt.s32.totalorder %s6761_s27, 21 }
  0x1d   : > { %10841 = sst [smem:[#allocation31_spill]] %s6753_s25  ;;  %p6903_p4 = por %p120_p0, %p6895_p1 }
  0x1e   : > { %s10842_s29 = scalar_select %p6895_p1, 1, 0 }
  0x1f   : > { %s10844_s30 = scalar_select %p6903_p4, 1, 0 }
  0x20   : > { %10843 = sst [smem:[#allocation32_spill]] %s10842_s29  ;;  %p6907_p5 = pnand %p5332_p2, %p345_p3 }
  0x21   : > { %10845 = sst [smem:[#allocation33_spill]] %s10844_s30  ;;  %s6763_s13 = smov [#allocation12]  }
  0x22   : > { %s357_s14 = sshll.u32 %s6763_s13, 4  ;;  %p5723_p6 = pneg %p6907_p5  ;;  %s358_s14 = int_to_ptr.vmem [resolvable:$true] %s357_s14 }
  0x23   : > { %s6764_s16 = smov [#allocation13]   ;;  %s6382_s28 = scalar_lea.vmem %s358_s14, 8192 }
  0x24   : > { %p6915_p7 = pnand %p5723_p6, %p6895_p1  ;;  %s370_s17 = sshll.u32 %s6764_s16, 4  ;;  %s371_s17 = int_to_ptr.vmem [resolvable:$true] %s370_s17 }
  0x25   : > { %p6383_p9 = scmp.ne.s32.totalorder %s358_s14, %s6382_s28  ;;  %p6390_p12 = scmp.lt.s32.totalorder %s358_s14, %s358_s14 }
  0x26   : > { %p10641_p8 = pneg %p6915_p7  ;;  %p6391_p13 = scmp.lt.s32.totalorder %s6382_s28, %s6382_s28 }
  0x28   : > { %p6385_p10 = pnand %p6383_p9, %p10641_p8  ;;  %p6392_p0 = por %p6391_p13, %p6390_p12 }
  0x2a   : > { %p6386_p11 = pneg %p6385_p10 }
  0x2c   : > { %p6393_p2 = pnand %p6392_p0, %p6386_p11 }
  0x2e   : > { %6396 = shalt.err (!%p6393_p2)
}
  0x2f   : > { %s10627_s13 = smov 256   ;;  %s10629_s23 = smov 16  }
  0x30   : > { %s10848_s6 = sld [smem:[#allocation124_spill]]  ;;  %s6408_s10 = scalar_lea.vmem %s371_s17, 8192 }
  0x31   : > { %p6409_p3 = scmp.ne.s32.totalorder %s371_s17, %s6408_s10  ;;  %p6416_p10 = scmp.lt.s32.totalorder %s371_s17, %s371_s17 }
  0x32   : > { %p6417_p11 = scmp.lt.s32.totalorder %s6408_s10, %s6408_s10 }
  0x33   : > { %p6411_p6 = pnand %p6409_p3, %p10641_p8 }
  0x34   : > { %p6418_p12 = por %p6417_p11, %p6416_p10 }
  0x35   : > { %p6412_p9 = pneg %p6411_p6 }
  0x36   : > { %5726 = dma.hbm_to_vmem [thread:$0]  (!%p6915_p7), %s10848_s6, 8192, %s358_s14, [#allocation11], %s10627_s13, %s10627_s13, %s10629_s23  }
  0x37   : > { %p6419_p13 = pnand %p6418_p12, %p6412_p9 }
  0x39   : > { %6422 = shalt.err (!%p6419_p13)
}
  0x3a   : > { %s10849_s7 = sld [smem:[#allocation125_spill]]  ;;  %s45_s10 = sadd.s32 1, %s6753_s25 }
  0x3b   : > { %s48_s11 = sadd.s32 1, %s6757_s26  ;;  %p46_p0 = scmp.ge.s32.totalorder %s45_s10, 10 }
  0x3c   : > { %s55_s24 = sadd.s32 1, %s6741_s22  ;;  %p62_p2 = scmp.ne.s32.totalorder %s6741_s22, %s6737_s21 }
  0x3d   : > { %p10643_p3 = scmp.eq.s32.totalorder %s6761_s27, 0  ;;  %s11270_s10 = smov (%p46_p0, %s45_s10), 0 }
  0x3e   : > { %10850 = sst [smem:[#allocation34_spill]] %s11270_s10  ;;  %s11272_s11 = smov (!%p46_p0, %s48_s11), %s6757_s26 }
  0x3f   : > { %p6954_p6 = por %p10643_p3, %p62_p2  ;;  %p68_p9 = scmp.ne.s32.totalorder %s6737_s21, %s6733_s20 }
  0x40   : > { %5729 = dma.hbm_to_vmem [thread:$0]  (!%p6915_p7), %s10849_s7, 8192, %s371_s17, [#allocation14], %s10627_s13, %s10627_s13, %s10629_s23  }
  0x41   : > { %p50_p10 = scmp.ge.s32.totalorder %s11272_s11, 2  ;;  %s104_s17 = ssub.s32 %s6753_s25, %s11270_s10 }
  0x42   : > { %p6964_p11 = por %p6895_p1, %p68_p9  ;;  %p6968_p12 = scmp.eq.s32.totalorder %s104_s17, 0 }
  0x43   : > { %s11274_s11 = smov (%p50_p10, %s11272_s11), 0  ;;  %p10642_p13 = scmp.lt.s32.totalorder %s6761_s27, 20 }
  0x44   : > { %s10852_s16 = scalar_select %p6964_p11, 1, 0 }
  0x45   : > { %10855 = sst [smem:[#allocation36_spill]] %s11274_s11  ;;  %s10635_s13 = sand.u32 1, %s6741_s22  }
  0x46   : > { %10853 = sst [smem:[#allocation35_spill]] %s10852_s16  ;;  %s52_s23 = ssub.s32 %s6757_s26, %s11274_s11 }
  0x47   : > { %s6980_s6 = sshll.u32 %s10635_s13, 7  ;;  %p53_p0 = scmp.eq.s32.totalorder %s52_s23, 0 }
  0x48   : > { %s10646_s20 = sshll.u32 %s6757_s26, 11  ;;  %p6987_p2 = pnand %p10642_p13, %p6954_p6 }
  0x49   : > { %s6992_s17 = scalar_select %p53_p0, %s6741_s22, %s55_s24  }
  0x4a   : > { %s6995_s10 = sand.u32 1, %s6761_s27   ;;  %s10858_s1 = sld [smem:[#allocation122_spill]] }
  0x4b   : > { %10857 = sst [smem:[#allocation37_spill]] %s6992_s17  ;;  %s435_s23 = scalar_lea.vmem [#allocation4], %s6980_s6 }
  0x4c   : > { %s442_s30 = sshll.u32 %s435_s23, 4  ;;  %s10647_s14 = scalar_lea.sflag [#allocation5], %s6995_s10  ;;  %s443_s30 = int_to_ptr.vmem [resolvable:$true] %s442_s30 }
  0x4d   : > { %p10652_p6 = pneg %p6987_p2  ;;  %s6436_s16 = scalar_lea.vmem %s443_s30, 2048 }
  0x4e   : > { %p6437_p9 = scmp.ne.s32.totalorder %s443_s30, %s6436_s16  ;;  %s6767_s24 = smov [#allocation4]  }
  0x4f   : > { %s6441_s17 = sshll.u32 %s6767_s24, 4  ;;  %s6442_s17 = int_to_ptr.vmem [resolvable:$false] %s6441_s17 }
  0x50   : > { %s441_s13 = scalar_lea.hbm %s10858_s1, %s10646_s20  ;;  %p6439_p10 = pnand %p6437_p9, %p10652_p6 }
  0x51   : > { %s6443_s21 = scalar_lea.vmem %s6442_s17, 4096  ;;  %p6444_p8 = scmp.lt.s32.totalorder %s443_s30, %s6442_s17 }
  0x52   : > { %p6440_p0 = pneg %p6439_p10  ;;  %p6445_p13 = scmp.lt.s32.totalorder %s6443_s21, %s6436_s16 }
  0x54   : > { %p6446_p3 = por %p6445_p13, %p6444_p8 }
  0x56   : > { %p6447_p1 = pnand %p6446_p3, %p6440_p0 }
  0x58   : > { %6450 = shalt.err (!%p6447_p1)
}
  0x59   : > { %s10648_s29 = smov 128   ;;  %s10650_s11 = smov 8  }
  0x5a   : > { %5742 = dma.hbm_to_vmem [thread:$0]  (!%p6987_p2), %s441_s13, 2048, %s443_s30, %s10647_s14, %s10648_s29, %s10648_s29, %s10650_s11  }
  0x5b   : > { %s107_s21 = sadd.s32 1, %s6729_s19  ;;  %p114_p1 = scmp.ne.s32.totalorder %s6729_s19, %s6725_s18 }
  0x5c   : > { %s7022_s16 = scalar_select %p6968_p12, %s6729_s19, %s107_s21  }
  0x5d   : > { %p10860_p8 = scmp.eq.s32.totalorder %s6761_s27, 0  ;;  %s454_s17 = sand.u32 1, %s6729_s19  }
  0x5e   : > { %10859 = sst [smem:[#allocation38_spill]] %s7022_s16  ;;  %s7027_s23 = smul.u32 768, %s454_s17 }
  0x5f   : > { %p116_p3 = por %p114_p1, %p10860_p8  ;;  %s7030_s24 = smul.u32 12288, %s6753_s25 }
  0x60   : > { %p10861_p13 = scmp.lt.s32.totalorder %s6761_s27, 20  ;;  %s10863_s3 = sld [smem:[#allocation123_spill]] }
  0x61   : > { %s477_s21 = scalar_lea.vmem [#allocation7], %s7027_s23  ;;  %s6770_s29 = smov [#allocation15]  }
  0x62   : > { %p7034_p9 = pnand %p10861_p13, %p116_p3  ;;  %s484_s14 = sshll.u32 %s477_s21, 4  ;;  %s485_s14 = int_to_ptr.vmem [resolvable:$true] %s484_s14 }
  0x63   : > { %s383_s17 = sshll.u32 %s6770_s29, 4  ;;  %s10654_s11 = scalar_lea.sflag [#allocation8], %s6995_s10  ;;  %s7043_s17 = int_to_ptr.vmem [resolvable:$true] %s383_s17 }
  0x64   : > { %p10653_p12 = pneg %p7034_p9  ;;  %s6464_s1 = scalar_lea.vmem %s485_s14, 12288 }
  0x65   : > { %p6465_p10 = scmp.ne.s32.totalorder %s485_s14, %s6464_s1  ;;  %s6771_s30 = smov [#allocation7]  }
  0x66   : > { %s483_s28 = scalar_lea.hbm %s10863_s3, %s7030_s24  ;;  %s6469_s13 = sshll.u32 %s6771_s30, 4  ;;  %s6470_s13 = int_to_ptr.vmem [resolvable:$false] %s6469_s13 }
  0x67   : > { %p6467_p0 = pnand %p6465_p10, %p10653_p12  ;;  %s6471_s3 = scalar_lea.vmem %s6470_s13, 24576 }
  0x68   : > { %p6472_p8 = scmp.lt.s32.totalorder %s485_s14, %s6470_s13  ;;  %p6473_p3 = scmp.lt.s32.totalorder %s6471_s3, %s6464_s1 }
  0x69   : > { %p6468_p1 = pneg %p6467_p0 }
  0x6a   : > { %p6474_p13 = por %p6473_p3, %p6472_p8 }
  0x6c   : > { %p6475_p6 = pnand %p6474_p13, %p6468_p1 }
  0x6e   : > { %6478 = shalt.err (!%p6475_p6)
}
  0x6f   : > { %s10864_s29 = smov 8   ;;  %s10865_s21 = smov 128  }
  0x70   : > { %5748 = dma.hbm_to_vmem [thread:$0]  (!%p7034_p9), %s483_s28, 12288, %s485_s14, %s10654_s11, %s10865_s21, %s10865_s21, %s10864_s29  }
  0x71   : > { %s6490_s30 = scalar_lea.vmem %s7043_s17, 8192  ;;  %p10866_p0 = pneg %p6915_p7 }
  0x72   : > { %p6491_p10 = scmp.ne.s32.totalorder %s7043_s17, %s6490_s30  ;;  %p6498_p6 = scmp.lt.s32.totalorder %s7043_s17, %s7043_s17 }
  0x73   : > { %p6499_p1 = scmp.lt.s32.totalorder %s6490_s30, %s6490_s30 }
  0x74   : > { %p6493_p12 = pnand %p6491_p10, %p10866_p0 }
  0x75   : > { %p6500_p3 = por %p6499_p1, %p6498_p6 }
  0x76   : > { %p6494_p8 = pneg %p6493_p12 }
  0x78   : > { %p6501_p13 = pnand %p6500_p3, %p6494_p8 }
  0x7a   : > { %6504 = shalt.err (!%p6501_p13)
}
  0x7b   : > { %s10867_s1 = smov 16   ;;  %s10868_s3 = smov 256  }
  0x7c   : > { %s10869_s8 = sld [smem:[#allocation126_spill]]  ;;  %s6772_s28 = smov [#allocation16]  }
  0x7d   : > { %s396_s11 = sshll.u32 %s6772_s28, 4  ;;  %s10870_s25 = sshll.u32 %s6757_s26, 11  ;;  %s397_s11 = int_to_ptr.vmem [resolvable:$true] %s396_s11 }
  0x7e   : > { %s10871_s0 = sld [smem:[#allocation121_spill]]  ;;  %s6516_s18 = scalar_lea.vmem %s397_s11, 8192 }
  0x7f   : > { %p6517_p12 = scmp.ne.s32.totalorder %s397_s11, %s6516_s18  ;;  %p10872_p10 = pmov %p10866_p0 }
  0x80   : > { %p6524_p6 = scmp.lt.s32.totalorder %s397_s11, %s397_s11  ;;  %p6525_p1 = scmp.lt.s32.totalorder %s6516_s18, %s6516_s18 }
  0x81   : > { %p6519_p0 = pnand %p6517_p12, %p10872_p10 }
  0x82   : > { %5732 = dma.hbm_to_vmem [thread:$0]  (!%p6915_p7), %s10869_s8, 8192, %s7043_s17, [#allocation14], %s10868_s3, %s10868_s3, %s10867_s1  }
  0x83   : > { %p6520_p8 = pneg %p6519_p0  ;;  %p6526_p3 = por %p6525_p1, %p6524_p6 }
  0x84   : > { %s7079_s19 = scalar_lea.hbm %s10871_s0, %s10870_s25 }
  0x85   : > { %p6527_p13 = pnand %p6526_p3, %p6520_p8 }
  0x87   : > { %6530 = shalt.err (!%p6527_p13)
}
  0x88   : > { %5735 = dma.hbm_to_vmem [thread:$0]  (!%p6915_p7), %s10622_s9, 8192, %s397_s11, [#allocation17], %s10868_s3, %s10868_s3, %s10867_s1  }
  0x89   : > { %s414_s25 = scalar_lea.vmem [#allocation2], %s6980_s6  ;;  %s462_s28 = scalar_lea.hbm %s10615_s2, %s7030_s24 }
  0x8a   : > { %s421_s13 = sshll.u32 %s414_s25, 4  ;;  %s10873_s30 = sand.u32 1, %s6741_s22   ;;  %s422_s13 = int_to_ptr.vmem [resolvable:$true] %s421_s13 }
  0x8b   : > { %s411_s15 = scalar_lea.sflag [#allocation3], %s10873_s30  ;;  %s6544_s0 = scalar_lea.vmem %s422_s13, 2048 }
  0x8c   : > { %p6545_p12 = scmp.ne.s32.totalorder %s422_s13, %s6544_s0  ;;  %p10874_p10 = pneg %p6987_p2 }
  0x8d   : > { %s6773_s17 = smov [#allocation2]  }
  0x8e   : > { %p6547_p0 = pnand %p6545_p12, %p10874_p10  ;;  %s6549_s16 = sshll.u32 %s6773_s17, 4  ;;  %s6550_s16 = int_to_ptr.vmem [resolvable:$false] %s6549_s16 }
  0x8f   : > { %s6551_s8 = scalar_lea.vmem %s6550_s16, 4096  ;;  %p6552_p7 = scmp.lt.s32.totalorder %s422_s13, %s6550_s16 }
  0x90   : > { %p6548_p8 = pneg %p6547_p0  ;;  %p6553_p6 = scmp.lt.s32.totalorder %s6551_s8, %s6544_s0 }
  0x92   : > { %p6554_p1 = por %p6553_p6, %p6552_p7 }
  0x94   : > { %p6555_p3 = pnand %p6554_p1, %p6548_p8 }
  0x96   : > { %6558 = shalt.err (!%p6555_p3)
}
  0x97   : > { %5739 = dma.hbm_to_vmem [thread:$0]  (!%p6987_p2), %s7079_s19, 2048, %s422_s13, %s411_s15, %s10865_s21, %s10865_s21, %s10864_s29  }
  0x98   : > { %s456_s6 = scalar_lea.vmem [#allocation6], %s7027_s23  ;;  %s504_s0 = scalar_lea.hbm %s10617_s4, %s7030_s24 }
  0x99   : > { %s463_s11 = sshll.u32 %s456_s6, 4  ;;  %p10875_p12 = pneg %p7034_p9  ;;  %s464_s11 = int_to_ptr.vmem [resolvable:$true] %s463_s11 }
  0x9a   : > { %s6572_s8 = scalar_lea.vmem %s464_s11, 12288  ;;  %s6774_s7 = smov [#allocation6]  }
  0x9b   : > { %p6573_p13 = scmp.ne.s32.totalorder %s464_s11, %s6572_s8  ;;  %s6577_s25 = sshll.u32 %s6774_s7, 4  ;;  %s6578_s25 = int_to_ptr.vmem [resolvable:$false] %s6577_s25 }
  0x9c   : > { %s6579_s18 = scalar_lea.vmem %s6578_s25, 24576  ;;  %p6580_p8 = scmp.lt.s32.totalorder %s464_s11, %s6578_s25 }
  0x9d   : > { %p6575_p10 = pnand %p6573_p13, %p10875_p12  ;;  %p6581_p7 = scmp.lt.s32.totalorder %s6579_s18, %s6572_s8 }
  0x9f   : > { %p6576_p0 = pneg %p6575_p10  ;;  %p6582_p2 = por %p6581_p7, %p6580_p8 }
  0xa1   : > { %p6583_p6 = pnand %p6582_p2, %p6576_p0 }
  0xa3   : > { %6586 = shalt.err (!%p6583_p6)
}
  0xa4   : > { %s10876_s19 = scalar_lea.sflag [#allocation5], %s6995_s10  ;;  %s498_s30 = scalar_lea.vmem [#allocation9], %s7027_s23 }
  0xa5   : > { %5745 = dma.hbm_to_vmem [thread:$0]  (!%p7034_p9), %s462_s28, 12288, %s464_s11, %s10876_s19, %s10865_s21, %s10865_s21, %s10864_s29  }
  0xa6   : > { %s505_s15 = sshll.u32 %s498_s30, 4  ;;  %p10877_p3 = pmov %p10875_p12  ;;  %s506_s15 = int_to_ptr.vmem [resolvable:$true] %s505_s15 }
  0xa7   : > { %s6600_s17 = scalar_lea.vmem %s506_s15, 12288  ;;  %s6775_s16 = smov [#allocation9]  }
  0xa8   : > { %p6601_p1 = scmp.ne.s32.totalorder %s506_s15, %s6600_s17  ;;  %s6605_s6 = sshll.u32 %s6775_s16, 4  ;;  %s6606_s6 = int_to_ptr.vmem [resolvable:$false] %s6605_s6 }
  0xa9   : > { %s6607_s1 = scalar_lea.vmem %s6606_s6, 24576  ;;  %p6608_p10 = scmp.lt.s32.totalorder %s506_s15, %s6606_s6 }
  0xaa   : > { %p6603_p13 = pnand %p6601_p1, %p10877_p3  ;;  %p6609_p0 = scmp.lt.s32.totalorder %s6607_s1, %s6600_s17 }
  0xac   : > { %p6604_p12 = pneg %p6603_p13  ;;  %p6610_p8 = por %p6609_p0, %p6608_p10 }
  0xae   : > { %p6611_p7 = pnand %p6610_p8, %p6604_p12 }
  0xb0   : > { %6614 = shalt.err (!%p6611_p7)
}
  0xb1   : > { %s10878_s28 = scalar_lea.sflag [#allocation8], %s6995_s10  ;;  %s525_s25 = scalar_lea.hbm %s10618_s5, %s7030_s24 }
  0xb2   : > { %5751 = dma.hbm_to_vmem [thread:$0]  (!%p7034_p9), %s504_s0, 12288, %s506_s15, %s10878_s28, %s10865_s21, %s10865_s21, %s10864_s29  }
  0xb3   : > { %s519_s18 = scalar_lea.vmem [#allocation10], %s7027_s23  ;;  %s516_s13 = scalar_lea.sflag [#allocation11], %s6995_s10 }
  0xb4   : > { %s526_s19 = sshll.u32 %s519_s18, 4  ;;  %p10879_p6 = pmov %p10877_p3  ;;  %s527_s19 = int_to_ptr.vmem [resolvable:$true] %s526_s19 }
  0xb5   : > { %s6628_s14 = scalar_lea.vmem %s527_s19, 12288  ;;  %s6776_s30 = smov [#allocation10]  }
  0xb6   : > { %p6629_p2 = scmp.ne.s32.totalorder %s527_s19, %s6628_s14  ;;  %s6633_s17 = sshll.u32 %s6776_s30, 4  ;;  %s6634_s17 = int_to_ptr.vmem [resolvable:$false] %s6633_s17 }
  0xb7   : > { %s6635_s16 = scalar_lea.vmem %s6634_s17, 24576  ;;  %p6636_p13 = scmp.lt.s32.totalorder %s527_s19, %s6634_s17 }
  0xb8   : > { %p6631_p1 = pnand %p6629_p2, %p10879_p6  ;;  %p6637_p12 = scmp.lt.s32.totalorder %s6635_s16, %s6628_s14 }
  0xba   : > { %p6632_p3 = pneg %p6631_p1  ;;  %p6638_p10 = por %p6637_p12, %p6636_p13 }
  0xbc   : > { %p6639_p0 = pnand %p6638_p10, %p6632_p3 }
  0xbe   : > { %6642 = shalt.err (!%p6639_p0)
}
  0xbf   : > { %5754 = dma.hbm_to_vmem [thread:$0]  (!%p7034_p9), %s525_s25, 12288, %s527_s19, %s516_s13, %s10865_s21, %s10865_s21, %s10864_s29  }
  0xc0   : > { %538 = sbr.rel (%p6907_p5) target bundleno = 3822 (0xeee), region = 60 }
  0xc5   : > { %s10880_s10 = sld [smem:[#allocation28_spill]] }
  0xcb   : > { %s540_s24 = sand.u32 1, %s10880_s10  }
  0xcc   : > { %s5349_s0 = sshll.u32 %s540_s24, 7  ;;  %s541_s15 = scalar_lea.sflag [#allocation3], %s540_s24 }
  0xcd   : > { %s7161_s6 = scalar_lea.vmem [#allocation2], %s5349_s0 }
  0xce   : > { %6688 = dma.done.wait (%p6964_p11), %s541_s15, 2048  }
  0xcf   : > { %6690 = vsyncadd (%p6964_p11), %s541_s15, 4294965248  ;;  %s10882_s20 = sadd.s32 4294967295, %s6761_s27   ;;  %s7169_s21 = scalar_lea.vmem [#allocation4], %s5349_s0 }
  0xd0   : > { %s549_s1 = sand.u32 1, %s10882_s20  }
  0xd1   : > { %s550_s29 = scalar_lea.sflag [#allocation5], %s549_s1 }
  0xd2   : > { %6692 = dma.done.wait (%p6964_p11), %s550_s29, 2048  }
  0xd3   : > { %6694 = vsyncadd (%p6964_p11), %s550_s29, 4294965248  ;;  %s10883_s12 = sld [smem:[#allocation26_spill]] }
  0xd9   : > { %s560_s11 = sand.u32 1, %s10883_s12  }
  0xda   : > { %s5694_s3 = smul.u32 768, %s560_s11 }
  0xdc   : > { %s7176_s8 = scalar_lea.vmem [#allocation6], %s5694_s3 }
  0xdd   : > { %6696 = dma.done.wait (%p6903_p4), %s550_s29, 12288  }
  0xde   : > { %6698 = vsyncadd (%p6903_p4), %s550_s29, 4294955008  ;;  %s568_s7 = scalar_lea.sflag [#allocation8], %s549_s1  ;;  %s7182_s25 = scalar_lea.vmem [#allocation7], %s5694_s3 }
  0xdf   : > { %6700 = dma.done.wait (%p6903_p4), %s568_s7, 24576  }
  0xe0   : > { %6702 = vsyncadd (%p6903_p4), %s568_s7, 4294942720  ;;  %s7188_s18 = scalar_lea.vmem [#allocation9], %s5694_s3  ;;  %s586_s19 = scalar_lea.sflag [#allocation11], %s549_s1 }
  0xe1   : > { %s7190_s13 = scalar_lea.vmem [#allocation10], %s5694_s3 }
  0xe2   : > { %6704 = dma.done.wait (%p6903_p4), %s586_s19, 12288  }
  0xe3   : > { %6706 = vsyncadd (%p6903_p4), %s586_s19, 4294955008  ;;  %s10885_s14 = sld [smem:[#allocation32_spill]] }
  0xe9   : > { %p10886_p5 = scmp.ne.s32.totalorder %s10885_s14, 0 }
  0xeb   : > { %6708 = dma.done.wait (%p10886_p5), [#allocation11], 8192  }
  0xec   : > { %6710 = vsyncadd (%p10886_p5), [#allocation11], 4294959104 }
  0xed   : > { %6712 = dma.done.wait (%p10886_p5), [#allocation14], 16384  }
  0xee   : > { %6714 = vsyncadd (%p10886_p5), [#allocation14], 4294950912 }
  0xef   : > { %6716 = dma.done.wait (%p10886_p5), [#allocation17], 8192  }
  0xf0   : > { %6718 = vsyncadd (%p10886_p5), [#allocation17], 4294959104  ;;  %s10887_s30 = sld [smem:[#allocation30_spill]] }
  0xf1   : > { %s10888_s23 = sld [smem:[#allocation127_spill]] }
  0xf2   : > { %s10889_s20 = sld [smem:[#allocation128_spill]] }
  0xf3   : > { %s10890_s29 = sld [smem:[#allocation29_spill]] }
  0xf6   : > { %p674_p4 = scmp.lt.s32.totalorder %s10887_s30, 1 }
  0xf8   : > { %s11276_s30 = smov (!%p674_p4, %s10887_s30), 1 }
  0xf9   : > { %s5684_s17 = sshll.u32 %s11276_s30, 7  ;;  %p5359_p11 = scmp.ne.s32.totalorder %s10890_s29, 0 }
  0xfa   : > { %s7213_s24 = scalar_lea.vmem %s10888_s23, %s5684_s17  ;;  %s7218_s1 = scalar_lea.vmem %s10889_s20, %s5684_s17 }
  0xfb   : > { %687 = sbr.rel (%p5359_p11) target bundleno = 273 (0x111), region = 104 }
 0x100   : > { %v688_v0 = vld [vmem:[%s7161_s6] sm:$0xff]  ;;  %v689_v1 = vld [vmem:[%s7161_s6 + $0x8] sm:$0xff]  ;;  %v690_v2 = vld [vmem:[%s7161_s6 + $0x10] sm:$0xff] }
 0x101   : > { %704 = vst [vmem:[%s7213_s24] sm:$0xff] %v688_v0  ;;  %705 = vst [vmem:[%s7213_s24 + $0x8] sm:$0xff] %v689_v1  ;;  %v691_v3 = vld [vmem:[%s7161_s6 + $0x18] sm:$0xff]  ;;  %v692_v4 = vld [vmem:[%s7161_s6 + $0x20] sm:$0xff] }
 0x102   : > { %706 = vst [vmem:[%s7213_s24 + $0x10] sm:$0xff] %v690_v2  ;;  %v693_v5 = vld [vmem:[%s7161_s6 + $0x28] sm:$0xff]  ;;  %707 = vst [vmem:[%s7213_s24 + $0x18] sm:$0xff] %v691_v3  ;;  %v694_v6 = vld [vmem:[%s7161_s6 + $0x30] sm:$0xff] }
 0x103   : > { %708 = vst [vmem:[%s7213_s24 + $0x20] sm:$0xff] %v692_v4  ;;  %709 = vst [vmem:[%s7213_s24 + $0x28] sm:$0xff] %v693_v5  ;;  %v695_v7 = vld [vmem:[%s7161_s6 + $0x38] sm:$0xff]  ;;  %v696_v8 = vld [vmem:[%s7161_s6 + $0x40] sm:$0xff] }
 0x104   : > { %710 = vst [vmem:[%s7213_s24 + $0x30] sm:$0xff] %v694_v6  ;;  %711 = vst [vmem:[%s7213_s24 + $0x38] sm:$0xff] %v695_v7  ;;  %v697_v9 = vld [vmem:[%s7161_s6 + $0x48] sm:$0xff]  ;;  %v698_v10 = vld [vmem:[%s7161_s6 + $0x50] sm:$0xff] }
 0x105   : > { %712 = vst [vmem:[%s7213_s24 + $0x40] sm:$0xff] %v696_v8  ;;  %v699_v11 = vld [vmem:[%s7161_s6 + $0x58] sm:$0xff]  ;;  %713 = vst [vmem:[%s7213_s24 + $0x48] sm:$0xff] %v697_v9  ;;  %v700_v12 = vld [vmem:[%s7161_s6 + $0x60] sm:$0xff] }
 0x106   : > { %714 = vst [vmem:[%s7213_s24 + $0x50] sm:$0xff] %v698_v10  ;;  %715 = vst [vmem:[%s7213_s24 + $0x58] sm:$0xff] %v699_v11  ;;  %v701_v13 = vld [vmem:[%s7161_s6 + $0x68] sm:$0xff]  ;;  %v702_v14 = vld [vmem:[%s7161_s6 + $0x70] sm:$0xff] }
 0x107   : > { %716 = vst [vmem:[%s7213_s24 + $0x60] sm:$0xff] %v700_v12  ;;  %717 = vst [vmem:[%s7213_s24 + $0x68] sm:$0xff] %v701_v13  ;;  %v703_v15 = vld [vmem:[%s7161_s6 + $0x78] sm:$0xff]  ;;  %v720_v16 = vld [vmem:[%s7169_s21] sm:$0xff] }
 0x108   : > { %718 = vst [vmem:[%s7213_s24 + $0x70] sm:$0xff] %v702_v14  ;;  %v721_v17 = vld [vmem:[%s7169_s21 + $0x8] sm:$0xff]  ;;  %719 = vst [vmem:[%s7213_s24 + $0x78] sm:$0xff] %v703_v15  ;;  %v722_v18 = vld [vmem:[%s7169_s21 + $0x10] sm:$0xff] }
 0x109   : > { %736 = vst [vmem:[%s7218_s1] sm:$0xff] %v720_v16  ;;  %737 = vst [vmem:[%s7218_s1 + $0x8] sm:$0xff] %v721_v17  ;;  %v723_v19 = vld [vmem:[%s7169_s21 + $0x18] sm:$0xff]  ;;  %v724_v20 = vld [vmem:[%s7169_s21 + $0x20] sm:$0xff] }
 0x10a   : > { %738 = vst [vmem:[%s7218_s1 + $0x10] sm:$0xff] %v722_v18  ;;  %739 = vst [vmem:[%s7218_s1 + $0x18] sm:$0xff] %v723_v19  ;;  %v725_v21 = vld [vmem:[%s7169_s21 + $0x28] sm:$0xff]  ;;  %v726_v22 = vld [vmem:[%s7169_s21 + $0x30] sm:$0xff] }
 0x10b   : > { %740 = vst [vmem:[%s7218_s1 + $0x20] sm:$0xff] %v724_v20  ;;  %v727_v23 = vld [vmem:[%s7169_s21 + $0x38] sm:$0xff]  ;;  %741 = vst [vmem:[%s7218_s1 + $0x28] sm:$0xff] %v725_v21  ;;  %v728_v24 = vld [vmem:[%s7169_s21 + $0x40] sm:$0xff] }
 0x10c   : > { %742 = vst [vmem:[%s7218_s1 + $0x30] sm:$0xff] %v726_v22  ;;  %743 = vst [vmem:[%s7218_s1 + $0x38] sm:$0xff] %v727_v23  ;;  %v729_v25 = vld [vmem:[%s7169_s21 + $0x48] sm:$0xff]  ;;  %v730_v26 = vld [vmem:[%s7169_s21 + $0x50] sm:$0xff] }
 0x10d   : > { %744 = vst [vmem:[%s7218_s1 + $0x40] sm:$0xff] %v728_v24  ;;  %745 = vst [vmem:[%s7218_s1 + $0x48] sm:$0xff] %v729_v25  ;;  %v731_v27 = vld [vmem:[%s7169_s21 + $0x58] sm:$0xff]  ;;  %v732_v28 = vld [vmem:[%s7169_s21 + $0x60] sm:$0xff] }
 0x10e   : > { %746 = vst [vmem:[%s7218_s1 + $0x50] sm:$0xff] %v730_v26  ;;  %v733_v29 = vld [vmem:[%s7169_s21 + $0x68] sm:$0xff]  ;;  %747 = vst [vmem:[%s7218_s1 + $0x58] sm:$0xff] %v731_v27  ;;  %v734_v30 = vld [vmem:[%s7169_s21 + $0x70] sm:$0xff] }
 0x10f   : > { %748 = vst [vmem:[%s7218_s1 + $0x60] sm:$0xff] %v732_v28  ;;  %749 = vst [vmem:[%s7218_s1 + $0x68] sm:$0xff] %v733_v29  ;;  %v735_v31 = vld [vmem:[%s7169_s21 + $0x78] sm:$0xff] }
 0x110   : > { %750 = vst [vmem:[%s7218_s1 + $0x70] sm:$0xff] %v734_v30  ;;  %751 = vst [vmem:[%s7218_s1 + $0x78] sm:$0xff] %v735_v31 }
 0x111 PF: > { %v7286_v32 = vld [vmem:[%s7213_s24 + $0x78] sm:$0xff]  ;;  %v10661_v35 = vmov 0.0   ;;  %v7301_v38 = vld [vmem:[%s7213_s24 + $0x70] sm:$0xff]  ;;  %v7320_v46 = vld [vmem:[%s7213_s24 + $0x68] sm:$0xff] }
 0x112   : > { %v7292_v34 = vld [vmem:[%s7176_s8 + $0x78] sm:$0xff]  ;;  %1232 = vmatprep.subr.mxu0 %v10661_v35  ;;  %v7309_v41 = vld [vmem:[%s7176_s8 + $0x70] sm:$0xff]  ;;  %v7327_v50 = vld [vmem:[%s7176_s8 + $0x68] sm:$0xff] }
 0x113   : > { %v7296_v36 = vld [vmem:[%s7182_s25 + $0x78] sm:$0xff]  ;;  %v1119_v37 = vmul.f32 %v7292_v34, %v7286_v32  ;;  %v7312_v42 = vld [vmem:[%s7182_s25 + $0x70] sm:$0xff]  ;;  %v1118_v44 = vmul.f32 %v7309_v41, %v7301_v38  ;;  %v7330_v51 = vld [vmem:[%s7182_s25 + $0x68] sm:$0xff]  ;;  %v1117_v53 = vmul.f32 %v7327_v50, %v7320_v46 }
 0x114   : > { %v1087_v43 = vld [vmem:[%s7188_s18 + $0x78] sm:$0xff]  ;;  %v1086_v49 = vld [vmem:[%s7188_s18 + $0x70] sm:$0xff]  ;;  %v7337_v55 = vld [vmem:[%s7213_s24 + $0x60] sm:$0xff] }
 0x115   : > { %v7343_v57 = vld [vmem:[%s7176_s8 + $0x60] sm:$0xff]  ;;  %v1085_v59 = vld [vmem:[%s7188_s18 + $0x68] sm:$0xff]  ;;  %v7352_v62 = vld [vmem:[%s7213_s24 + $0x58] sm:$0xff] }
 0x116   : > { %v7323_v47 = vld [vmem:[%s7218_s1 + $0x68] sm:$0xff]  ;;  %v7340_v56 = vld [vmem:[%s7218_s1 + $0x60] sm:$0xff]  ;;  %v1116_v61 = vmul.f32 %v7343_v57, %v7337_v55  ;;  %v7357_v2 = vld [vmem:[%s7218_s1 + $0x58] sm:$0xff] }
 0x117   : > { %v7289_v33 = vld [vmem:[%s7218_s1 + $0x78] sm:$0xff]  ;;  %v7306_v40 = vld [vmem:[%s7218_s1 + $0x70] sm:$0xff]  ;;  %v1133_v54 = vmul.f32 %v7330_v51, %v7323_v47  ;;  %v7347_v60 = vld [vmem:[%s7182_s25 + $0x60] sm:$0xff] }
 0x118   : > { %v1135_v39 = vmul.f32 %v7296_v36, %v7289_v33  ;;  %v1134_v45 = vmul.f32 %v7312_v42, %v7306_v40  ;;  %v1132_v1 = vmul.f32 %v7347_v60, %v7340_v56  ;;  %v7360_v3 = vld [vmem:[%s7176_s8 + $0x58] sm:$0xff]  ;;  %v1084_v5 = vld [vmem:[%s7188_s18 + $0x60] sm:$0xff]  ;;  %v7371_v8 = vld [vmem:[%s7213_s24 + $0x50] sm:$0xff] }
 0x119   : > { %v1149_v0 = vsub.f32 %v1117_v53, %v1133_v54  ;;  %v7363_v4 = vld [vmem:[%s7182_s25 + $0x58] sm:$0xff]  ;;  %v1115_v6 = vmul.f32 %v7360_v3, %v7352_v62  ;;  %v7374_v9 = vld [vmem:[%s7218_s1 + $0x50] sm:$0xff]  ;;  %v7389_v18 = vld [vmem:[%s7213_s24 + $0x48] sm:$0xff] }
 0x11a   : > { %v1151_v48 = vsub.f32 %v1119_v37, %v1135_v39  ;;  %v1150_v52 = vsub.f32 %v1118_v44, %v1134_v45  ;;  %v1131_v7 = vmul.f32 %v7363_v4, %v7357_v2  ;;  %v1148_v11 = vsub.f32 %v1116_v61, %v1132_v1  ;;  %v1083_v12 = vld [vmem:[%s7188_s18 + $0x58] sm:$0xff]  ;;  %v7379_v13 = vld [vmem:[%s7176_s8 + $0x50] sm:$0xff]  ;;  %v7392_v19 = vld [vmem:[%s7218_s1 + $0x48] sm:$0xff] }
 0x11b   : > { %v1165_v10 = vadd.f32 %v1149_v0, %v1085_v59  ;;  %v7382_v14 = vld [vmem:[%s7182_s25 + $0x50] sm:$0xff]  ;;  %v1114_v16 = vmul.f32 %v7379_v13, %v7371_v8  ;;  %v7395_v20 = vld [vmem:[%s7176_s8 + $0x48] sm:$0xff]  ;;  %v7405_v25 = vld [vmem:[%s7213_s24 + $0x40] sm:$0xff] }
 0x11c   : > { %v1167_v58 = vadd.f32 %v1151_v48, %v1087_v43  ;;  %v1166_v63 = vadd.f32 %v1150_v52, %v1086_v49  ;;  %v1147_v15 = vsub.f32 %v1115_v6, %v1131_v7  ;;  %v1130_v17 = vmul.f32 %v7382_v14, %v7374_v9  ;;  %v1082_v22 = vld [vmem:[%s7188_s18 + $0x50] sm:$0xff]  ;;  %v7400_v23 = vld [vmem:[%s7182_s25 + $0x48] sm:$0xff]  ;;  %v7410_v29 = vld [vmem:[%s7218_s1 + $0x40] sm:$0xff] }
 0x11d   : > { %v1164_v21 = vadd.f32 %v1148_v11, %v1084_v5  ;;  %v1113_v24 = vmul.f32 %v7395_v20, %v7389_v18  ;;  %v1129_v28 = vmul.f32 %v7400_v23, %v7392_v19  ;;  %v7413_v30 = vld [vmem:[%s7176_s8 + $0x40] sm:$0xff]  ;;  %v1081_v37 = vld [vmem:[%s7188_s18 + $0x48] sm:$0xff]  ;;  %v7425_v44 = vld [vmem:[%s7213_s24 + $0x38] sm:$0xff] }
 0x11e   : > { %1233 = vmatpush1.msra.mxu0 %v1167_v58  ;;  %v1163_v26 = vadd.f32 %v1147_v15, %v1083_v12  ;;  %v1146_v27 = vsub.f32 %v1114_v16, %v1130_v17  ;;  %v7416_v31 = vld [vmem:[%s7182_s25 + $0x40] sm:$0xff]  ;;  %v1112_v39 = vmul.f32 %v7413_v30, %v7405_v25  ;;  %v7428_v45 = vld [vmem:[%s7218_s1 + $0x38] sm:$0xff]  ;;  %v7446_v0 = vld [vmem:[%s7218_s1 + $0x30] sm:$0xff] }
 0x11f   : > { %1234 = vmatprep.subr.mxu0 %v10661_v35  ;;  %v1128_v43 = vmul.f32 %v7416_v31, %v7410_v29  ;;  %v1145_v49 = vsub.f32 %v1113_v24, %v1129_v28  ;;  %v1080_v52 = vld [vmem:[%s7188_s18 + $0x40] sm:$0xff]  ;;  %v7432_v53 = vld [vmem:[%s7176_s8 + $0x38] sm:$0xff]  ;;  %v7449_v1 = vld [vmem:[%s7176_s8 + $0x30] sm:$0xff] }
 0x120   : > { %1235 = vmatpush1.msra.mxu0 %v1166_v63  ;;  %v1162_v48 = vadd.f32 %v1146_v27, %v1082_v22  ;;  %v7435_v54 = vld [vmem:[%s7182_s25 + $0x38] sm:$0xff]  ;;  %v1111_v59 = vmul.f32 %v7432_v53, %v7425_v44  ;;  %v7443_v63 = vld [vmem:[%s7213_s24 + $0x30] sm:$0xff]  ;;  %v7458_v11 = vld [vmem:[%s7213_s24 + $0x28] sm:$0xff] }
 0x121   : > { %1236 = vmatprep.subr.mxu0 %v10661_v35  ;;  %v1144_v58 = vsub.f32 %v1112_v39, %v1128_v43  ;;  %v1127_v61 = vmul.f32 %v7435_v54, %v7428_v45  ;;  %v1161_v5 = vadd.f32 %v1145_v49, %v1081_v37  ;;  %v1079_v6 = vld [vmem:[%s7188_s18 + $0x38] sm:$0xff]  ;;  %v7453_v7 = vld [vmem:[%s7182_s25 + $0x30] sm:$0xff]  ;;  %v7464_v16 = vld [vmem:[%s7218_s1 + $0x28] sm:$0xff] }
 0x122   : > { %1237 = vmatpush1.msra.mxu0 %v1165_v10  ;;  %v1110_v10 = vmul.f32 %v7449_v1, %v7443_v63  ;;  %v1126_v15 = vmul.f32 %v7453_v7, %v7446_v0  ;;  %10891 = vst [vmem:[#allocation39_spill] sm:$0xff] %v7464_v16  ;;  %v7467_v17 = vld [vmem:[%s7176_s8 + $0x28] sm:$0xff]  ;;  %v7477_v27 = vld [vmem:[%s7213_s24 + $0x20] sm:$0xff]  ;;  %v1078_v37 = vld [vmem:[%s7188_s18 + $0x30] sm:$0xff] }
 0x123   : > { %1238 = vmatprep.subr.mxu0 %v10661_v35  ;;  %v1143_v12 = vsub.f32 %v1111_v59, %v1127_v61  ;;  %10892 = vst [vmem:[#allocation40_spill] sm:$0xff] %v7467_v17  ;;  %v1160_v22 = vadd.f32 %v1144_v58, %v1080_v52  ;;  %v1109_v24 = vmul.f32 %v7467_v17, %v7458_v11  ;;  %10893 = vst [vmem:[#allocation41_spill] sm:$0xff] %v7477_v27  ;;  %v7480_v28 = vld [vmem:[%s7218_s1 + $0x20] sm:$0xff]  ;;  %v7495_v61 = vld [vmem:[%s7213_s24 + $0x18] sm:$0xff]  ;;  %v10905_v17 = vmov 0.0  }
 0x124   : > { %1239 = vmatpush1.msra.mxu0 %v1164_v21  ;;  %v7470_v21 = vld [vmem:[%s7182_s25 + $0x28] sm:$0xff]  ;;  %10894 = vst [vmem:[#allocation42_spill] sm:$0xff] %v7480_v28  ;;  %v1142_v39 = vsub.f32 %v1110_v10, %v1126_v15  ;;  %v7485_v43 = vld [vmem:[%s7176_s8 + $0x20] sm:$0xff]  ;;  %10897 = vst [vmem:[#allocation45_spill] sm:$0xff] %v7495_v61 }
 0x125   : > { %1240 = vmatprep.subr.mxu0 %v10661_v35  ;;  %10895 = vst [vmem:[#allocation43_spill] sm:$0xff] %v7485_v43  ;;  %v1159_v49 = vadd.f32 %v1143_v12, %v1079_v6  ;;  %v1108_v58 = vmul.f32 %v7485_v43, %v7477_v27  ;;  %v7498_v10 = vld [vmem:[%s7218_s1 + $0x18] sm:$0xff]  ;;  %v7509_v12 = vld [vmem:[%s7213_s24 + $0x10] sm:$0xff] }
 0x126   : > { %1241 = vmatpush1.msra.mxu0 %v1163_v26  ;;  %v1125_v26 = vmul.f32 %v7470_v21, %v7464_v16  ;;  %10898 = vst [vmem:[#allocation46_spill] sm:$0xff] %v7498_v10  ;;  %v7501_v15 = vld [vmem:[%s7176_s8 + $0x18] sm:$0xff]  ;;  %10901 = vst [vmem:[#allocation49_spill] sm:$0xff] %v7509_v12  ;;  %v7522_v27 = vld [vmem:[%s7182_s25 + $0x10] sm:$0xff] }
 0x127   : > { %1242 = vmatprep.subr.mxu0 %v10661_v35  ;;  %10899 = vst [vmem:[#allocation47_spill] sm:$0xff] %v7501_v15  ;;  %v7506_v6 = vld [vmem:[%s7182_s25 + $0x18] sm:$0xff]  ;;  %v1107_v43 = vmul.f32 %v7501_v15, %v7495_v61  ;;  %10904 = vst [vmem:[#allocation52_spill] sm:$0xff] %v7522_v27  ;;  %v7538_v61 = vld [vmem:[%s7176_s8 + $0x8] sm:$0xff] }
 0x128   : > { %1243 = vmatpush1.msra.mxu0 %v1162_v48  ;;  %v7488_v48 = vld [vmem:[%s7182_s25 + $0x20] sm:$0xff]  ;;  %v1141_v52 = vsub.f32 %v1109_v24, %v1125_v26  ;;  %10900 = vst [vmem:[#allocation48_spill] sm:$0xff] %v7506_v6  ;;  %v1158_v24 = vadd.f32 %v1142_v39, %v1078_v37  ;;  %v7529_v39 = vld [vmem:[%s7213_s24 + $0x8] sm:$0xff]  ;;  %v1075_v15 = vld [vmem:[%s7188_s18 + $0x18] sm:$0xff] }
 0x129   : > { %1244 = vmatprep.subr.mxu0 %v10661_v35  ;;  %10896 = vst [vmem:[#allocation44_spill] sm:$0xff] %v7488_v48  ;;  %v1124_v59 = vmul.f32 %v7488_v48, %v7480_v28  ;;  %v1123_v28 = vmul.f32 %v7506_v6, %v7498_v10  ;;  %v7516_v48 = vld [vmem:[%s7218_s1 + $0x10] sm:$0xff]  ;;  %10906 = vst [vmem:[#allocation53_spill] sm:$0xff] %v7529_v39  ;;  %v7541_v16 = vld [vmem:[%s7182_s25 + $0x8] sm:$0xff] }
 0x12a   : > { %1245 = vmatpush1.msra.mxu0 %v1161_v5  ;;  %v1077_v5 = vld [vmem:[%s7188_s18 + $0x28] sm:$0xff]  ;;  %10902 = vst [vmem:[#allocation50_spill] sm:$0xff] %v7516_v48  ;;  %v1122_v6 = vmul.f32 %v7522_v27, %v7516_v48  ;;  %10908 = vst [vmem:[#allocation55_spill] sm:$0xff] %v7538_v61  ;;  %v7558_v48 = vld [vmem:[%s7182_s25] sm:$0xff] }
 0x12b   : > { %1246 = vmatprep.subr.mxu0 %v10661_v35  ;;  %v1140_v26 = vsub.f32 %v1108_v58, %v1124_v59  ;;  %v7519_v35 = vld [vmem:[%s7176_s8 + $0x10] sm:$0xff]  ;;  %v7532_v58 = vld [vmem:[%s7218_s1 + $0x8] sm:$0xff]  ;;  %v1157_v59 = vadd.f32 %v1141_v52, %v1077_v5  ;;  %v1139_v10 = vsub.f32 %v1107_v43, %v1123_v28  ;;  %10909 = vst [vmem:[#allocation56_spill] sm:$0xff] %v7541_v16  ;;  %v7552_v52 = vld [vmem:[%s7218_s1] sm:$0xff] }
 0x12c   : > { %1247 = vmatpush1.msra.mxu0 %v1160_v22  ;;  %10903 = vst [vmem:[#allocation51_spill] sm:$0xff] %v7519_v35  ;;  %v1076_v22 = vld [vmem:[%s7188_s18 + $0x20] sm:$0xff]  ;;  %v1106_v37 = vmul.f32 %v7519_v35, %v7509_v12  ;;  %10907 = vst [vmem:[#allocation54_spill] sm:$0xff] %v7532_v58  ;;  %v1105_v35 = vmul.f32 %v7538_v61, %v7529_v39  ;;  %v1074_v27 = vld [vmem:[%s7188_s18 + $0x10] sm:$0xff] }
 0x12d   : > { %1248 = vmatprep.subr.mxu0 %v10905_v17  ;;  %v7549_v12 = vld [vmem:[%s7213_s24] sm:$0xff]  ;;  %10910 = vst [vmem:[#allocation57_spill] sm:$0xff] %v7552_v52  ;;  %v1156_v43 = vadd.f32 %v1140_v26, %v1076_v22  ;;  %v1073_v22 = vld [vmem:[%s7188_s18 + $0x8] sm:$0xff] }
 0x12e   : > { %1249 = vmatpush1.msra.mxu0 %v1159_v49  ;;  %v1121_v49 = vmul.f32 %v7541_v16, %v7532_v58  ;;  %v7555_v28 = vld [vmem:[%s7176_s8] sm:$0xff]  ;;  %v1138_v5 = vsub.f32 %v1106_v37, %v1122_v6  ;;  %v1120_v58 = vmul.f32 %v7558_v48, %v7552_v52  ;;  %v1183_v16 = vmul.f32 %v7296_v36, %v7286_v32 }
 0x12f   : > { %1250 = vmatprep.subr.mxu0 %v10905_v17  ;;  %10911 = vst [vmem:[#allocation58_spill] sm:$0xff] %v7555_v28  ;;  %v1104_v61 = vmul.f32 %v7555_v28, %v7549_v12  ;;  %v1155_v6 = vadd.f32 %v1139_v10, %v1075_v15  ;;  %v1182_v28 = vmul.f32 %v7312_v42, %v7301_v38  ;;  %v1072_v32 = vld [vmem:[%s7188_s18] sm:$0xff]  ;;  %v1103_v38 = vld [vmem:[%s7190_s13 + $0x78] sm:$0xff]  ;;  %v7606_v15 = vld [vmem:[#allocation12 + $0x8] sm:$0xff] }
 0x130   : > { %1251 = vmatpush1.msra.mxu0 %v1158_v24  ;;  %v1199_v24 = vmul.f32 %v7292_v34, %v7289_v33  ;;  %v1137_v26 = vsub.f32 %v1105_v35, %v1121_v49  ;;  %v1154_v37 = vadd.f32 %v1138_v5, %v1074_v27  ;;  %v1198_v52 = vmul.f32 %v7309_v41, %v7306_v40  ;;  %v10912_v49 = vld [vmem:[#allocation39_spill] sm:$0xff] }
 0x131   : > { %1252 = vmatprep.subr.mxu0 %v10905_v17  ;;  %v1136_v39 = vsub.f32 %v1104_v61, %v1120_v58  ;;  %v1181_v35 = vmul.f32 %v7330_v51, %v7320_v46  ;;  %v1197_v36 = vmul.f32 %v7327_v50, %v7323_v47  ;;  %v1180_v41 = vmul.f32 %v7347_v60, %v7337_v55  ;;  %v1102_v46 = vld [vmem:[%s7190_s13 + $0x70] sm:$0xff]  ;;  %v1101_v55 = vld [vmem:[%s7190_s13 + $0x68] sm:$0xff] }
 0x132   : > { %1253 = vmatpush1.msra.mxu0 %v1157_v59  ;;  %v1153_v33 = vadd.f32 %v1137_v26, %v1073_v22  ;;  %v1215_v34 = vadd.f32 %v1199_v24, %v1183_v16  ;;  %v1214_v40 = vadd.f32 %v1198_v52, %v1182_v28  ;;  %v1196_v27 = vmul.f32 %v7343_v57, %v7340_v56  ;;  %v10913_v52 = vld [vmem:[#allocation40_spill] sm:$0xff]  ;;  %v10916_v24 = vld [vmem:[#allocation42_spill] sm:$0xff] }
 0x133   : > { %1254 = vmatprep.subr.mxu0 %v10905_v17  ;;  %v1152_v42 = vadd.f32 %v1136_v39, %v1072_v32  ;;  %v1213_v47 = vadd.f32 %v1197_v36, %v1181_v35  ;;  %v1179_v50 = vmul.f32 %v7363_v4, %v7352_v62  ;;  %v1195_v16 = vmul.f32 %v7360_v3, %v7357_v2  ;;  %v1100_v62 = vld [vmem:[%s7190_s13 + $0x60] sm:$0xff]  ;;  %v10919_v32 = vld [vmem:[#allocation48_spill] sm:$0xff] }
 0x134   : > { %1255 = vmatpush1.msra.mxu0 %v1156_v43  ;;  %v1231_v51 = vadd.f32 %v1215_v34, %v1103_v38  ;;  %v1230_v60 = vadd.f32 %v1214_v40, %v1102_v46  ;;  %v1212_v56 = vadd.f32 %v1196_v27, %v1180_v41  ;;  %v1178_v57 = vmul.f32 %v7382_v14, %v7371_v8  ;;  %v1099_v8 = vld [vmem:[%s7190_s13 + $0x58] sm:$0xff]  ;;  %v10915_v43 = vld [vmem:[#allocation44_spill] sm:$0xff]  ;;  %v10921_v35 = vld [vmem:[#allocation47_spill] sm:$0xff] }
 0x135   : > { %1256 = vmatprep.subr.mxu0 %v10905_v17  ;;  %v1194_v61 = vmul.f32 %v7379_v13, %v7374_v9  ;;  %v1229_v4 = vadd.f32 %v1213_v47, %v1101_v55  ;;  %v1211_v2 = vadd.f32 %v1195_v16, %v1179_v50  ;;  %v1177_v3 = vmul.f32 %v7400_v23, %v7389_v18  ;;  %v1098_v18 = vld [vmem:[%s7190_s13 + $0x50] sm:$0xff]  ;;  %v10920_v34 = vld [vmem:[#allocation46_spill] sm:$0xff]  ;;  %v1093_v38 = vld [vmem:[%s7190_s13 + $0x28] sm:$0xff] }
 0x136   : > { %1257 = vmatpush1.msra.mxu0 %v1155_v6  ;;  %v1193_v10 = vmul.f32 %v7395_v20, %v7392_v19  ;;  %v1228_v9 = vadd.f32 %v1212_v56, %v1100_v62  ;;  %v1176_v14 = vmul.f32 %v7416_v31, %v7405_v25  ;;  %v1192_v39 = vmul.f32 %v7413_v30, %v7410_v29  ;;  %v1097_v25 = vld [vmem:[%s7190_s13 + $0x48] sm:$0xff]  ;;  %v10917_v6 = vld [vmem:[#allocation43_spill] sm:$0xff]  ;;  %v10922_v41 = vld [vmem:[#allocation49_spill] sm:$0xff] }
 0x137   : > { %1258 = vmatprep.subr.mxu0 %v10905_v17  ;;  %v1210_v13 = vadd.f32 %v1194_v61, %v1178_v57  ;;  %1296 = vmatprep.mubr.f32.mxu0 %v7606_v15  ;;  %v1227_v19 = vadd.f32 %v1211_v2, %v1099_v8  ;;  %v1175_v23 = vmul.f32 %v7435_v54, %v7425_v44  ;;  %v1096_v44 = vld [vmem:[%s7190_s13 + $0x40] sm:$0xff]  ;;  %v10923_v27 = vld [vmem:[#allocation52_spill] sm:$0xff]  ;;  %v10926_v56 = vld [vmem:[#allocation53_spill] sm:$0xff] }
 0x138   : > { %1259 = vmatpush1.msra.mxu0 %v1154_v37  ;;  %v1209_v20 = vadd.f32 %v1193_v10, %v1177_v3  ;;  %v1191_v58 = vmul.f32 %v7432_v53, %v7428_v45  ;;  %v1208_v30 = vadd.f32 %v1192_v39, %v1176_v14  ;;  %v1174_v31 = vmul.f32 %v7453_v7, %v7443_v63  ;;  %v1095_v63 = vld [vmem:[%s7190_s13 + $0x38] sm:$0xff]  ;;  %v10918_v37 = vld [vmem:[#allocation45_spill] sm:$0xff]  ;;  %v10925_v47 = vld [vmem:[#allocation51_spill] sm:$0xff] }
 0x139   : > { %1260 = vmatprep.subr.mxu0 %v10905_v17  ;;  %v1226_v29 = vadd.f32 %v1210_v13, %v1098_v18  ;;  %v1190_v59 = vmul.f32 %v7449_v1, %v7446_v0  ;;  %v1173_v53 = vmul.f32 %v7470_v21, %v7458_v11  ;;  %v1189_v28 = vmul.f32 %v10913_v52, %v10912_v49  ;;  %v10914_v1 = vld [vmem:[#allocation41_spill] sm:$0xff]  ;;  %v1092_v16 = vld [vmem:[%s7190_s13 + $0x20] sm:$0xff]  ;;  %v10927_v57 = vld [vmem:[#allocation56_spill] sm:$0xff] }
 0x13a   : > { %1261 = vmatpush1.msra.mxu0 %v1153_v33  ;;  %v1225_v54 = vadd.f32 %v1209_v20, %v1097_v25  ;;  %v1207_v45 = vadd.f32 %v1191_v58, %v1175_v23  ;;  %v1224_v7 = vadd.f32 %v1208_v30, %v1096_v44  ;;  %v1172_v5 = vmul.f32 %v10915_v43, %v10914_v1  ;;  %v1094_v11 = vld [vmem:[%s7190_s13 + $0x30] sm:$0xff]  ;;  %v10928_v62 = vld [vmem:[#allocation54_spill] sm:$0xff]  ;;  %v1089_v23 = vld [vmem:[%s7190_s13 + $0x8] sm:$0xff] }
 0x13b   : > { %1262 = vmatprep.subr.mxu0 %v10905_v17  ;;  %v1206_v0 = vadd.f32 %v1190_v59, %v1174_v31  ;;  %v1188_v26 = vmul.f32 %v10917_v6, %v10916_v24  ;;  %v1205_v22 = vadd.f32 %v1189_v28, %v1173_v53  ;;  %v1171_v33 = vmul.f32 %v10919_v32, %v10918_v37  ;;  %v1091_v3 = vld [vmem:[%s7190_s13 + $0x18] sm:$0xff]  ;;  %v10930_v13 = vld [vmem:[#allocation57_spill] sm:$0xff]  ;;  %v752_v30 = vld [vmem:[#allocation12] sm:$0xff] }
 0x13c   : > { %1263 = vmatpush1.msra.mxu0 %v1152_v42  ;;  %v1223_v21 = vadd.f32 %v1207_v45, %v1095_v63  ;;  %v1187_v36 = vmul.f32 %v10921_v35, %v10920_v34  ;;  %v1170_v46 = vmul.f32 %v10923_v27, %v10922_v41  ;;  %v1169_v61 = vmul.f32 %v10927_v57, %v10926_v56  ;;  %v10931_v14 = vld [vmem:[#allocation58_spill] sm:$0xff]  ;;  %v1090_v18 = vld [vmem:[%s7190_s13 + $0x10] sm:$0xff]  ;;  %v757_v44 = vld [vmem:[#allocation12 + $0x28] sm:$0xff] }
 0x13d   : > { %1264 = vmatprep.subr.mxu0 %v10905_v17  ;;  %v1222_v42 = vadd.f32 %v1206_v0, %v1094_v11  ;;  %v1204_v40 = vadd.f32 %v1188_v26, %v1172_v5  ;;  %v1221_v55 = vadd.f32 %v1205_v22, %v1093_v38  ;;  %v1184_v39 = vmul.f32 %v10931_v14, %v10930_v13  ;;  %v755_v31 = vld [vmem:[#allocation12 + $0x18] sm:$0xff]  ;;  %v754_v59 = vld [vmem:[#allocation12 + $0x10] sm:$0xff]  ;;  %v761_v49 = vld [vmem:[#allocation12 + $0x48] sm:$0xff] }
 0x13e   : > { %1265 = vmatpush2.msra.mxu0 %v1231_v51  ;;  %v10924_v51 = vld [vmem:[#allocation50_spill] sm:$0xff]  ;;  %v758_v53 = vld [vmem:[#allocation12 + $0x30] sm:$0xff]  ;;  %v760_v52 = vld [vmem:[#allocation12 + $0x40] sm:$0xff] }
 0x13f   : > { %1266 = vmatprep.subr.mxu0 %v10905_v17  ;;  %v1186_v50 = vmul.f32 %v10925_v47, %v10924_v51  ;;  %v1220_v10 = vadd.f32 %v1204_v40, %v1092_v16  ;;  %v759_v45 = vld [vmem:[#allocation12 + $0x38] sm:$0xff]  ;;  %v762_v63 = vld [vmem:[#allocation12 + $0x50] sm:$0xff]  ;;  %v764_v0 = vld [vmem:[#allocation12 + $0x60] sm:$0xff] }
 0x140   : > { %1267 = vmatpush2.msra.mxu0 %v1230_v60  ;;  %v1203_v60 = vadd.f32 %v1187_v36, %v1171_v33  ;;  %v763_v28 = vld [vmem:[#allocation12 + $0x58] sm:$0xff]  ;;  %v766_v43 = vld [vmem:[#allocation12 + $0x70] sm:$0xff]  ;;  %v769_v5 = vld [vmem:[#allocation12 + $0x88] sm:$0xff] }
 0x141   : > { %1268 = vmatprep.subr.mxu0 %v10905_v17  ;;  %v1202_v8 = vadd.f32 %v1186_v50, %v1170_v46  ;;  %v767_v1 = vld [vmem:[#allocation12 + $0x78] sm:$0xff]  ;;  %v768_v24 = vld [vmem:[#allocation12 + $0x80] sm:$0xff]  ;;  %v770_v26 = vld [vmem:[#allocation12 + $0x90] sm:$0xff] }
 0x142   : > { %1269 = vmatpush2.msra.mxu0 %v1229_v4  ;;  %v10929_v4 = vld [vmem:[#allocation55_spill] sm:$0xff]  ;;  %v771_v6 = vld [vmem:[#allocation12 + $0x98] sm:$0xff]  ;;  %v773_v11 = vld [vmem:[#allocation12 + $0xa8] sm:$0xff] }
 0x143   : > { %1270 = vmatprep.subr.mxu0 %v10905_v17  ;;  %v1185_v2 = vmul.f32 %v10929_v4, %v10928_v62  ;;  %v1218_v58 = vadd.f32 %v1202_v8, %v1090_v18  ;;  %v775_v22 = vld [vmem:[#allocation12 + $0xb8] sm:$0xff]  ;;  %v774_v37 = vld [vmem:[#allocation12 + $0xb0] sm:$0xff]  ;;  %v777_v32 = vld [vmem:[#allocation12 + $0xc8] sm:$0xff] }
 0x144   : > { %1271 = vmatpush2.msra.mxu0 %v1228_v9  ;;  %v1168_v9 = vmul.f32 %v7558_v48, %v7549_v12  ;;  %v776_v33 = vld [vmem:[#allocation12 + $0xc0] sm:$0xff]  ;;  %v779_v34 = vld [vmem:[#allocation12 + $0xd8] sm:$0xff]  ;;  %v778_v35 = vld [vmem:[#allocation12 + $0xd0] sm:$0xff] }
 0x145   : > { %1272 = vmatprep.subr.mxu0 %v10905_v17  ;;  %v1201_v20 = vadd.f32 %v1185_v2, %v1169_v61  ;;  %v781_v36 = vld [vmem:[#allocation12 + $0xe8] sm:$0xff]  ;;  %v780_v38 = vld [vmem:[#allocation12 + $0xe0] sm:$0xff]  ;;  %v782_v40 = vld [vmem:[#allocation12 + $0xf0] sm:$0xff] }
 0x146   : > { %1273 = vmatpush2.msra.mxu0 %v1227_v19  ;;  %v1219_v19 = vadd.f32 %v1203_v60, %v1091_v3  ;;  %v1200_v25 = vadd.f32 %v1184_v39, %v1168_v9  ;;  %v785_v41 = vld [vmem:[#allocation12 + $0x108] sm:$0xff]  ;;  %v784_v27 = vld [vmem:[#allocation12 + $0x100] sm:$0xff]  ;;  %v787_v46 = vld [vmem:[#allocation12 + $0x118] sm:$0xff] }
 0x147   : > { %1274 = vmatprep.subr.mxu0 %v10905_v17  ;;  %v1217_v48 = vadd.f32 %v1201_v20, %v1089_v23  ;;  %v786_v51 = vld [vmem:[#allocation12 + $0x110] sm:$0xff]  ;;  %v847_v47 = vld [vmem:[#allocation13 + $0xf8] sm:$0xff]  ;;  %v789_v50 = vld [vmem:[#allocation12 + $0x128] sm:$0xff] }
 0x148   : > { %1275 = vmatpush2.msra.mxu0 %v1226_v29  ;;  %v1088_v29 = vld [vmem:[%s7190_s13] sm:$0xff]  ;;  %1457 = vmatprep.subr.mxu1 %v847_v47  ;;  %v846_v16 = vld [vmem:[#allocation13 + $0xf0] sm:$0xff]  ;;  %v843_v57 = vld [vmem:[#allocation13 + $0xd8] sm:$0xff] }
 0x149   : > { %1276 = vmatprep.subr.mxu0 %v10905_v17  ;;  %v1216_v12 = vadd.f32 %v1200_v25, %v1088_v29  ;;  %1458 = vmatpush1.msra.mxu1 %v846_v16  ;;  %v844_v60 = vld [vmem:[#allocation13 + $0xe0] sm:$0xff]  ;;  %v791_v61 = vld [vmem:[#allocation12 + $0x138] sm:$0xff]  ;;  %v842_v62 = vld [vmem:[#allocation13 + $0xd0] sm:$0xff] }
 0x14a   : > { %1277 = vmatpush2.msra.mxu0 %v1225_v54  ;;  %v756_v54 = vld [vmem:[#allocation12 + $0x20] sm:$0xff]  ;;  %v841_v4 = vld [vmem:[#allocation13 + $0xc8] sm:$0xff]  ;;  %v790_v3 = vld [vmem:[#allocation12 + $0x130] sm:$0xff] }
 0x14b   : > { %1278 = vmatprep.subr.mxu0 %v10905_v17  ;;  %v788_v56 = vld [vmem:[#allocation12 + $0x120] sm:$0xff]  ;;  %v793_v8 = vld [vmem:[#allocation12 + $0x148] sm:$0xff]  ;;  %v838_v9 = vld [vmem:[#allocation13 + $0xb0] sm:$0xff] }
 0x14c   : > { %1279 = vmatpush2.msra.mxu0 %v1224_v7  ;;  %v765_v7 = vld [vmem:[#allocation12 + $0x68] sm:$0xff]  ;;  %v840_v2 = vld [vmem:[#allocation13 + $0xc0] sm:$0xff]  ;;  %v835_v18 = vld [vmem:[#allocation13 + $0x98] sm:$0xff] }
 0x14d   : > { %1280 = vmatprep.subr.mxu0 %v10905_v17  ;;  %v837_v13 = vld [vmem:[#allocation13 + $0xa8] sm:$0xff]  ;;  %v836_v14 = vld [vmem:[#allocation13 + $0xa0] sm:$0xff]  ;;  %v834_v20 = vld [vmem:[#allocation13 + $0x90] sm:$0xff] }
 0x14e   : > { %1281 = vmatpush2.msra.mxu0 %v1223_v21  ;;  %v772_v21 = vld [vmem:[#allocation12 + $0xa0] sm:$0xff]  ;;  %v833_v23 = vld [vmem:[#allocation13 + $0x88] sm:$0xff]  ;;  %v794_v25 = vld [vmem:[#allocation12 + $0x150] sm:$0xff] }
 0x14f   : > { %1282 = vmatprep.subr.mxu0 %v10905_v17  ;;  %v792_v39 = vld [vmem:[#allocation12 + $0x140] sm:$0xff]  ;;  %v831_v29 = vld [vmem:[#allocation13 + $0x78] sm:$0xff] }
 0x150   : > { %1283 = vmatpush2.msra.mxu0 %v1222_v42  ;;  %v783_v42 = vld [vmem:[#allocation12 + $0xf8] sm:$0xff] }
 0x151   : > { %1284 = vmatprep.subr.mxu0 %v10905_v17 }
 0x152   : > { %1285 = vmatpush2.msra.mxu0 %v1221_v55  ;;  %v845_v55 = vld [vmem:[#allocation13 + $0xe8] sm:$0xff] }
 0x153   : > { %1286 = vmatprep.subr.mxu0 %v10905_v17  ;;  %1459 = vmatprep.subr.mxu1 %v845_v55 }
 0x154   : > { %1287 = vmatpush2.msra.mxu0 %v1220_v10  ;;  %1460 = vmatpush1.msra.mxu1 %v844_v60  ;;  %v839_v10 = vld [vmem:[#allocation13 + $0xb8] sm:$0xff] }
 0x155   : > { %1288 = vmatprep.subr.mxu0 %v10905_v17  ;;  %1461 = vmatprep.subr.mxu1 %v843_v57 }
 0x156   : > { %1289 = vmatpush2.msra.mxu0 %v1219_v19  ;;  %1462 = vmatpush1.msra.mxu1 %v842_v62  ;;  %v795_v19 = vld [vmem:[#allocation12 + $0x158] sm:$0xff] }
 0x157   : > { %1290 = vmatprep.subr.mxu0 %v10905_v17  ;;  %1463 = vmatprep.subr.mxu1 %v841_v4 }
 0x158   : > { %1291 = vmatpush2.msra.mxu0 %v1218_v58  ;;  %1464 = vmatpush1.msra.mxu1 %v840_v2  ;;  %v832_v58 = vld [vmem:[#allocation13 + $0x80] sm:$0xff] }
 0x159   : > { %1292 = vmatprep.subr.mxu0 %v10905_v17  ;;  %1465 = vmatprep.subr.mxu1 %v839_v10 }
 0x15a   : > { %1293 = vmatpush2.msra.mxu0 %v1217_v48  ;;  %1466 = vmatpush1.msra.mxu1 %v838_v9  ;;  %v797_v48 = vld [vmem:[#allocation12 + $0x168] sm:$0xff] }
 0x15b   : > { %1294 = vmatprep.subr.mxu0 %v10905_v17  ;;  %1467 = vmatprep.subr.mxu1 %v837_v13 }
 0x15c   : > { %1295 = vmatpush2.msra.mxu0 %v1216_v12  ;;  %1468 = vmatpush1.msra.mxu1 %v836_v14  ;;  %v830_v12 = vld [vmem:[#allocation13 + $0x70] sm:$0xff] }
 0x15d   : > { %1297 = vmatmul.mubr.f32.vlgmr.msra.gmra.mxu0 %v752_v30  ;;  %2039 = vmatprep.subr.mxu0 %v847_v47  ;;  %v7672_v30 = vld [vmem:[#allocation13 + $0x68] sm:$0xff]  ;;  %v7743_v47 = vld [vmem:[#allocation13 + $0x1b0] sm:$0xff] }
 0x15e   : > { %1301 = vmatprep.mubr.f32.mxu0 %v755_v31  ;;  %2040 = vmatpush1.msra.mxu0 %v846_v16  ;;  %v7675_v31 = vld [vmem:[#allocation13 + $0x60] sm:$0xff] }
 0x15f   : > { %2041 = vmatprep.subr.mxu0 %v845_v55  ;;  %1469 = vmatprep.subr.mxu1 %v835_v18  ;;  %v7751_v16 = vld [vmem:[#allocation13 + $0x1a0] sm:$0xff] }
 0x160   : > { %2042 = vmatpush1.msra.mxu0 %v844_v60  ;;  %1470 = vmatpush1.msra.mxu1 %v834_v20  ;;  %v808_v55 = vld [vmem:[#allocation12 + $0x1c0] sm:$0xff]  ;;  %v7754_v60 = vld [vmem:[#allocation13 + $0x198] sm:$0xff] }
 0x161   : > { %1302 = vmatmul.mubr.f32.gmra.mxu0 %v754_v59  ;;  %2043 = vmatprep.subr.mxu0 %v843_v57  ;;  %v796_v59 = vld [vmem:[#allocation12 + $0x160] sm:$0xff]  ;;  %v7757_v57 = vld [vmem:[#allocation13 + $0x190] sm:$0xff] }
 0x162   : > { %1306 = vmatprep.mubr.f32.mxu0 %v757_v44  ;;  %2044 = vmatpush1.msra.mxu0 %v842_v62  ;;  %v7678_v44 = vld [vmem:[#allocation13 + $0x58] sm:$0xff]  ;;  %v7765_v62 = vld [vmem:[#allocation13 + $0x180] sm:$0xff] }
 0x163   : > { %2045 = vmatprep.subr.mxu0 %v841_v4  ;;  %1471 = vmatprep.subr.mxu1 %v833_v23  ;;  %v810_v4 = vld [vmem:[#allocation12 + $0x1d0] sm:$0xff] }
 0x164   : > { %2046 = vmatpush1.msra.mxu0 %v840_v2  ;;  %1472 = vmatpush1.msra.mxu1 %v832_v58  ;;  %v7768_v2 = vld [vmem:[#allocation13 + $0x178] sm:$0xff] }
 0x165   : > { %1307 = vmatmul.mubr.f32.gmra.mxu0 %v756_v54  ;;  %1473 = vmatprep.subr.mxu1 %v831_v29  ;;  %v799_v54 = vld [vmem:[#allocation12 + $0x178] sm:$0xff] }
 0x166   : > { %1311 = vmatprep.mubr.f32.mxu0 %v759_v45  ;;  %2047 = vmatprep.subr.mxu0 %v839_v10  ;;  %v7681_v45 = vld [vmem:[#allocation13 + $0x50] sm:$0xff] }
 0x167   : > { %1474 = vmatpush1.msra.mxu1 %v830_v12  ;;  %2048 = vmatpush1.msra.mxu0 %v838_v9  ;;  %v7771_v10 = vld [vmem:[#allocation13 + $0x170] sm:$0xff]  ;;  %v860_v9 = vld [vmem:[#allocation13 + $0x160] sm:$0xff] }
 0x168   : > { %1475 = vmatprep.subr.mxu1 %v7672_v30  ;;  %2049 = vmatprep.subr.mxu0 %v837_v13  ;;  %v812_v13 = vld [vmem:[#allocation12 + $0x1e0] sm:$0xff] }
 0x169   : > { %1312 = vmatmul.mubr.f32.gmra.mxu0 %v758_v53  ;;  %1476 = vmatpush1.msra.mxu1 %v7675_v31  ;;  %v7684_v53 = vld [vmem:[#allocation13 + $0x48] sm:$0xff] }
 0x16a   : > { %1316 = vmatprep.mubr.f32.mxu0 %v761_v49  ;;  %1477 = vmatprep.subr.mxu1 %v7678_v44  ;;  %v7687_v49 = vld [vmem:[#allocation13 + $0x40] sm:$0xff] }
 0x16b   : > { %1478 = vmatpush1.msra.mxu1 %v7681_v45  ;;  %2050 = vmatpush1.msra.mxu0 %v836_v14  ;;  %v859_v14 = vld [vmem:[#allocation13 + $0x158] sm:$0xff] }
 0x16c   : > { %1479 = vmatprep.subr.mxu1 %v7684_v53  ;;  %2051 = vmatprep.subr.mxu0 %v835_v18  ;;  %v858_v18 = vld [vmem:[#allocation13 + $0x150] sm:$0xff] }
 0x16d   : > { %1317 = vmatmul.mubr.f32.gmra.mxu0 %v760_v52  ;;  %v798_v52 = vld [vmem:[#allocation12 + $0x170] sm:$0xff]  ;;  %1480 = vmatpush1.msra.mxu1 %v7687_v49 }
 0x16e   : > { %1321 = vmatprep.mubr.f32.mxu0 %v763_v28  ;;  %v7690_v28 = vld [vmem:[#allocation13 + $0x38] sm:$0xff]  ;;  %2052 = vmatpush1.msra.mxu0 %v834_v20  ;;  %v856_v20 = vld [vmem:[#allocation13 + $0x140] sm:$0xff] }
 0x16f   : > { %1481 = vmatprep.subr.mxu1 %v7690_v28  ;;  %2053 = vmatprep.subr.mxu0 %v833_v23  ;;  %v7778_v23 = vld [vmem:[#allocation12 + $0x1f0] sm:$0xff] }
 0x170   : > { %2054 = vmatpush1.msra.mxu0 %v832_v58  ;;  %10932 = vst [vmem:[#allocation39_spill] sm:$0xff] %v7778_v23  ;;  %v855_v58 = vld [vmem:[#allocation13 + $0x138] sm:$0xff] }
 0x171   : > { %1322 = vmatmul.mubr.f32.gmra.mxu0 %v762_v63  ;;  %v801_v63 = vld [vmem:[#allocation12 + $0x188] sm:$0xff]  ;;  %2055 = vmatprep.subr.mxu0 %v831_v29 }
 0x172   : > { %1326 = vmatprep.mubr.f32.mxu0 %v765_v7  ;;  %v7693_v7 = vld [vmem:[#allocation13 + $0x30] sm:$0xff]  ;;  %2056 = vmatpush1.msra.mxu0 %v830_v12  ;;  %v853_v29 = vld [vmem:[#allocation13 + $0x128] sm:$0xff]  ;;  %v851_v12 = vld [vmem:[#allocation13 + $0x118] sm:$0xff] }
 0x173   : > { %1482 = vmatpush1.msra.mxu1 %v7693_v7  ;;  %2057 = vmatprep.subr.mxu0 %v7672_v30  ;;  %v850_v30 = vld [vmem:[#allocation13 + $0x110] sm:$0xff] }
 0x174   : > { %2058 = vmatpush1.msra.mxu0 %v7675_v31  ;;  %v849_v31 = vld [vmem:[#allocation13 + $0x108] sm:$0xff] }
 0x175   : > { %1327 = vmatmul.mubr.f32.gmra.mxu0 %v764_v0  ;;  %v7696_v0 = vld [vmem:[#allocation13 + $0x28] sm:$0xff]  ;;  %2059 = vmatprep.subr.mxu0 %v7678_v44 }
 0x176   : > { %1331 = vmatprep.mubr.f32.mxu0 %v767_v1  ;;  %1483 = vmatprep.subr.mxu1 %v7696_v0  ;;  %v7699_v1 = vld [vmem:[#allocation13 + $0x20] sm:$0xff] }
 0x177   : > { %1484 = vmatpush1.msra.mxu1 %v7699_v1  ;;  %2060 = vmatpush1.msra.mxu0 %v7681_v45 }
 0x178   : > { %2061 = vmatprep.subr.mxu0 %v7684_v53 }
 0x179   : > { %1332 = vmatmul.mubr.f32.gmra.mxu0 %v766_v43  ;;  %v800_v43 = vld [vmem:[#allocation12 + $0x180] sm:$0xff] }
 0x17a   : > { %1336 = vmatprep.mubr.f32.mxu0 %v769_v5  ;;  %v7702_v5 = vld [vmem:[#allocation13 + $0x18] sm:$0xff]  ;;  %2062 = vmatpush1.msra.mxu0 %v7687_v49 }
 0x17b   : > { %1485 = vmatprep.subr.mxu1 %v7702_v5  ;;  %2063 = vmatprep.subr.mxu0 %v7690_v28 }
 0x17c   : > { %2064 = vmatpush1.msra.mxu0 %v7693_v7 }
 0x17d   : > { %1337 = vmatmul.mubr.f32.gmra.mxu0 %v768_v24  ;;  %v803_v24 = vld [vmem:[#allocation12 + $0x198] sm:$0xff]  ;;  %2065 = vmatprep.subr.mxu0 %v7696_v0 }
 0x17e   : > { %1341 = vmatprep.mubr.f32.mxu0 %v771_v6  ;;  %v7705_v6 = vld [vmem:[#allocation13 + $0x10] sm:$0xff]  ;;  %2066 = vmatpush1.msra.mxu0 %v7699_v1 }
 0x17f   : > { %1486 = vmatpush1.msra.mxu1 %v7705_v6  ;;  %2067 = vmatprep.subr.mxu0 %v7702_v5 }
 0x180   : > { %2068 = vmatpush1.msra.mxu0 %v7705_v6 }
 0x181   : > { %1342 = vmatmul.mubr.f32.gmra.mxu0 %v770_v26  ;;  %v7708_v26 = vld [vmem:[#allocation13 + $0x8] sm:$0xff] }
 0x182   : > { %1346 = vmatprep.mubr.f32.mxu0 %v773_v11  ;;  %1487 = vmatprep.subr.mxu1 %v7708_v26  ;;  %v7711_v11 = vld [vmem:[#allocation13] sm:$0xff] }
 0x183   : > { %1488 = vmatpush1.msra.mxu1 %v7711_v11  ;;  %2069 = vmatprep.subr.mxu0 %v7708_v26 }
 0x184   : > { %2070 = vmatpush1.msra.mxu0 %v7711_v11 }
 0x185   : > { %1347 = vmatmul.mubr.f32.gmra.mxu0 %v772_v21  ;;  %v802_v21 = vld [vmem:[#allocation12 + $0x190] sm:$0xff] }
 0x186   : > { %1351 = vmatprep.mubr.f32.mxu0 %v775_v22  ;;  %v7714_v22 = vld [vmem:[#allocation13 + $0x1f8] sm:$0xff] }
 0x187   : > { %1489 = vmatprep.subr.mxu1 %v7714_v22  ;;  %2071 = vmatprep.subr.mxu0 %v7714_v22 }
 0x189   : > { %1352 = vmatmul.mubr.f32.gmra.mxu0 %v774_v37  ;;  %v805_v37 = vld [vmem:[#allocation12 + $0x1a8] sm:$0xff] }
 0x18a   : > { %1356 = vmatprep.mubr.f32.mxu0 %v777_v32  ;;  %v7717_v32 = vld [vmem:[#allocation13 + $0x1f0] sm:$0xff] }
 0x18b   : > { %1490 = vmatpush2.msra.mxu1 %v7717_v32  ;;  %2072 = vmatpush2.msra.mxu0 %v7717_v32 }
 0x18d   : > { %1357 = vmatmul.mubr.f32.gmra.mxu0 %v776_v33  ;;  %v7720_v33 = vld [vmem:[#allocation13 + $0x1e8] sm:$0xff] }
 0x18e   : > { %1361 = vmatprep.mubr.f32.mxu0 %v779_v34  ;;  %1491 = vmatprep.subr.mxu1 %v7720_v33  ;;  %v7723_v34 = vld [vmem:[#allocation13 + $0x1e0] sm:$0xff] }
 0x18f   : > { %1492 = vmatpush2.msra.mxu1 %v7723_v34  ;;  %2073 = vmatprep.subr.mxu0 %v7720_v33 }
 0x190   : > { %2074 = vmatpush2.msra.mxu0 %v7723_v34 }
 0x191   : > { %1362 = vmatmul.mubr.f32.gmra.mxu0 %v778_v35  ;;  %v804_v35 = vld [vmem:[#allocation12 + $0x1a0] sm:$0xff] }
 0x192   : > { %1366 = vmatprep.mubr.f32.mxu0 %v781_v36  ;;  %v7726_v36 = vld [vmem:[#allocation13 + $0x1d8] sm:$0xff] }
 0x193   : > { %1493 = vmatprep.subr.mxu1 %v7726_v36  ;;  %2075 = vmatprep.subr.mxu0 %v7726_v36 }
 0x195   : > { %1367 = vmatmul.mubr.f32.gmra.mxu0 %v780_v38  ;;  %v807_v38 = vld [vmem:[#allocation12 + $0x1b8] sm:$0xff] }
 0x196   : > { %1371 = vmatprep.mubr.f32.mxu0 %v783_v42  ;;  %v7729_v42 = vld [vmem:[#allocation13 + $0x1d0] sm:$0xff] }
 0x197   : > { %1494 = vmatpush2.msra.mxu1 %v7729_v42  ;;  %2076 = vmatpush2.msra.mxu0 %v7729_v42 }
 0x199   : > { %1372 = vmatmul.mubr.f32.gmra.mxu0 %v782_v40  ;;  %v7733_v40 = vld [vmem:[#allocation13 + $0x1c8] sm:$0xff] }
 0x19a   : > { %1376 = vmatprep.mubr.f32.mxu0 %v785_v41  ;;  %1495 = vmatprep.subr.mxu1 %v7733_v40  ;;  %v7737_v41 = vld [vmem:[#allocation13 + $0x1c0] sm:$0xff] }
 0x19b   : > { %1496 = vmatpush2.msra.mxu1 %v7737_v41  ;;  %2077 = vmatprep.subr.mxu0 %v7733_v40 }
 0x19c   : > { %2078 = vmatpush2.msra.mxu0 %v7737_v41 }
 0x19d   : > { %1377 = vmatmul.mubr.f32.gmra.mxu0 %v784_v27  ;;  %v806_v27 = vld [vmem:[#allocation12 + $0x1b0] sm:$0xff] }
 0x19e   : > { %1381 = vmatprep.mubr.f32.mxu0 %v787_v46  ;;  %v7740_v46 = vld [vmem:[#allocation13 + $0x1b8] sm:$0xff] }
 0x19f   : > { %1497 = vmatprep.subr.mxu1 %v7740_v46  ;;  %2079 = vmatprep.subr.mxu0 %v7740_v46 }
 0x1a0   : > { %1498 = vmatpush2.msra.mxu1 %v7743_v47  ;;  %2080 = vmatpush2.msra.mxu0 %v7743_v47 }
 0x1a1   : > { %1382 = vmatmul.mubr.f32.gmra.mxu0 %v786_v51  ;;  %v809_v51 = vld [vmem:[#allocation12 + $0x1c8] sm:$0xff] }
 0x1a2   : > { %1386 = vmatprep.mubr.f32.mxu0 %v789_v50  ;;  %v7747_v50 = vld [vmem:[#allocation13 + $0x1a8] sm:$0xff] }
 0x1a3   : > { %1499 = vmatprep.subr.mxu1 %v7747_v50  ;;  %2081 = vmatprep.subr.mxu0 %v7747_v50 }
 0x1a4   : > { %1500 = vmatpush2.msra.mxu1 %v7751_v16  ;;  %2082 = vmatpush2.msra.mxu0 %v7751_v16 }
 0x1a5   : > { %1387 = vmatmul.mubr.f32.gmra.mxu0 %v788_v56  ;;  %v811_v56 = vld [vmem:[#allocation12 + $0x1d8] sm:$0xff]  ;;  %1501 = vmatprep.subr.mxu1 %v7754_v60 }
 0x1a6   : > { %1391 = vmatprep.mubr.f32.mxu0 %v791_v61  ;;  %1502 = vmatpush2.msra.mxu1 %v7757_v57  ;;  %v7761_v61 = vld [vmem:[#allocation13 + $0x188] sm:$0xff] }
 0x1a7   : > { %1503 = vmatprep.subr.mxu1 %v7761_v61  ;;  %2083 = vmatprep.subr.mxu0 %v7754_v60 }
 0x1a8   : > { %1504 = vmatpush2.msra.mxu1 %v7765_v62  ;;  %2084 = vmatpush2.msra.mxu0 %v7757_v57 }
 0x1a9   : > { %1392 = vmatmul.mubr.f32.gmra.mxu0 %v790_v3  ;;  %v813_v3 = vld [vmem:[#allocation12 + $0x1e8] sm:$0xff]  ;;  %1505 = vmatprep.subr.mxu1 %v7768_v2 }
 0x1aa   : > { %1396 = vmatprep.mubr.f32.mxu0 %v793_v8  ;;  %1506 = vmatpush2.msra.mxu1 %v7771_v10  ;;  %v861_v8 = vld [vmem:[#allocation13 + $0x168] sm:$0xff] }
 0x1ab   : > { %1507 = vmatprep.subr.mxu1 %v861_v8  ;;  %2085 = vmatprep.subr.mxu0 %v7761_v61 }
 0x1ac   : > { %1508 = vmatpush2.msra.mxu1 %v860_v9  ;;  %2086 = vmatpush2.msra.mxu0 %v7765_v62 }
 0x1ad   : > { %1397 = vmatmul.mubr.f32.gmra.mxu0 %v792_v39  ;;  %v815_v39 = vld [vmem:[#allocation12 + $0x1f8] sm:$0xff]  ;;  %1509 = vmatprep.subr.mxu1 %v859_v14 }
 0x1ae   : > { %1401 = vmatprep.mubr.f32.mxu0 %v795_v19  ;;  %1510 = vmatpush2.msra.mxu1 %v858_v18  ;;  %v857_v19 = vld [vmem:[#allocation13 + $0x148] sm:$0xff] }
 0x1af   : > { %1511 = vmatprep.subr.mxu1 %v857_v19  ;;  %2087 = vmatprep.subr.mxu0 %v7768_v2 }
 0x1b0   : > { %1512 = vmatpush2.msra.mxu1 %v856_v20  ;;  %2088 = vmatpush2.msra.mxu0 %v7771_v10 }
 0x1b1   : > { %1402 = vmatmul.mubr.f32.gmra.mxu0 %v794_v25  ;;  %1513 = vmatprep.subr.mxu1 %v855_v58  ;;  %v854_v25 = vld [vmem:[#allocation13 + $0x130] sm:$0xff] }
 0x1b2   : > { %1406 = vmatprep.mubr.f32.mxu0 %v797_v48  ;;  %1514 = vmatpush2.msra.mxu1 %v854_v25  ;;  %v852_v48 = vld [vmem:[#allocation13 + $0x120] sm:$0xff] }
 0x1b3   : > { %1515 = vmatprep.subr.mxu1 %v853_v29  ;;  %2089 = vmatprep.subr.mxu0 %v861_v8 }
 0x1b4   : > { %1516 = vmatpush2.msra.mxu1 %v852_v48  ;;  %2090 = vmatpush2.msra.mxu0 %v860_v9 }
 0x1b5   : > { %1407 = vmatmul.mubr.f32.gmra.mxu0 %v796_v59  ;;  %1517 = vmatprep.subr.mxu1 %v851_v12  ;;  %v848_v59 = vld [vmem:[#allocation13 + $0x100] sm:$0xff] }
 0x1b6   : > { %1411 = vmatprep.mubr.f32.mxu0 %v799_v54  ;;  %1518 = vmatpush2.msra.mxu1 %v850_v30 }
 0x1b7   : > { %1519 = vmatprep.subr.mxu1 %v849_v31  ;;  %2091 = vmatprep.subr.mxu0 %v859_v14 }
 0x1b8   : > { %1520 = vmatpush2.msra.mxu1 %v848_v59  ;;  %2092 = vmatpush2.msra.mxu0 %v858_v18 }
 0x1b9   : > { %1412 = vmatmul.mubr.f32.gmra.mxu0 %v798_v52  ;;  %1814 = vmatprep.subr.mxu1 %v10905_v17 }
 0x1ba   : > { %1416 = vmatprep.mubr.f32.mxu0 %v801_v63  ;;  %2093 = vmatprep.subr.mxu0 %v857_v19 }
 0x1bb   : > { %2094 = vmatpush2.msra.mxu0 %v856_v20 }
 0x1bc   : > { %2095 = vmatprep.subr.mxu0 %v855_v58 }
 0x1bd   : > { %1417 = vmatmul.mubr.f32.gmra.mxu0 %v800_v43 }
 0x1be   : > { %1421 = vmatprep.mubr.f32.mxu0 %v803_v24  ;;  %2096 = vmatpush2.msra.mxu0 %v854_v25 }
 0x1bf   : > { %2097 = vmatprep.subr.mxu0 %v853_v29 }
 0x1c0   : > { %2098 = vmatpush2.msra.mxu0 %v852_v48 }
 0x1c1   : > { %1422 = vmatmul.mubr.f32.gmra.mxu0 %v802_v21  ;;  %2099 = vmatprep.subr.mxu0 %v851_v12 }
 0x1c2   : > { %1426 = vmatprep.mubr.f32.mxu0 %v805_v37  ;;  %2100 = vmatpush2.msra.mxu0 %v850_v30 }
 0x1c3   : > { %2101 = vmatprep.subr.mxu0 %v849_v31 }
 0x1c4   : > { %2102 = vmatpush2.msra.mxu0 %v848_v59 }
 0x1c5   : > { %1427 = vmatmul.mubr.f32.gmra.mxu0 %v804_v35  ;;  %2396 = vmatprep.subr.mxu0 %v10905_v17 }
 0x1c6   : > { %1431 = vmatprep.mubr.f32.mxu0 %v807_v38 }
 0x1c9   : > { %1432 = vmatmul.mubr.f32.gmra.mxu0 %v806_v27 }
 0x1ca   : > { %1436 = vmatprep.mubr.f32.mxu0 %v809_v51 }
 0x1cd   : > { %1437 = vmatmul.mubr.f32.gmra.mxu0 %v808_v55 }
 0x1ce   : > { %1441 = vmatprep.mubr.f32.mxu0 %v811_v56 }
 0x1d1   : > { %1442 = vmatmul.mubr.f32.gmra.mxu0 %v810_v4 }
 0x1d2   : > { %1446 = vmatprep.mubr.f32.mxu0 %v813_v3 }
 0x1d5   : > { %1447 = vmatmul.mubr.f32.gmra.mxu0 %v812_v13 }
 0x1d6   : > { %1451 = vmatprep.mubr.f32.mxu0 %v815_v39 }
 0x1d9   : > { %1452 = vmatmul.mubr.f32.gmra.mxu0 %v7778_v23 }
 0x21d   : > { %v1298_v44 = vpop.f32.mrf.mxu0 }
 0x21f   : > { %v1300_v54 = vpop.f32.mrf.mxu0 }
 0x221   : > { %v1303_v45 = vpop.f32.mrf.mxu0 }
 0x223   : > { %v1305_v53 = vpop.f32.mrf.mxu0 }
 0x225   : > { %v1308_v49 = vpop.f32.mrf.mxu0 }
 0x227   : > { %v1310_v52 = vpop.f32.mrf.mxu0 }
 0x229   : > { %v1313_v28 = vpop.f32.mrf.mxu0 }
 0x22b   : > { %v1315_v63 = vpop.f32.mrf.mxu0 }
 0x22d   : > { %v1318_v7 = vpop.f32.mrf.mxu0 }
 0x22f   : > { %v1320_v0 = vpop.f32.mrf.mxu0 }
 0x231   : > { %v1323_v1 = vpop.f32.mrf.mxu0 }
 0x233   : > { %v1325_v43 = vpop.f32.mrf.mxu0 }
 0x235   : > { %v1328_v5 = vpop.f32.mrf.mxu0 }
 0x237   : > { %v1330_v24 = vpop.f32.mrf.mxu0 }
 0x239   : > { %v1333_v6 = vpop.f32.mrf.mxu0 }
 0x23b   : > { %v1335_v26 = vpop.f32.mrf.mxu0 }
 0x23d   : > { %v1338_v11 = vpop.f32.mrf.mxu0 }
 0x23f   : > { %v1340_v21 = vpop.f32.mrf.mxu0 }
 0x241   : > { %v1343_v22 = vpop.f32.mrf.mxu0 }
 0x243   : > { %v1345_v37 = vpop.f32.mrf.mxu0 }
 0x245   : > { %v1348_v32 = vpop.f32.mrf.mxu0 }
 0x247   : > { %v1350_v33 = vpop.f32.mrf.mxu0 }
 0x249   : > { %v1353_v34 = vpop.f32.mrf.mxu0 }
 0x24b   : > { %v1355_v35 = vpop.f32.mrf.mxu0 }
 0x24d   : > { %v1358_v36 = vpop.f32.mrf.mxu0 }
 0x24f   : > { %v1360_v38 = vpop.f32.mrf.mxu0 }
 0x251   : > { %v1363_v42 = vpop.f32.mrf.mxu0 }
 0x253   : > { %v1365_v40 = vpop.f32.mrf.mxu0 }
 0x255   : > { %v1368_v41 = vpop.f32.mrf.mxu0 }
 0x257   : > { %v1370_v27 = vpop.f32.mrf.mxu0 }
 0x259   : > { %v7805_v46 = vpop.f32.mrf.mxu0 }
 0x25b   : > { %v1375_v51 = vpop.f32.mrf.mxu0 }
 0x25d   : > { %v1378_v47 = vpop.f32.mrf.mxu0 }
 0x25e   : > { %1521 = vmatprep.mubr.f32.mxu1 %v1378_v47  ;;  %v7870_v47 = vld [vmem:[%s7176_s8 + $0xf0] sm:$0xff] }
 0x25f   : > { %v1380_v50 = vpop.f32.mrf.mxu0  ;;  %1522 = vmatmul.mubr.f32.vlgmr.msra.gmra.mxu1 %v1298_v44 }
 0x260   : > { %v7873_v50 = vld [vmem:[%s7182_s25 + $0xf0] sm:$0xff] }
 0x261   : > { %v1383_v16 = vpop.f32.mrf.mxu0 }
 0x262   : > { %1527 = vmatprep.mubr.f32.mxu1 %v1383_v16 }
 0x263   : > { %v1385_v55 = vpop.f32.mrf.mxu0  ;;  %1528 = vmatmul.mubr.f32.gmra.mxu1 %v1303_v45 }
 0x264   : > { %v7878_v55 = vld [vmem:[%s7176_s8 + $0xf8] sm:$0xff] }
 0x265   : > { %v1388_v60 = vpop.f32.mrf.mxu0 }
 0x266   : > { %1533 = vmatprep.mubr.f32.mxu1 %v1388_v60 }
 0x267   : > { %v1390_v56 = vpop.f32.mrf.mxu0  ;;  %1534 = vmatmul.mubr.f32.gmra.mxu1 %v1308_v49 }
 0x268   : > { %v7883_v56 = vld [vmem:[%s7176_s8 + $0xe8] sm:$0xff] }
 0x269   : > { %v1393_v57 = vpop.f32.mrf.mxu0 }
 0x26a   : > { %1539 = vmatprep.mubr.f32.mxu1 %v1393_v57  ;;  %v7886_v57 = vld [vmem:[%s7182_s25 + $0xe8] sm:$0xff] }
 0x26b   : > { %v1395_v61 = vpop.f32.mrf.mxu0  ;;  %1540 = vmatmul.mubr.f32.gmra.mxu1 %v1313_v28 }
 0x26c   : > { %v7889_v61 = vld [vmem:[%s7182_s25 + $0xf8] sm:$0xff] }
 0x26d   : > { %v1398_v62 = vpop.f32.mrf.mxu0 }
 0x26e   : > { %1545 = vmatprep.mubr.f32.mxu1 %v1398_v62 }
 0x26f   : > { %v1400_v4 = vpop.f32.mrf.mxu0  ;;  %1546 = vmatmul.mubr.f32.gmra.mxu1 %v1318_v7 }
 0x271   : > { %v1403_v2 = vpop.f32.mrf.mxu0 }
 0x272   : > { %1551 = vmatprep.mubr.f32.mxu1 %v1403_v2 }
 0x273   : > { %v1405_v3 = vpop.f32.mrf.mxu0  ;;  %1552 = vmatmul.mubr.f32.gmra.mxu1 %v1323_v1 }
 0x275   : > { %v1408_v10 = vpop.f32.mrf.mxu0 }
 0x276   : > { %1557 = vmatprep.mubr.f32.mxu1 %v1408_v10 }
 0x277   : > { %v1410_v8 = vpop.f32.mrf.mxu0  ;;  %1558 = vmatmul.mubr.f32.gmra.mxu1 %v1328_v5 }
 0x278   : > { %v7902_v8 = vld [vmem:[%s7176_s8 + $0xe0] sm:$0xff] }
 0x279   : > { %v1413_v9 = vpop.f32.mrf.mxu0 }
 0x27a   : > { %1563 = vmatprep.mubr.f32.mxu1 %v1413_v9  ;;  %v7905_v9 = vld [vmem:[%s7182_s25 + $0xe0] sm:$0xff] }
 0x27b   : > { %v1415_v13 = vpop.f32.mrf.mxu0  ;;  %1564 = vmatmul.mubr.f32.gmra.mxu1 %v1333_v6 }
 0x27c   : > { %v5407_v13 = vld [vmem:[%s7188_s18 + $0xf8] sm:$0xff] }
 0x27d   : > { %v1418_v14 = vpop.f32.mrf.mxu0 }
 0x27e   : > { %1569 = vmatprep.mubr.f32.mxu1 %v1418_v14 }
 0x27f   : > { %v1420_v39 = vpop.f32.mrf.mxu0  ;;  %1570 = vmatmul.mubr.f32.gmra.mxu1 %v1338_v11 }
 0x281   : > { %v1423_v18 = vpop.f32.mrf.mxu0 }
 0x282   : > { %1575 = vmatprep.mubr.f32.mxu1 %v1423_v18 }
 0x283   : > { %v1425_v19 = vpop.f32.mrf.mxu0  ;;  %1576 = vmatmul.mubr.f32.gmra.mxu1 %v1343_v22 }
 0x285   : > { %v1428_v20 = vpop.f32.mrf.mxu0 }
 0x286   : > { %1581 = vmatprep.mubr.f32.mxu1 %v1428_v20  ;;  %v7913_v20 = vld [vmem:[%s7176_s8 + $0xd8] sm:$0xff] }
 0x287   : > { %v1430_v58 = vpop.f32.mrf.mxu0  ;;  %1582 = vmatmul.mubr.f32.gmra.mxu1 %v1348_v32 }
 0x288   : > { %v7916_v58 = vld [vmem:[%s7182_s25 + $0xd8] sm:$0xff] }
 0x289   : > { %v1433_v25 = vpop.f32.mrf.mxu0 }
 0x28a   : > { %1587 = vmatprep.mubr.f32.mxu1 %v1433_v25  ;;  %v5406_v25 = vld [vmem:[%s7188_s18 + $0xf0] sm:$0xff] }
 0x28b   : > { %v1435_v29 = vpop.f32.mrf.mxu0  ;;  %1588 = vmatmul.mubr.f32.gmra.mxu1 %v1353_v34 }
 0x28d   : > { %v1438_v48 = vpop.f32.mrf.mxu0 }
 0x28e   : > { %1593 = vmatprep.mubr.f32.mxu1 %v1438_v48 }
 0x28f   : > { %v1440_v12 = vpop.f32.mrf.mxu0  ;;  %1594 = vmatmul.mubr.f32.gmra.mxu1 %v1358_v36 }
 0x291   : > { %v1443_v30 = vpop.f32.mrf.mxu0 }
 0x292   : > { %1599 = vmatprep.mubr.f32.mxu1 %v1443_v30 }
 0x293   : > { %v1445_v31 = vpop.f32.mrf.mxu0  ;;  %1600 = vmatmul.mubr.f32.gmra.mxu1 %v1363_v42 }
 0x294   : > { %v7924_v31 = vld [vmem:[%s7176_s8 + $0xd0] sm:$0xff] }
 0x295   : > { %v1448_v59 = vpop.f32.mrf.mxu0 }
 0x296   : > { %1605 = vmatprep.mubr.f32.mxu1 %v1448_v59  ;;  %v7927_v59 = vld [vmem:[%s7182_s25 + $0xd0] sm:$0xff] }
 0x297   : > { %v1450_v44 = vpop.f32.mrf.mxu0  ;;  %1606 = vmatmul.mubr.f32.gmra.mxu1 %v1368_v41 }
 0x298   : > { %v5405_v44 = vld [vmem:[%s7188_s18 + $0xe8] sm:$0xff] }
 0x299   : > { %v1453_v54 = vpop.f32.mrf.mxu0 }
 0x29a   : > { %1611 = vmatprep.mubr.f32.mxu1 %v1453_v54 }
 0x29b   : > { %v1455_v45 = vpop.f32.mrf.mxu0  ;;  %1612 = vmatmul.mubr.f32.gmra.mxu1 %v7805_v46 }
 0x29c   : > { %1878 = vmatprep.mubr.f32.mxu1 %v7606_v15 }
 0x31f   : > { %v7809_v53 = vpop.f32.mrf.mxu1 }
 0x321   : > { %v7811_v49 = vpop.f32.mrf.mxu1 }
 0x323   : > { %v7813_v52 = vpop.f32.mrf.mxu1 }
 0x325   : > { %v7815_v28 = vpop.f32.mrf.mxu1 }
 0x327   : > { %v7817_v63 = vpop.f32.mrf.mxu1 }
 0x328   : > { %10933 = vst [vmem:[#allocation40_spill] sm:$0xff] %v7817_v63 }
 0x329   : > { %v7819_v7 = vpop.f32.mrf.mxu1 }
 0x32a   : > { %10934 = vst [vmem:[#allocation41_spill] sm:$0xff] %v7819_v7 }
 0x32b   : > { %v7821_v0 = vpop.f32.mrf.mxu1 }
 0x32c   : > { %10935 = vst [vmem:[#allocation44_spill] sm:$0xff] %v7821_v0 }
 0x32d   : > { %v7823_v1 = vpop.f32.mrf.mxu1 }
 0x32f   : > { %v7825_v43 = vpop.f32.mrf.mxu1 }
 0x330   : > { %10936 = vst [vmem:[#allocation42_spill] sm:$0xff] %v7825_v43 }
 0x331   : > { %v7827_v5 = vpop.f32.mrf.mxu1 }
 0x333   : > { %v7829_v15 = vpop.f32.mrf.mxu1 }
 0x334   : > { %10937 = vst [vmem:[#allocation43_spill] sm:$0xff] %v7829_v15 }
 0x335   : > { %v7831_v24 = vpop.f32.mrf.mxu1 }
 0x337   : > { %v7833_v6 = vpop.f32.mrf.mxu1 }
 0x338   : > { %10938 = vst [vmem:[#allocation45_spill] sm:$0xff] %v7833_v6 }
 0x339   : > { %v7835_v26 = vpop.f32.mrf.mxu1 }
 0x33b   : > { %v7837_v11 = vpop.f32.mrf.mxu1 }
 0x33c   : > { %10939 = vst [vmem:[#allocation48_spill] sm:$0xff] %v7837_v11 }
 0x33d   : > { %v7839_v21 = vpop.f32.mrf.mxu1 }
 0x33f   : > { %v7841_v22 = vpop.f32.mrf.mxu1 }
 0x340   : > { %10940 = vst [vmem:[#allocation46_spill] sm:$0xff] %v7841_v22 }
 0x341   : > { %v7843_v37 = vpop.f32.mrf.mxu1 }
 0x343   : > { %v7845_v32 = vpop.f32.mrf.mxu1 }
 0x344   : > { %10941 = vst [vmem:[#allocation47_spill] sm:$0xff] %v7845_v32 }
 0x345   : > { %v7847_v33 = vpop.f32.mrf.mxu1 }
 0x347   : > { %v7849_v34 = vpop.f32.mrf.mxu1 }
 0x349   : > { %v7851_v35 = vpop.f32.mrf.mxu1 }
 0x34a   : > { %v1712_v54 = vmul.f32 %v7927_v59, %v7851_v35 }
 0x34b   : > { %v7853_v36 = vpop.f32.mrf.mxu1 }
 0x34c   : > { %v1697_v45 = vmul.f32 %v7913_v20, %v7853_v36 }
 0x34d   : > { %v7855_v38 = vpop.f32.mrf.mxu1 }
 0x34e   : > { %v1713_v29 = vmul.f32 %v7916_v58, %v7855_v38 }
 0x34f   : > { %v7857_v42 = vpop.f32.mrf.mxu1 }
 0x350   : > { %v1698_v48 = vmul.f32 %v7902_v8, %v7857_v42 }
 0x351   : > { %v7859_v40 = vpop.f32.mrf.mxu1 }
 0x352   : > { %v1714_v14 = vmul.f32 %v7905_v9, %v7859_v40 }
 0x353   : > { %v7861_v41 = vpop.f32.mrf.mxu1 }
 0x354   : > { %v1699_v39 = vmul.f32 %v7883_v56, %v7861_v41 }
 0x355   : > { %v7863_v27 = vpop.f32.mrf.mxu1 }
 0x356   : > { %v1715_v4 = vmul.f32 %v7886_v57, %v7863_v27 }
 0x357   : > { %v7865_v46 = vpop.f32.mrf.mxu1 }
 0x358   : > { %v1700_v2 = vmul.f32 %v7870_v47, %v7865_v46  ;;  %v1731_v12 = vsub.f32 %v1699_v39, %v1715_v4  ;;  %v7938_v4 = vld [vmem:[%s7182_s25 + $0xc8] sm:$0xff]  ;;  %v1696_v39 = vmul.f32 %v7924_v31, %v7849_v34 }
 0x359   : > { %v7867_v51 = vpop.f32.mrf.mxu1  ;;  %10942 = vst [vmem:[#allocation49_spill] sm:$0xff] %v7938_v4 }
 0x35a   : > { %v1716_v60 = vmul.f32 %v7873_v50, %v7867_v51 }
 0x35b   : > { %v7875_v16 = vpop.f32.mrf.mxu1 }
 0x35c   : > { %v1701_v3 = vmul.f32 %v7878_v55, %v7875_v16  ;;  %v1732_v18 = vsub.f32 %v1700_v2, %v1716_v60  ;;  %v1730_v60 = vsub.f32 %v1698_v48, %v1714_v14  ;;  %v1747_v14 = vadd.f32 %v5405_v44, %v1731_v12  ;;  %v5403_v48 = vld [vmem:[%s7188_s18 + $0xd8] sm:$0xff] }
 0x35d   : > { %v7891_v62 = vpop.f32.mrf.mxu1  ;;  %v7959_v12 = vld [vmem:[%s7176_s8 + $0xb8] sm:$0xff] }
 0x35e   : > { %v1717_v10 = vmul.f32 %v7889_v61, %v7891_v62  ;;  %v1748_v2 = vadd.f32 %v5406_v25, %v1732_v18  ;;  %v7947_v18 = vld [vmem:[%s7176_s8 + $0xc0] sm:$0xff]  ;;  %v7962_v44 = vld [vmem:[%s7182_s25 + $0xb8] sm:$0xff] }
 0x35f   : > { %v7950_v25 = vld [vmem:[%s7182_s25 + $0xc0] sm:$0xff]  ;;  %10944 = vst [vmem:[#allocation50_spill] sm:$0xff] %v7962_v44 }
 0x360   : > { %v1733_v19 = vsub.f32 %v1701_v3, %v1717_v10  ;;  %v7935_v3 = vld [vmem:[%s7176_s8 + $0xc8] sm:$0xff]  ;;  %v5404_v10 = vld [vmem:[%s7188_s18 + $0xe0] sm:$0xff]  ;;  %10943 = vst [vmem:[#allocation52_spill] sm:$0xff] %v7950_v25 }
 0x361   : > { %v1695_v23 = vmul.f32 %v7935_v3, %v7845_v32 }
 0x362   : > { %v1749_v30 = vadd.f32 %v5407_v13, %v1733_v19  ;;  %v1711_v13 = vmul.f32 %v7938_v4, %v7847_v33  ;;  %v1729_v19 = vsub.f32 %v1697_v45, %v1713_v29  ;;  %v1728_v4 = vsub.f32 %v1696_v39, %v1712_v54  ;;  %v5402_v45 = vld [vmem:[%s7188_s18 + $0xd0] sm:$0xff]  ;;  %v5401_v39 = vld [vmem:[%s7188_s18 + $0xc8] sm:$0xff] }
 0x363   : > { %v1746_v29 = vadd.f32 %v5404_v10, %v1730_v60  ;;  %v7971_v60 = vld [vmem:[%s7176_s8 + $0xb0] sm:$0xff] }
 0x364   : > { %1815 = vmatpush1.msra.mxu1 %v1749_v30  ;;  %v1710_v30 = vmul.f32 %v7950_v25, %v7843_v37  ;;  %v1694_v25 = vmul.f32 %v7947_v18, %v7841_v22  ;;  %v1727_v32 = vsub.f32 %v1695_v23, %v1711_v13  ;;  %v1745_v54 = vadd.f32 %v5403_v48, %v1729_v19  ;;  %v7974_v10 = vld [vmem:[%s7182_s25 + $0xb0] sm:$0xff]  ;;  %v7983_v13 = vld [vmem:[%s7176_s8 + $0xa8] sm:$0xff]  ;;  %v5400_v48 = vld [vmem:[%s7188_s18 + $0xc0] sm:$0xff] }
 0x365   : > { %1816 = vmatprep.subr.mxu1 %v10905_v17  ;;  %10945 = vst [vmem:[#allocation51_spill] sm:$0xff] %v7974_v10  ;;  %v1744_v23 = vadd.f32 %v5402_v45, %v1728_v4  ;;  %v7986_v19 = vld [vmem:[%s7182_s25 + $0xa8] sm:$0xff]  ;;  %v7995_v4 = vld [vmem:[%s7176_s8 + $0xa0] sm:$0xff]  ;;  %v5399_v45 = vld [vmem:[%s7188_s18 + $0xb8] sm:$0xff] }
 0x366   : > { %1817 = vmatpush1.msra.mxu1 %v1748_v2  ;;  %v1709_v2 = vmul.f32 %v7962_v44, %v7839_v21  ;;  %v1693_v44 = vmul.f32 %v7959_v12, %v7837_v11  ;;  %v1726_v22 = vsub.f32 %v1694_v25, %v1710_v30  ;;  %10946 = vst [vmem:[#allocation53_spill] sm:$0xff] %v7986_v19  ;;  %v7998_v30 = vld [vmem:[%s7182_s25 + $0xa0] sm:$0xff] }
 0x367   : > { %1818 = vmatprep.subr.mxu1 %v10905_v17  ;;  %v1743_v25 = vadd.f32 %v5401_v39, %v1727_v32  ;;  %10947 = vst [vmem:[#allocation56_spill] sm:$0xff] %v7998_v30  ;;  %v8007_v32 = vld [vmem:[%s7176_s8 + $0x98] sm:$0xff]  ;;  %v5398_v39 = vld [vmem:[%s7188_s18 + $0xb0] sm:$0xff] }
 0x368   : > { %1819 = vmatpush1.msra.mxu1 %v1747_v14  ;;  %v1708_v14 = vmul.f32 %v7974_v10, %v7835_v26  ;;  %v1692_v10 = vmul.f32 %v7971_v60, %v7833_v6  ;;  %v1725_v11 = vsub.f32 %v1693_v44, %v1709_v2  ;;  %v1742_v44 = vadd.f32 %v5400_v48, %v1726_v22  ;;  %v8010_v2 = vld [vmem:[%s7182_s25 + $0x98] sm:$0xff]  ;;  %v8019_v22 = vld [vmem:[%s7176_s8 + $0x90] sm:$0xff]  ;;  %v5397_v48 = vld [vmem:[%s7188_s18 + $0xa8] sm:$0xff] }
 0x369   : > { %1820 = vmatprep.subr.mxu1 %v10905_v17  ;;  %10948 = vst [vmem:[#allocation54_spill] sm:$0xff] %v8010_v2 }
 0x36a   : > { %1821 = vmatpush1.msra.mxu1 %v1746_v29  ;;  %v1707_v29 = vmul.f32 %v7986_v19, %v7831_v24  ;;  %v1691_v19 = vmul.f32 %v7983_v13, %v7829_v15  ;;  %v1724_v6 = vsub.f32 %v1692_v10, %v1708_v14  ;;  %v1741_v10 = vadd.f32 %v5399_v45, %v1725_v11  ;;  %v8022_v14 = vld [vmem:[%s7182_s25 + $0x90] sm:$0xff]  ;;  %v8031_v11 = vld [vmem:[%s7176_s8 + $0x88] sm:$0xff]  ;;  %v5396_v45 = vld [vmem:[%s7188_s18 + $0xa0] sm:$0xff] }
 0x36b   : > { %1822 = vmatprep.subr.mxu1 %v10905_v17  ;;  %10949 = vst [vmem:[#allocation55_spill] sm:$0xff] %v8022_v14 }
 0x36c   : > { %1823 = vmatpush1.msra.mxu1 %v1745_v54  ;;  %v1706_v54 = vmul.f32 %v7998_v30, %v7827_v5  ;;  %v1690_v30 = vmul.f32 %v7995_v4, %v7825_v43  ;;  %v1723_v15 = vsub.f32 %v1691_v19, %v1707_v29  ;;  %v1740_v19 = vadd.f32 %v5398_v39, %v1724_v6  ;;  %v8034_v29 = vld [vmem:[%s7182_s25 + $0x88] sm:$0xff]  ;;  %v8046_v6 = vld [vmem:[%s7182_s25 + $0x80] sm:$0xff] }
 0x36d   : > { %1824 = vmatprep.subr.mxu1 %v10905_v17  ;;  %10950 = vst [vmem:[#allocation57_spill] sm:$0xff] %v8034_v29  ;;  %10951 = vst [vmem:[#allocation58_spill] sm:$0xff] %v8046_v6  ;;  %v1702_v39 = vmul.f32 %v8046_v6, %v7811_v49  ;;  %v5393_v6 = vld [vmem:[%s7188_s18 + $0x88] sm:$0xff] }
 0x36e   : > { %1825 = vmatpush1.msra.mxu1 %v1744_v23  ;;  %v1705_v23 = vmul.f32 %v8010_v2, %v7823_v1  ;;  %v1689_v2 = vmul.f32 %v8007_v32, %v7821_v0  ;;  %v1722_v43 = vsub.f32 %v1690_v30, %v1706_v54  ;;  %v1739_v0 = vadd.f32 %v5397_v48, %v1723_v15  ;;  %v8043_v30 = vld [vmem:[%s7176_s8 + $0x80] sm:$0xff]  ;;  %v5395_v54 = vld [vmem:[%s7188_s18 + $0x98] sm:$0xff]  ;;  %v5394_v15 = vld [vmem:[%s7188_s18 + $0x90] sm:$0xff] }
 0x36f   : > { %1826 = vmatprep.subr.mxu1 %v10905_v17  ;;  %v1781_v48 = vmul.f32 %v7878_v55, %v7891_v62 }
 0x370   : > { %1827 = vmatpush1.msra.mxu1 %v1743_v25  ;;  %v1704_v25 = vmul.f32 %v8022_v14, %v7819_v7  ;;  %v1688_v14 = vmul.f32 %v8019_v22, %v7817_v63  ;;  %v1721_v7 = vsub.f32 %v1689_v2, %v1705_v23  ;;  %v1738_v63 = vadd.f32 %v5396_v45, %v1722_v43  ;;  %v5392_v45 = vld [vmem:[%s7188_s18 + $0x80] sm:$0xff] }
 0x371   : > { %1828 = vmatprep.subr.mxu1 %v10905_v17  ;;  %v1686_v2 = vmul.f32 %v8043_v30, %v7809_v53  ;;  %v1765_v43 = vmul.f32 %v7889_v61, %v7875_v16  ;;  %v1763_v16 = vmul.f32 %v7886_v57, %v7861_v41  ;;  %v1776_v41 = vmul.f32 %v7924_v31, %v7851_v35  ;;  %v5419_v35 = vld [vmem:[%s7190_s13 + $0xd8] sm:$0xff]  ;;  %v10953_v31 = vld [vmem:[#allocation49_spill] sm:$0xff] }
 0x372   : > { %1829 = vmatpush1.msra.mxu1 %v1742_v44  ;;  %v1703_v44 = vmul.f32 %v8034_v29, %v7815_v28  ;;  %v1720_v29 = vsub.f32 %v1688_v14, %v1704_v25  ;;  %v1761_v57 = vmul.f32 %v7916_v58, %v7853_v36  ;;  %v1774_v36 = vmul.f32 %v7947_v18, %v7843_v37  ;;  %v10952_v58 = vld [vmem:[#allocation47_spill] sm:$0xff]  ;;  %v5417_v37 = vld [vmem:[%s7190_s13 + $0xc8] sm:$0xff] }
 0x373   : > { %1830 = vmatprep.subr.mxu1 %v10905_v17  ;;  %v1718_v14 = vsub.f32 %v1686_v2, %v1702_v39  ;;  %v1797_v55 = vadd.f32 %v1781_v48, %v1765_v43  ;;  %v1759_v39 = vmul.f32 %v10953_v31, %v10952_v58  ;;  %v1772_v18 = vmul.f32 %v7971_v60, %v7835_v26  ;;  %v5415_v26 = vld [vmem:[%s7190_s13 + $0xb8] sm:$0xff] }
 0x374   : > { %1831 = vmatpush1.msra.mxu1 %v1741_v10  ;;  %v1687_v10 = vmul.f32 %v8031_v11, %v7813_v52  ;;  %v1736_v25 = vadd.f32 %v5394_v15, %v1720_v29  ;;  %v1770_v60 = vmul.f32 %v7995_v4, %v7827_v5  ;;  %v5413_v5 = vld [vmem:[%s7190_s13 + $0xa8] sm:$0xff]  ;;  %v10964_v4 = vld [vmem:[#allocation41_spill] sm:$0xff] }
 0x375   : > { %1832 = vmatprep.subr.mxu1 %v10905_v17  ;;  %v1734_v29 = vadd.f32 %v5392_v45, %v1718_v14  ;;  %v10957_v14 = vld [vmem:[#allocation50_spill] sm:$0xff]  ;;  %v10958_v45 = vld [vmem:[#allocation45_spill] sm:$0xff] }
 0x376   : > { %1833 = vmatpush1.msra.mxu1 %v1740_v19  ;;  %v1719_v23 = vsub.f32 %v1687_v10, %v1703_v44  ;;  %v1737_v19 = vadd.f32 %v5395_v54, %v1721_v7  ;;  %v1764_v7 = vmul.f32 %v7873_v50, %v7865_v46  ;;  %v1777_v46 = vmul.f32 %v7913_v20, %v7855_v38  ;;  %v5420_v38 = vld [vmem:[%s7190_s13 + $0xe0] sm:$0xff]  ;;  %v10969_v58 = vld [vmem:[#allocation57_spill] sm:$0xff] }
 0x377   : > { %1834 = vmatprep.subr.mxu1 %v10905_v17  ;;  %v1762_v50 = vmul.f32 %v7905_v9, %v7857_v42  ;;  %v1775_v42 = vmul.f32 %v7935_v3, %v7847_v33  ;;  %v1760_v9 = vmul.f32 %v7927_v59, %v7849_v34  ;;  %v5418_v33 = vld [vmem:[%s7190_s13 + $0xd0] sm:$0xff]  ;;  %v1773_v34 = vmul.f32 %v7959_v12, %v7839_v21  ;;  %v10954_v59 = vld [vmem:[#allocation46_spill] sm:$0xff]  ;;  %v10955_v3 = vld [vmem:[#allocation52_spill] sm:$0xff] }
 0x378   : > { %1835 = vmatpush1.msra.mxu1 %v1739_v0  ;;  %v1780_v0 = vmul.f32 %v7870_v47, %v7867_v51  ;;  %v1735_v62 = vadd.f32 %v5393_v6, %v1719_v23  ;;  %v5423_v51 = vld [vmem:[%s7190_s13 + $0xf8] sm:$0xff]  ;;  %v1778_v47 = vmul.f32 %v7902_v8, %v7859_v40  ;;  %v5421_v40 = vld [vmem:[%s7190_s13 + $0xe8] sm:$0xff]  ;;  %v1793_v20 = vadd.f32 %v1777_v46, %v1761_v57  ;;  %v5416_v21 = vld [vmem:[%s7190_s13 + $0xc0] sm:$0xff] }
 0x379   : > { %1836 = vmatprep.subr.mxu1 %v10905_v17  ;;  %v1813_v44 = vadd.f32 %v5423_v51, %v1797_v55  ;;  %v1792_v10 = vadd.f32 %v1776_v41, %v1760_v9  ;;  %v1758_v2 = vmul.f32 %v10955_v3, %v10954_v59  ;;  %v1791_v23 = vadd.f32 %v1775_v42, %v1759_v39  ;;  %v10960_v51 = vld [vmem:[#allocation43_spill] sm:$0xff]  ;;  %v10963_v46 = vld [vmem:[#allocation56_spill] sm:$0xff]  ;;  %v10966_v57 = vld [vmem:[#allocation54_spill] sm:$0xff] }
 0x37a   : > { %1837 = vmatpush1.msra.mxu1 %v1738_v63  ;;  %v1779_v63 = vmul.f32 %v7883_v56, %v7863_v27  ;;  %v1796_v61 = vadd.f32 %v1780_v0, %v1764_v7  ;;  %v5422_v27 = vld [vmem:[%s7190_s13 + $0xf0] sm:$0xff]  ;;  %v1794_v8 = vadd.f32 %v1778_v47, %v1762_v50  ;;  %v1809_v48 = vadd.f32 %v5419_v35, %v1793_v20  ;;  %v10965_v41 = vld [vmem:[#allocation44_spill] sm:$0xff]  ;;  %v10968_v9 = vld [vmem:[#allocation55_spill] sm:$0xff] }
 0x37b   : > { %1838 = vmatprep.subr.mxu1 %v10905_v17  ;;  %v1790_v43 = vadd.f32 %v1774_v36, %v1758_v2  ;;  %v1771_v12 = vmul.f32 %v7983_v13, %v7831_v24  ;;  %v10961_v47 = vld [vmem:[#allocation53_spill] sm:$0xff]  ;;  %v1769_v13 = vmul.f32 %v8007_v32, %v7823_v1  ;;  %v5412_v1 = vld [vmem:[%s7190_s13 + $0xa0] sm:$0xff]  ;;  %v1767_v32 = vmul.f32 %v8031_v11, %v7815_v28  ;;  %v10967_v42 = vld [vmem:[#allocation40_spill] sm:$0xff] }
 0x37c   : > { %1839 = vmatpush1.msra.mxu1 %v1737_v19  ;;  %v1795_v56 = vadd.f32 %v1779_v63, %v1763_v16  ;;  %v1812_v6 = vadd.f32 %v5422_v27, %v1796_v61  ;;  %v1810_v15 = vadd.f32 %v5420_v38, %v1794_v8  ;;  %v10956_v19 = vld [vmem:[#allocation48_spill] sm:$0xff]  ;;  %v10959_v63 = vld [vmem:[#allocation51_spill] sm:$0xff]  ;;  %v1755_v16 = vmul.f32 %v10961_v47, %v10960_v51  ;;  %v5414_v24 = vld [vmem:[%s7190_s13 + $0xb0] sm:$0xff] }
 0x37d   : > { %1840 = vmatprep.subr.mxu1 %v10905_v17  ;;  %v1757_v0 = vmul.f32 %v10957_v14, %v10956_v19  ;;  %v1756_v7 = vmul.f32 %v10959_v63, %v10958_v45  ;;  %v10962_v27 = vld [vmem:[#allocation42_spill] sm:$0xff]  ;;  %v1753_v8 = vmul.f32 %v10966_v57, %v10965_v41  ;;  %v1752_v20 = vmul.f32 %v10968_v9, %v10967_v42  ;;  %v5410_v11 = vld [vmem:[%s7190_s13 + $0x90] sm:$0xff]  ;;  %v5409_v59 = vld [vmem:[%s7190_s13 + $0x88] sm:$0xff] }
 0x37e   : > { %1841 = vmatpush1.msra.mxu1 %v1736_v25  ;;  %v1811_v54 = vadd.f32 %v5421_v40, %v1795_v56  ;;  %v1808_v25 = vadd.f32 %v5418_v33, %v1792_v10  ;;  %v1754_v50 = vmul.f32 %v10963_v46, %v10962_v27  ;;  %v1787_v56 = vadd.f32 %v1771_v12, %v1755_v16  ;;  %v5411_v35 = vld [vmem:[%s7190_s13 + $0x98] sm:$0xff]  ;;  %v5963_v14 = vld [vmem:[#allocation12 + $0x30] sm:$0xff]  ;;  %v5968_v12 = vld [vmem:[#allocation12 + $0x68] sm:$0xff] }
 0x37f   : > { %1842 = vmatprep.subr.mxu1 %v10905_v17  ;;  %v1789_v55 = vadd.f32 %v1773_v34, %v1757_v0  ;;  %v1788_v61 = vadd.f32 %v1772_v18, %v1756_v7  ;;  %v1768_v40 = vmul.f32 %v8019_v22, %v10964_v4  ;;  %v1766_v36 = vmul.f32 %v8043_v30, %v7811_v49  ;;  %v10970_v10 = vld [vmem:[#allocation58_spill] sm:$0xff]  ;;  %v5961_v18 = vld [vmem:[#allocation12 + $0x20] sm:$0xff]  ;;  %v5964_v0 = vld [vmem:[#allocation12 + $0x48] sm:$0xff] }
 0x380   : > { %1843 = vmatpush1.msra.mxu1 %v1735_v62  ;;  %v1807_v62 = vadd.f32 %v5417_v37, %v1791_v23  ;;  %v1803_v22 = vadd.f32 %v5413_v5, %v1787_v56  ;;  %v1751_v31 = vmul.f32 %v10969_v58, %v7813_v52  ;;  %v5408_v52 = vld [vmem:[%s7190_s13 + $0x80] sm:$0xff]  ;;  %v5958_v23 = vld [vmem:[#allocation12 + $0x18] sm:$0xff]  ;;  %v5960_v37 = vld [vmem:[#allocation12 + $0x28] sm:$0xff] }
 0x381   : > { %1844 = vmatprep.subr.mxu1 %v10905_v17  ;;  %v1804_v38 = vadd.f32 %v5414_v24, %v1788_v61  ;;  %v1784_v39 = vadd.f32 %v1768_v40, %v1752_v20  ;;  %v5962_v19 = vld [vmem:[#allocation12 + $0x38] sm:$0xff]  ;;  %v5969_v45 = vld [vmem:[#allocation12 + $0x60] sm:$0xff]  ;;  %v5971_v7 = vld [vmem:[#allocation12 + $0x70] sm:$0xff] }
 0x382   : > { %1845 = vmatpush1.msra.mxu1 %v1734_v29  ;;  %v1806_v29 = vadd.f32 %v5416_v21, %v1790_v43  ;;  %v1783_v33 = vadd.f32 %v1767_v32, %v1751_v31  ;;  %v5965_v43 = vld [vmem:[#allocation12 + $0x40] sm:$0xff]  ;;  %v5967_v21 = vld [vmem:[#allocation12 + $0x50] sm:$0xff]  ;;  %v5970_v63 = vld [vmem:[#allocation12 + $0x78] sm:$0xff] }
 0x383   : > { %1846 = vmatprep.subr.mxu1 %v10905_v17  ;;  %v1800_v30 = vadd.f32 %v5410_v11, %v1784_v39  ;;  %v5976_v51 = vld [vmem:[#allocation12 + $0xa8] sm:$0xff]  ;;  %v5977_v47 = vld [vmem:[#allocation12 + $0xa0] sm:$0xff]  ;;  %v5978_v16 = vld [vmem:[#allocation12 + $0xb8] sm:$0xff] }
 0x384   : > { %1847 = vmatpush2.msra.mxu1 %v1813_v44  ;;  %v1805_v44 = vadd.f32 %v5415_v26, %v1789_v55  ;;  %v1799_v3 = vadd.f32 %v5409_v59, %v1783_v33  ;;  %v5972_v55 = vld [vmem:[#allocation12 + $0x88] sm:$0xff]  ;;  %v5974_v26 = vld [vmem:[#allocation12 + $0x98] sm:$0xff]  ;;  %v5979_v61 = vld [vmem:[#allocation12 + $0xb0] sm:$0xff] }
 0x385   : > { %1848 = vmatprep.subr.mxu1 %v10905_v17  ;;  %v5981_v24 = vld [vmem:[#allocation12 + $0xc0] sm:$0xff]  ;;  %v5983_v27 = vld [vmem:[#allocation12 + $0xd0] sm:$0xff]  ;;  %v5984_v46 = vld [vmem:[#allocation12 + $0xe8] sm:$0xff] }
 0x386   : > { %1849 = vmatpush2.msra.mxu1 %v1812_v6  ;;  %v1786_v6 = vadd.f32 %v1770_v60, %v1754_v50  ;;  %v5975_v60 = vld [vmem:[#allocation12 + $0x90] sm:$0xff]  ;;  %v5985_v50 = vld [vmem:[#allocation12 + $0xe0] sm:$0xff]  ;;  %v5986_v56 = vld [vmem:[#allocation12 + $0xf8] sm:$0xff] }
 0x387   : > { %1850 = vmatprep.subr.mxu1 %v10905_v17  ;;  %v5988_v5 = vld [vmem:[#allocation12 + $0x108] sm:$0xff]  ;;  %v5989_v4 = vld [vmem:[#allocation12 + $0x100] sm:$0xff]  ;;  %v5990_v40 = vld [vmem:[#allocation12 + $0x118] sm:$0xff] }
 0x388   : > { %1851 = vmatpush2.msra.mxu1 %v1811_v54  ;;  %v1785_v54 = vadd.f32 %v1769_v13, %v1753_v8  ;;  %v1802_v28 = vadd.f32 %v5412_v1, %v1786_v6  ;;  %v5982_v13 = vld [vmem:[#allocation12 + $0xd8] sm:$0xff]  ;;  %v5991_v41 = vld [vmem:[#allocation12 + $0x110] sm:$0xff]  ;;  %v5992_v57 = vld [vmem:[#allocation12 + $0x128] sm:$0xff] }
 0x389   : > { %1852 = vmatprep.subr.mxu1 %v10905_v17  ;;  %v5993_v8 = vld [vmem:[#allocation12 + $0x120] sm:$0xff]  ;;  %v5994_v6 = vld [vmem:[#allocation12 + $0x138] sm:$0xff]  ;;  %v5996_v1 = vld [vmem:[#allocation12 + $0x148] sm:$0xff] }
 0x38a   : > { %1853 = vmatpush2.msra.mxu1 %v1810_v15  ;;  %v1750_v15 = vmul.f32 %v10970_v10, %v7809_v53  ;;  %v1801_v34 = vadd.f32 %v5411_v35, %v1785_v54  ;;  %v5957_v53 = vld [vmem:[#allocation12] sm:$0xff]  ;;  %v5998_v42 = vld [vmem:[#allocation12 + $0x158] sm:$0xff]  ;;  %v5999_v9 = vld [vmem:[#allocation12 + $0x150] sm:$0xff] }
 0x38b   : > { %1854 = vmatprep.subr.mxu1 %v10905_v17  ;;  %v5997_v32 = vld [vmem:[#allocation12 + $0x140] sm:$0xff]  ;;  %v6000_v20 = vld [vmem:[#allocation12 + $0x168] sm:$0xff]  ;;  %v6003_v35 = vld [vmem:[#allocation12 + $0x170] sm:$0xff] }
 0x38c   : > { %1855 = vmatpush2.msra.mxu1 %v1809_v48  ;;  %v1782_v49 = vadd.f32 %v1766_v36, %v1750_v15  ;;  %v5959_v48 = vld [vmem:[#allocation12 + $0x10] sm:$0xff]  ;;  %v6001_v54 = vld [vmem:[#allocation12 + $0x160] sm:$0xff]  ;;  %v6004_v36 = vld [vmem:[#allocation12 + $0x188] sm:$0xff] }
 0x38d   : > { %1856 = vmatprep.subr.mxu1 %v10905_v17  ;;  %v6005_v58 = vld [vmem:[#allocation12 + $0x180] sm:$0xff]  ;;  %v6006_v31 = vld [vmem:[#allocation12 + $0x198] sm:$0xff]  ;;  %v6007_v39 = vld [vmem:[#allocation12 + $0x190] sm:$0xff] }
 0x38e   : > { %1857 = vmatpush2.msra.mxu1 %v1808_v25  ;;  %v1798_v2 = vadd.f32 %v5408_v52, %v1782_v49  ;;  %v5966_v25 = vld [vmem:[#allocation12 + $0x58] sm:$0xff]  ;;  %v6009_v11 = vld [vmem:[#allocation12 + $0x1a0] sm:$0xff]  ;;  %v6011_v15 = vld [vmem:[#allocation12 + $0x1b0] sm:$0xff] }
 0x38f   : > { %1858 = vmatprep.subr.mxu1 %v10905_v17  ;;  %v6010_v10 = vld [vmem:[#allocation12 + $0x1b8] sm:$0xff]  ;;  %v6012_v33 = vld [vmem:[#allocation12 + $0x1c8] sm:$0xff]  ;;  %v6015_v49 = vld [vmem:[#allocation12 + $0x1d0] sm:$0xff] }
 0x390   : > { %1859 = vmatpush2.msra.mxu1 %v1807_v62  ;;  %v5973_v62 = vld [vmem:[#allocation12 + $0x80] sm:$0xff]  ;;  %v6014_v59 = vld [vmem:[#allocation12 + $0x1d8] sm:$0xff] }
 0x391   : > { %1860 = vmatprep.subr.mxu1 %v10905_v17  ;;  %v6017_v52 = vld [vmem:[#allocation12 + $0x1e0] sm:$0xff] }
 0x392   : > { %1861 = vmatpush2.msra.mxu1 %v1806_v29  ;;  %v5980_v29 = vld [vmem:[#allocation12 + $0xc8] sm:$0xff] }
 0x393   : > { %1862 = vmatprep.subr.mxu1 %v10905_v17 }
 0x394   : > { %1863 = vmatpush2.msra.mxu1 %v1805_v44  ;;  %v5987_v44 = vld [vmem:[#allocation12 + $0xf0] sm:$0xff] }
 0x395   : > { %1864 = vmatprep.subr.mxu1 %v10905_v17 }
 0x396   : > { %1865 = vmatpush2.msra.mxu1 %v1804_v38  ;;  %v5995_v38 = vld [vmem:[#allocation12 + $0x130] sm:$0xff] }
 0x397   : > { %1866 = vmatprep.subr.mxu1 %v10905_v17 }
 0x398   : > { %1867 = vmatpush2.msra.mxu1 %v1803_v22  ;;  %v6002_v22 = vld [vmem:[#allocation12 + $0x178] sm:$0xff] }
 0x399   : > { %1868 = vmatprep.subr.mxu1 %v10905_v17 }
 0x39a   : > { %1869 = vmatpush2.msra.mxu1 %v1802_v28  ;;  %v6008_v28 = vld [vmem:[#allocation12 + $0x1a8] sm:$0xff] }
 0x39b   : > { %1870 = vmatprep.subr.mxu1 %v10905_v17 }
 0x39c   : > { %1871 = vmatpush2.msra.mxu1 %v1801_v34  ;;  %v6013_v34 = vld [vmem:[#allocation12 + $0x1c0] sm:$0xff] }
 0x39d   : > { %1872 = vmatprep.subr.mxu1 %v10905_v17 }
 0x39e   : > { %1873 = vmatpush2.msra.mxu1 %v1800_v30  ;;  %v6016_v30 = vld [vmem:[#allocation12 + $0x1e8] sm:$0xff] }
 0x39f   : > { %1874 = vmatprep.subr.mxu1 %v10905_v17 }
 0x3a0   : > { %1875 = vmatpush2.msra.mxu1 %v1799_v3  ;;  %v6018_v3 = vld [vmem:[#allocation12 + $0x1f8] sm:$0xff] }
 0x3a1   : > { %1876 = vmatprep.subr.mxu1 %v10905_v17 }
 0x3a2   : > { %1877 = vmatpush2.msra.mxu1 %v1798_v2  ;;  %v10971_v2 = vld [vmem:[#allocation39_spill] sm:$0xff] }
 0x3a3   : > { %1879 = vmatmul.mubr.f32.vlgmr.msra.gmra.mxu1 %v5957_v53 }
 0x3a4   : > { %1883 = vmatprep.mubr.f32.mxu1 %v5958_v23 }
 0x3a7   : > { %1884 = vmatmul.mubr.f32.gmra.mxu1 %v5959_v48 }
 0x3a8   : > { %1888 = vmatprep.mubr.f32.mxu1 %v5960_v37 }
 0x3ab   : > { %1889 = vmatmul.mubr.f32.gmra.mxu1 %v5961_v18 }
 0x3ac   : > { %1893 = vmatprep.mubr.f32.mxu1 %v5962_v19 }
 0x3af   : > { %1894 = vmatmul.mubr.f32.gmra.mxu1 %v5963_v14 }
 0x3b0   : > { %1898 = vmatprep.mubr.f32.mxu1 %v5964_v0 }
 0x3b3   : > { %1899 = vmatmul.mubr.f32.gmra.mxu1 %v5965_v43 }
 0x3b4   : > { %1903 = vmatprep.mubr.f32.mxu1 %v5966_v25 }
 0x3b7   : > { %1904 = vmatmul.mubr.f32.gmra.mxu1 %v5967_v21 }
 0x3b8   : > { %1908 = vmatprep.mubr.f32.mxu1 %v5968_v12 }
 0x3bb   : > { %1909 = vmatmul.mubr.f32.gmra.mxu1 %v5969_v45 }
 0x3bc   : > { %1913 = vmatprep.mubr.f32.mxu1 %v5970_v63 }
 0x3bf   : > { %1914 = vmatmul.mubr.f32.gmra.mxu1 %v5971_v7 }
 0x3c0   : > { %1918 = vmatprep.mubr.f32.mxu1 %v5972_v55 }
 0x3c3   : > { %1919 = vmatmul.mubr.f32.gmra.mxu1 %v5973_v62 }
 0x3c4   : > { %1923 = vmatprep.mubr.f32.mxu1 %v5974_v26 }
 0x3c7   : > { %1924 = vmatmul.mubr.f32.gmra.mxu1 %v5975_v60 }
 0x3c8   : > { %1928 = vmatprep.mubr.f32.mxu1 %v5976_v51 }
 0x3cb   : > { %1929 = vmatmul.mubr.f32.gmra.mxu1 %v5977_v47 }
 0x3cc   : > { %1933 = vmatprep.mubr.f32.mxu1 %v5978_v16 }
 0x3cf   : > { %1934 = vmatmul.mubr.f32.gmra.mxu1 %v5979_v61 }
 0x3d0   : > { %1938 = vmatprep.mubr.f32.mxu1 %v5980_v29 }
 0x3d3   : > { %1939 = vmatmul.mubr.f32.gmra.mxu1 %v5981_v24 }
 0x3d4   : > { %1943 = vmatprep.mubr.f32.mxu1 %v5982_v13 }
 0x3d7   : > { %1944 = vmatmul.mubr.f32.gmra.mxu1 %v5983_v27 }
 0x3d8   : > { %1948 = vmatprep.mubr.f32.mxu1 %v5984_v46 }
 0x3db   : > { %1949 = vmatmul.mubr.f32.gmra.mxu1 %v5985_v50 }
 0x3dc   : > { %1953 = vmatprep.mubr.f32.mxu1 %v5986_v56 }
 0x3df   : > { %1954 = vmatmul.mubr.f32.gmra.mxu1 %v5987_v44 }
 0x3e0   : > { %1958 = vmatprep.mubr.f32.mxu1 %v5988_v5 }
 0x3e3   : > { %1959 = vmatmul.mubr.f32.gmra.mxu1 %v5989_v4 }
 0x3e4   : > { %1963 = vmatprep.mubr.f32.mxu1 %v5990_v40 }
 0x3e7   : > { %1964 = vmatmul.mubr.f32.gmra.mxu1 %v5991_v41 }
 0x3e8   : > { %1968 = vmatprep.mubr.f32.mxu1 %v5992_v57 }
 0x3eb   : > { %1969 = vmatmul.mubr.f32.gmra.mxu1 %v5993_v8 }
 0x3ec   : > { %1973 = vmatprep.mubr.f32.mxu1 %v5994_v6 }
 0x3ef   : > { %1974 = vmatmul.mubr.f32.gmra.mxu1 %v5995_v38 }
 0x3f0   : > { %1978 = vmatprep.mubr.f32.mxu1 %v5996_v1 }
 0x3f3   : > { %1979 = vmatmul.mubr.f32.gmra.mxu1 %v5997_v32 }
 0x3f4   : > { %1983 = vmatprep.mubr.f32.mxu1 %v5998_v42 }
 0x3f7   : > { %1984 = vmatmul.mubr.f32.gmra.mxu1 %v5999_v9 }
 0x3f8   : > { %1988 = vmatprep.mubr.f32.mxu1 %v6000_v20 }
 0x3fb   : > { %1989 = vmatmul.mubr.f32.gmra.mxu1 %v6001_v54 }
 0x3fc   : > { %1993 = vmatprep.mubr.f32.mxu1 %v6002_v22 }
 0x3ff   : > { %1994 = vmatmul.mubr.f32.gmra.mxu1 %v6003_v35 }
 0x400   : > { %1998 = vmatprep.mubr.f32.mxu1 %v6004_v36 }
 0x403   : > { %1999 = vmatmul.mubr.f32.gmra.mxu1 %v6005_v58 }
 0x404   : > { %2003 = vmatprep.mubr.f32.mxu1 %v6006_v31 }
 0x407   : > { %2004 = vmatmul.mubr.f32.gmra.mxu1 %v6007_v39 }
 0x408   : > { %2008 = vmatprep.mubr.f32.mxu1 %v6008_v28 }
 0x40b   : > { %2009 = vmatmul.mubr.f32.gmra.mxu1 %v6009_v11 }
 0x40c   : > { %2013 = vmatprep.mubr.f32.mxu1 %v6010_v10 }
 0x40f   : > { %2014 = vmatmul.mubr.f32.gmra.mxu1 %v6011_v15 }
 0x410   : > { %2018 = vmatprep.mubr.f32.mxu1 %v6012_v33 }
 0x413   : > { %2019 = vmatmul.mubr.f32.gmra.mxu1 %v6013_v34 }
 0x414   : > { %2023 = vmatprep.mubr.f32.mxu1 %v6014_v59 }
 0x417   : > { %2024 = vmatmul.mubr.f32.gmra.mxu1 %v6015_v49 }
 0x418   : > { %2028 = vmatprep.mubr.f32.mxu1 %v6016_v30 }
 0x41b   : > { %2029 = vmatmul.mubr.f32.gmra.mxu1 %v6017_v52 }
 0x41c   : > { %2033 = vmatprep.mubr.f32.mxu1 %v6018_v3 }
 0x41f   : > { %2034 = vmatmul.mubr.f32.gmra.mxu1 %v10971_v2 }
 0x463   : > { %v1880_v53 = vpop.f32.mrf.mxu1 }
 0x465   : > { %v1882_v23 = vpop.f32.mrf.mxu1 }
 0x467   : > { %v1885_v48 = vpop.f32.mrf.mxu1 }
 0x469   : > { %v1887_v37 = vpop.f32.mrf.mxu1 }
 0x46a   : > { %v881_v37 = vld [vmem:[#allocation15 + $0x8] sm:$0xff] }
 0x46b   : > { %v1890_v18 = vpop.f32.mrf.mxu1 }
 0x46d   : > { %v1892_v19 = vpop.f32.mrf.mxu1 }
 0x46f   : > { %v1895_v14 = vpop.f32.mrf.mxu1 }
 0x471   : > { %v1897_v0 = vpop.f32.mrf.mxu1 }
 0x473   : > { %v1900_v43 = vpop.f32.mrf.mxu1 }
 0x475   : > { %v1902_v25 = vpop.f32.mrf.mxu1 }
 0x477   : > { %v1905_v21 = vpop.f32.mrf.mxu1 }
 0x479   : > { %v1907_v12 = vpop.f32.mrf.mxu1 }
 0x47b   : > { %v1910_v45 = vpop.f32.mrf.mxu1 }
 0x47d   : > { %v1912_v63 = vpop.f32.mrf.mxu1 }
 0x47f   : > { %v1915_v7 = vpop.f32.mrf.mxu1 }
 0x481   : > { %v1917_v55 = vpop.f32.mrf.mxu1 }
 0x483   : > { %v1920_v62 = vpop.f32.mrf.mxu1 }
 0x485   : > { %v1922_v26 = vpop.f32.mrf.mxu1 }
 0x487   : > { %v1925_v60 = vpop.f32.mrf.mxu1 }
 0x489   : > { %v1927_v51 = vpop.f32.mrf.mxu1 }
 0x48b   : > { %v1930_v47 = vpop.f32.mrf.mxu1 }
 0x48d   : > { %v1932_v16 = vpop.f32.mrf.mxu1 }
 0x48f   : > { %v1935_v61 = vpop.f32.mrf.mxu1 }
 0x491   : > { %v1937_v29 = vpop.f32.mrf.mxu1 }
 0x493   : > { %v1940_v24 = vpop.f32.mrf.mxu1 }
 0x495   : > { %v1942_v13 = vpop.f32.mrf.mxu1 }
 0x497   : > { %v1945_v27 = vpop.f32.mrf.mxu1 }
 0x499   : > { %v1947_v46 = vpop.f32.mrf.mxu1 }
 0x49b   : > { %v1950_v50 = vpop.f32.mrf.mxu1 }
 0x49d   : > { %v1952_v56 = vpop.f32.mrf.mxu1 }
 0x49f   : > { %v8161_v44 = vpop.f32.mrf.mxu1 }
 0x4a1   : > { %v1957_v5 = vpop.f32.mrf.mxu1 }
 0x4a3   : > { %v1960_v4 = vpop.f32.mrf.mxu1 }
 0x4a4   : > { %2103 = vmatprep.mubr.f32.mxu0 %v1960_v4  ;;  %v8225_v4 = vld [vmem:[%s7176_s8 + $0x170] sm:$0xff] }
 0x4a5   : > { %v1962_v40 = vpop.f32.mrf.mxu1  ;;  %2104 = vmatmul.mubr.f32.vlgmr.msra.gmra.mxu0 %v1880_v53 }
 0x4a6   : > { %v8228_v40 = vld [vmem:[%s7182_s25 + $0x170] sm:$0xff] }
 0x4a7   : > { %v1965_v41 = vpop.f32.mrf.mxu1 }
 0x4a8   : > { %2109 = vmatprep.mubr.f32.mxu0 %v1965_v41 }
 0x4a9   : > { %v1967_v57 = vpop.f32.mrf.mxu1  ;;  %2110 = vmatmul.mubr.f32.gmra.mxu0 %v1885_v48 }
 0x4aa   : > { %v8233_v57 = vld [vmem:[%s7176_s8 + $0x178] sm:$0xff] }
 0x4ab   : > { %v1970_v8 = vpop.f32.mrf.mxu1 }
 0x4ac   : > { %2115 = vmatprep.mubr.f32.mxu0 %v1970_v8 }
 0x4ad   : > { %v1972_v6 = vpop.f32.mrf.mxu1  ;;  %2116 = vmatmul.mubr.f32.gmra.mxu0 %v1890_v18 }
 0x4ae   : > { %v8238_v6 = vld [vmem:[%s7176_s8 + $0x168] sm:$0xff] }
 0x4af   : > { %v1975_v38 = vpop.f32.mrf.mxu1 }
 0x4b0   : > { %2121 = vmatprep.mubr.f32.mxu0 %v1975_v38  ;;  %v8241_v38 = vld [vmem:[%s7182_s25 + $0x168] sm:$0xff] }
 0x4b1   : > { %v1977_v1 = vpop.f32.mrf.mxu1  ;;  %2122 = vmatmul.mubr.f32.gmra.mxu0 %v1895_v14 }
 0x4b2   : > { %v8244_v1 = vld [vmem:[%s7182_s25 + $0x178] sm:$0xff] }
 0x4b3   : > { %v1980_v32 = vpop.f32.mrf.mxu1 }
 0x4b4   : > { %2127 = vmatprep.mubr.f32.mxu0 %v1980_v32 }
 0x4b5   : > { %v1982_v42 = vpop.f32.mrf.mxu1  ;;  %2128 = vmatmul.mubr.f32.gmra.mxu0 %v1900_v43 }
 0x4b7   : > { %v1985_v9 = vpop.f32.mrf.mxu1 }
 0x4b8   : > { %2133 = vmatprep.mubr.f32.mxu0 %v1985_v9 }
 0x4b9   : > { %v1987_v20 = vpop.f32.mrf.mxu1  ;;  %2134 = vmatmul.mubr.f32.gmra.mxu0 %v1905_v21 }
 0x4bb   : > { %v1990_v54 = vpop.f32.mrf.mxu1 }
 0x4bc   : > { %2139 = vmatprep.mubr.f32.mxu0 %v1990_v54 }
 0x4bd   : > { %v1992_v22 = vpop.f32.mrf.mxu1  ;;  %2140 = vmatmul.mubr.f32.gmra.mxu0 %v1910_v45 }
 0x4be   : > { %v8257_v22 = vld [vmem:[%s7176_s8 + $0x160] sm:$0xff] }
 0x4bf   : > { %v1995_v35 = vpop.f32.mrf.mxu1 }
 0x4c0   : > { %2145 = vmatprep.mubr.f32.mxu0 %v1995_v35  ;;  %v8260_v35 = vld [vmem:[%s7182_s25 + $0x160] sm:$0xff] }
 0x4c1   : > { %v1997_v36 = vpop.f32.mrf.mxu1  ;;  %2146 = vmatmul.mubr.f32.gmra.mxu0 %v1915_v7 }
 0x4c2   : > { %v5471_v36 = vld [vmem:[%s7188_s18 + $0x178] sm:$0xff] }
 0x4c3   : > { %v2000_v58 = vpop.f32.mrf.mxu1 }
 0x4c4   : > { %2151 = vmatprep.mubr.f32.mxu0 %v2000_v58 }
 0x4c5   : > { %v2002_v31 = vpop.f32.mrf.mxu1  ;;  %2152 = vmatmul.mubr.f32.gmra.mxu0 %v1920_v62 }
 0x4c7   : > { %v2005_v39 = vpop.f32.mrf.mxu1 }
 0x4c8   : > { %2157 = vmatprep.mubr.f32.mxu0 %v2005_v39 }
 0x4c9   : > { %v2007_v28 = vpop.f32.mrf.mxu1  ;;  %2158 = vmatmul.mubr.f32.gmra.mxu0 %v1925_v60 }
 0x4cb   : > { %v2010_v11 = vpop.f32.mrf.mxu1 }
 0x4cc   : > { %2163 = vmatprep.mubr.f32.mxu0 %v2010_v11  ;;  %v8268_v11 = vld [vmem:[%s7176_s8 + $0x158] sm:$0xff] }
 0x4cd   : > { %v2012_v10 = vpop.f32.mrf.mxu1  ;;  %2164 = vmatmul.mubr.f32.gmra.mxu0 %v1930_v47 }
 0x4ce   : > { %v8271_v10 = vld [vmem:[%s7182_s25 + $0x158] sm:$0xff] }
 0x4cf   : > { %v2015_v15 = vpop.f32.mrf.mxu1 }
 0x4d0   : > { %2169 = vmatprep.mubr.f32.mxu0 %v2015_v15  ;;  %v5470_v15 = vld [vmem:[%s7188_s18 + $0x170] sm:$0xff] }
 0x4d1   : > { %v2017_v33 = vpop.f32.mrf.mxu1  ;;  %2170 = vmatmul.mubr.f32.gmra.mxu0 %v1935_v61 }
 0x4d3   : > { %v2020_v34 = vpop.f32.mrf.mxu1 }
 0x4d4   : > { %2175 = vmatprep.mubr.f32.mxu0 %v2020_v34 }
 0x4d5   : > { %v2022_v59 = vpop.f32.mrf.mxu1  ;;  %2176 = vmatmul.mubr.f32.gmra.mxu0 %v1940_v24 }
 0x4d7   : > { %v2025_v49 = vpop.f32.mrf.mxu1 }
 0x4d8   : > { %2181 = vmatprep.mubr.f32.mxu0 %v2025_v49 }
 0x4d9   : > { %v2027_v30 = vpop.f32.mrf.mxu1  ;;  %2182 = vmatmul.mubr.f32.gmra.mxu0 %v1945_v27 }
 0x4da   : > { %v8279_v30 = vld [vmem:[%s7176_s8 + $0x150] sm:$0xff] }
 0x4db   : > { %v2030_v52 = vpop.f32.mrf.mxu1 }
 0x4dc   : > { %2187 = vmatprep.mubr.f32.mxu0 %v2030_v52  ;;  %v8282_v52 = vld [vmem:[%s7182_s25 + $0x150] sm:$0xff] }
 0x4dd   : > { %v2032_v3 = vpop.f32.mrf.mxu1  ;;  %2188 = vmatmul.mubr.f32.gmra.mxu0 %v1950_v50 }
 0x4de   : > { %v5469_v3 = vld [vmem:[%s7188_s18 + $0x168] sm:$0xff] }
 0x4df   : > { %v2035_v2 = vpop.f32.mrf.mxu1 }
 0x4e0   : > { %2193 = vmatprep.mubr.f32.mxu0 %v2035_v2 }
 0x4e1   : > { %v2037_v53 = vpop.f32.mrf.mxu1  ;;  %2194 = vmatmul.mubr.f32.gmra.mxu0 %v8161_v44 }
 0x4e2   : > { %2460 = vmatprep.mubr.f32.mxu0 %v881_v37 }
 0x565   : > { %v8164_v23 = vpop.f32.mrf.mxu0 }
 0x567   : > { %v8166_v48 = vpop.f32.mrf.mxu0 }
 0x569   : > { %v8168_v18 = vpop.f32.mrf.mxu0 }
 0x56b   : > { %v8170_v19 = vpop.f32.mrf.mxu0 }
 0x56d   : > { %v8172_v14 = vpop.f32.mrf.mxu0 }
 0x56e   : > { %10972 = vst [vmem:[#allocation47_spill] sm:$0xff] %v8172_v14 }
 0x56f   : > { %v8174_v0 = vpop.f32.mrf.mxu0 }
 0x570   : > { %10973 = vst [vmem:[#allocation49_spill] sm:$0xff] %v8174_v0 }
 0x571   : > { %v8176_v43 = vpop.f32.mrf.mxu0 }
 0x572   : > { %10974 = vst [vmem:[#allocation46_spill] sm:$0xff] %v8176_v43 }
 0x573   : > { %v8178_v25 = vpop.f32.mrf.mxu0 }
 0x575   : > { %v8180_v21 = vpop.f32.mrf.mxu0 }
 0x576   : > { %10975 = vst [vmem:[#allocation52_spill] sm:$0xff] %v8180_v21 }
 0x577   : > { %v8182_v12 = vpop.f32.mrf.mxu0 }
 0x579   : > { %v8184_v45 = vpop.f32.mrf.mxu0 }
 0x57a   : > { %10976 = vst [vmem:[#allocation48_spill] sm:$0xff] %v8184_v45 }
 0x57b   : > { %v8186_v63 = vpop.f32.mrf.mxu0 }
 0x57d   : > { %v8188_v7 = vpop.f32.mrf.mxu0 }
 0x57e   : > { %10977 = vst [vmem:[#allocation50_spill] sm:$0xff] %v8188_v7 }
 0x57f   : > { %v8190_v55 = vpop.f32.mrf.mxu0 }
 0x581   : > { %v8192_v62 = vpop.f32.mrf.mxu0 }
 0x582   : > { %10978 = vst [vmem:[#allocation45_spill] sm:$0xff] %v8192_v62 }
 0x583   : > { %v8194_v26 = vpop.f32.mrf.mxu0 }
 0x585   : > { %v8196_v60 = vpop.f32.mrf.mxu0 }
 0x586   : > { %10979 = vst [vmem:[#allocation51_spill] sm:$0xff] %v8196_v60 }
 0x587   : > { %v8198_v51 = vpop.f32.mrf.mxu0 }
 0x589   : > { %v8200_v47 = vpop.f32.mrf.mxu0 }
 0x58a   : > { %10980 = vst [vmem:[#allocation43_spill] sm:$0xff] %v8200_v47 }
 0x58b   : > { %v8202_v16 = vpop.f32.mrf.mxu0 }
 0x58d   : > { %v8204_v61 = vpop.f32.mrf.mxu0 }
 0x58f   : > { %v8206_v29 = vpop.f32.mrf.mxu0 }
 0x590   : > { %v2294_v2 = vmul.f32 %v8282_v52, %v8206_v29 }
 0x591   : > { %v8208_v24 = vpop.f32.mrf.mxu0 }
 0x592   : > { %v2279_v53 = vmul.f32 %v8268_v11, %v8208_v24 }
 0x593   : > { %v8210_v13 = vpop.f32.mrf.mxu0 }
 0x594   : > { %v2295_v33 = vmul.f32 %v8271_v10, %v8210_v13 }
 0x595   : > { %v8212_v27 = vpop.f32.mrf.mxu0 }
 0x596   : > { %v2280_v34 = vmul.f32 %v8257_v22, %v8212_v27 }
 0x597   : > { %v8214_v46 = vpop.f32.mrf.mxu0 }
 0x598   : > { %v2296_v58 = vmul.f32 %v8260_v35, %v8214_v46 }
 0x599   : > { %v8216_v50 = vpop.f32.mrf.mxu0 }
 0x59a   : > { %v2281_v31 = vmul.f32 %v8238_v6, %v8216_v50  ;;  %v2312_v37 = vsub.f32 %v2280_v34, %v2296_v58 }
 0x59b   : > { %v8218_v56 = vpop.f32.mrf.mxu0 }
 0x59c   : > { %v2297_v42 = vmul.f32 %v8241_v38, %v8218_v56 }
 0x59d   : > { %v8220_v44 = vpop.f32.mrf.mxu0 }
 0x59e   : > { %v2282_v9 = vmul.f32 %v8225_v4, %v8220_v44  ;;  %v2313_v59 = vsub.f32 %v2281_v31, %v2297_v42  ;;  %v8293_v42 = vld [vmem:[%s7182_s25 + $0x148] sm:$0xff]  ;;  %v2311_v31 = vsub.f32 %v2279_v53, %v2295_v33  ;;  %v5466_v53 = vld [vmem:[%s7188_s18 + $0x150] sm:$0xff] }
 0x59f   : > { %v8222_v5 = vpop.f32.mrf.mxu0  ;;  %10981 = vst [vmem:[#allocation53_spill] sm:$0xff] %v8293_v42 }
 0x5a0   : > { %v2298_v8 = vmul.f32 %v8228_v40, %v8222_v5  ;;  %v2329_v58 = vadd.f32 %v5469_v3, %v2313_v59  ;;  %v8314_v59 = vld [vmem:[%s7176_s8 + $0x138] sm:$0xff] }
 0x5a1   : > { %v8230_v41 = vpop.f32.mrf.mxu0  ;;  %v8317_v3 = vld [vmem:[%s7182_s25 + $0x138] sm:$0xff] }
 0x5a2   : > { %v2283_v20 = vmul.f32 %v8233_v57, %v8230_v41  ;;  %v2314_v39 = vsub.f32 %v2282_v9, %v2298_v8  ;;  %v8290_v9 = vld [vmem:[%s7176_s8 + $0x148] sm:$0xff]  ;;  %10983 = vst [vmem:[#allocation56_spill] sm:$0xff] %v8317_v3 }
 0x5a3   : > { %v8246_v32 = vpop.f32.mrf.mxu0 }
 0x5a4   : > { %v2299_v54 = vmul.f32 %v8244_v1, %v8246_v32  ;;  %v2330_v8 = vadd.f32 %v5470_v15, %v2314_v39  ;;  %v8302_v39 = vld [vmem:[%s7176_s8 + $0x140] sm:$0xff]  ;;  %v5467_v15 = vld [vmem:[%s7188_s18 + $0x158] sm:$0xff] }
 0x5a6   : > { %v2315_v28 = vsub.f32 %v2283_v20, %v2299_v54  ;;  %v5468_v20 = vld [vmem:[%s7188_s18 + $0x160] sm:$0xff]  ;;  %v2293_v54 = vmul.f32 %v8293_v42, %v8202_v16 }
 0x5a7   : > { %v2328_v33 = vadd.f32 %v5468_v20, %v2312_v37  ;;  %v8326_v37 = vld [vmem:[%s7176_s8 + $0x130] sm:$0xff] }
 0x5a8   : > { %v2331_v49 = vadd.f32 %v5471_v36, %v2315_v28  ;;  %v2278_v36 = vmul.f32 %v8279_v30, %v8204_v61  ;;  %v8305_v28 = vld [vmem:[%s7182_s25 + $0x140] sm:$0xff]  ;;  %v8329_v20 = vld [vmem:[%s7182_s25 + $0x130] sm:$0xff] }
 0x5a9   : > { %10982 = vst [vmem:[#allocation42_spill] sm:$0xff] %v8305_v28  ;;  %v2292_v34 = vmul.f32 %v8305_v28, %v8198_v51  ;;  %v2276_v28 = vmul.f32 %v8302_v39, %v8196_v60  ;;  %10984 = vst [vmem:[#allocation41_spill] sm:$0xff] %v8329_v20 }
 0x5aa   : > { %2397 = vmatpush1.msra.mxu0 %v2331_v49  ;;  %v2277_v49 = vmul.f32 %v8290_v9, %v8200_v47  ;;  %v2310_v42 = vsub.f32 %v2278_v36, %v2294_v2  ;;  %v2327_v2 = vadd.f32 %v5467_v15, %v2311_v31  ;;  %v5465_v36 = vld [vmem:[%s7188_s18 + $0x148] sm:$0xff] }
 0x5ab   : > { %2398 = vmatprep.subr.mxu0 %v10905_v17  ;;  %v2308_v60 = vsub.f32 %v2276_v28, %v2292_v34  ;;  %v8338_v31 = vld [vmem:[%s7176_s8 + $0x128] sm:$0xff]  ;;  %v8353_v34 = vld [vmem:[%s7182_s25 + $0x120] sm:$0xff] }
 0x5ac   : > { %2399 = vmatpush1.msra.mxu0 %v2330_v8  ;;  %v2291_v8 = vmul.f32 %v8317_v3, %v8194_v26  ;;  %v2309_v47 = vsub.f32 %v2277_v49, %v2293_v54  ;;  %v2275_v3 = vmul.f32 %v8314_v59, %v8192_v62  ;;  %v2326_v54 = vadd.f32 %v5466_v53, %v2310_v42  ;;  %v8341_v15 = vld [vmem:[%s7182_s25 + $0x128] sm:$0xff]  ;;  %v5464_v49 = vld [vmem:[%s7188_s18 + $0x140] sm:$0xff]  ;;  %v5463_v53 = vld [vmem:[%s7188_s18 + $0x138] sm:$0xff] }
 0x5ad   : > { %2400 = vmatprep.subr.mxu0 %v10905_v17  ;;  %10985 = vst [vmem:[#allocation44_spill] sm:$0xff] %v8341_v15  ;;  %v8350_v42 = vld [vmem:[%s7176_s8 + $0x120] sm:$0xff]  ;;  %10986 = vst [vmem:[#allocation54_spill] sm:$0xff] %v8353_v34 }
 0x5ae   : > { %2401 = vmatpush1.msra.mxu0 %v2329_v58  ;;  %v2290_v58 = vmul.f32 %v8329_v20, %v8190_v55  ;;  %v2274_v20 = vmul.f32 %v8326_v37, %v8188_v7  ;;  %v2307_v62 = vsub.f32 %v2275_v3, %v2291_v8  ;;  %v2325_v28 = vadd.f32 %v5465_v36, %v2309_v47  ;;  %v8362_v47 = vld [vmem:[%s7176_s8 + $0x118] sm:$0xff]  ;;  %v5462_v36 = vld [vmem:[%s7188_s18 + $0x130] sm:$0xff] }
 0x5af   : > { %2402 = vmatprep.subr.mxu0 %v10905_v17  ;;  %v2324_v3 = vadd.f32 %v5464_v49, %v2308_v60  ;;  %v8365_v8 = vld [vmem:[%s7182_s25 + $0x118] sm:$0xff]  ;;  %v8374_v60 = vld [vmem:[%s7176_s8 + $0x110] sm:$0xff]  ;;  %v5461_v49 = vld [vmem:[%s7188_s18 + $0x128] sm:$0xff] }
 0x5b0   : > { %2403 = vmatpush1.msra.mxu0 %v2328_v33  ;;  %v2289_v33 = vmul.f32 %v8341_v15, %v8186_v63  ;;  %v2273_v15 = vmul.f32 %v8338_v31, %v8184_v45  ;;  %v2306_v7 = vsub.f32 %v2274_v20, %v2290_v58  ;;  %10987 = vst [vmem:[#allocation40_spill] sm:$0xff] %v8365_v8  ;;  %v8377_v58 = vld [vmem:[%s7182_s25 + $0x110] sm:$0xff] }
 0x5b1   : > { %2404 = vmatprep.subr.mxu0 %v10905_v17  ;;  %v2323_v20 = vadd.f32 %v5463_v53, %v2307_v62  ;;  %10988 = vst [vmem:[#allocation55_spill] sm:$0xff] %v8377_v58  ;;  %v8386_v62 = vld [vmem:[%s7176_s8 + $0x108] sm:$0xff]  ;;  %v5460_v53 = vld [vmem:[%s7188_s18 + $0x120] sm:$0xff] }
 0x5b2   : > { %2405 = vmatpush1.msra.mxu0 %v2327_v2  ;;  %v2288_v2 = vmul.f32 %v8353_v34, %v8182_v12  ;;  %v2272_v34 = vmul.f32 %v8350_v42, %v8180_v21  ;;  %v2305_v45 = vsub.f32 %v2273_v15, %v2289_v33  ;;  %v2322_v15 = vadd.f32 %v5462_v36, %v2306_v7  ;;  %v8389_v33 = vld [vmem:[%s7182_s25 + $0x108] sm:$0xff]  ;;  %v8401_v7 = vld [vmem:[%s7182_s25 + $0x100] sm:$0xff] }
 0x5b3   : > { %2406 = vmatprep.subr.mxu0 %v10905_v17  ;;  %10989 = vst [vmem:[#allocation57_spill] sm:$0xff] %v8389_v33  ;;  %10990 = vst [vmem:[#allocation58_spill] sm:$0xff] %v8401_v7  ;;  %v2284_v36 = vmul.f32 %v8401_v7, %v8166_v48  ;;  %v5457_v7 = vld [vmem:[%s7188_s18 + $0x108] sm:$0xff] }
 0x5b4   : > { %2407 = vmatpush1.msra.mxu0 %v2326_v54  ;;  %v2287_v54 = vmul.f32 %v8365_v8, %v8178_v25  ;;  %v2271_v8 = vmul.f32 %v8362_v47, %v8176_v43  ;;  %v2304_v21 = vsub.f32 %v2272_v34, %v2288_v2  ;;  %v2321_v43 = vadd.f32 %v5461_v49, %v2305_v45  ;;  %v8398_v34 = vld [vmem:[%s7176_s8 + $0x100] sm:$0xff]  ;;  %v5459_v2 = vld [vmem:[%s7188_s18 + $0x118] sm:$0xff]  ;;  %v5458_v45 = vld [vmem:[%s7188_s18 + $0x110] sm:$0xff] }
 0x5b5   : > { %2408 = vmatprep.subr.mxu0 %v10905_v17  ;;  %v2363_v49 = vmul.f32 %v8233_v57, %v8246_v32 }
 0x5b6   : > { %2409 = vmatpush1.msra.mxu0 %v2325_v28  ;;  %v2286_v28 = vmul.f32 %v8377_v58, %v8174_v0  ;;  %v2270_v58 = vmul.f32 %v8374_v60, %v8172_v14  ;;  %v2303_v0 = vsub.f32 %v2271_v8, %v2287_v54  ;;  %v2320_v14 = vadd.f32 %v5460_v53, %v2304_v21  ;;  %v5456_v53 = vld [vmem:[%s7188_s18 + $0x100] sm:$0xff] }
 0x5b7   : > { %2410 = vmatprep.subr.mxu0 %v10905_v17  ;;  %v2268_v8 = vmul.f32 %v8398_v34, %v8164_v23  ;;  %v2347_v21 = vmul.f32 %v8244_v1, %v8230_v41  ;;  %v2345_v41 = vmul.f32 %v8241_v38, %v8216_v50  ;;  %v2358_v50 = vmul.f32 %v8279_v30, %v8206_v29  ;;  %v5483_v29 = vld [vmem:[%s7190_s13 + $0x158] sm:$0xff]  ;;  %v10992_v30 = vld [vmem:[#allocation53_spill] sm:$0xff] }
 0x5b8   : > { %2411 = vmatpush1.msra.mxu0 %v2324_v3  ;;  %v2285_v3 = vmul.f32 %v8389_v33, %v8170_v19  ;;  %v2302_v33 = vsub.f32 %v2270_v58, %v2286_v28  ;;  %v2343_v38 = vmul.f32 %v8271_v10, %v8208_v24  ;;  %v2356_v24 = vmul.f32 %v8302_v39, %v8198_v51  ;;  %v10991_v10 = vld [vmem:[#allocation43_spill] sm:$0xff]  ;;  %v5481_v51 = vld [vmem:[%s7190_s13 + $0x148] sm:$0xff] }
 0x5b9   : > { %2412 = vmatprep.subr.mxu0 %v10905_v17  ;;  %v2300_v58 = vsub.f32 %v2268_v8, %v2284_v36  ;;  %v2379_v57 = vadd.f32 %v2363_v49, %v2347_v21  ;;  %v2341_v36 = vmul.f32 %v10992_v30, %v10991_v10  ;;  %v2354_v39 = vmul.f32 %v8326_v37, %v8190_v55  ;;  %v5479_v55 = vld [vmem:[%s7190_s13 + $0x138] sm:$0xff] }
 0x5ba   : > { %2413 = vmatpush1.msra.mxu0 %v2323_v20  ;;  %v2269_v20 = vmul.f32 %v8386_v62, %v8168_v18  ;;  %v2318_v28 = vadd.f32 %v5458_v45, %v2302_v33  ;;  %v2352_v37 = vmul.f32 %v8350_v42, %v8182_v12  ;;  %v5477_v12 = vld [vmem:[%s7190_s13 + $0x128] sm:$0xff]  ;;  %v11003_v42 = vld [vmem:[#allocation49_spill] sm:$0xff] }
 0x5bb   : > { %2414 = vmatprep.subr.mxu0 %v10905_v17  ;;  %v2316_v33 = vadd.f32 %v5456_v53, %v2300_v58  ;;  %v10996_v58 = vld [vmem:[#allocation56_spill] sm:$0xff]  ;;  %v10997_v53 = vld [vmem:[#allocation50_spill] sm:$0xff]  ;;  %v11008_v10 = vld [vmem:[#allocation57_spill] sm:$0xff] }
 0x5bc   : > { %2415 = vmatpush1.msra.mxu0 %v2322_v15  ;;  %v2301_v54 = vsub.f32 %v2269_v20, %v2285_v3  ;;  %v2319_v15 = vadd.f32 %v5459_v2, %v2303_v0  ;;  %v2346_v0 = vmul.f32 %v8228_v40, %v8220_v44  ;;  %v2359_v44 = vmul.f32 %v8268_v11, %v8210_v13  ;;  %v5484_v13 = vld [vmem:[%s7190_s13 + $0x160] sm:$0xff] }
 0x5bd   : > { %2416 = vmatprep.subr.mxu0 %v10905_v17  ;;  %v2344_v40 = vmul.f32 %v8260_v35, %v8212_v27  ;;  %v2357_v27 = vmul.f32 %v8290_v9, %v8202_v16  ;;  %v2342_v35 = vmul.f32 %v8282_v52, %v8204_v61  ;;  %v5482_v16 = vld [vmem:[%s7190_s13 + $0x150] sm:$0xff]  ;;  %v2355_v61 = vmul.f32 %v8314_v59, %v8194_v26  ;;  %v10993_v52 = vld [vmem:[#allocation51_spill] sm:$0xff]  ;;  %v10994_v9 = vld [vmem:[#allocation42_spill] sm:$0xff] }
 0x5be   : > { %2417 = vmatpush1.msra.mxu0 %v2321_v43  ;;  %v2362_v43 = vmul.f32 %v8225_v4, %v8222_v5  ;;  %v2317_v32 = vadd.f32 %v5457_v7, %v2301_v54  ;;  %v5487_v5 = vld [vmem:[%s7190_s13 + $0x178] sm:$0xff]  ;;  %v2360_v4 = vmul.f32 %v8257_v22, %v8214_v46  ;;  %v5485_v46 = vld [vmem:[%s7190_s13 + $0x168] sm:$0xff]  ;;  %v2375_v11 = vadd.f32 %v2359_v44, %v2343_v38  ;;  %v5480_v26 = vld [vmem:[%s7190_s13 + $0x140] sm:$0xff] }
 0x5bf   : > { %2418 = vmatprep.subr.mxu0 %v10905_v17  ;;  %v2395_v3 = vadd.f32 %v5487_v5, %v2379_v57  ;;  %v2374_v20 = vadd.f32 %v2358_v50, %v2342_v35  ;;  %v2340_v8 = vmul.f32 %v10994_v9, %v10993_v52  ;;  %v2373_v54 = vadd.f32 %v2357_v27, %v2341_v36  ;;  %v10999_v5 = vld [vmem:[#allocation48_spill] sm:$0xff]  ;;  %v11002_v44 = vld [vmem:[#allocation54_spill] sm:$0xff]  ;;  %v11006_v27 = vld [vmem:[#allocation47_spill] sm:$0xff] }
 0x5c0   : > { %2419 = vmatpush1.msra.mxu0 %v2320_v14  ;;  %v2361_v14 = vmul.f32 %v8238_v6, %v8218_v56  ;;  %v2378_v1 = vadd.f32 %v2362_v43, %v2346_v0  ;;  %v5486_v56 = vld [vmem:[%s7190_s13 + $0x170] sm:$0xff]  ;;  %v2376_v22 = vadd.f32 %v2360_v4, %v2344_v40  ;;  %v2391_v49 = vadd.f32 %v5483_v29, %v2375_v11  ;;  %v11000_v4 = vld [vmem:[#allocation44_spill] sm:$0xff]  ;;  %v11004_v50 = vld [vmem:[#allocation46_spill] sm:$0xff] }
 0x5c1   : > { %2420 = vmatprep.subr.mxu0 %v10905_v17  ;;  %v2372_v21 = vadd.f32 %v2356_v24, %v2340_v8  ;;  %v2353_v59 = vmul.f32 %v8338_v31, %v8186_v63  ;;  %v5478_v63 = vld [vmem:[%s7190_s13 + $0x130] sm:$0xff]  ;;  %v2351_v31 = vmul.f32 %v8362_v47, %v8178_v25  ;;  %v11005_v38 = vld [vmem:[#allocation40_spill] sm:$0xff]  ;;  %v5476_v25 = vld [vmem:[%s7190_s13 + $0x120] sm:$0xff]  ;;  %v2349_v47 = vmul.f32 %v8386_v62, %v8170_v19 }
 0x5c2   : > { %2421 = vmatpush1.msra.mxu0 %v2319_v15  ;;  %v2377_v6 = vadd.f32 %v2361_v14, %v2345_v41  ;;  %v2394_v7 = vadd.f32 %v5486_v56, %v2378_v1  ;;  %v2392_v45 = vadd.f32 %v5484_v13, %v2376_v22  ;;  %v10995_v15 = vld [vmem:[#allocation45_spill] sm:$0xff]  ;;  %v2337_v41 = vmul.f32 %v11000_v4, %v10999_v5  ;;  %v11001_v56 = vld [vmem:[#allocation52_spill] sm:$0xff]  ;;  %v11007_v35 = vld [vmem:[#allocation55_spill] sm:$0xff] }
 0x5c3   : > { %2422 = vmatprep.subr.mxu0 %v10905_v17  ;;  %v2339_v43 = vmul.f32 %v10996_v58, %v10995_v15  ;;  %v10998_v14 = vld [vmem:[#allocation41_spill] sm:$0xff]  ;;  %v2336_v40 = vmul.f32 %v11002_v44, %v11001_v56  ;;  %v2335_v22 = vmul.f32 %v11005_v38, %v11004_v50  ;;  %v2334_v11 = vmul.f32 %v11007_v35, %v11006_v27  ;;  %v5475_v29 = vld [vmem:[%s7190_s13 + $0x118] sm:$0xff]  ;;  %v5473_v52 = vld [vmem:[%s7190_s13 + $0x108] sm:$0xff] }
 0x5c4   : > { %2423 = vmatpush1.msra.mxu0 %v2318_v28  ;;  %v2393_v2 = vadd.f32 %v5485_v46, %v2377_v6  ;;  %v2390_v28 = vadd.f32 %v5482_v16, %v2374_v20  ;;  %v2338_v0 = vmul.f32 %v10998_v14, %v10997_v53  ;;  %v2369_v6 = vadd.f32 %v2353_v59, %v2337_v41  ;;  %v5474_v62 = vld [vmem:[%s7190_s13 + $0x110] sm:$0xff]  ;;  %v11009_v20 = vld [vmem:[#allocation58_spill] sm:$0xff]  ;;  %v885_v59 = vld [vmem:[#allocation15 + $0x28] sm:$0xff] }
 0x5c5   : > { %2424 = vmatprep.subr.mxu0 %v10905_v17  ;;  %v2371_v57 = vadd.f32 %v2355_v61, %v2339_v43  ;;  %v2350_v46 = vmul.f32 %v8374_v60, %v11003_v42  ;;  %v2348_v24 = vmul.f32 %v8398_v34, %v8166_v48  ;;  %v2333_v30 = vmul.f32 %v11008_v10, %v8168_v18  ;;  %v5472_v18 = vld [vmem:[%s7190_s13 + $0x100] sm:$0xff]  ;;  %v975_v8 = vld [vmem:[#allocation16 + $0xf8] sm:$0xff]  ;;  %v970_v43 = vld [vmem:[#allocation16 + $0xd0] sm:$0xff] }
 0x5c6   : > { %2425 = vmatpush1.msra.mxu0 %v2317_v32  ;;  %v2389_v32 = vadd.f32 %v5481_v51, %v2373_v54  ;;  %v2370_v1 = vadd.f32 %v2354_v39, %v2338_v0  ;;  %v2385_v60 = vadd.f32 %v5477_v12, %v2369_v6  ;;  %v974_v54 = vld [vmem:[#allocation16 + $0xf0] sm:$0xff]  ;;  %v880_v51 = vld [vmem:[#allocation15] sm:$0xff]  ;;  %2621 = vmatprep.subr.mxu1 %v975_v8  ;;  %v883_v15 = vld [vmem:[#allocation15 + $0x18] sm:$0xff] }
 0x5c7   : > { %2426 = vmatprep.subr.mxu0 %v10905_v17  ;;  %v2366_v36 = vadd.f32 %v2350_v46, %v2334_v11  ;;  %v2365_v16 = vadd.f32 %v2349_v47, %v2333_v30  ;;  %v972_v39 = vld [vmem:[#allocation16 + $0xe0] sm:$0xff]  ;;  %2622 = vmatpush1.msra.mxu1 %v974_v54  ;;  %v971_v58 = vld [vmem:[#allocation16 + $0xd8] sm:$0xff]  ;;  %v966_v0 = vld [vmem:[#allocation16 + $0xb0] sm:$0xff] }
 0x5c8   : > { %2427 = vmatpush1.msra.mxu0 %v2316_v33  ;;  %v2388_v33 = vadd.f32 %v5480_v26, %v2372_v21  ;;  %v2386_v13 = vadd.f32 %v5478_v63, %v2370_v1  ;;  %v969_v21 = vld [vmem:[#allocation16 + $0xc8] sm:$0xff]  ;;  %v968_v26 = vld [vmem:[#allocation16 + $0xc0] sm:$0xff]  ;;  %v967_v53 = vld [vmem:[#allocation16 + $0xb8] sm:$0xff] }
 0x5c9   : > { %2428 = vmatprep.subr.mxu0 %v10905_v17  ;;  %v2382_v34 = vadd.f32 %v5474_v62, %v2366_v36  ;;  %v2381_v9 = vadd.f32 %v5473_v52, %v2365_v16  ;;  %v6019_v14 = vld [vmem:[#allocation13 + $0xf8] sm:$0xff]  ;;  %v6021_v41 = vld [vmem:[#allocation13 + $0xe8] sm:$0xff]  ;;  %v962_v1 = vld [vmem:[#allocation16 + $0x90] sm:$0xff] }
 0x5ca   : > { %2429 = vmatpush2.msra.mxu0 %v2395_v3  ;;  %v2387_v3 = vadd.f32 %v5479_v55, %v2371_v57  ;;  %v6020_v57 = vld [vmem:[#allocation13 + $0xf0] sm:$0xff]  ;;  %v884_v55 = vld [vmem:[#allocation15 + $0x20] sm:$0xff]  ;;  %v887_v5 = vld [vmem:[#allocation15 + $0x38] sm:$0xff] }
 0x5cb   : > { %2430 = vmatprep.subr.mxu0 %v10905_v17  ;;  %v963_v4 = vld [vmem:[#allocation16 + $0x98] sm:$0xff]  ;;  %v961_v63 = vld [vmem:[#allocation16 + $0x88] sm:$0xff]  ;;  %v960_v56 = vld [vmem:[#allocation16 + $0x80] sm:$0xff] }
 0x5cc   : > { %2431 = vmatpush2.msra.mxu0 %v2394_v7  ;;  %v2368_v7 = vadd.f32 %v2352_v37, %v2336_v40  ;;  %v964_v37 = vld [vmem:[#allocation16 + $0xa0] sm:$0xff]  ;;  %v889_v44 = vld [vmem:[#allocation15 + $0x48] sm:$0xff]  ;;  %v959_v40 = vld [vmem:[#allocation16 + $0x78] sm:$0xff] }
 0x5cd   : > { %2432 = vmatprep.subr.mxu0 %v10905_v17  ;;  %v6023_v6 = vld [vmem:[#allocation13 + $0xd8] sm:$0xff]  ;;  %v6024_v12 = vld [vmem:[#allocation13 + $0xd0] sm:$0xff]  ;;  %v957_v42 = vld [vmem:[#allocation16 + $0x68] sm:$0xff] }
 0x5ce   : > { %2433 = vmatpush2.msra.mxu0 %v2393_v2  ;;  %v2367_v2 = vadd.f32 %v2351_v31, %v2335_v22  ;;  %v2384_v19 = vadd.f32 %v5476_v25, %v2368_v7  ;;  %v886_v31 = vld [vmem:[#allocation15 + $0x30] sm:$0xff]  ;;  %v888_v46 = vld [vmem:[#allocation15 + $0x40] sm:$0xff]  ;;  %v891_v38 = vld [vmem:[#allocation15 + $0x58] sm:$0xff] }
 0x5cf   : > { %2434 = vmatprep.subr.mxu0 %v10905_v17  ;;  %v956_v50 = vld [vmem:[#allocation16 + $0x60] sm:$0xff]  ;;  %v955_v22 = vld [vmem:[#allocation16 + $0x58] sm:$0xff]  ;;  %v6025_v7 = vld [vmem:[#allocation13 + $0xc8] sm:$0xff] }
 0x5d0   : > { %2435 = vmatpush2.msra.mxu0 %v2392_v45  ;;  %v2332_v45 = vmul.f32 %v11009_v20, %v8164_v23  ;;  %v2383_v61 = vadd.f32 %v5475_v29, %v2367_v2  ;;  %v6026_v25 = vld [vmem:[#allocation13 + $0xc0] sm:$0xff]  ;;  %v953_v47 = vld [vmem:[#allocation16 + $0x48] sm:$0xff]  ;;  %v890_v27 = vld [vmem:[#allocation15 + $0x50] sm:$0xff] }
 0x5d1   : > { %2436 = vmatprep.subr.mxu0 %v10905_v17  ;;  %v952_v35 = vld [vmem:[#allocation16 + $0x40] sm:$0xff]  ;;  %v893_v11 = vld [vmem:[#allocation15 + $0x68] sm:$0xff]  ;;  %v951_v2 = vld [vmem:[#allocation16 + $0x38] sm:$0xff] }
 0x5d2   : > { %2437 = vmatpush2.msra.mxu0 %v2391_v49  ;;  %v2364_v48 = vadd.f32 %v2348_v24, %v2332_v45  ;;  %v973_v49 = vld [vmem:[#allocation16 + $0xe8] sm:$0xff]  ;;  %v950_v29 = vld [vmem:[#allocation16 + $0x30] sm:$0xff]  ;;  %v892_v30 = vld [vmem:[#allocation15 + $0x60] sm:$0xff] }
 0x5d3   : > { %2438 = vmatprep.subr.mxu0 %v10905_v17  ;;  %2623 = vmatprep.subr.mxu1 %v973_v49  ;;  %v6028_v24 = vld [vmem:[#allocation13 + $0xb0] sm:$0xff]  ;;  %v949_v10 = vld [vmem:[#allocation16 + $0x28] sm:$0xff]  ;;  %v948_v36 = vld [vmem:[#allocation16 + $0x20] sm:$0xff] }
 0x5d4   : > { %2439 = vmatpush2.msra.mxu0 %v2390_v28  ;;  %v2380_v23 = vadd.f32 %v5472_v18, %v2364_v48  ;;  %2624 = vmatpush1.msra.mxu1 %v972_v39  ;;  %v882_v28 = vld [vmem:[#allocation15 + $0x10] sm:$0xff]  ;;  %v947_v62 = vld [vmem:[#allocation16 + $0x18] sm:$0xff]  ;;  %v6029_v20 = vld [vmem:[#allocation13 + $0xa8] sm:$0xff] }
 0x5d5   : > { %2440 = vmatprep.subr.mxu0 %v10905_v17  ;;  %2625 = vmatprep.subr.mxu1 %v971_v58  ;;  %v946_v45 = vld [vmem:[#allocation16 + $0x10] sm:$0xff]  ;;  %v6030_v16 = vld [vmem:[#allocation13 + $0xa0] sm:$0xff]  ;;  %v6031_v18 = vld [vmem:[#allocation13 + $0x98] sm:$0xff] }
 0x5d6   : > { %2441 = vmatpush2.msra.mxu0 %v2389_v32  ;;  %2626 = vmatpush1.msra.mxu1 %v970_v43  ;;  %v965_v32 = vld [vmem:[#allocation16 + $0xa8] sm:$0xff]  ;;  %v894_v52 = vld [vmem:[#allocation15 + $0x70] sm:$0xff]  ;;  %v944_v48 = vld [vmem:[#allocation16] sm:$0xff] }
 0x5d7   : > { %2442 = vmatprep.subr.mxu0 %v10905_v17  ;;  %2627 = vmatprep.subr.mxu1 %v969_v21  ;;  %v896_v8 = vld [vmem:[#allocation15 + $0x80] sm:$0xff]  ;;  %v6033_v54 = vld [vmem:[#allocation13 + $0x88] sm:$0xff]  ;;  %v899_v49 = vld [vmem:[#allocation15 + $0x98] sm:$0xff] }
 0x5d8   : > { %2443 = vmatpush2.msra.mxu0 %v2388_v33  ;;  %2628 = vmatpush1.msra.mxu1 %v968_v26  ;;  %v6022_v33 = vld [vmem:[#allocation13 + $0xe0] sm:$0xff]  ;;  %v898_v39 = vld [vmem:[#allocation15 + $0x90] sm:$0xff]  ;;  %v901_v58 = vld [vmem:[#allocation15 + $0xa8] sm:$0xff] }
 0x5d9   : > { %2444 = vmatprep.subr.mxu0 %v10905_v17  ;;  %2629 = vmatprep.subr.mxu1 %v967_v53  ;;  %v6037_v43 = vld [vmem:[#allocation13 + $0x68] sm:$0xff]  ;;  %v6038_v21 = vld [vmem:[#allocation13 + $0x60] sm:$0xff]  ;;  %v903_v53 = vld [vmem:[#allocation15 + $0xb8] sm:$0xff] }
 0x5da   : > { %2445 = vmatpush2.msra.mxu0 %v2387_v3  ;;  %2630 = vmatpush1.msra.mxu1 %v966_v0  ;;  %v958_v3 = vld [vmem:[#allocation16 + $0x70] sm:$0xff]  ;;  %v900_v26 = vld [vmem:[#allocation15 + $0xa0] sm:$0xff] }
 0x5db   : > { %2446 = vmatprep.subr.mxu0 %v10905_v17  ;;  %2631 = vmatprep.subr.mxu1 %v965_v32  ;;  %v6042_v0 = vld [vmem:[#allocation13 + $0x40] sm:$0xff]  ;;  %v902_v32 = vld [vmem:[#allocation15 + $0xb0] sm:$0xff] }
 0x5dc   : > { %2447 = vmatpush2.msra.mxu0 %v2386_v13  ;;  %2632 = vmatpush1.msra.mxu1 %v964_v37  ;;  %v954_v13 = vld [vmem:[#allocation16 + $0x50] sm:$0xff]  ;;  %v905_v37 = vld [vmem:[#allocation15 + $0xc8] sm:$0xff] }
 0x5dd   : > { %2448 = vmatprep.subr.mxu0 %v10905_v17  ;;  %2633 = vmatprep.subr.mxu1 %v963_v4  ;;  %v6046_v4 = vld [vmem:[#allocation13 + $0x20] sm:$0xff] }
 0x5de   : > { %2449 = vmatpush2.msra.mxu0 %v2385_v60  ;;  %2634 = vmatpush1.msra.mxu1 %v962_v1  ;;  %v6027_v60 = vld [vmem:[#allocation13 + $0xb8] sm:$0xff]  ;;  %v904_v1 = vld [vmem:[#allocation15 + $0xc0] sm:$0xff] }
 0x5df   : > { %2450 = vmatprep.subr.mxu0 %v10905_v17  ;;  %2635 = vmatprep.subr.mxu1 %v961_v63  ;;  %v907_v63 = vld [vmem:[#allocation15 + $0xd8] sm:$0xff] }
 0x5e0   : > { %2451 = vmatpush2.msra.mxu0 %v2384_v19  ;;  %2636 = vmatpush1.msra.mxu1 %v960_v56  ;;  %v895_v19 = vld [vmem:[#allocation15 + $0x78] sm:$0xff]  ;;  %v6050_v56 = vld [vmem:[#allocation13] sm:$0xff] }
 0x5e1   : > { %2452 = vmatprep.subr.mxu0 %v10905_v17  ;;  %2637 = vmatprep.subr.mxu1 %v959_v40  ;;  %v906_v40 = vld [vmem:[#allocation15 + $0xd0] sm:$0xff] }
 0x5e2   : > { %2453 = vmatpush2.msra.mxu0 %v2383_v61  ;;  %2638 = vmatpush1.msra.mxu1 %v958_v3  ;;  %v945_v61 = vld [vmem:[#allocation16 + $0x8] sm:$0xff] }
 0x5e3   : > { %2454 = vmatprep.subr.mxu0 %v10905_v17  ;;  %2639 = vmatprep.subr.mxu1 %v957_v42  ;;  %v909_v3 = vld [vmem:[#allocation15 + $0xe8] sm:$0xff]  ;;  %v6054_v42 = vld [vmem:[#allocation13 + $0x1e0] sm:$0xff] }
 0x5e4   : > { %2455 = vmatpush2.msra.mxu0 %v2382_v34  ;;  %2640 = vmatpush1.msra.mxu1 %v956_v50  ;;  %v897_v34 = vld [vmem:[#allocation15 + $0x88] sm:$0xff]  ;;  %v908_v50 = vld [vmem:[#allocation15 + $0xe0] sm:$0xff] }
 0x5e5   : > { %2456 = vmatprep.subr.mxu0 %v10905_v17  ;;  %2641 = vmatprep.subr.mxu1 %v955_v22  ;;  %v911_v22 = vld [vmem:[#allocation15 + $0xf8] sm:$0xff] }
 0x5e6   : > { %2457 = vmatpush2.msra.mxu0 %v2381_v9  ;;  %2642 = vmatpush1.msra.mxu1 %v954_v13  ;;  %v6032_v9 = vld [vmem:[#allocation13 + $0x90] sm:$0xff]  ;;  %v6058_v13 = vld [vmem:[#allocation13 + $0x1c0] sm:$0xff] }
 0x5e7   : > { %2458 = vmatprep.subr.mxu0 %v10905_v17  ;;  %2643 = vmatprep.subr.mxu1 %v953_v47  ;;  %v910_v47 = vld [vmem:[#allocation15 + $0xf0] sm:$0xff] }
 0x5e8   : > { %2459 = vmatpush2.msra.mxu0 %v2380_v23  ;;  %2644 = vmatpush1.msra.mxu1 %v952_v35  ;;  %v6034_v23 = vld [vmem:[#allocation13 + $0x80] sm:$0xff]  ;;  %v913_v35 = vld [vmem:[#allocation15 + $0x108] sm:$0xff] }
 0x5e9   : > { %2461 = vmatmul.mubr.f32.vlgmr.msra.gmra.mxu0 %v880_v51  ;;  %3363 = vmatprep.subr.mxu0 %v6019_v14  ;;  %v6035_v51 = vld [vmem:[#allocation13 + $0x78] sm:$0xff]  ;;  %v6041_v14 = vld [vmem:[#allocation13 + $0x48] sm:$0xff] }
 0x5ea   : > { %2465 = vmatprep.mubr.f32.mxu0 %v883_v15  ;;  %3364 = vmatpush1.msra.mxu0 %v6020_v57  ;;  %v6036_v15 = vld [vmem:[#allocation13 + $0x70] sm:$0xff]  ;;  %v6043_v57 = vld [vmem:[#allocation13 + $0x38] sm:$0xff] }
 0x5eb   : > { %3365 = vmatprep.subr.mxu0 %v6021_v41  ;;  %2645 = vmatprep.subr.mxu1 %v951_v2  ;;  %v6047_v41 = vld [vmem:[#allocation13 + $0x18] sm:$0xff]  ;;  %v6062_v2 = vld [vmem:[#allocation13 + $0x1a0] sm:$0xff] }
 0x5ec   : > { %3366 = vmatpush1.msra.mxu0 %v6022_v33  ;;  %2646 = vmatpush1.msra.mxu1 %v950_v29  ;;  %v6048_v33 = vld [vmem:[#allocation13 + $0x10] sm:$0xff]  ;;  %v912_v29 = vld [vmem:[#allocation15 + $0x100] sm:$0xff] }
 0x5ed   : > { %2466 = vmatmul.mubr.f32.gmra.mxu0 %v882_v28  ;;  %3367 = vmatprep.subr.mxu0 %v6023_v6  ;;  %v6039_v28 = vld [vmem:[#allocation13 + $0x58] sm:$0xff]  ;;  %v6052_v6 = vld [vmem:[#allocation13 + $0x1f0] sm:$0xff] }
 0x5ee   : > { %2470 = vmatprep.mubr.f32.mxu0 %v885_v59  ;;  %3368 = vmatpush1.msra.mxu0 %v6024_v12  ;;  %v6040_v59 = vld [vmem:[#allocation13 + $0x50] sm:$0xff]  ;;  %v6053_v12 = vld [vmem:[#allocation13 + $0x1e8] sm:$0xff] }
 0x5ef   : > { %3369 = vmatprep.subr.mxu0 %v6025_v7  ;;  %2647 = vmatprep.subr.mxu1 %v949_v10  ;;  %v6057_v7 = vld [vmem:[#allocation13 + $0x1c8] sm:$0xff]  ;;  %v915_v10 = vld [vmem:[#allocation15 + $0x118] sm:$0xff] }
 0x5f0   : > { %3370 = vmatpush1.msra.mxu0 %v6026_v25  ;;  %2648 = vmatpush1.msra.mxu1 %v948_v36  ;;  %v6059_v25 = vld [vmem:[#allocation13 + $0x1b8] sm:$0xff]  ;;  %v6066_v36 = vld [vmem:[#allocation13 + $0x180] sm:$0xff] }
 0x5f1   : > { %2471 = vmatmul.mubr.f32.gmra.mxu0 %v884_v55  ;;  %3371 = vmatprep.subr.mxu0 %v6027_v60  ;;  %v6044_v55 = vld [vmem:[#allocation13 + $0x30] sm:$0xff]  ;;  %v6063_v60 = vld [vmem:[#allocation13 + $0x198] sm:$0xff] }
 0x5f2   : > { %2475 = vmatprep.mubr.f32.mxu0 %v887_v5  ;;  %3372 = vmatpush1.msra.mxu0 %v6028_v24  ;;  %v6045_v5 = vld [vmem:[#allocation13 + $0x28] sm:$0xff]  ;;  %v6064_v24 = vld [vmem:[#allocation13 + $0x190] sm:$0xff] }
 0x5f3   : > { %3373 = vmatprep.subr.mxu0 %v6029_v20  ;;  %2649 = vmatprep.subr.mxu1 %v947_v62  ;;  %v914_v62 = vld [vmem:[#allocation15 + $0x110] sm:$0xff] }
 0x5f4   : > { %3374 = vmatpush1.msra.mxu0 %v6030_v16  ;;  %2650 = vmatpush1.msra.mxu1 %v946_v45  ;;  %v6068_v20 = vld [vmem:[#allocation13 + $0x170] sm:$0xff]  ;;  %v917_v45 = vld [vmem:[#allocation15 + $0x128] sm:$0xff]  ;;  %v1007_v16 = vld [vmem:[#allocation16 + $0x1f8] sm:$0xff] }
 0x5f5   : > { %2476 = vmatmul.mubr.f32.gmra.mxu0 %v886_v31  ;;  %3375 = vmatprep.subr.mxu0 %v6031_v18  ;;  %v6049_v31 = vld [vmem:[#allocation13 + $0x8] sm:$0xff]  ;;  %v6071_v18 = vld [vmem:[#allocation13 + $0x158] sm:$0xff] }
 0x5f6   : > { %2480 = vmatprep.mubr.f32.mxu0 %v889_v44  ;;  %2651 = vmatprep.subr.mxu1 %v945_v61  ;;  %v6051_v44 = vld [vmem:[#allocation13 + $0x1f8] sm:$0xff]  ;;  %v1006_v61 = vld [vmem:[#allocation16 + $0x1f0] sm:$0xff] }
 0x5f7   : > { %3376 = vmatpush1.msra.mxu0 %v6032_v9  ;;  %2652 = vmatpush1.msra.mxu1 %v944_v48  ;;  %v6070_v48 = vld [vmem:[#allocation13 + $0x160] sm:$0xff]  ;;  %v919_v9 = vld [vmem:[#allocation15 + $0x138] sm:$0xff] }
 0x5f8   : > { %3377 = vmatprep.subr.mxu0 %v6033_v54  ;;  %2653 = vmatprep.subr.mxu1 %v1007_v16  ;;  %v1004_v54 = vld [vmem:[#allocation16 + $0x1e0] sm:$0xff]  ;;  %v982_v16 = vld [vmem:[#allocation16 + $0x130] sm:$0xff] }
 0x5f9   : > { %2481 = vmatmul.mubr.f32.gmra.mxu0 %v888_v46  ;;  %v6055_v46 = vld [vmem:[#allocation13 + $0x1d8] sm:$0xff]  ;;  %2654 = vmatpush2.msra.mxu1 %v1006_v61  ;;  %v940_v61 = vld [vmem:[#allocation15 + $0x1e0] sm:$0xff] }
 0x5fa   : > { %2485 = vmatprep.mubr.f32.mxu0 %v891_v38  ;;  %3378 = vmatpush1.msra.mxu0 %v6034_v23  ;;  %v6056_v38 = vld [vmem:[#allocation13 + $0x1d0] sm:$0xff]  ;;  %v6073_v23 = vld [vmem:[#allocation13 + $0x148] sm:$0xff] }
 0x5fb   : > { %3379 = vmatprep.subr.mxu0 %v6035_v51  ;;  %v918_v51 = vld [vmem:[#allocation15 + $0x130] sm:$0xff] }
 0x5fc   : > { %3380 = vmatpush1.msra.mxu0 %v6036_v15  ;;  %v921_v15 = vld [vmem:[#allocation15 + $0x148] sm:$0xff] }
 0x5fd   : > { %2486 = vmatmul.mubr.f32.gmra.mxu0 %v890_v27  ;;  %3381 = vmatprep.subr.mxu0 %v6037_v43  ;;  %v6060_v27 = vld [vmem:[#allocation13 + $0x1b0] sm:$0xff] }
 0x5fe   : > { %2490 = vmatprep.mubr.f32.mxu0 %v893_v11  ;;  %3382 = vmatpush1.msra.mxu0 %v6038_v21  ;;  %v6061_v11 = vld [vmem:[#allocation13 + $0x1a8] sm:$0xff]  ;;  %v1002_v43 = vld [vmem:[#allocation16 + $0x1d0] sm:$0xff]  ;;  %v6075_v21 = vld [vmem:[#allocation13 + $0x138] sm:$0xff] }
 0x5ff   : > { %3383 = vmatprep.subr.mxu0 %v6039_v28  ;;  %v6076_v28 = vld [vmem:[#allocation13 + $0x130] sm:$0xff] }
 0x600   : > { %3384 = vmatpush1.msra.mxu0 %v6040_v59  ;;  %v6077_v59 = vld [vmem:[#allocation13 + $0x128] sm:$0xff] }
 0x601   : > { %2491 = vmatmul.mubr.f32.gmra.mxu0 %v892_v30  ;;  %3385 = vmatprep.subr.mxu0 %v6041_v14  ;;  %v6065_v30 = vld [vmem:[#allocation13 + $0x188] sm:$0xff] }
 0x602   : > { %2495 = vmatprep.mubr.f32.mxu0 %v895_v19  ;;  %3386 = vmatpush1.msra.mxu0 %v6042_v0  ;;  %v6067_v19 = vld [vmem:[#allocation13 + $0x178] sm:$0xff]  ;;  %v1001_v14 = vld [vmem:[#allocation16 + $0x1c8] sm:$0xff]  ;;  %v1000_v0 = vld [vmem:[#allocation16 + $0x1c0] sm:$0xff] }
 0x603   : > { %3387 = vmatprep.subr.mxu0 %v6043_v57  ;;  %v6078_v57 = vld [vmem:[#allocation13 + $0x120] sm:$0xff] }
 0x604   : > { %3388 = vmatpush1.msra.mxu0 %v6044_v55  ;;  %v922_v55 = vld [vmem:[#allocation15 + $0x150] sm:$0xff] }
 0x605   : > { %2496 = vmatmul.mubr.f32.gmra.mxu0 %v894_v52  ;;  %3389 = vmatprep.subr.mxu0 %v6045_v5  ;;  %v6069_v52 = vld [vmem:[#allocation13 + $0x168] sm:$0xff] }
 0x606   : > { %2500 = vmatprep.mubr.f32.mxu0 %v897_v34  ;;  %3390 = vmatpush1.msra.mxu0 %v6046_v4  ;;  %v916_v34 = vld [vmem:[#allocation15 + $0x120] sm:$0xff]  ;;  %v925_v5 = vld [vmem:[#allocation15 + $0x168] sm:$0xff]  ;;  %v999_v4 = vld [vmem:[#allocation16 + $0x1b8] sm:$0xff] }
 0x607   : > { %3391 = vmatprep.subr.mxu0 %v6047_v41  ;;  %v998_v41 = vld [vmem:[#allocation16 + $0x1b0] sm:$0xff] }
 0x608   : > { %3392 = vmatpush1.msra.mxu0 %v6048_v33  ;;  %v6082_v33 = vld [vmem:[#allocation13 + $0x100] sm:$0xff] }
 0x609   : > { %2501 = vmatmul.mubr.f32.gmra.mxu0 %v896_v8  ;;  %3393 = vmatprep.subr.mxu0 %v6049_v31  ;;  %v1005_v8 = vld [vmem:[#allocation16 + $0x1e8] sm:$0xff]  ;;  %v927_v31 = vld [vmem:[#allocation15 + $0x178] sm:$0xff] }
 0x60a   : > { %2505 = vmatprep.mubr.f32.mxu0 %v899_v49  ;;  %3394 = vmatpush1.msra.mxu0 %v6050_v56  ;;  %v6072_v49 = vld [vmem:[#allocation13 + $0x150] sm:$0xff]  ;;  %v997_v56 = vld [vmem:[#allocation16 + $0x1a8] sm:$0xff] }
 0x60b   : > { %3395 = vmatprep.subr.mxu0 %v6051_v44  ;;  %2655 = vmatprep.subr.mxu1 %v1005_v8  ;;  %v996_v44 = vld [vmem:[#allocation16 + $0x1a0] sm:$0xff]  ;;  %v978_v8 = vld [vmem:[#allocation16 + $0x110] sm:$0xff] }
 0x60c   : > { %3396 = vmatpush2.msra.mxu0 %v6052_v6  ;;  %2656 = vmatpush2.msra.mxu1 %v1004_v54  ;;  %v929_v6 = vld [vmem:[#allocation15 + $0x188] sm:$0xff] }
 0x60d   : > { %2506 = vmatmul.mubr.f32.gmra.mxu0 %v898_v39  ;;  %3397 = vmatprep.subr.mxu0 %v6053_v12  ;;  %v6074_v39 = vld [vmem:[#allocation13 + $0x140] sm:$0xff]  ;;  %v994_v12 = vld [vmem:[#allocation16 + $0x190] sm:$0xff]  ;;  %v977_v54 = vld [vmem:[#allocation16 + $0x108] sm:$0xff] }
 0x60e   : > { %2510 = vmatprep.mubr.f32.mxu0 %v901_v58  ;;  %3398 = vmatpush2.msra.mxu0 %v6054_v42  ;;  %v1003_v58 = vld [vmem:[#allocation16 + $0x1d8] sm:$0xff]  ;;  %v928_v42 = vld [vmem:[#allocation15 + $0x180] sm:$0xff] }
 0x60f   : > { %3399 = vmatprep.subr.mxu0 %v6055_v46  ;;  %2657 = vmatprep.subr.mxu1 %v1003_v58  ;;  %v931_v46 = vld [vmem:[#allocation15 + $0x198] sm:$0xff] }
 0x610   : > { %3400 = vmatpush2.msra.mxu0 %v6056_v38  ;;  %2658 = vmatpush2.msra.mxu1 %v1002_v43  ;;  %v992_v38 = vld [vmem:[#allocation16 + $0x180] sm:$0xff] }
 0x611   : > { %2511 = vmatmul.mubr.f32.gmra.mxu0 %v900_v26  ;;  %3401 = vmatprep.subr.mxu0 %v6057_v7  ;;  %v920_v26 = vld [vmem:[#allocation15 + $0x140] sm:$0xff]  ;;  %v933_v7 = vld [vmem:[#allocation15 + $0x1a8] sm:$0xff] }
 0x612   : > { %2515 = vmatprep.mubr.f32.mxu0 %v903_v53  ;;  %3402 = vmatpush2.msra.mxu0 %v6058_v13  ;;  %v923_v53 = vld [vmem:[#allocation15 + $0x158] sm:$0xff] }
 0x613   : > { %3403 = vmatprep.subr.mxu0 %v6059_v25  ;;  %2659 = vmatprep.subr.mxu1 %v1001_v14  ;;  %v991_v13 = vld [vmem:[#allocation16 + $0x178] sm:$0xff]  ;;  %v990_v25 = vld [vmem:[#allocation16 + $0x170] sm:$0xff] }
 0x614   : > { %3404 = vmatpush2.msra.mxu0 %v6060_v27  ;;  %2660 = vmatpush2.msra.mxu1 %v1000_v0  ;;  %v935_v27 = vld [vmem:[#allocation15 + $0x1b8] sm:$0xff] }
 0x615   : > { %2516 = vmatmul.mubr.f32.gmra.mxu0 %v902_v32  ;;  %3405 = vmatprep.subr.mxu0 %v6061_v11  ;;  %v6079_v32 = vld [vmem:[#allocation13 + $0x118] sm:$0xff]  ;;  %v988_v11 = vld [vmem:[#allocation16 + $0x160] sm:$0xff] }
 0x616   : > { %2520 = vmatprep.mubr.f32.mxu0 %v905_v37  ;;  %3406 = vmatpush2.msra.mxu0 %v6062_v2  ;;  %v6080_v37 = vld [vmem:[#allocation13 + $0x110] sm:$0xff] }
 0x617   : > { %3407 = vmatprep.subr.mxu0 %v6063_v60  ;;  %2661 = vmatprep.subr.mxu1 %v999_v4  ;;  %v934_v2 = vld [vmem:[#allocation15 + $0x1b0] sm:$0xff]  ;;  %v937_v60 = vld [vmem:[#allocation15 + $0x1c8] sm:$0xff] }
 0x618   : > { %3408 = vmatpush2.msra.mxu0 %v6064_v24  ;;  %2662 = vmatpush2.msra.mxu1 %v998_v41  ;;  %v986_v24 = vld [vmem:[#allocation16 + $0x150] sm:$0xff] }
 0x619   : > { %2521 = vmatmul.mubr.f32.gmra.mxu0 %v904_v1  ;;  %3409 = vmatprep.subr.mxu0 %v6065_v30  ;;  %v6081_v1 = vld [vmem:[#allocation13 + $0x108] sm:$0xff]  ;;  %v939_v30 = vld [vmem:[#allocation15 + $0x1d8] sm:$0xff] }
 0x61a   : > { %2525 = vmatprep.mubr.f32.mxu0 %v907_v63  ;;  %3410 = vmatpush2.msra.mxu0 %v6066_v36  ;;  %v924_v63 = vld [vmem:[#allocation15 + $0x160] sm:$0xff]  ;;  %v985_v36 = vld [vmem:[#allocation16 + $0x148] sm:$0xff] }
 0x61b   : > { %3411 = vmatprep.subr.mxu0 %v6067_v19  ;;  %2663 = vmatprep.subr.mxu1 %v997_v56  ;;  %v984_v19 = vld [vmem:[#allocation16 + $0x140] sm:$0xff] }
 0x61c   : > { %3412 = vmatpush2.msra.mxu0 %v6068_v20  ;;  %2664 = vmatpush2.msra.mxu1 %v996_v44  ;;  %v941_v20 = vld [vmem:[#allocation15 + $0x1e8] sm:$0xff] }
 0x61d   : > { %2526 = vmatmul.mubr.f32.gmra.mxu0 %v906_v40  ;;  %3413 = vmatprep.subr.mxu0 %v6069_v52  ;;  %v926_v40 = vld [vmem:[#allocation15 + $0x170] sm:$0xff]  ;;  %v943_v52 = vld [vmem:[#allocation15 + $0x1f8] sm:$0xff] }
 0x61e   : > { %2530 = vmatprep.mubr.f32.mxu0 %v909_v3  ;;  %3414 = vmatpush2.msra.mxu0 %v6070_v48  ;;  %v995_v3 = vld [vmem:[#allocation16 + $0x198] sm:$0xff]  ;;  %v981_v48 = vld [vmem:[#allocation16 + $0x128] sm:$0xff] }
 0x61f   : > { %3415 = vmatprep.subr.mxu0 %v6071_v18  ;;  %2665 = vmatprep.subr.mxu1 %v995_v3  ;;  %v942_v18 = vld [vmem:[#allocation15 + $0x1f0] sm:$0xff] }
 0x620   : > { %3416 = vmatpush2.msra.mxu0 %v6072_v49  ;;  %2666 = vmatpush2.msra.mxu1 %v994_v12  ;;  %v976_v49 = vld [vmem:[#allocation16 + $0x100] sm:$0xff] }
 0x621   : > { %2531 = vmatmul.mubr.f32.gmra.mxu0 %v908_v50  ;;  %3417 = vmatprep.subr.mxu0 %v6073_v23  ;;  %v993_v50 = vld [vmem:[#allocation16 + $0x188] sm:$0xff] }
 0x622   : > { %2535 = vmatprep.mubr.f32.mxu0 %v911_v22  ;;  %3418 = vmatpush2.msra.mxu0 %v6074_v39  ;;  %v930_v22 = vld [vmem:[#allocation15 + $0x190] sm:$0xff] }
 0x623   : > { %3419 = vmatprep.subr.mxu0 %v6075_v21  ;;  %2667 = vmatprep.subr.mxu1 %v993_v50 }
 0x624   : > { %3420 = vmatpush2.msra.mxu0 %v6076_v28  ;;  %2668 = vmatpush2.msra.mxu1 %v992_v38 }
 0x625   : > { %2536 = vmatmul.mubr.f32.gmra.mxu0 %v910_v47  ;;  %3421 = vmatprep.subr.mxu0 %v6077_v59  ;;  %v932_v47 = vld [vmem:[#allocation15 + $0x1a0] sm:$0xff] }
 0x626   : > { %2540 = vmatprep.mubr.f32.mxu0 %v913_v35  ;;  %3422 = vmatpush2.msra.mxu0 %v6078_v57  ;;  %v989_v35 = vld [vmem:[#allocation16 + $0x168] sm:$0xff] }
 0x627   : > { %3423 = vmatprep.subr.mxu0 %v6079_v32  ;;  %2669 = vmatprep.subr.mxu1 %v991_v13 }
 0x628   : > { %3424 = vmatpush2.msra.mxu0 %v6080_v37  ;;  %2670 = vmatpush2.msra.mxu1 %v990_v25 }
 0x629   : > { %2541 = vmatmul.mubr.f32.gmra.mxu0 %v912_v29  ;;  %3425 = vmatprep.subr.mxu0 %v6081_v1  ;;  %v987_v29 = vld [vmem:[#allocation16 + $0x158] sm:$0xff] }
 0x62a   : > { %2545 = vmatprep.mubr.f32.mxu0 %v915_v10  ;;  %3426 = vmatpush2.msra.mxu0 %v6082_v33  ;;  %v936_v10 = vld [vmem:[#allocation15 + $0x1c0] sm:$0xff] }
 0x62b   : > { %3720 = vmatprep.subr.mxu0 %v10905_v17  ;;  %2671 = vmatprep.subr.mxu1 %v989_v35 }
 0x62c   : > { %2672 = vmatpush2.msra.mxu1 %v988_v11 }
 0x62d   : > { %2546 = vmatmul.mubr.f32.gmra.mxu0 %v914_v62  ;;  %2673 = vmatprep.subr.mxu1 %v987_v29  ;;  %v938_v62 = vld [vmem:[#allocation15 + $0x1d0] sm:$0xff] }
 0x62e   : > { %2550 = vmatprep.mubr.f32.mxu0 %v917_v45  ;;  %2674 = vmatpush2.msra.mxu1 %v986_v24  ;;  %v983_v45 = vld [vmem:[#allocation16 + $0x138] sm:$0xff] }
 0x62f   : > { %2675 = vmatprep.subr.mxu1 %v985_v36 }
 0x630   : > { %2676 = vmatpush2.msra.mxu1 %v984_v19 }
 0x631   : > { %2551 = vmatmul.mubr.f32.gmra.mxu0 %v916_v34  ;;  %2677 = vmatprep.subr.mxu1 %v983_v45  ;;  %v980_v34 = vld [vmem:[#allocation16 + $0x120] sm:$0xff] }
 0x632   : > { %2555 = vmatprep.mubr.f32.mxu0 %v919_v9  ;;  %2678 = vmatpush2.msra.mxu1 %v982_v16  ;;  %v979_v9 = vld [vmem:[#allocation16 + $0x118] sm:$0xff] }
 0x633   : > { %2679 = vmatprep.subr.mxu1 %v981_v48 }
 0x634   : > { %2680 = vmatpush2.msra.mxu1 %v980_v34 }
 0x635   : > { %2556 = vmatmul.mubr.f32.gmra.mxu0 %v918_v51  ;;  %2681 = vmatprep.subr.mxu1 %v979_v9 }
 0x636   : > { %2560 = vmatprep.mubr.f32.mxu0 %v921_v15  ;;  %2682 = vmatpush2.msra.mxu1 %v978_v8 }
 0x637   : > { %2683 = vmatprep.subr.mxu1 %v977_v54 }
 0x638   : > { %2684 = vmatpush2.msra.mxu1 %v976_v49 }
 0x639   : > { %2561 = vmatmul.mubr.f32.gmra.mxu0 %v920_v26  ;;  %3138 = vmatprep.subr.mxu1 %v10905_v17 }
 0x63a   : > { %2565 = vmatprep.mubr.f32.mxu0 %v923_v53 }
 0x63d   : > { %2566 = vmatmul.mubr.f32.gmra.mxu0 %v922_v55 }
 0x63e   : > { %2570 = vmatprep.mubr.f32.mxu0 %v925_v5 }
 0x641   : > { %2571 = vmatmul.mubr.f32.gmra.mxu0 %v924_v63 }
 0x642   : > { %2575 = vmatprep.mubr.f32.mxu0 %v927_v31 }
 0x645   : > { %2576 = vmatmul.mubr.f32.gmra.mxu0 %v926_v40 }
 0x646   : > { %2580 = vmatprep.mubr.f32.mxu0 %v929_v6 }
 0x649   : > { %2581 = vmatmul.mubr.f32.gmra.mxu0 %v928_v42 }
 0x64a   : > { %2585 = vmatprep.mubr.f32.mxu0 %v931_v46 }
 0x64d   : > { %2586 = vmatmul.mubr.f32.gmra.mxu0 %v930_v22 }
 0x64e   : > { %2590 = vmatprep.mubr.f32.mxu0 %v933_v7 }
 0x651   : > { %2591 = vmatmul.mubr.f32.gmra.mxu0 %v932_v47 }
 0x652   : > { %2595 = vmatprep.mubr.f32.mxu0 %v935_v27 }
 0x655   : > { %2596 = vmatmul.mubr.f32.gmra.mxu0 %v934_v2 }
 0x656   : > { %2600 = vmatprep.mubr.f32.mxu0 %v937_v60 }
 0x659   : > { %2601 = vmatmul.mubr.f32.gmra.mxu0 %v936_v10 }
 0x65a   : > { %2605 = vmatprep.mubr.f32.mxu0 %v939_v30 }
 0x65d   : > { %2606 = vmatmul.mubr.f32.gmra.mxu0 %v938_v62 }
 0x65e   : > { %2610 = vmatprep.mubr.f32.mxu0 %v941_v20 }
 0x661   : > { %2611 = vmatmul.mubr.f32.gmra.mxu0 %v940_v61 }
 0x662   : > { %2615 = vmatprep.mubr.f32.mxu0 %v943_v52 }
 0x665   : > { %2616 = vmatmul.mubr.f32.gmra.mxu0 %v942_v18 }
 0x6a9   : > { %v2462_v23 = vpop.f32.mrf.mxu0 }
 0x6ab   : > { %v2464_v51 = vpop.f32.mrf.mxu0 }
 0x6ac   : > { %v6083_v51 = vld [vmem:[#allocation12 + $0x8] sm:$0xff] }
 0x6ad   : > { %v2467_v39 = vpop.f32.mrf.mxu0 }
 0x6af   : > { %v2469_v15 = vpop.f32.mrf.mxu0 }
 0x6b1   : > { %v2472_v58 = vpop.f32.mrf.mxu0 }
 0x6b3   : > { %v2474_v43 = vpop.f32.mrf.mxu0 }
 0x6b5   : > { %v2477_v21 = vpop.f32.mrf.mxu0 }
 0x6b7   : > { %v2479_v28 = vpop.f32.mrf.mxu0 }
 0x6b9   : > { %v2482_v26 = vpop.f32.mrf.mxu0 }
 0x6bb   : > { %v2484_v59 = vpop.f32.mrf.mxu0 }
 0x6bd   : > { %v2487_v53 = vpop.f32.mrf.mxu0 }
 0x6bf   : > { %v2489_v14 = vpop.f32.mrf.mxu0 }
 0x6c1   : > { %v2492_v0 = vpop.f32.mrf.mxu0 }
 0x6c3   : > { %v2494_v57 = vpop.f32.mrf.mxu0 }
 0x6c5   : > { %v2497_v32 = vpop.f32.mrf.mxu0 }
 0x6c7   : > { %v2499_v55 = vpop.f32.mrf.mxu0 }
 0x6c9   : > { %v2502_v37 = vpop.f32.mrf.mxu0 }
 0x6cb   : > { %v2504_v5 = vpop.f32.mrf.mxu0 }
 0x6cd   : > { %v2507_v4 = vpop.f32.mrf.mxu0 }
 0x6cf   : > { %v2509_v41 = vpop.f32.mrf.mxu0 }
 0x6d1   : > { %v2512_v1 = vpop.f32.mrf.mxu0 }
 0x6d3   : > { %v2514_v33 = vpop.f32.mrf.mxu0 }
 0x6d5   : > { %v2517_v63 = vpop.f32.mrf.mxu0 }
 0x6d7   : > { %v2519_v31 = vpop.f32.mrf.mxu0 }
 0x6d9   : > { %v2522_v56 = vpop.f32.mrf.mxu0 }
 0x6db   : > { %v2524_v44 = vpop.f32.mrf.mxu0 }
 0x6dd   : > { %v2527_v40 = vpop.f32.mrf.mxu0 }
 0x6df   : > { %v2529_v6 = vpop.f32.mrf.mxu0 }
 0x6e1   : > { %v2532_v3 = vpop.f32.mrf.mxu0 }
 0x6e3   : > { %v2534_v12 = vpop.f32.mrf.mxu0 }
 0x6e5   : > { %v8517_v42 = vpop.f32.mrf.mxu0 }
 0x6e7   : > { %v2539_v46 = vpop.f32.mrf.mxu0 }
 0x6e9   : > { %v2542_v50 = vpop.f32.mrf.mxu0 }
 0x6ea   : > { %2685 = vmatprep.mubr.f32.mxu1 %v2542_v50 }
 0x6eb   : > { %v2544_v38 = vpop.f32.mrf.mxu0  ;;  %2686 = vmatmul.mubr.f32.vlgmr.msra.gmra.mxu1 %v2462_v23 }
 0x6ed   : > { %v2547_v22 = vpop.f32.mrf.mxu0 }
 0x6ee   : > { %2691 = vmatprep.mubr.f32.mxu1 %v2547_v22 }
 0x6ef   : > { %v2549_v7 = vpop.f32.mrf.mxu0  ;;  %2692 = vmatmul.mubr.f32.gmra.mxu1 %v2467_v39 }
 0x6f1   : > { %v2552_v13 = vpop.f32.mrf.mxu0 }
 0x6f2   : > { %2697 = vmatprep.mubr.f32.mxu1 %v2552_v13 }
 0x6f3   : > { %v2554_v25 = vpop.f32.mrf.mxu0  ;;  %2698 = vmatmul.mubr.f32.gmra.mxu1 %v2472_v58 }
 0x6f5   : > { %v2557_v47 = vpop.f32.mrf.mxu0 }
 0x6f6   : > { %2703 = vmatprep.mubr.f32.mxu1 %v2557_v47 }
 0x6f7   : > { %v2559_v27 = vpop.f32.mrf.mxu0  ;;  %2704 = vmatmul.mubr.f32.gmra.mxu1 %v2477_v21 }
 0x6f9   : > { %v2562_v35 = vpop.f32.mrf.mxu0 }
 0x6fa   : > { %2709 = vmatprep.mubr.f32.mxu1 %v2562_v35 }
 0x6fb   : > { %v2564_v11 = vpop.f32.mrf.mxu0  ;;  %2710 = vmatmul.mubr.f32.gmra.mxu1 %v2482_v26 }
 0x6fd   : > { %v2567_v2 = vpop.f32.mrf.mxu0 }
 0x6fe   : > { %2715 = vmatprep.mubr.f32.mxu1 %v2567_v2 }
 0x6ff   : > { %v2569_v60 = vpop.f32.mrf.mxu0  ;;  %2716 = vmatmul.mubr.f32.gmra.mxu1 %v2487_v53 }
 0x701   : > { %v2572_v29 = vpop.f32.mrf.mxu0 }
 0x702   : > { %2721 = vmatprep.mubr.f32.mxu1 %v2572_v29 }
 0x703   : > { %v2574_v24 = vpop.f32.mrf.mxu0  ;;  %2722 = vmatmul.mubr.f32.gmra.mxu1 %v2492_v0 }
 0x705   : > { %v2577_v10 = vpop.f32.mrf.mxu0 }
 0x706   : > { %2727 = vmatprep.mubr.f32.mxu1 %v2577_v10 }
 0x707   : > { %v2579_v30 = vpop.f32.mrf.mxu0  ;;  %2728 = vmatmul.mubr.f32.gmra.mxu1 %v2497_v32 }
 0x709   : > { %v2582_v36 = vpop.f32.mrf.mxu0 }
 0x70a   : > { %2733 = vmatprep.mubr.f32.mxu1 %v2582_v36 }
 0x70b   : > { %v2584_v19 = vpop.f32.mrf.mxu0  ;;  %2734 = vmatmul.mubr.f32.gmra.mxu1 %v2502_v37 }
 0x70d   : > { %v2587_v62 = vpop.f32.mrf.mxu0 }
 0x70e   : > { %2739 = vmatprep.mubr.f32.mxu1 %v2587_v62 }
 0x70f   : > { %v2589_v20 = vpop.f32.mrf.mxu0  ;;  %2740 = vmatmul.mubr.f32.gmra.mxu1 %v2507_v4 }
 0x711   : > { %v2592_v45 = vpop.f32.mrf.mxu0 }
 0x712   : > { %2745 = vmatprep.mubr.f32.mxu1 %v2592_v45 }
 0x713   : > { %v2594_v16 = vpop.f32.mrf.mxu0  ;;  %2746 = vmatmul.mubr.f32.gmra.mxu1 %v2512_v1 }
 0x715   : > { %v2597_v61 = vpop.f32.mrf.mxu0 }
 0x716   : > { %2751 = vmatprep.mubr.f32.mxu1 %v2597_v61 }
 0x717   : > { %v2599_v52 = vpop.f32.mrf.mxu0  ;;  %2752 = vmatmul.mubr.f32.gmra.mxu1 %v2517_v63 }
 0x719   : > { %v2602_v48 = vpop.f32.mrf.mxu0 }
 0x71a   : > { %2757 = vmatprep.mubr.f32.mxu1 %v2602_v48 }
 0x71b   : > { %v2604_v34 = vpop.f32.mrf.mxu0  ;;  %2758 = vmatmul.mubr.f32.gmra.mxu1 %v2522_v56 }
 0x71d   : > { %v2607_v18 = vpop.f32.mrf.mxu0 }
 0x71e   : > { %2763 = vmatprep.mubr.f32.mxu1 %v2607_v18 }
 0x71f   : > { %v2609_v9 = vpop.f32.mrf.mxu0  ;;  %2764 = vmatmul.mubr.f32.gmra.mxu1 %v2527_v40 }
 0x721   : > { %v2612_v8 = vpop.f32.mrf.mxu0 }
 0x722   : > { %2769 = vmatprep.mubr.f32.mxu1 %v2612_v8 }
 0x723   : > { %v2614_v54 = vpop.f32.mrf.mxu0  ;;  %2770 = vmatmul.mubr.f32.gmra.mxu1 %v2532_v3 }
 0x725   : > { %v2617_v49 = vpop.f32.mrf.mxu0 }
 0x726   : > { %2775 = vmatprep.mubr.f32.mxu1 %v2617_v49 }
 0x727   : > { %v2619_v23 = vpop.f32.mrf.mxu0  ;;  %2776 = vmatmul.mubr.f32.gmra.mxu1 %v8517_v42 }
 0x728   : > { %3202 = vmatprep.mubr.f32.mxu1 %v6083_v51 }
 0x7ab   : > { %v8520_v39 = vpop.f32.mrf.mxu1 }
 0x7ac   : > { %v2782_v22 = vmul.f32 %v8520_v39, %v8520_v39 }
 0x7ad   : > { %v8522_v15 = vpop.f32.mrf.mxu1 }
 0x7ae   : > { %v2798_v42 = vmul.f32 %v8522_v15, %v8522_v15 }
 0x7af   : > { %v8524_v58 = vpop.f32.mrf.mxu1 }
 0x7b0   : > { %v8598_v11 = vadd.f32 %v2798_v42, %v2782_v22  ;;  %v2783_v36 = vmul.f32 %v8524_v58, %v8524_v58 }
 0x7b1   : > { %v8526_v43 = vpop.f32.mrf.mxu1 }
 0x7b2   : > { %v2799_v2 = vmul.f32 %v8526_v43, %v8526_v43  ;;  %v2830_v52 = vmax.f32 %v8598_v11, 1e-30  ;;  %vm2862_vm15 = vcmp.lt.f32.partialorder %v8598_v11, 1e-30 }
 0x7b3   : > { %v8528_v21 = vpop.f32.mrf.mxu1 }
 0x7b4   : > { %v8625_v48 = vadd.f32 %v2799_v2, %v2783_v36 }
 0x7b5   : > { %v8530_v28 = vpop.f32.mrf.mxu1 }
 0x7b6   : > { %v2800_v8 = vmul.f32 %v8530_v28, %v8530_v28  ;;  %vm2863_vm14 = vcmp.lt.f32.partialorder %v8625_v48, 1e-30 }
 0x7b7   : > { %v8532_v26 = vpop.f32.mrf.mxu1 }
 0x7b8   : > { %v2785_v36 = vmul.f32 %v8532_v26, %v8532_v26 }
 0x7b9   : > { %v8534_v59 = vpop.f32.mrf.mxu1 }
 0x7bb   : > { %v8536_v53 = vpop.f32.mrf.mxu1 }
 0x7bd   : > { %v8538_v14 = vpop.f32.mrf.mxu1 }
 0x7bf   : > { %v8540_v0 = vpop.f32.mrf.mxu1 }
 0x7c1   : > { %v8542_v57 = vpop.f32.mrf.mxu1 }
 0x7c3   : > { %v8544_v32 = vpop.f32.mrf.mxu1 }
 0x7c5   : > { %v8546_v55 = vpop.f32.mrf.mxu1 }
 0x7c7   : > { %v8548_v37 = vpop.f32.mrf.mxu1 }
 0x7c8   : > { %v2789_v2 = vmul.f32 %v8548_v37, %v8548_v37 }
 0x7c9   : > { %v8550_v5 = vpop.f32.mrf.mxu1 }
 0x7ca   : > { %v2805_v51 = vmul.f32 %v8550_v5, %v8550_v5 }
 0x7cb   : > { %v8552_v4 = vpop.f32.mrf.mxu1 }
 0x7cd   : > { %v8554_v41 = vpop.f32.mrf.mxu1 }
 0x7ce   : > { %v2806_v54 = vmul.f32 %v8554_v41, %v8554_v41 }
 0x7cf   : > { %v8556_v1 = vpop.f32.mrf.mxu1 }
 0x7d0   : > { %v2791_v49 = vmul.f32 %v8556_v1, %v8556_v1 }
 0x7d1   : > { %v8558_v33 = vpop.f32.mrf.mxu1 }
 0x7d2   : > { %v2807_v16 = vmul.f32 %v8558_v33, %v8558_v33 }
 0x7d3   : > { %v8560_v63 = vpop.f32.mrf.mxu1 }
 0x7d4   : > { %v2792_v46 = vmul.f32 %v8560_v63, %v8560_v63 }
 0x7d5   : > { %v8562_v31 = vpop.f32.mrf.mxu1 }
 0x7d6   : > { %v2808_v3 = vmul.f32 %v8562_v31, %v8562_v31 }
 0x7d7   : > { %v8564_v56 = vpop.f32.mrf.mxu1 }
 0x7d8   : > { %v8588_v13 = vadd.f32 %v2808_v3, %v2792_v46  ;;  %v2793_v60 = vmul.f32 %v8564_v56, %v8564_v56  ;;  %v2790_v46 = vmul.f32 %v8552_v4, %v8552_v4 }
 0x7d9   : > { %v8566_v44 = vpop.f32.mrf.mxu1 }
 0x7da   : > { %v2809_v25 = vmul.f32 %v8566_v44, %v8566_v44  ;;  %v2840_v19 = vmax.f32 %v8588_v13, 1e-30  ;;  %vm2872_vm0 = vcmp.lt.f32.partialorder %v8588_v13, 1e-30 }
 0x7db   : > { %v8568_v40 = vpop.f32.mrf.mxu1 }
 0x7dc   : > { %v2794_v47 = vmul.f32 %v8568_v40, %v8568_v40  ;;  %v8615_v62 = vadd.f32 %v2809_v25, %v2793_v60  ;;  %5861 = vrsqrt.f32 %v2840_v19  ;;  %v2801_v25 = vmul.f32 %v8534_v59, %v8534_v59 }
 0x7dd   : > { %v8570_v6 = vpop.f32.mrf.mxu1  ;;  %v8660_v60 = vadd.f32 %v2806_v54, %v2790_v46  ;;  %v2803_v19 = vmul.f32 %v8542_v57, %v8542_v57  ;;  %v2831_v54 = vmax.f32 %v8625_v48, 1e-30  ;;  %v2786_v46 = vmul.f32 %v8536_v53, %v8536_v53 }
 0x7de   : > { %v2810_v50 = vmul.f32 %v8570_v6, %v8570_v6  ;;  %v2841_v3 = vmax.f32 %v8615_v62, 1e-30  ;;  %vm2873_vm1 = vcmp.lt.f32.partialorder %v8615_v62, 1e-30 }
 0x7df   : > { %v8574_v12 = vpop.f32.mrf.mxu1  ;;  %vm2870_vm6 = vcmp.lt.f32.partialorder %v8660_v60, 1e-30 }
 0x7e0   : > { %v2795_v27 = vmul.f32 %v8574_v12, %v8574_v12  ;;  %v8604_v29 = vadd.f32 %v2810_v50, %v2794_v47  ;;  %v8647_v50 = vadd.f32 %v2807_v16, %v2791_v49  ;;  %v8670_v16 = vadd.f32 %v2805_v51, %v2789_v2 }
 0x7e1   : > { %v8582_v38 = vpop.f32.mrf.mxu1  ;;  %v2802_v49 = vmul.f32 %v8538_v14, %v8538_v14 }
 0x7e2   : > { %v2811_v7 = vmul.f32 %v8582_v38, %v8582_v38  ;;  %v2842_v34 = vmax.f32 %v8604_v29, 1e-30  ;;  %vm2874_vm2 = vcmp.lt.f32.partialorder %v8604_v29, 1e-30  ;;  %vm2871_vm4 = vcmp.lt.f32.partialorder %v8647_v50, 1e-30 }
 0x7e3   : > { %v8596_v35 = vpop.f32.mrf.mxu1  ;;  %v8691_v2 = vadd.f32 %v2802_v49, %v2786_v46  ;;  %vm2869_vm8 = vcmp.lt.f32.partialorder %v8670_v16, 1e-30 }
 0x7e4   : > { %v8606_v24 = vadd.f32 %v2811_v7, %v2795_v27  ;;  %v2796_v20 = vmul.f32 %v8596_v35, %v8596_v35  ;;  %v2784_v7 = vmul.f32 %v8528_v21, %v8528_v21  ;;  %v2804_v27 = vmul.f32 %v8546_v55, %v8546_v55 }
 0x7e5   : > { %v8608_v10 = vpop.f32.mrf.mxu1  ;;  %vm2866_vm11 = vcmp.lt.f32.partialorder %v8691_v2, 1e-30 }
 0x7e6   : > { %v2812_v30 = vmul.f32 %v8608_v10, %v8608_v10  ;;  %v2843_v61 = vmax.f32 %v8606_v24, 1e-30  ;;  %vm2875_vm5 = vcmp.lt.f32.partialorder %v8606_v24, 1e-30 }
 0x7e7   : > { %v8619_v45 = vpop.f32.mrf.mxu1 }
 0x7e8   : > { %v8628_v18 = vadd.f32 %v2812_v30, %v2796_v20  ;;  %v2797_v42 = vmul.f32 %v8619_v45, %v8619_v45  ;;  %5863 = vrsqrt.f32 %v2843_v61  ;;  %v8662_v30 = vadd.f32 %v2800_v8, %v2784_v7 }
 0x7e9   : > { %v8630_v9 = vpop.f32.mrf.mxu1  ;;  %5865 = vrsqrt.f32 %v2842_v34  ;;  %v2788_v20 = vmul.f32 %v8544_v32, %v8544_v32  ;;  %v2839_v61 = vmax.f32 %v8647_v50, 1e-30  ;;  %v8675_v8 = vadd.f32 %v2801_v25, %v2785_v36  ;;  %v5862_v36 = vpop.eup %5861 }
 0x7ea   : > { %v2813_v23 = vmul.f32 %v8630_v9, %v8630_v9  ;;  %v2844_v22 = vmax.f32 %v8628_v18, 1e-30  ;;  %v2832_v51 = vmax.f32 %v8662_v30, 1e-30  ;;  %v2837_v7 = vmax.f32 %v8670_v16, 1e-30 }
 0x7eb   : > { %v2833_v25 = vmax.f32 %v8675_v8, 1e-30  ;;  %vm2876_vm3 = vcmp.lt.f32.partialorder %v8628_v18, 1e-30  ;;  %v2888_v18 = vmul.f32 %v5862_v36, %v8560_v63  ;;  %vm2865_vm12 = vcmp.lt.f32.partialorder %v8675_v8, 1e-30 }
 0x7ec   : > { %v8654_v47 = vadd.f32 %v2813_v23, %v2797_v42  ;;  %5867 = vrsqrt.f32 %v2844_v22  ;;  %v2787_v23 = vmul.f32 %v8540_v0, %v8540_v0  ;;  %v2838_v42 = vmax.f32 %v8660_v60, 1e-30 }
 0x7ed   : > { %5869 = vrsqrt.f32 %v2841_v3  ;;  %v8681_v3 = vadd.f32 %v2804_v27, %v2788_v20  ;;  %vm2864_vm13 = vcmp.lt.f32.partialorder %v8662_v30, 1e-30 }
 0x7ee   : > { %v2845_v34 = vmax.f32 %v8654_v47, 1e-30  ;;  %v8687_v22 = vadd.f32 %v2803_v19, %v2787_v23  ;;  %v2834_v19 = vmax.f32 %v8691_v2, 1e-30  ;;  %vm2877_vm7 = vcmp.lt.f32.partialorder %v8654_v47, 1e-30 }
 0x7ef   : > { %v2836_v27 = vmax.f32 %v8681_v3, 1e-30  ;;  %vm2868_vm9 = vcmp.lt.f32.partialorder %v8681_v3, 1e-30 }
 0x7f0   : > { %5871 = vrsqrt.f32 %v2845_v34  ;;  %vm2867_vm10 = vcmp.lt.f32.partialorder %v8687_v22, 1e-30 }
 0x7f1   : > { %5873 = vrsqrt.f32 %v2830_v52  ;;  %v2835_v52 = vmax.f32 %v8687_v22, 1e-30 }
 0x7f2   : > { %5875 = vrsqrt.f32 %v2839_v61 }
 0x7f3   : > { %5877 = vrsqrt.f32 %v2831_v54 }
 0x7f4   : > { %5879 = vrsqrt.f32 %v2838_v42 }
 0x7f5   : > { %5881 = vrsqrt.f32 %v2832_v51  ;;  %v5864_v20 = vpop.eup %5863 }
 0x7f6   : > { %5883 = vrsqrt.f32 %v2837_v7  ;;  %v5866_v34 = vpop.eup %5865  ;;  %v2891_v49 = vmul.f32 %v5864_v20, %v8574_v12  ;;  %v2923_v23 = vmul.f32 %v5864_v20, %v8582_v38  ;;  %v8714_v7 = vld [vmem:[%s7182_s25 + $0x1f0] sm:$0xff] }
 0x7f7   : > { %5885 = vrsqrt.f32 %v2833_v25  ;;  %v2890_v46 = vmul.f32 %v5866_v34, %v8568_v40  ;;  %v2922_v12 = vmul.f32 %v5866_v34, %v8570_v6  ;;  %11013 = vst [vmem:[#allocation51_spill] sm:$0xff] %v8714_v7  ;;  %v8722_v6 = vld [vmem:[%s7176_s8 + $0x1e8] sm:$0xff] }
 0x7f8   : > { %5887 = vrsqrt.f32 %v2836_v27  ;;  %11014 = vst [vmem:[#allocation42_spill] sm:$0xff] %v8722_v6  ;;  %v8726_v20 = vsel %vm2875_vm5, 1.0, %v2891_v49  ;;  %v8731_v34 = vld [vmem:[%s7182_s25 + $0x1e8] sm:$0xff] }
 0x7f9   : > { %v5868_v61 = vpop.eup %5867  ;;  %5889 = vrsqrt.f32 %v2835_v52  ;;  %11015 = vst [vmem:[#allocation45_spill] sm:$0xff] %v8726_v20  ;;  %11017 = vst [vmem:[#allocation50_spill] sm:$0xff] %v8731_v34 }
 0x7fa   : > { %v5870_v54 = vpop.eup %5869  ;;  %v2892_v42 = vmul.f32 %v5868_v61, %v8596_v35  ;;  %v2924_v51 = vmul.f32 %v5868_v61, %v8608_v10  ;;  %5891 = vrsqrt.f32 %v2834_v19  ;;  %v8711_v10 = vld [vmem:[%s7176_s8 + $0x1f0] sm:$0xff]  ;;  %v8728_v19 = vsel %vm2875_vm5, 0.0, %v2923_v23  ;;  %v8736_v61 = vld [vmem:[%s7176_s8 + $0x1f8] sm:$0xff] }
 0x7fb   : > { %11012 = vst [vmem:[#allocation53_spill] sm:$0xff] %v8711_v10  ;;  %v2889_v40 = vmul.f32 %v5870_v54, %v8564_v56  ;;  %v2921_v27 = vmul.f32 %v5870_v54, %v8566_v44  ;;  %11016 = vst [vmem:[#allocation56_spill] sm:$0xff] %v8728_v19  ;;  %v8739_v44 = vld [vmem:[%s7182_s25 + $0x1f8] sm:$0xff]  ;;  %v2920_v54 = vmul.f32 %v5862_v36, %v8562_v31  ;;  %v8759_v31 = vld [vmem:[%s7176_s8 + $0x1e0] sm:$0xff] }
 0x7fc   : > { %v8706_v38 = vsel %vm2876_vm3, 1.0, %v2892_v42  ;;  %v8708_v35 = vsel %vm2876_vm3, 0.0, %v2924_v51  ;;  %11018 = vst [vmem:[#allocation41_spill] sm:$0xff] %v8736_v61  ;;  %11019 = vst [vmem:[#allocation48_spill] sm:$0xff] %v8739_v44  ;;  %v8756_v42 = vsel %vm2874_vm2, 0.0, %v2922_v12  ;;  %v8762_v36 = vld [vmem:[%s7182_s25 + $0x1e0] sm:$0xff]  ;;  %v3039_v29 = vmul.f32 %v8731_v34, %v8728_v19 }
 0x7fd   : > { %11010 = vst [vmem:[#allocation39_spill] sm:$0xff] %v8706_v38  ;;  %11011 = vst [vmem:[#allocation43_spill] sm:$0xff] %v8708_v35  ;;  %v5872_v25 = vpop.eup %5871  ;;  %v3024_v49 = vmul.f32 %v8711_v10, %v8706_v38  ;;  %v3040_v23 = vmul.f32 %v8714_v7, %v8708_v35  ;;  %v8783_v7 = vsel %vm2873_vm1, 1.0, %v2889_v40  ;;  %v8790_v19 = vld [vmem:[%s7176_s8 + $0x1d8] sm:$0xff] }
 0x7fe   : > { %v8724_v52 = vpop.eup %5873  ;;  %v2893_v63 = vmul.f32 %v5872_v25, %v8619_v45  ;;  %v2925_v56 = vmul.f32 %v5872_v25, %v8630_v9  ;;  %v8752_v9 = vsel %vm2874_vm2, 1.0, %v2890_v46  ;;  %11020 = vst [vmem:[#allocation44_spill] sm:$0xff] %v8756_v42  ;;  %11021 = vst [vmem:[#allocation52_spill] sm:$0xff] %v8759_v31  ;;  %v3023_v46 = vmul.f32 %v8722_v6, %v8726_v20  ;;  %v8793_v34 = vld [vmem:[%s7182_s25 + $0x1d8] sm:$0xff] }
 0x7ff   : > { %v5876_v24 = vpop.eup %5875  ;;  %11022 = vst [vmem:[#allocation54_spill] sm:$0xff] %v8762_v36  ;;  %v8787_v6 = vsel %vm2873_vm1, 0.0, %v2921_v27  ;;  %11025 = vst [vmem:[#allocation40_spill] sm:$0xff] %v8790_v19  ;;  %v5535_v20 = vld [vmem:[%s7188_s18 + $0x1f8] sm:$0xff]  ;;  %v3056_v62 = vsub.f32 %v3024_v49, %v3040_v23  ;;  %v5534_v49 = vld [vmem:[%s7188_s18 + $0x1f0] sm:$0xff] }
 0x800   : > { %v8748_v45 = vpop.eup %5877  ;;  %v8764_v51 = vsel %vm2877_vm7, 1.0, %v2893_v63  ;;  %v8766_v47 = vsel %vm2877_vm7, 0.0, %v2925_v56  ;;  %v2887_v63 = vmul.f32 %v5876_v24, %v8556_v1  ;;  %v2919_v56 = vmul.f32 %v5876_v24, %v8558_v33  ;;  %11024 = vst [vmem:[#allocation46_spill] sm:$0xff] %v8787_v6 }
 0x801   : > { %11023 = vst [vmem:[#allocation49_spill] sm:$0xff] %v8766_v47  ;;  %v5880_v25 = vpop.eup %5879  ;;  %v3025_v12 = vmul.f32 %v8736_v61, %v8764_v51  ;;  %v3041_v10 = vmul.f32 %v8739_v44, %v8766_v47  ;;  %v3022_v1 = vmul.f32 %v8759_v31, %v8752_v9  ;;  %v3038_v33 = vmul.f32 %v8762_v36, %v8756_v42  ;;  %v8814_v31 = vld [vmem:[%s7176_s8 + $0x1d0] sm:$0xff] }
 0x802   : > { %v8777_v35 = vpop.eup %5881  ;;  %v2886_v24 = vmul.f32 %v5880_v25, %v8552_v4  ;;  %v2918_v61 = vmul.f32 %v5880_v25, %v8554_v41  ;;  %v8807_v47 = vsel %vm2872_vm0, 1.0, %v2888_v18  ;;  %v8811_v44 = vsel %vm2872_vm0, 0.0, %v2920_v54  ;;  %11026 = vst [vmem:[#allocation47_spill] sm:$0xff] %v8814_v31 }
 0x803   : > { %v5884_v38 = vpop.eup %5883  ;;  %v3057_v40 = vsub.f32 %v3025_v12, %v3041_v10  ;;  %v8817_v10 = vld [vmem:[%s7182_s25 + $0x1d0] sm:$0xff]  ;;  %v3021_v4 = vmul.f32 %v8790_v19, %v8783_v7  ;;  %v3037_v41 = vmul.f32 %v8793_v34, %v8787_v6  ;;  %v3055_v13 = vsub.f32 %v3023_v46, %v3039_v29  ;;  %v8836_v19 = vld [vmem:[%s7176_s8 + $0x1c8] sm:$0xff] }
 0x804   : > { %v8801_v27 = vpop.eup %5885  ;;  %v2885_v25 = vmul.f32 %v5884_v38, %v8548_v37  ;;  %v2917_v12 = vmul.f32 %v5884_v38, %v8550_v5  ;;  %v8829_v42 = vsel %vm2871_vm4, 1.0, %v2887_v63  ;;  %v8833_v36 = vsel %vm2871_vm4, 0.0, %v2919_v56  ;;  %11027 = vst [vmem:[#allocation55_spill] sm:$0xff] %v8836_v19  ;;  %v8839_v6 = vld [vmem:[%s7182_s25 + $0x1c8] sm:$0xff] }
 0x805   : > { %v5888_v23 = vpop.eup %5887  ;;  %v3073_v18 = vadd.f32 %v5535_v20, %v3057_v40  ;;  %v5533_v20 = vld [vmem:[%s7188_s18 + $0x1e8] sm:$0xff]  ;;  %v3020_v37 = vmul.f32 %v8814_v31, %v8807_v47  ;;  %v3036_v5 = vmul.f32 %v8817_v10, %v8811_v44  ;;  %v3054_v38 = vsub.f32 %v3022_v1, %v3038_v33  ;;  %v8858_v31 = vld [vmem:[%s7176_s8 + $0x1c0] sm:$0xff] }
 0x806   : > { %v5890_v54 = vpop.eup %5889  ;;  %v3072_v50 = vadd.f32 %v5534_v49, %v3056_v62  ;;  %v2884_v29 = vmul.f32 %v5888_v23, %v8544_v32  ;;  %v2916_v63 = vmul.f32 %v5888_v23, %v8546_v55  ;;  %v8851_v56 = vsel %vm2870_vm6, 1.0, %v2886_v24  ;;  %v8861_v1 = vld [vmem:[%s7182_s25 + $0x1c0] sm:$0xff] }
 0x807   : > { %3139 = vmatpush1.msra.mxu1 %v3073_v18  ;;  %v5892_v46 = vpop.eup %5891  ;;  %v8855_v40 = vsel %vm2870_vm6, 0.0, %v2918_v61  ;;  %v5532_v32 = vld [vmem:[%s7188_s18 + $0x1e0] sm:$0xff]  ;;  %v3019_v55 = vmul.f32 %v8836_v19, %v8829_v42  ;;  %v3035_v60 = vmul.f32 %v8839_v6, %v8833_v36  ;;  %v3053_v33 = vsub.f32 %v3021_v4, %v3037_v41  ;;  %v8881_v18 = vld [vmem:[%s7176_s8 + $0x1b8] sm:$0xff] }
 0x808   : > { %3140 = vmatprep.subr.mxu1 %v10905_v17  ;;  %v3071_v61 = vadd.f32 %v5533_v20, %v3055_v13  ;;  %v2883_v62 = vmul.f32 %v5890_v54, %v8540_v0  ;;  %v2915_v24 = vmul.f32 %v5890_v54, %v8542_v57  ;;  %v8874_v49 = vsel %vm2869_vm8, 1.0, %v2885_v25  ;;  %v8884_v19 = vld [vmem:[%s7182_s25 + $0x1b8] sm:$0xff]  ;;  %v8904_v20 = vld [vmem:[%s7176_s8 + $0x1b0] sm:$0xff] }
 0x809   : > { %3141 = vmatpush1.msra.mxu1 %v3072_v50  ;;  %v8878_v23 = vsel %vm2869_vm8, 0.0, %v2917_v12  ;;  %v5531_v0 = vld [vmem:[%s7188_s18 + $0x1d8] sm:$0xff]  ;;  %v3018_v57 = vmul.f32 %v8858_v31, %v8851_v56  ;;  %v3034_v16 = vmul.f32 %v8861_v1, %v8855_v40  ;;  %v3052_v4 = vsub.f32 %v3020_v37, %v3036_v5  ;;  %v8907_v50 = vld [vmem:[%s7182_s25 + $0x1b0] sm:$0xff] }
 0x80a   : > { %3142 = vmatprep.subr.mxu1 %v10905_v17  ;;  %v3070_v41 = vadd.f32 %v5532_v32, %v3054_v38  ;;  %v2882_v13 = vmul.f32 %v5892_v46, %v8536_v53  ;;  %v2914_v54 = vmul.f32 %v5892_v46, %v8538_v14  ;;  %v8897_v25 = vsel %vm2868_vm9, 1.0, %v2884_v29  ;;  %v5530_v53 = vld [vmem:[%s7188_s18 + $0x1d0] sm:$0xff]  ;;  %v8929_v32 = vld [vmem:[%s7176_s8 + $0x1a8] sm:$0xff] }
 0x80b   : > { %3143 = vmatpush1.msra.mxu1 %v3071_v61  ;;  %v8901_v12 = vsel %vm2868_vm9, 0.0, %v2916_v63  ;;  %v3017_v14 = vmul.f32 %v8881_v18, %v8874_v49  ;;  %v3033_v3 = vmul.f32 %v8884_v19, %v8878_v23  ;;  %v3051_v37 = vsub.f32 %v3019_v55, %v3035_v60  ;;  %v8932_v55 = vld [vmem:[%s7182_s25 + $0x1a8] sm:$0xff] }
 0x80c   : > { %3144 = vmatprep.subr.mxu1 %v10905_v17  ;;  %v3069_v5 = vadd.f32 %v5531_v0, %v3053_v33  ;;  %v2881_v38 = vmul.f32 %v8801_v27, %v8532_v26  ;;  %v2913_v46 = vmul.f32 %v8801_v27, %v8534_v59  ;;  %v8922_v29 = vsel %vm2867_vm10, 1.0, %v2883_v62  ;;  %v5529_v26 = vld [vmem:[%s7188_s18 + $0x1c8] sm:$0xff]  ;;  %v8953_v0 = vld [vmem:[%s7176_s8 + $0x1a0] sm:$0xff] }
 0x80d   : > { %3145 = vmatpush1.msra.mxu1 %v3070_v41  ;;  %v8926_v63 = vsel %vm2867_vm10, 0.0, %v2915_v24  ;;  %v3016_v59 = vmul.f32 %v8904_v20, %v8897_v25  ;;  %v3032_v27 = vmul.f32 %v8907_v50, %v8901_v12  ;;  %v3050_v60 = vsub.f32 %v3018_v57, %v3034_v16  ;;  %v8956_v57 = vld [vmem:[%s7182_s25 + $0x1a0] sm:$0xff] }
 0x80e   : > { %3146 = vmatprep.subr.mxu1 %v10905_v17  ;;  %v3068_v22 = vadd.f32 %v5530_v53, %v3052_v4  ;;  %v2880_v33 = vmul.f32 %v8777_v35, %v8528_v21  ;;  %v2912_v61 = vmul.f32 %v8777_v35, %v8530_v28  ;;  %v8946_v62 = vsel %vm2866_vm11, 1.0, %v2882_v13  ;;  %v5528_v21 = vld [vmem:[%s7188_s18 + $0x1c0] sm:$0xff]  ;;  %v8977_v53 = vld [vmem:[%s7176_s8 + $0x198] sm:$0xff] }
 0x80f   : > { %3147 = vmatpush1.msra.mxu1 %v3069_v5  ;;  %v8950_v24 = vsel %vm2866_vm11, 0.0, %v2914_v54  ;;  %v3015_v28 = vmul.f32 %v8929_v32, %v8922_v29  ;;  %v3031_v35 = vmul.f32 %v8932_v55, %v8926_v63  ;;  %v3049_v16 = vsub.f32 %v3017_v14, %v3033_v3  ;;  %v8980_v14 = vld [vmem:[%s7182_s25 + $0x198] sm:$0xff] }
 0x810   : > { %3148 = vmatprep.subr.mxu1 %v10905_v17  ;;  %v3067_v2 = vadd.f32 %v5529_v26, %v3051_v37  ;;  %v2879_v4 = vmul.f32 %v8748_v45, %v8524_v58  ;;  %v2911_v41 = vmul.f32 %v8748_v45, %v8526_v43  ;;  %v8970_v13 = vsel %vm2865_vm12, 1.0, %v2881_v38  ;;  %v5527_v58 = vld [vmem:[%s7188_s18 + $0x1b8] sm:$0xff]  ;;  %v9001_v26 = vld [vmem:[%s7176_s8 + $0x190] sm:$0xff] }
 0x811   : > { %3149 = vmatpush1.msra.mxu1 %v3068_v22  ;;  %v8974_v54 = vsel %vm2865_vm12, 0.0, %v2913_v46  ;;  %v3014_v43 = vmul.f32 %v8953_v0, %v8946_v62  ;;  %v3030_v45 = vmul.f32 %v8956_v57, %v8950_v24  ;;  %v3048_v3 = vsub.f32 %v3016_v59, %v3032_v27  ;;  %11028 = vst [vmem:[#allocation57_spill] sm:$0xff] %v9001_v26  ;;  %v9004_v59 = vld [vmem:[%s7182_s25 + $0x190] sm:$0xff]  ;;  %v9009_v27 = vld [vmem:[%s7176_s8 + $0x188] sm:$0xff] }
 0x812   : > { %3150 = vmatprep.subr.mxu1 %v10905_v17  ;;  %v3066_v8 = vadd.f32 %v5528_v21, %v3050_v60  ;;  %v2878_v37 = vmul.f32 %v8724_v52, %v8520_v39  ;;  %v2910_v5 = vmul.f32 %v8724_v52, %v8522_v15  ;;  %v8994_v38 = vsel %vm2864_vm13, 1.0, %v2880_v33  ;;  %v5526_v39 = vld [vmem:[%s7188_s18 + $0x1b0] sm:$0xff]  ;;  %11029 = vst [vmem:[#allocation58_spill] sm:$0xff] %v9009_v27  ;;  %v5525_v21 = vld [vmem:[%s7188_s18 + $0x1a8] sm:$0xff] }
 0x813   : > { %3151 = vmatpush1.msra.mxu1 %v3067_v2  ;;  %v8998_v46 = vsel %vm2864_vm13, 0.0, %v2912_v61  ;;  %v3013_v15 = vmul.f32 %v8977_v53, %v8970_v13  ;;  %v3029_v52 = vmul.f32 %v8980_v14, %v8974_v54  ;;  %v3047_v60 = vsub.f32 %v3015_v28, %v3031_v35  ;;  %v9025_v61 = vld [vmem:[%s7182_s25 + $0x188] sm:$0xff] }
 0x814   : > { %3152 = vmatprep.subr.mxu1 %v10905_v17  ;;  %v3065_v30 = vadd.f32 %v5527_v58, %v3049_v16  ;;  %v9018_v22 = vsel %vm2863_vm14, 1.0, %v2879_v4  ;;  %v9022_v33 = vsel %vm2863_vm14, 0.0, %v2911_v41  ;;  %11031 = vst [vmem:[#allocation60_spill] sm:$0xff] %v9025_v61  ;;  %v3012_v28 = vmul.f32 %v9001_v26, %v8994_v38  ;;  %v9038_v4 = vld [vmem:[%s7176_s8 + $0x180] sm:$0xff] }
 0x815   : > { %3153 = vmatpush1.msra.mxu1 %v3066_v8  ;;  %11030 = vst [vmem:[#allocation59_spill] sm:$0xff] %v9022_v33  ;;  %v3028_v11 = vmul.f32 %v9004_v59, %v8998_v46  ;;  %v3046_v35 = vsub.f32 %v3014_v43, %v3030_v45  ;;  %v3064_v16 = vadd.f32 %v5526_v39, %v3048_v3  ;;  %v9033_v2 = vsel %vm2862_vm15, 1.0, %v2878_v37  ;;  %v9041_v41 = vld [vmem:[%s7182_s25 + $0x180] sm:$0xff]  ;;  %v5523_v37 = vld [vmem:[%s7188_s18 + $0x198] sm:$0xff] }
 0x816   : > { %3154 = vmatprep.subr.mxu1 %v10905_v17  ;;  %v9035_v48 = vsel %vm2862_vm15, 0.0, %v2910_v5  ;;  %11033 = vst [vmem:[#allocation62_spill] sm:$0xff] %v9038_v4  ;;  %11034 = vst [vmem:[#allocation63_spill] sm:$0xff] %v9041_v41  ;;  %v5524_v58 = vld [vmem:[%s7188_s18 + $0x1a0] sm:$0xff]  ;;  %v3011_v8 = vmul.f32 %v9009_v27, %v9018_v22  ;;  %v3027_v43 = vmul.f32 %v9025_v61, %v9022_v33  ;;  %v5522_v27 = vld [vmem:[%s7188_s18 + $0x190] sm:$0xff] }
 0x817   : > { %3155 = vmatpush1.msra.mxu1 %v3065_v30  ;;  %11032 = vst [vmem:[#allocation61_spill] sm:$0xff] %v9035_v48  ;;  %v3045_v45 = vsub.f32 %v3013_v15, %v3029_v52  ;;  %v3063_v3 = vadd.f32 %v5525_v21, %v3047_v60  ;;  %v3010_v5 = vmul.f32 %v9038_v4, %v9033_v2  ;;  %v11035_v52 = vld [vmem:[#allocation48_spill] sm:$0xff]  ;;  %v11036_v21 = vld [vmem:[#allocation49_spill] sm:$0xff] }
 0x818   : > { %3156 = vmatprep.subr.mxu1 %v10905_v17  ;;  %v3026_v39 = vmul.f32 %v9041_v41, %v9035_v48  ;;  %v3044_v30 = vsub.f32 %v3012_v28, %v3028_v11  ;;  %v3062_v26 = vadd.f32 %v5524_v58, %v3046_v35  ;;  %v3043_v15 = vsub.f32 %v3011_v8, %v3027_v43  ;;  %v5521_v4 = vld [vmem:[%s7188_s18 + $0x188] sm:$0xff]  ;;  %v11038_v11 = vld [vmem:[#allocation39_spill] sm:$0xff]  ;;  %v11041_v48 = vld [vmem:[#allocation53_spill] sm:$0xff] }
 0x819   : > { %3157 = vmatpush1.msra.mxu1 %v3064_v16  ;;  %v3089_v60 = vmul.f32 %v11035_v52, %v8764_v51  ;;  %v11037_v16 = vld [vmem:[#allocation41_spill] sm:$0xff]  ;;  %v3061_v61 = vadd.f32 %v5523_v37, %v3045_v45  ;;  %v11039_v35 = vld [vmem:[#allocation51_spill] sm:$0xff]  ;;  %v11044_v37 = vld [vmem:[#allocation56_spill] sm:$0xff] }
 0x81a   : > { %3158 = vmatprep.subr.mxu1 %v10905_v17  ;;  %v3105_v33 = vmul.f32 %v11037_v16, %v11036_v21  ;;  %v3042_v28 = vsub.f32 %v3010_v5, %v3026_v39  ;;  %v3088_v58 = vmul.f32 %v11039_v35, %v11038_v11  ;;  %v3060_v8 = vadd.f32 %v5522_v27, %v3044_v30  ;;  %v5520_v51 = vld [vmem:[%s7188_s18 + $0x180] sm:$0xff]  ;;  %v11042_v43 = vld [vmem:[#allocation45_spill] sm:$0xff]  ;;  %v11045_v52 = vld [vmem:[#allocation42_spill] sm:$0xff] }
 0x81b   : > { %3159 = vmatpush1.msra.mxu1 %v3063_v3  ;;  %v11040_v3 = vld [vmem:[#allocation43_spill] sm:$0xff]  ;;  %v3103_v21 = vmul.f32 %v11045_v52, %v11044_v37  ;;  %v3059_v5 = vadd.f32 %v5521_v4, %v3043_v15  ;;  %v5551_v39 = vld [vmem:[%s7190_s13 + $0x1f8] sm:$0xff]  ;;  %v11048_v30 = vld [vmem:[#allocation52_spill] sm:$0xff] }
 0x81c   : > { %3160 = vmatprep.subr.mxu1 %v10905_v17  ;;  %v3104_v41 = vmul.f32 %v11041_v48, %v11040_v3  ;;  %v3121_v16 = vadd.f32 %v3105_v33, %v3089_v60  ;;  %v11047_v48 = vld [vmem:[#allocation44_spill] sm:$0xff]  ;;  %v3058_v3 = vadd.f32 %v5520_v51, %v3042_v28  ;;  %v3085_v33 = vmul.f32 %v8793_v34, %v8783_v7  ;;  %v11049_v4 = vld [vmem:[#allocation46_spill] sm:$0xff]  ;;  %v11051_v28 = vld [vmem:[#allocation47_spill] sm:$0xff] }
 0x81d   : > { %3161 = vmatpush1.msra.mxu1 %v3062_v26  ;;  %v11043_v26 = vld [vmem:[#allocation50_spill] sm:$0xff]  ;;  %v3102_v11 = vmul.f32 %v11048_v30, %v11047_v48  ;;  %v11050_v15 = vld [vmem:[#allocation40_spill] sm:$0xff]  ;;  %v5548_v7 = vld [vmem:[%s7190_s13 + $0x1e0] sm:$0xff]  ;;  %v3083_v34 = vmul.f32 %v8839_v6, %v8829_v42  ;;  %v3081_v42 = vmul.f32 %v8884_v19, %v8874_v49  ;;  %v3079_v49 = vmul.f32 %v8932_v55, %v8922_v29 }
 0x81e   : > { %3162 = vmatprep.subr.mxu1 %v10905_v17  ;;  %v3087_v45 = vmul.f32 %v11043_v26, %v11042_v43  ;;  %v3120_v35 = vadd.f32 %v3104_v41, %v3088_v58  ;;  %v5550_v43 = vld [vmem:[%s7190_s13 + $0x1f0] sm:$0xff]  ;;  %v3101_v60 = vmul.f32 %v11050_v15, %v11049_v4  ;;  %v3137_v26 = vadd.f32 %v5551_v39, %v3121_v16  ;;  %v5544_v19 = vld [vmem:[%s7190_s13 + $0x1c0] sm:$0xff] }
 0x81f   : > { %3163 = vmatpush1.msra.mxu1 %v3061_v61  ;;  %v11046_v61 = vld [vmem:[#allocation54_spill] sm:$0xff]  ;;  %v3084_v41 = vmul.f32 %v8817_v10, %v8807_v47  ;;  %v3100_v58 = vmul.f32 %v11051_v28, %v8811_v44  ;;  %v3082_v47 = vmul.f32 %v8861_v1, %v8851_v56  ;;  %v3098_v10 = vmul.f32 %v8858_v31, %v8855_v40  ;;  %v5546_v6 = vld [vmem:[%s7190_s13 + $0x1d0] sm:$0xff]  ;;  %v5545_v31 = vld [vmem:[%s7190_s13 + $0x1c8] sm:$0xff] }
 0x820   : > { %3164 = vmatprep.subr.mxu1 %v10905_v17  ;;  %v3086_v27 = vmul.f32 %v11046_v61, %v8752_v9  ;;  %v5549_v9 = vld [vmem:[%s7190_s13 + $0x1e8] sm:$0xff]  ;;  %v3136_v37 = vadd.f32 %v5550_v43, %v3120_v35  ;;  %v5547_v44 = vld [vmem:[%s7190_s13 + $0x1d8] sm:$0xff]  ;;  %v3080_v56 = vmul.f32 %v8907_v50, %v8897_v25  ;;  %v3096_v40 = vmul.f32 %v8904_v20, %v8901_v12  ;;  %v5542_v29 = vld [vmem:[%s7190_s13 + $0x1b0] sm:$0xff] }
 0x821   : > { %3165 = vmatpush1.msra.mxu1 %v3060_v8  ;;  %v3119_v8 = vadd.f32 %v3103_v21, %v3087_v45  ;;  %v11052_v45 = vld [vmem:[#allocation55_spill] sm:$0xff]  ;;  %v3117_v21 = vadd.f32 %v3101_v60, %v3085_v33  ;;  %v3114_v1 = vadd.f32 %v3098_v10, %v3082_v47  ;;  %v5543_v25 = vld [vmem:[%s7190_s13 + $0x1b8] sm:$0xff]  ;;  %v3078_v12 = vmul.f32 %v8956_v57, %v8946_v62  ;;  %v5541_v62 = vld [vmem:[%s7190_s13 + $0x1a8] sm:$0xff] }
 0x822   : > { %3166 = vmatprep.subr.mxu1 %v10905_v17  ;;  %v3118_v51 = vadd.f32 %v3102_v11, %v3086_v27  ;;  %v3099_v52 = vmul.f32 %v11052_v45, %v8833_v36  ;;  %v3097_v36 = vmul.f32 %v8881_v18, %v8878_v23  ;;  %v3095_v23 = vmul.f32 %v8929_v32, %v8926_v63  ;;  %v11056_v33 = vld [vmem:[#allocation58_spill] sm:$0xff]  ;;  %v5538_v28 = vld [vmem:[%s7190_s13 + $0x190] sm:$0xff]  ;;  %v6088_v10 = vld [vmem:[#allocation16 + $0xe8] sm:$0xff] }
 0x823   : > { %3167 = vmatpush1.msra.mxu1 %v3059_v5  ;;  %v3135_v16 = vadd.f32 %v5549_v9, %v3119_v8  ;;  %v3116_v5 = vadd.f32 %v3100_v58, %v3084_v41  ;;  %v3133_v27 = vadd.f32 %v5547_v44, %v3117_v21  ;;  %v3094_v20 = vmul.f32 %v8953_v0, %v8950_v24  ;;  %v11053_v0 = vld [vmem:[#allocation57_spill] sm:$0xff]  ;;  %v6084_v21 = vld [vmem:[#allocation12] sm:$0xff]  ;;  %v6086_v44 = vld [vmem:[#allocation12 + $0x18] sm:$0xff] }
 0x824   : > { %3168 = vmatprep.subr.mxu1 %v10905_v17  ;;  %v3134_v39 = vadd.f32 %v5548_v7, %v3118_v51  ;;  %v3115_v61 = vadd.f32 %v3099_v52, %v3083_v34  ;;  %v3113_v18 = vadd.f32 %v3097_v36, %v3081_v42  ;;  %v3112_v50 = vadd.f32 %v3096_v40, %v3080_v56  ;;  %v11058_v8 = vld [vmem:[#allocation61_spill] sm:$0xff]  ;;  %v6092_v42 = vld [vmem:[#allocation12 + $0x28] sm:$0xff]  ;;  %v6097_v56 = vld [vmem:[#allocation16 + $0xb8] sm:$0xff] }
 0x825   : > { %3169 = vmatpush1.msra.mxu1 %v3058_v3  ;;  %v3132_v48 = vadd.f32 %v5546_v6, %v3116_v5  ;;  %v3130_v11 = vadd.f32 %v5544_v19, %v3114_v1  ;;  %v3077_v63 = vmul.f32 %v8980_v14, %v8970_v13  ;;  %v3093_v32 = vmul.f32 %v8977_v53, %v8974_v54  ;;  %v5540_v13 = vld [vmem:[%s7190_s13 + $0x1a0] sm:$0xff]  ;;  %v11054_v54 = vld [vmem:[#allocation60_spill] sm:$0xff]  ;;  %v6087_v47 = vld [vmem:[#allocation16 + $0xf0] sm:$0xff] }
 0x826   : > { %3170 = vmatprep.subr.mxu1 %v10905_v17  ;;  %v3131_v30 = vadd.f32 %v5545_v31, %v3115_v61  ;;  %v3111_v55 = vadd.f32 %v3095_v23, %v3079_v49  ;;  %v3129_v35 = vadd.f32 %v5543_v25, %v3113_v18  ;;  %v3076_v24 = vmul.f32 %v9004_v59, %v8994_v38  ;;  %v11055_v14 = vld [vmem:[#allocation59_spill] sm:$0xff]  ;;  %v6091_v6 = vld [vmem:[#allocation16 + $0xd8] sm:$0xff]  ;;  %v6093_v36 = vld [vmem:[#allocation16 + $0xd0] sm:$0xff] }
 0x827   : > { %3171 = vmatpush2.msra.mxu1 %v3137_v26  ;;  %v3092_v57 = vmul.f32 %v11053_v0, %v8998_v46  ;;  %v3110_v3 = vadd.f32 %v3094_v20, %v3078_v12  ;;  %v3128_v43 = vadd.f32 %v5542_v29, %v3112_v50  ;;  %v3075_v53 = vmul.f32 %v11054_v54, %v9018_v22  ;;  %v5539_v46 = vld [vmem:[%s7190_s13 + $0x198] sm:$0xff]  ;;  %v11057_v59 = vld [vmem:[#allocation63_spill] sm:$0xff]  ;;  %v6094_v61 = vld [vmem:[#allocation16 + $0xc8] sm:$0xff] }
 0x828   : > { %3172 = vmatprep.subr.mxu1 %v10905_v17  ;;  %v3091_v4 = vmul.f32 %v11056_v33, %v11055_v14  ;;  %v3109_v15 = vadd.f32 %v3093_v32, %v3077_v63  ;;  %v3127_v38 = vadd.f32 %v5541_v62, %v3111_v55  ;;  %v3074_v60 = vmul.f32 %v11057_v59, %v9033_v2  ;;  %v11059_v26 = vld [vmem:[#allocation62_spill] sm:$0xff]  ;;  %v5536_v2 = vld [vmem:[%s7190_s13 + $0x180] sm:$0xff]  ;;  %v6099_v1 = vld [vmem:[#allocation16 + $0xb0] sm:$0xff] }
 0x829   : > { %3173 = vmatpush2.msra.mxu1 %v3136_v37  ;;  %v3090_v9 = vmul.f32 %v11059_v26, %v11058_v8  ;;  %v3108_v41 = vadd.f32 %v3092_v57, %v3076_v24  ;;  %v3126_v22 = vadd.f32 %v5540_v13, %v3110_v3  ;;  %v5537_v37 = vld [vmem:[%s7190_s13 + $0x188] sm:$0xff]  ;;  %v6089_v5 = vld [vmem:[#allocation16 + $0xe0] sm:$0xff]  ;;  %v6098_v40 = vld [vmem:[#allocation12 + $0x38] sm:$0xff] }
 0x82a   : > { %3174 = vmatprep.subr.mxu1 %v10905_v17  ;;  %v3107_v58 = vadd.f32 %v3091_v4, %v3075_v53  ;;  %v3125_v51 = vadd.f32 %v5539_v46, %v3109_v15  ;;  %v6096_v31 = vld [vmem:[#allocation12 + $0x20] sm:$0xff]  ;;  %v6102_v49 = vld [vmem:[#allocation12 + $0x30] sm:$0xff]  ;;  %v6103_v23 = vld [vmem:[#allocation16 + $0x98] sm:$0xff] }
 0x82b   : > { %3175 = vmatpush2.msra.mxu1 %v3135_v16  ;;  %v3106_v7 = vadd.f32 %v3090_v9, %v3074_v60  ;;  %v3124_v34 = vadd.f32 %v5538_v28, %v3108_v41  ;;  %v6085_v16 = vld [vmem:[#allocation16 + $0xf8] sm:$0xff]  ;;  %v6101_v19 = vld [vmem:[#allocation16 + $0xa0] sm:$0xff]  ;;  %v6104_v18 = vld [vmem:[#allocation12 + $0x48] sm:$0xff] }
 0x82c   : > { %3176 = vmatprep.subr.mxu1 %v10905_v17  ;;  %v3123_v45 = vadd.f32 %v5537_v37, %v3107_v58  ;;  %v6106_v25 = vld [vmem:[#allocation16 + $0x88] sm:$0xff]  ;;  %v6107_v12 = vld [vmem:[#allocation16 + $0x80] sm:$0xff]  ;;  %v6109_v50 = vld [vmem:[#allocation16 + $0x78] sm:$0xff] }
 0x82d   : > { %3177 = vmatpush2.msra.mxu1 %v3134_v39  ;;  %v3122_v52 = vadd.f32 %v5536_v2, %v3106_v7  ;;  %v6090_v39 = vld [vmem:[#allocation12 + $0x10] sm:$0xff]  ;;  %v6108_v20 = vld [vmem:[#allocation12 + $0x40] sm:$0xff]  ;;  %v6112_v63 = vld [vmem:[#allocation16 + $0x68] sm:$0xff] }
 0x82e   : > { %3178 = vmatprep.subr.mxu1 %v10905_v17  ;;  %v6111_v29 = vld [vmem:[#allocation16 + $0x70] sm:$0xff]  ;;  %v6113_v32 = vld [vmem:[#allocation16 + $0x60] sm:$0xff]  ;;  %v6116_v62 = vld [vmem:[#allocation12 + $0x68] sm:$0xff] }
 0x82f   : > { %3179 = vmatpush2.msra.mxu1 %v3133_v27  ;;  %v6095_v27 = vld [vmem:[#allocation16 + $0xc0] sm:$0xff]  ;;  %v6114_v55 = vld [vmem:[#allocation12 + $0x50] sm:$0xff]  ;;  %v6118_v0 = vld [vmem:[#allocation16 + $0x48] sm:$0xff] }
 0x830   : > { %3180 = vmatprep.subr.mxu1 %v10905_v17  ;;  %v6117_v24 = vld [vmem:[#allocation16 + $0x50] sm:$0xff]  ;;  %v6119_v57 = vld [vmem:[#allocation16 + $0x40] sm:$0xff]  ;;  %v6122_v13 = vld [vmem:[#allocation12 + $0x78] sm:$0xff] }
 0x831   : > { %3181 = vmatpush2.msra.mxu1 %v3132_v48  ;;  %v6100_v48 = vld [vmem:[#allocation16 + $0xa8] sm:$0xff]  ;;  %v6120_v3 = vld [vmem:[#allocation12 + $0x60] sm:$0xff]  ;;  %v6123_v54 = vld [vmem:[#allocation16 + $0x30] sm:$0xff] }
 0x832   : > { %3182 = vmatprep.subr.mxu1 %v10905_v17  ;;  %v6124_v53 = vld [vmem:[#allocation16 + $0x28] sm:$0xff]  ;;  %v6125_v14 = vld [vmem:[#allocation16 + $0x20] sm:$0xff]  ;;  %v6126_v33 = vld [vmem:[#allocation12 + $0x70] sm:$0xff] }
 0x833   : > { %3183 = vmatpush2.msra.mxu1 %v3131_v30  ;;  %v6105_v30 = vld [vmem:[#allocation16 + $0x90] sm:$0xff]  ;;  %v6127_v4 = vld [vmem:[#allocation16 + $0x18] sm:$0xff]  ;;  %v6128_v15 = vld [vmem:[#allocation12 + $0x88] sm:$0xff] }
 0x834   : > { %3184 = vmatprep.subr.mxu1 %v10905_v17  ;;  %v6130_v46 = vld [vmem:[#allocation16 + $0x8] sm:$0xff]  ;;  %v6131_v59 = vld [vmem:[#allocation16] sm:$0xff]  ;;  %v6133_v8 = vld [vmem:[#allocation16 + $0x1f8] sm:$0xff] }
 0x835   : > { %3185 = vmatpush2.msra.mxu1 %v3130_v11  ;;  %v6110_v11 = vld [vmem:[#allocation12 + $0x58] sm:$0xff]  ;;  %v6132_v60 = vld [vmem:[#allocation12 + $0x80] sm:$0xff]  ;;  %v6135_v9 = vld [vmem:[#allocation16 + $0x1f0] sm:$0xff] }
 0x836   : > { %3186 = vmatprep.subr.mxu1 %v10905_v17  ;;  %v6134_v26 = vld [vmem:[#allocation12 + $0x98] sm:$0xff]  ;;  %v6136_v41 = vld [vmem:[#allocation16 + $0x1e8] sm:$0xff]  ;;  %v6138_v28 = vld [vmem:[#allocation12 + $0x90] sm:$0xff] }
 0x837   : > { %3187 = vmatpush2.msra.mxu1 %v3129_v35  ;;  %v6115_v35 = vld [vmem:[#allocation16 + $0x58] sm:$0xff]  ;;  %v6141_v37 = vld [vmem:[#allocation16 + $0x1d0] sm:$0xff]  ;;  %v6142_v7 = vld [vmem:[#allocation16 + $0x1c8] sm:$0xff] }
 0x838   : > { %3188 = vmatprep.subr.mxu1 %v10905_v17  ;;  %v6139_v58 = vld [vmem:[#allocation16 + $0x1d8] sm:$0xff]  ;;  %v6144_v2 = vld [vmem:[#allocation12 + $0xa0] sm:$0xff] }
 0x839   : > { %3189 = vmatpush2.msra.mxu1 %v3128_v43  ;;  %v6121_v43 = vld [vmem:[#allocation16 + $0x38] sm:$0xff] }
 0x83a   : > { %3190 = vmatprep.subr.mxu1 %v10905_v17 }
 0x83b   : > { %3191 = vmatpush2.msra.mxu1 %v3127_v38  ;;  %v6129_v38 = vld [vmem:[#allocation16 + $0x10] sm:$0xff] }
 0x83c   : > { %3192 = vmatprep.subr.mxu1 %v10905_v17 }
 0x83d   : > { %3193 = vmatpush2.msra.mxu1 %v3126_v22  ;;  %v6137_v22 = vld [vmem:[#allocation16 + $0x1e0] sm:$0xff] }
 0x83e   : > { %3194 = vmatprep.subr.mxu1 %v10905_v17 }
 0x83f   : > { %3195 = vmatpush2.msra.mxu1 %v3125_v51  ;;  %v6140_v51 = vld [vmem:[#allocation12 + $0xa8] sm:$0xff] }
 0x840   : > { %3196 = vmatprep.subr.mxu1 %v10905_v17 }
 0x841   : > { %3197 = vmatpush2.msra.mxu1 %v3124_v34  ;;  %v6143_v34 = vld [vmem:[#allocation16 + $0x1c0] sm:$0xff] }
 0x842   : > { %3198 = vmatprep.subr.mxu1 %v10905_v17 }
 0x843   : > { %3199 = vmatpush2.msra.mxu1 %v3123_v45  ;;  %v6145_v45 = vld [vmem:[#allocation16 + $0x1b8] sm:$0xff] }
 0x844   : > { %3200 = vmatprep.subr.mxu1 %v10905_v17 }
 0x845   : > { %3201 = vmatpush2.msra.mxu1 %v3122_v52  ;;  %v6146_v52 = vld [vmem:[#allocation12 + $0xb8] sm:$0xff] }
 0x846   : > { %3203 = vmatmul.mubr.f32.vlgmr.msra.gmra.mxu1 %v6084_v21  ;;  %3945 = vmatprep.subr.mxu1 %v6085_v16  ;;  %v6147_v21 = vld [vmem:[#allocation16 + $0x1b0] sm:$0xff]  ;;  %v6148_v16 = vld [vmem:[#allocation16 + $0x1a8] sm:$0xff] }
 0x847   : > { %3207 = vmatprep.mubr.f32.mxu1 %v6086_v44  ;;  %3946 = vmatpush1.msra.mxu1 %v6087_v47  ;;  %v6149_v44 = vld [vmem:[#allocation16 + $0x1a0] sm:$0xff]  ;;  %v6150_v47 = vld [vmem:[#allocation12 + $0xb0] sm:$0xff] }
 0x848   : > { %3947 = vmatprep.subr.mxu1 %v6088_v10  ;;  %v6151_v10 = vld [vmem:[#allocation16 + $0x198] sm:$0xff] }
 0x849   : > { %3948 = vmatpush1.msra.mxu1 %v6089_v5  ;;  %v6152_v5 = vld [vmem:[#allocation12 + $0xc8] sm:$0xff] }
 0x84a   : > { %3208 = vmatmul.mubr.f32.gmra.mxu1 %v6090_v39  ;;  %3949 = vmatprep.subr.mxu1 %v6091_v6  ;;  %v6153_v39 = vld [vmem:[#allocation16 + $0x190] sm:$0xff]  ;;  %v6154_v6 = vld [vmem:[#allocation16 + $0x188] sm:$0xff] }
 0x84b   : > { %3212 = vmatprep.mubr.f32.mxu1 %v6092_v42  ;;  %3950 = vmatpush1.msra.mxu1 %v6093_v36  ;;  %v6155_v42 = vld [vmem:[#allocation16 + $0x180] sm:$0xff] }
 0x84c   : > { %3951 = vmatprep.subr.mxu1 %v6094_v61  ;;  %v6156_v36 = vld [vmem:[#allocation12 + $0xc0] sm:$0xff]  ;;  %v6157_v61 = vld [vmem:[#allocation16 + $0x178] sm:$0xff] }
 0x84d   : > { %3952 = vmatpush1.msra.mxu1 %v6095_v27  ;;  %v6158_v27 = vld [vmem:[#allocation12 + $0xd8] sm:$0xff] }
 0x84e   : > { %3213 = vmatmul.mubr.f32.gmra.mxu1 %v6096_v31  ;;  %3953 = vmatprep.subr.mxu1 %v6097_v56  ;;  %v6159_v31 = vld [vmem:[#allocation16 + $0x170] sm:$0xff]  ;;  %v6160_v56 = vld [vmem:[#allocation16 + $0x168] sm:$0xff] }
 0x84f   : > { %3217 = vmatprep.mubr.f32.mxu1 %v6098_v40  ;;  %3954 = vmatpush1.msra.mxu1 %v6099_v1  ;;  %v6161_v40 = vld [vmem:[#allocation16 + $0x160] sm:$0xff]  ;;  %v6162_v1 = vld [vmem:[#allocation12 + $0xd0] sm:$0xff] }
 0x850   : > { %3955 = vmatprep.subr.mxu1 %v6100_v48  ;;  %v6163_v48 = vld [vmem:[#allocation16 + $0x158] sm:$0xff] }
 0x851   : > { %3956 = vmatpush1.msra.mxu1 %v6101_v19  ;;  %v6164_v19 = vld [vmem:[#allocation12 + $0xe8] sm:$0xff] }
 0x852   : > { %3218 = vmatmul.mubr.f32.gmra.mxu1 %v6102_v49  ;;  %3957 = vmatprep.subr.mxu1 %v6103_v23  ;;  %v6165_v49 = vld [vmem:[#allocation16 + $0x150] sm:$0xff]  ;;  %v6166_v23 = vld [vmem:[#allocation16 + $0x148] sm:$0xff] }
 0x853   : > { %3222 = vmatprep.mubr.f32.mxu1 %v6104_v18  ;;  %3958 = vmatpush1.msra.mxu1 %v6105_v30  ;;  %v6167_v18 = vld [vmem:[#allocation16 + $0x140] sm:$0xff] }
 0x854   : > { %3959 = vmatprep.subr.mxu1 %v6106_v25  ;;  %v6168_v30 = vld [vmem:[#allocation12 + $0xe0] sm:$0xff]  ;;  %v6169_v25 = vld [vmem:[#allocation16 + $0x138] sm:$0xff] }
 0x855   : > { %3960 = vmatpush1.msra.mxu1 %v6107_v12  ;;  %v6170_v12 = vld [vmem:[#allocation12 + $0xf8] sm:$0xff] }
 0x856   : > { %3223 = vmatmul.mubr.f32.gmra.mxu1 %v6108_v20  ;;  %3961 = vmatprep.subr.mxu1 %v6109_v50  ;;  %v6171_v20 = vld [vmem:[#allocation16 + $0x130] sm:$0xff]  ;;  %v6172_v50 = vld [vmem:[#allocation16 + $0x128] sm:$0xff] }
 0x857   : > { %3227 = vmatprep.mubr.f32.mxu1 %v6110_v11  ;;  %3962 = vmatpush1.msra.mxu1 %v6111_v29  ;;  %v6173_v11 = vld [vmem:[#allocation16 + $0x120] sm:$0xff]  ;;  %v6174_v29 = vld [vmem:[#allocation12 + $0xf0] sm:$0xff] }
 0x858   : > { %3963 = vmatprep.subr.mxu1 %v6112_v63  ;;  %v6175_v63 = vld [vmem:[#allocation16 + $0x118] sm:$0xff] }
 0x859   : > { %3964 = vmatpush1.msra.mxu1 %v6113_v32  ;;  %v6176_v32 = vld [vmem:[#allocation12 + $0x108] sm:$0xff] }
 0x85a   : > { %3228 = vmatmul.mubr.f32.gmra.mxu1 %v6114_v55  ;;  %3965 = vmatprep.subr.mxu1 %v6115_v35  ;;  %v6177_v55 = vld [vmem:[#allocation16 + $0x110] sm:$0xff]  ;;  %v6178_v35 = vld [vmem:[#allocation16 + $0x108] sm:$0xff] }
 0x85b   : > { %3232 = vmatprep.mubr.f32.mxu1 %v6116_v62  ;;  %3966 = vmatpush1.msra.mxu1 %v6117_v24  ;;  %v6179_v62 = vld [vmem:[#allocation16 + $0x100] sm:$0xff] }
 0x85c   : > { %3967 = vmatprep.subr.mxu1 %v6118_v0  ;;  %v6180_v24 = vld [vmem:[#allocation12 + $0x100] sm:$0xff]  ;;  %v6181_v0 = vld [vmem:[#allocation12 + $0x118] sm:$0xff] }
 0x85d   : > { %3968 = vmatpush1.msra.mxu1 %v6119_v57  ;;  %v6182_v57 = vld [vmem:[#allocation12 + $0x110] sm:$0xff] }
 0x85e   : > { %3233 = vmatmul.mubr.f32.gmra.mxu1 %v6120_v3  ;;  %3969 = vmatprep.subr.mxu1 %v6121_v43  ;;  %v6183_v3 = vld [vmem:[#allocation12 + $0x128] sm:$0xff]  ;;  %v6184_v43 = vld [vmem:[#allocation12 + $0x120] sm:$0xff] }
 0x85f   : > { %3237 = vmatprep.mubr.f32.mxu1 %v6122_v13  ;;  %3970 = vmatpush1.msra.mxu1 %v6123_v54  ;;  %v6185_v13 = vld [vmem:[#allocation12 + $0x138] sm:$0xff]  ;;  %v6186_v54 = vld [vmem:[#allocation12 + $0x130] sm:$0xff] }
 0x860   : > { %3971 = vmatprep.subr.mxu1 %v6124_v53  ;;  %v6187_v53 = vld [vmem:[#allocation12 + $0x148] sm:$0xff] }
 0x861   : > { %3972 = vmatpush1.msra.mxu1 %v6125_v14  ;;  %v6188_v14 = vld [vmem:[#allocation12 + $0x140] sm:$0xff] }
 0x862   : > { %3238 = vmatmul.mubr.f32.gmra.mxu1 %v6126_v33  ;;  %3973 = vmatprep.subr.mxu1 %v6127_v4  ;;  %v6189_v33 = vld [vmem:[#allocation12 + $0x158] sm:$0xff]  ;;  %v6190_v4 = vld [vmem:[#allocation12 + $0x150] sm:$0xff] }
 0x863   : > { %3242 = vmatprep.mubr.f32.mxu1 %v6128_v15  ;;  %3974 = vmatpush1.msra.mxu1 %v6129_v38  ;;  %v6191_v15 = vld [vmem:[#allocation12 + $0x168] sm:$0xff]  ;;  %v6192_v38 = vld [vmem:[#allocation12 + $0x160] sm:$0xff] }
 0x864   : > { %3975 = vmatprep.subr.mxu1 %v6130_v46  ;;  %v6193_v46 = vld [vmem:[#allocation12 + $0x178] sm:$0xff] }
 0x865   : > { %3976 = vmatpush1.msra.mxu1 %v6131_v59  ;;  %v6194_v59 = vld [vmem:[#allocation12 + $0x170] sm:$0xff] }
 0x866   : > { %3243 = vmatmul.mubr.f32.gmra.mxu1 %v6132_v60  ;;  %3977 = vmatprep.subr.mxu1 %v6133_v8  ;;  %v6195_v60 = vld [vmem:[#allocation12 + $0x188] sm:$0xff]  ;;  %v6196_v8 = vld [vmem:[#allocation12 + $0x180] sm:$0xff] }
 0x867   : > { %3247 = vmatprep.mubr.f32.mxu1 %v6134_v26  ;;  %3978 = vmatpush2.msra.mxu1 %v6135_v9  ;;  %v6197_v26 = vld [vmem:[#allocation12 + $0x198] sm:$0xff]  ;;  %v6198_v9 = vld [vmem:[#allocation12 + $0x190] sm:$0xff] }
 0x868   : > { %3979 = vmatprep.subr.mxu1 %v6136_v41  ;;  %v6199_v41 = vld [vmem:[#allocation12 + $0x1a8] sm:$0xff] }
 0x869   : > { %3980 = vmatpush2.msra.mxu1 %v6137_v22  ;;  %v6200_v22 = vld [vmem:[#allocation12 + $0x1a0] sm:$0xff] }
 0x86a   : > { %3248 = vmatmul.mubr.f32.gmra.mxu1 %v6138_v28  ;;  %3981 = vmatprep.subr.mxu1 %v6139_v58  ;;  %v6201_v28 = vld [vmem:[#allocation12 + $0x1b8] sm:$0xff]  ;;  %v6202_v58 = vld [vmem:[#allocation12 + $0x1b0] sm:$0xff] }
 0x86b   : > { %3252 = vmatprep.mubr.f32.mxu1 %v6140_v51  ;;  %3982 = vmatpush2.msra.mxu1 %v6141_v37  ;;  %v6203_v51 = vld [vmem:[#allocation12 + $0x1c8] sm:$0xff]  ;;  %v6204_v37 = vld [vmem:[#allocation12 + $0x1c0] sm:$0xff] }
 0x86c   : > { %3983 = vmatprep.subr.mxu1 %v6142_v7  ;;  %v6205_v7 = vld [vmem:[#allocation12 + $0x1d8] sm:$0xff] }
 0x86d   : > { %3984 = vmatpush2.msra.mxu1 %v6143_v34  ;;  %v6206_v34 = vld [vmem:[#allocation12 + $0x1d0] sm:$0xff] }
 0x86e   : > { %3253 = vmatmul.mubr.f32.gmra.mxu1 %v6144_v2  ;;  %3985 = vmatprep.subr.mxu1 %v6145_v45  ;;  %v6207_v2 = vld [vmem:[#allocation12 + $0x1e8] sm:$0xff]  ;;  %v6208_v45 = vld [vmem:[#allocation12 + $0x1e0] sm:$0xff] }
 0x86f   : > { %3257 = vmatprep.mubr.f32.mxu1 %v6146_v52  ;;  %3986 = vmatpush2.msra.mxu1 %v6147_v21  ;;  %v6209_v52 = vld [vmem:[#allocation12 + $0x1f8] sm:$0xff]  ;;  %v6210_v21 = vld [vmem:[#allocation12 + $0x1f0] sm:$0xff] }
 0x870   : > { %3987 = vmatprep.subr.mxu1 %v6148_v16 }
 0x871   : > { %3988 = vmatpush2.msra.mxu1 %v6149_v44 }
 0x872   : > { %3258 = vmatmul.mubr.f32.gmra.mxu1 %v6150_v47  ;;  %3989 = vmatprep.subr.mxu1 %v6151_v10 }
 0x873   : > { %3262 = vmatprep.mubr.f32.mxu1 %v6152_v5  ;;  %3990 = vmatpush2.msra.mxu1 %v6153_v39 }
 0x874   : > { %3991 = vmatprep.subr.mxu1 %v6154_v6 }
 0x875   : > { %3992 = vmatpush2.msra.mxu1 %v6155_v42 }
 0x876   : > { %3263 = vmatmul.mubr.f32.gmra.mxu1 %v6156_v36  ;;  %3993 = vmatprep.subr.mxu1 %v6157_v61 }
 0x877   : > { %3267 = vmatprep.mubr.f32.mxu1 %v6158_v27  ;;  %3994 = vmatpush2.msra.mxu1 %v6159_v31 }
 0x878   : > { %3995 = vmatprep.subr.mxu1 %v6160_v56 }
 0x879   : > { %3996 = vmatpush2.msra.mxu1 %v6161_v40 }
 0x87a   : > { %3268 = vmatmul.mubr.f32.gmra.mxu1 %v6162_v1  ;;  %3997 = vmatprep.subr.mxu1 %v6163_v48 }
 0x87b   : > { %3272 = vmatprep.mubr.f32.mxu1 %v6164_v19  ;;  %3998 = vmatpush2.msra.mxu1 %v6165_v49 }
 0x87c   : > { %3999 = vmatprep.subr.mxu1 %v6166_v23 }
 0x87d   : > { %4000 = vmatpush2.msra.mxu1 %v6167_v18 }
 0x87e   : > { %3273 = vmatmul.mubr.f32.gmra.mxu1 %v6168_v30  ;;  %4001 = vmatprep.subr.mxu1 %v6169_v25 }
 0x87f   : > { %3277 = vmatprep.mubr.f32.mxu1 %v6170_v12  ;;  %4002 = vmatpush2.msra.mxu1 %v6171_v20 }
 0x880   : > { %4003 = vmatprep.subr.mxu1 %v6172_v50 }
 0x881   : > { %4004 = vmatpush2.msra.mxu1 %v6173_v11 }
 0x882   : > { %3278 = vmatmul.mubr.f32.gmra.mxu1 %v6174_v29  ;;  %4005 = vmatprep.subr.mxu1 %v6175_v63 }
 0x883   : > { %3282 = vmatprep.mubr.f32.mxu1 %v6176_v32  ;;  %4006 = vmatpush2.msra.mxu1 %v6177_v55 }
 0x884   : > { %4007 = vmatprep.subr.mxu1 %v6178_v35 }
 0x885   : > { %4008 = vmatpush2.msra.mxu1 %v6179_v62 }
 0x886   : > { %3283 = vmatmul.mubr.f32.gmra.mxu1 %v6180_v24  ;;  %4302 = vmatprep.subr.mxu1 %v10905_v17 }
 0x887   : > { %3287 = vmatprep.mubr.f32.mxu1 %v6181_v0 }
 0x88a   : > { %3288 = vmatmul.mubr.f32.gmra.mxu1 %v6182_v57 }
 0x88b   : > { %3292 = vmatprep.mubr.f32.mxu1 %v6183_v3 }
 0x88e   : > { %3293 = vmatmul.mubr.f32.gmra.mxu1 %v6184_v43 }
 0x88f   : > { %3297 = vmatprep.mubr.f32.mxu1 %v6185_v13 }
 0x892   : > { %3298 = vmatmul.mubr.f32.gmra.mxu1 %v6186_v54 }
 0x893   : > { %3302 = vmatprep.mubr.f32.mxu1 %v6187_v53 }
 0x896   : > { %3303 = vmatmul.mubr.f32.gmra.mxu1 %v6188_v14 }
 0x897   : > { %3307 = vmatprep.mubr.f32.mxu1 %v6189_v33 }
 0x89a   : > { %3308 = vmatmul.mubr.f32.gmra.mxu1 %v6190_v4 }
 0x89b   : > { %3312 = vmatprep.mubr.f32.mxu1 %v6191_v15 }
 0x89e   : > { %3313 = vmatmul.mubr.f32.gmra.mxu1 %v6192_v38 }
 0x89f   : > { %3317 = vmatprep.mubr.f32.mxu1 %v6193_v46 }
 0x8a2   : > { %3318 = vmatmul.mubr.f32.gmra.mxu1 %v6194_v59 }
 0x8a3   : > { %3322 = vmatprep.mubr.f32.mxu1 %v6195_v60 }
 0x8a6   : > { %3323 = vmatmul.mubr.f32.gmra.mxu1 %v6196_v8 }
 0x8a7   : > { %3327 = vmatprep.mubr.f32.mxu1 %v6197_v26 }
 0x8aa   : > { %3328 = vmatmul.mubr.f32.gmra.mxu1 %v6198_v9 }
 0x8ab   : > { %3332 = vmatprep.mubr.f32.mxu1 %v6199_v41 }
 0x8ae   : > { %3333 = vmatmul.mubr.f32.gmra.mxu1 %v6200_v22 }
 0x8af   : > { %3337 = vmatprep.mubr.f32.mxu1 %v6201_v28 }
 0x8b2   : > { %3338 = vmatmul.mubr.f32.gmra.mxu1 %v6202_v58 }
 0x8b3   : > { %3342 = vmatprep.mubr.f32.mxu1 %v6203_v51 }
 0x8b6   : > { %3343 = vmatmul.mubr.f32.gmra.mxu1 %v6204_v37 }
 0x8b7   : > { %3347 = vmatprep.mubr.f32.mxu1 %v6205_v7 }
 0x8ba   : > { %3348 = vmatmul.mubr.f32.gmra.mxu1 %v6206_v34 }
 0x8bb   : > { %3352 = vmatprep.mubr.f32.mxu1 %v6207_v2 }
 0x8be   : > { %3353 = vmatmul.mubr.f32.gmra.mxu1 %v6208_v45 }
 0x8bf   : > { %3357 = vmatprep.mubr.f32.mxu1 %v6209_v52 }
 0x8c2   : > { %3358 = vmatmul.mubr.f32.gmra.mxu1 %v6210_v21 }
 0x906   : > { %v3204_v16 = vpop.f32.mrf.mxu1 }
 0x908   : > { %v3206_v44 = vpop.f32.mrf.mxu1 }
 0x909   : > { %v9163_v44 = vld [vmem:[#allocation15 + $0x8] sm:$0xff] }
 0x90a   : > { %v3209_v47 = vpop.f32.mrf.mxu1  ;;  %11060 = vst [vmem:[#allocation48_spill] sm:$0xff] %v9163_v44 }
 0x90c   : > { %v3211_v10 = vpop.f32.mrf.mxu1 }
 0x90e   : > { %v3214_v5 = vpop.f32.mrf.mxu1 }
 0x910   : > { %v3216_v39 = vpop.f32.mrf.mxu1 }
 0x912   : > { %v3219_v6 = vpop.f32.mrf.mxu1 }
 0x914   : > { %v3221_v42 = vpop.f32.mrf.mxu1 }
 0x916   : > { %v3224_v36 = vpop.f32.mrf.mxu1 }
 0x918   : > { %v3226_v61 = vpop.f32.mrf.mxu1 }
 0x91a   : > { %v3229_v27 = vpop.f32.mrf.mxu1 }
 0x91c   : > { %v3231_v31 = vpop.f32.mrf.mxu1 }
 0x91e   : > { %v3234_v56 = vpop.f32.mrf.mxu1 }
 0x920   : > { %v3236_v40 = vpop.f32.mrf.mxu1 }
 0x922   : > { %v3239_v1 = vpop.f32.mrf.mxu1 }
 0x924   : > { %v3241_v48 = vpop.f32.mrf.mxu1 }
 0x926   : > { %v3244_v19 = vpop.f32.mrf.mxu1 }
 0x928   : > { %v3246_v49 = vpop.f32.mrf.mxu1 }
 0x92a   : > { %v3249_v23 = vpop.f32.mrf.mxu1 }
 0x92c   : > { %v3251_v18 = vpop.f32.mrf.mxu1 }
 0x92d   : > { %v9201_v18 = vld [vmem:[%s7182_s25 + $0x240] sm:$0xff] }
 0x92e   : > { %v3254_v30 = vpop.f32.mrf.mxu1 }
 0x930   : > { %v3256_v25 = vpop.f32.mrf.mxu1 }
 0x932   : > { %v3259_v12 = vpop.f32.mrf.mxu1 }
 0x934   : > { %v3261_v20 = vpop.f32.mrf.mxu1 }
 0x936   : > { %v3264_v50 = vpop.f32.mrf.mxu1 }
 0x938   : > { %v3266_v11 = vpop.f32.mrf.mxu1 }
 0x939   : > { %v5577_v11 = vld [vmem:[%s7182_s25 + $0x248] sm:$0xff] }
 0x93a   : > { %v3269_v29 = vpop.f32.mrf.mxu1 }
 0x93c   : > { %v3271_v63 = vpop.f32.mrf.mxu1 }
 0x93d   : > { %v5561_v63 = vld [vmem:[%s7176_s8 + $0x248] sm:$0xff] }
 0x93e   : > { %v3274_v32 = vpop.f32.mrf.mxu1 }
 0x940   : > { %v3276_v55 = vpop.f32.mrf.mxu1 }
 0x942   : > { %v9160_v35 = vpop.f32.mrf.mxu1 }
 0x944   : > { %v3281_v62 = vpop.f32.mrf.mxu1 }
 0x946   : > { %v3284_v24 = vpop.f32.mrf.mxu1 }
 0x947   : > { %3427 = vmatprep.mubr.f32.mxu0 %v3284_v24 }
 0x948   : > { %v3286_v0 = vpop.f32.mrf.mxu1  ;;  %3428 = vmatmul.mubr.f32.vlgmr.msra.gmra.mxu0 %v3204_v16 }
 0x94a   : > { %v3289_v57 = vpop.f32.mrf.mxu1 }
 0x94b   : > { %3433 = vmatprep.mubr.f32.mxu0 %v3289_v57 }
 0x94c   : > { %v3291_v3 = vpop.f32.mrf.mxu1  ;;  %3434 = vmatmul.mubr.f32.gmra.mxu0 %v3209_v47 }
 0x94e   : > { %v3294_v43 = vpop.f32.mrf.mxu1 }
 0x94f   : > { %3439 = vmatprep.mubr.f32.mxu0 %v3294_v43 }
 0x950   : > { %v3296_v13 = vpop.f32.mrf.mxu1  ;;  %3440 = vmatmul.mubr.f32.gmra.mxu0 %v3214_v5 }
 0x952   : > { %v3299_v54 = vpop.f32.mrf.mxu1 }
 0x953   : > { %3445 = vmatprep.mubr.f32.mxu0 %v3299_v54 }
 0x954   : > { %v3301_v53 = vpop.f32.mrf.mxu1  ;;  %3446 = vmatmul.mubr.f32.gmra.mxu0 %v3219_v6 }
 0x956   : > { %v3304_v14 = vpop.f32.mrf.mxu1 }
 0x957   : > { %3451 = vmatprep.mubr.f32.mxu0 %v3304_v14 }
 0x958   : > { %v3306_v33 = vpop.f32.mrf.mxu1  ;;  %3452 = vmatmul.mubr.f32.gmra.mxu0 %v3224_v36 }
 0x95a   : > { %v3309_v4 = vpop.f32.mrf.mxu1 }
 0x95b   : > { %3457 = vmatprep.mubr.f32.mxu0 %v3309_v4  ;;  %v9242_v4 = vld [vmem:[%s7176_s8 + $0x270] sm:$0xff] }
 0x95c   : > { %v3311_v15 = vpop.f32.mrf.mxu1  ;;  %3458 = vmatmul.mubr.f32.gmra.mxu0 %v3229_v27 }
 0x95d   : > { %v9245_v15 = vld [vmem:[%s7182_s25 + $0x270] sm:$0xff] }
 0x95e   : > { %v3314_v38 = vpop.f32.mrf.mxu1 }
 0x95f   : > { %3463 = vmatprep.mubr.f32.mxu0 %v3314_v38 }
 0x960   : > { %v3316_v46 = vpop.f32.mrf.mxu1  ;;  %3464 = vmatmul.mubr.f32.gmra.mxu0 %v3234_v56 }
 0x961   : > { %v9250_v46 = vld [vmem:[%s7176_s8 + $0x278] sm:$0xff] }
 0x962   : > { %v3319_v59 = vpop.f32.mrf.mxu1 }
 0x963   : > { %3469 = vmatprep.mubr.f32.mxu0 %v3319_v59 }
 0x964   : > { %v3321_v60 = vpop.f32.mrf.mxu1  ;;  %3470 = vmatmul.mubr.f32.gmra.mxu0 %v3239_v1 }
 0x965   : > { %v9255_v60 = vld [vmem:[%s7176_s8 + $0x268] sm:$0xff] }
 0x966   : > { %v3324_v8 = vpop.f32.mrf.mxu1 }
 0x967   : > { %3475 = vmatprep.mubr.f32.mxu0 %v3324_v8  ;;  %v9258_v8 = vld [vmem:[%s7182_s25 + $0x268] sm:$0xff] }
 0x968   : > { %v3326_v26 = vpop.f32.mrf.mxu1  ;;  %3476 = vmatmul.mubr.f32.gmra.mxu0 %v3244_v19 }
 0x969   : > { %v9261_v26 = vld [vmem:[%s7182_s25 + $0x278] sm:$0xff] }
 0x96a   : > { %v3329_v9 = vpop.f32.mrf.mxu1 }
 0x96b   : > { %3481 = vmatprep.mubr.f32.mxu0 %v3329_v9 }
 0x96c   : > { %v3331_v41 = vpop.f32.mrf.mxu1  ;;  %3482 = vmatmul.mubr.f32.gmra.mxu0 %v3249_v23 }
 0x96e   : > { %v3334_v22 = vpop.f32.mrf.mxu1 }
 0x96f   : > { %3487 = vmatprep.mubr.f32.mxu0 %v3334_v22 }
 0x970   : > { %v3336_v28 = vpop.f32.mrf.mxu1  ;;  %3488 = vmatmul.mubr.f32.gmra.mxu0 %v3254_v30  ;;  %v9204_v30 = vld [vmem:[%s7176_s8 + $0x240] sm:$0xff] }
 0x972   : > { %v3339_v58 = vpop.f32.mrf.mxu1 }
 0x973   : > { %3493 = vmatprep.mubr.f32.mxu0 %v3339_v58 }
 0x974   : > { %v3341_v51 = vpop.f32.mrf.mxu1  ;;  %3494 = vmatmul.mubr.f32.gmra.mxu0 %v3259_v12 }
 0x975   : > { %v9274_v51 = vld [vmem:[%s7176_s8 + $0x260] sm:$0xff] }
 0x976   : > { %v3344_v37 = vpop.f32.mrf.mxu1 }
 0x977   : > { %3499 = vmatprep.mubr.f32.mxu0 %v3344_v37  ;;  %v9277_v37 = vld [vmem:[%s7182_s25 + $0x260] sm:$0xff] }
 0x978   : > { %v3346_v7 = vpop.f32.mrf.mxu1  ;;  %3500 = vmatmul.mubr.f32.gmra.mxu0 %v3264_v50  ;;  %11066 = vst [vmem:[#allocation53_spill] sm:$0xff] %v9277_v37 }
 0x979   : > { %v5599_v7 = vld [vmem:[%s7188_s18 + $0x278] sm:$0xff] }
 0x97a   : > { %v3349_v34 = vpop.f32.mrf.mxu1 }
 0x97b   : > { %3505 = vmatprep.mubr.f32.mxu0 %v3349_v34 }
 0x97c   : > { %v3351_v2 = vpop.f32.mrf.mxu1  ;;  %3506 = vmatmul.mubr.f32.gmra.mxu0 %v3269_v29 }
 0x97e   : > { %v3354_v45 = vpop.f32.mrf.mxu1 }
 0x97f   : > { %3511 = vmatprep.mubr.f32.mxu0 %v3354_v45 }
 0x980   : > { %v3356_v52 = vpop.f32.mrf.mxu1  ;;  %3512 = vmatmul.mubr.f32.gmra.mxu0 %v3274_v32 }
 0x982   : > { %v3359_v21 = vpop.f32.mrf.mxu1 }
 0x983   : > { %3517 = vmatprep.mubr.f32.mxu0 %v3359_v21  ;;  %v9285_v21 = vld [vmem:[%s7176_s8 + $0x258] sm:$0xff] }
 0x984   : > { %v3361_v16 = vpop.f32.mrf.mxu1  ;;  %3518 = vmatmul.mubr.f32.gmra.mxu0 %v9160_v35 }
 0x985   : > { %3784 = vmatprep.mubr.f32.mxu0 %v9163_v44  ;;  %v9288_v16 = vld [vmem:[%s7182_s25 + $0x258] sm:$0xff] }
 0x986   : > { %11067 = vst [vmem:[#allocation45_spill] sm:$0xff] %v9288_v16 }
 0xa08   : > { %v9166_v47 = vpop.f32.mrf.mxu0 }
 0xa0a   : > { %v9168_v10 = vpop.f32.mrf.mxu0 }
 0xa0c   : > { %v9170_v5 = vpop.f32.mrf.mxu0 }
 0xa0e   : > { %v9172_v39 = vpop.f32.mrf.mxu0 }
 0xa10   : > { %v9174_v6 = vpop.f32.mrf.mxu0 }
 0xa11   : > { %11061 = vst [vmem:[#allocation49_spill] sm:$0xff] %v9174_v6 }
 0xa12   : > { %v9176_v42 = vpop.f32.mrf.mxu0 }
 0xa13   : > { %11062 = vst [vmem:[#allocation41_spill] sm:$0xff] %v9176_v42 }
 0xa14   : > { %v9178_v36 = vpop.f32.mrf.mxu0 }
 0xa15   : > { %11063 = vst [vmem:[#allocation39_spill] sm:$0xff] %v9178_v36 }
 0xa16   : > { %v9180_v61 = vpop.f32.mrf.mxu0 }
 0xa18   : > { %v9182_v27 = vpop.f32.mrf.mxu0 }
 0xa1a   : > { %v9184_v31 = vpop.f32.mrf.mxu0 }
 0xa1c   : > { %v9186_v56 = vpop.f32.mrf.mxu0 }
 0xa1e   : > { %v9188_v40 = vpop.f32.mrf.mxu0 }
 0xa20   : > { %v9190_v1 = vpop.f32.mrf.mxu0 }
 0xa22   : > { %v9192_v48 = vpop.f32.mrf.mxu0 }
 0xa24   : > { %v9194_v19 = vpop.f32.mrf.mxu0 }
 0xa26   : > { %v9196_v49 = vpop.f32.mrf.mxu0 }
 0xa28   : > { %v9198_v23 = vpop.f32.mrf.mxu0 }
 0xa29   : > { %v3664_v12 = vmul.f32 %v9201_v18, %v9198_v23 }
 0xa2a   : > { %v9206_v25 = vpop.f32.mrf.mxu0 }
 0xa2b   : > { %v3680_v20 = vmul.f32 %v9204_v30, %v9206_v25 }
 0xa2c   : > { %v9212_v50 = vpop.f32.mrf.mxu0 }
 0xa2d   : > { %v9215_v29 = vadd.f32 %v3680_v20, %v3664_v12  ;;  %v3665_v55 = vmul.f32 %v5577_v11, %v9212_v50  ;;  %v5598_v12 = vld [vmem:[%s7188_s18 + $0x270] sm:$0xff] }
 0xa2e   : > { %v3485_v32 = vpop.f32.mrf.mxu0 }
 0xa2f   : > { %11064 = vst [vmem:[#allocation51_spill] sm:$0xff] %v9215_v29  ;;  %v3681_v35 = vmul.f32 %v5561_v63, %v3485_v32  ;;  %v9296_v29 = vld [vmem:[%s7176_s8 + $0x250] sm:$0xff] }
 0xa30   : > { %v9219_v62 = vpop.f32.mrf.mxu0 }
 0xa31   : > { %v9221_v24 = vadd.f32 %v3681_v35, %v3665_v55 }
 0xa32   : > { %v9223_v0 = vpop.f32.mrf.mxu0 }
 0xa33   : > { %11065 = vst [vmem:[#allocation43_spill] sm:$0xff] %v9221_v24  ;;  %v9299_v24 = vld [vmem:[%s7182_s25 + $0x250] sm:$0xff] }
 0xa34   : > { %v9225_v57 = vpop.f32.mrf.mxu0  ;;  %11068 = vst [vmem:[#allocation50_spill] sm:$0xff] %v9299_v24 }
 0xa36   : > { %v9227_v3 = vpop.f32.mrf.mxu0 }
 0xa37   : > { %v3619_v20 = vmul.f32 %v9288_v16, %v9227_v3  ;;  %v5596_v16 = vld [vmem:[%s7188_s18 + $0x260] sm:$0xff] }
 0xa38   : > { %v9229_v43 = vpop.f32.mrf.mxu0 }
 0xa39   : > { %v3604_v55 = vmul.f32 %v9274_v51, %v9229_v43 }
 0xa3a   : > { %v9231_v13 = vpop.f32.mrf.mxu0 }
 0xa3b   : > { %v3620_v34 = vmul.f32 %v9277_v37, %v9231_v13 }
 0xa3c   : > { %v9233_v54 = vpop.f32.mrf.mxu0 }
 0xa3d   : > { %v3605_v2 = vmul.f32 %v9255_v60, %v9233_v54 }
 0xa3e   : > { %v9235_v53 = vpop.f32.mrf.mxu0 }
 0xa3f   : > { %v3621_v41 = vmul.f32 %v9258_v8, %v9235_v53 }
 0xa40   : > { %v9237_v14 = vpop.f32.mrf.mxu0 }
 0xa41   : > { %v3606_v22 = vmul.f32 %v9242_v4, %v9237_v14  ;;  %v3637_v35 = vsub.f32 %v3605_v2, %v3621_v41  ;;  %v3617_v41 = vmul.f32 %v5577_v11, %v3485_v32  ;;  %v9316_v11 = vld [vmem:[%s7176_s8 + $0x238] sm:$0xff] }
 0xa42   : > { %v9239_v33 = vpop.f32.mrf.mxu0  ;;  %v9319_v32 = vld [vmem:[%s7182_s25 + $0x238] sm:$0xff] }
 0xa43   : > { %v3622_v59 = vmul.f32 %v9245_v15, %v9239_v33 }
 0xa44   : > { %v9247_v38 = vpop.f32.mrf.mxu0 }
 0xa45   : > { %v3607_v28 = vmul.f32 %v9250_v46, %v9247_v38  ;;  %v3638_v45 = vsub.f32 %v3606_v22, %v3622_v59  ;;  %v5597_v59 = vld [vmem:[%s7188_s18 + $0x268] sm:$0xff]  ;;  %v3618_v22 = vmul.f32 %v9299_v24, %v9223_v0  ;;  %v5595_v24 = vld [vmem:[%s7188_s18 + $0x258] sm:$0xff] }
 0xa46   : > { %v9263_v9 = vpop.f32.mrf.mxu0 }
 0xa47   : > { %v3623_v58 = vmul.f32 %v9261_v26, %v9263_v9  ;;  %v3654_v37 = vadd.f32 %v5598_v12, %v3638_v45 }
 0xa49   : > { %v3639_v52 = vsub.f32 %v3607_v28, %v3623_v58  ;;  %v3603_v28 = vmul.f32 %v9285_v21, %v9225_v57  ;;  %v3636_v58 = vsub.f32 %v3604_v55, %v3620_v34  ;;  %v3601_v34 = vmul.f32 %v5561_v63, %v9212_v50  ;;  %v9328_v63 = vld [vmem:[%s7176_s8 + $0x230] sm:$0xff]  ;;  %v5593_v55 = vld [vmem:[%s7188_s18 + $0x248] sm:$0xff] }
 0xa4b   : > { %v3655_v44 = vadd.f32 %v5599_v7, %v3639_v52  ;;  %v3602_v7 = vmul.f32 %v9296_v29, %v9219_v62  ;;  %v3635_v2 = vsub.f32 %v3603_v28, %v3619_v20  ;;  %v3653_v52 = vadd.f32 %v5597_v59, %v3637_v35  ;;  %v5594_v20 = vld [vmem:[%s7188_s18 + $0x250] sm:$0xff]  ;;  %v5592_v28 = vld [vmem:[%s7188_s18 + $0x240] sm:$0xff] }
 0xa4c   : > { %v3652_v12 = vadd.f32 %v5596_v16, %v3636_v58  ;;  %v9331_v16 = vld [vmem:[%s7182_s25 + $0x230] sm:$0xff]  ;;  %v3599_v59 = vmul.f32 %v9316_v11, %v9194_v19 }
 0xa4d   : > { %3721 = vmatpush1.msra.mxu0 %v3655_v44  ;;  %v3616_v44 = vmul.f32 %v9201_v18, %v9206_v25  ;;  %v3634_v45 = vsub.f32 %v3602_v7, %v3618_v22  ;;  %v3600_v18 = vmul.f32 %v9204_v30, %v9198_v23  ;;  %v3633_v25 = vsub.f32 %v3601_v34, %v3617_v41  ;;  %v9343_v22 = vld [vmem:[%s7182_s25 + $0x228] sm:$0xff]  ;;  %v5591_v34 = vld [vmem:[%s7188_s18 + $0x238] sm:$0xff] }
 0xa4e   : > { %3722 = vmatprep.subr.mxu0 %v10905_v17  ;;  %v3651_v50 = vadd.f32 %v5595_v24, %v3635_v2  ;;  %v3614_v35 = vmul.f32 %v9331_v16, %v9192_v48  ;;  %v9340_v24 = vld [vmem:[%s7176_s8 + $0x228] sm:$0xff]  ;;  %v3613_v58 = vmul.f32 %v9343_v22, %v9188_v40  ;;  %v3598_v41 = vmul.f32 %v9328_v63, %v9190_v1 }
 0xa4f   : > { %3723 = vmatpush1.msra.mxu0 %v3654_v37  ;;  %v3615_v37 = vmul.f32 %v9319_v32, %v9196_v49  ;;  %v3632_v23 = vsub.f32 %v3600_v18, %v3616_v44  ;;  %v3650_v30 = vadd.f32 %v5594_v20, %v3634_v45  ;;  %v3649_v2 = vadd.f32 %v5593_v55, %v3633_v25  ;;  %v9355_v44 = vld [vmem:[%s7182_s25 + $0x220] sm:$0xff]  ;;  %v9364_v18 = vld [vmem:[%s7176_s8 + $0x218] sm:$0xff] }
 0xa50   : > { %3724 = vmatprep.subr.mxu0 %v10905_v17  ;;  %11069 = vst [vmem:[#allocation56_spill] sm:$0xff] %v9355_v44  ;;  %v3612_v45 = vmul.f32 %v9355_v44, %v9184_v31  ;;  %v3630_v20 = vsub.f32 %v3598_v41, %v3614_v35  ;;  %v9367_v25 = vld [vmem:[%s7182_s25 + $0x218] sm:$0xff]  ;;  %v5589_v41 = vld [vmem:[%s7188_s18 + $0x228] sm:$0xff] }
 0xa51   : > { %3725 = vmatpush1.msra.mxu0 %v3653_v52  ;;  %v3631_v7 = vsub.f32 %v3599_v59, %v3615_v37  ;;  %v9352_v52 = vld [vmem:[%s7176_s8 + $0x220] sm:$0xff]  ;;  %v3648_v37 = vadd.f32 %v5592_v28, %v3632_v23  ;;  %11070 = vst [vmem:[#allocation42_spill] sm:$0xff] %v9367_v25  ;;  %v3611_v55 = vmul.f32 %v9367_v25, %v9180_v61  ;;  %v9376_v23 = vld [vmem:[%s7176_s8 + $0x210] sm:$0xff] }
 0xa52   : > { %3726 = vmatprep.subr.mxu0 %v10905_v17  ;;  %v3596_v59 = vmul.f32 %v9352_v52, %v9182_v27  ;;  %v9379_v28 = vld [vmem:[%s7182_s25 + $0x210] sm:$0xff]  ;;  %v3595_v25 = vmul.f32 %v9364_v18, %v9178_v36 }
 0xa53   : > { %3727 = vmatpush1.msra.mxu0 %v3652_v12  ;;  %v3597_v12 = vmul.f32 %v9340_v24, %v9186_v56  ;;  %v3647_v35 = vadd.f32 %v5591_v34, %v3631_v7  ;;  %11071 = vst [vmem:[#allocation54_spill] sm:$0xff] %v9379_v28  ;;  %v9388_v7 = vld [vmem:[%s7176_s8 + $0x208] sm:$0xff] }
 0xa54   : > { %3728 = vmatprep.subr.mxu0 %v10905_v17  ;;  %v3628_v44 = vsub.f32 %v3596_v59, %v3612_v45  ;;  %v9391_v34 = vld [vmem:[%s7182_s25 + $0x208] sm:$0xff]  ;;  %v9400_v45 = vld [vmem:[%s7176_s8 + $0x200] sm:$0xff] }
 0xa55   : > { %3729 = vmatpush1.msra.mxu0 %v3651_v50  ;;  %v5590_v50 = vld [vmem:[%s7188_s18 + $0x230] sm:$0xff]  ;;  %11072 = vst [vmem:[#allocation44_spill] sm:$0xff] %v9391_v34 }
 0xa56   : > { %3730 = vmatprep.subr.mxu0 %v10905_v17 }
 0xa57   : > { %3731 = vmatpush1.msra.mxu0 %v3650_v30  ;;  %v3629_v30 = vsub.f32 %v3597_v12, %v3613_v58  ;;  %v3646_v58 = vadd.f32 %v5590_v50, %v3630_v20  ;;  %v5588_v12 = vld [vmem:[%s7188_s18 + $0x220] sm:$0xff]  ;;  %v5587_v50 = vld [vmem:[%s7188_s18 + $0x218] sm:$0xff] }
 0xa58   : > { %3732 = vmatprep.subr.mxu0 %v10905_v17  ;;  %v9403_v20 = vld [vmem:[%s7182_s25 + $0x200] sm:$0xff] }
 0xa59   : > { %3733 = vmatpush1.msra.mxu0 %v3649_v2  ;;  %v3610_v2 = vmul.f32 %v9379_v28, %v9176_v42  ;;  %v3594_v28 = vmul.f32 %v9376_v23, %v9174_v6  ;;  %v3627_v42 = vsub.f32 %v3595_v25, %v3611_v55  ;;  %v3645_v36 = vadd.f32 %v5589_v41, %v3629_v30  ;;  %v5586_v25 = vld [vmem:[%s7188_s18 + $0x210] sm:$0xff] }
 0xa5a   : > { %3734 = vmatprep.subr.mxu0 %v10905_v17  ;;  %11073 = vst [vmem:[#allocation52_spill] sm:$0xff] %v9403_v20  ;;  %v3608_v59 = vmul.f32 %v9403_v20, %v9168_v10  ;;  %v3644_v6 = vadd.f32 %v5588_v12, %v3628_v44  ;;  %v3592_v55 = vmul.f32 %v9400_v45, %v9166_v47  ;;  %v5585_v20 = vld [vmem:[%s7188_s18 + $0x208] sm:$0xff]  ;;  %v5584_v12 = vld [vmem:[%s7188_s18 + $0x200] sm:$0xff] }
 0xa5b   : > { %3735 = vmatpush1.msra.mxu0 %v3648_v37  ;;  %v3609_v37 = vmul.f32 %v9391_v34, %v9172_v39  ;;  %v3626_v34 = vsub.f32 %v3594_v28, %v3610_v2  ;;  %v3687_v41 = vmul.f32 %v9250_v46, %v9263_v9  ;;  %v3671_v44 = vmul.f32 %v9261_v26, %v9247_v38 }
 0xa5c   : > { %3736 = vmatprep.subr.mxu0 %v10905_v17  ;;  %v3624_v28 = vsub.f32 %v3592_v55, %v3608_v59  ;;  %v3669_v38 = vmul.f32 %v9258_v8, %v9233_v54  ;;  %v3682_v54 = vmul.f32 %v9296_v29, %v9223_v0  ;;  %v11075_v8 = vld [vmem:[#allocation45_spill] sm:$0xff]  ;;  %v5611_v55 = vld [vmem:[%s7190_s13 + $0x258] sm:$0xff] }
 0xa5d   : > { %3737 = vmatpush1.msra.mxu0 %v3647_v35  ;;  %v3593_v35 = vmul.f32 %v9388_v7, %v9170_v5  ;;  %v3642_v2 = vadd.f32 %v5586_v25, %v3626_v34  ;;  %v3703_v46 = vadd.f32 %v3687_v41, %v3671_v44  ;;  %v5608_v44 = vld [vmem:[%s7190_s13 + $0x240] sm:$0xff] }
 0xa5e   : > { %3738 = vmatprep.subr.mxu0 %v10905_v17 }
 0xa5f   : > { %3739 = vmatpush1.msra.mxu0 %v3646_v58  ;;  %v3625_v30 = vsub.f32 %v3593_v35, %v3609_v37  ;;  %v3643_v58 = vadd.f32 %v5587_v50, %v3627_v42  ;;  %v3670_v42 = vmul.f32 %v9245_v15, %v9237_v14  ;;  %v3683_v14 = vmul.f32 %v9285_v21, %v9227_v3  ;;  %v11074_v15 = vld [vmem:[#allocation53_spill] sm:$0xff]  ;;  %v5612_v3 = vld [vmem:[%s7190_s13 + $0x260] sm:$0xff] }
 0xa60   : > { %3740 = vmatprep.subr.mxu0 %v10905_v17  ;;  %v3668_v34 = vmul.f32 %v11074_v15, %v9229_v43  ;;  %v11076_v43 = vld [vmem:[#allocation50_spill] sm:$0xff] }
 0xa61   : > { %3741 = vmatpush1.msra.mxu0 %v3645_v36  ;;  %v3686_v36 = vmul.f32 %v9242_v4, %v9239_v33  ;;  %v3641_v9 = vadd.f32 %v5585_v20, %v3625_v30  ;;  %v5615_v33 = vld [vmem:[%s7190_s13 + $0x278] sm:$0xff]  ;;  %v3684_v4 = vmul.f32 %v9274_v51, %v9231_v13  ;;  %v5613_v13 = vld [vmem:[%s7190_s13 + $0x268] sm:$0xff]  ;;  %v3667_v51 = vmul.f32 %v11075_v8, %v9225_v57  ;;  %v5610_v57 = vld [vmem:[%s7190_s13 + $0x250] sm:$0xff] }
 0xa62   : > { %3742 = vmatprep.subr.mxu0 %v10905_v17  ;;  %v3719_v20 = vadd.f32 %v5615_v33, %v3703_v46  ;;  %v3666_v21 = vmul.f32 %v11076_v43, %v9219_v62  ;;  %v3679_v30 = vmul.f32 %v9316_v11, %v9196_v49  ;;  %v5609_v62 = vld [vmem:[%s7190_s13 + $0x248] sm:$0xff]  ;;  %v3677_v49 = vmul.f32 %v9340_v24, %v9188_v40  ;;  %v11081_v33 = vld [vmem:[#allocation39_spill] sm:$0xff] }
 0xa63   : > { %3743 = vmatpush1.msra.mxu0 %v3644_v6  ;;  %v3685_v6 = vmul.f32 %v9255_v60, %v9235_v53  ;;  %v3702_v26 = vadd.f32 %v3686_v36, %v3670_v42  ;;  %v3640_v53 = vadd.f32 %v5584_v12, %v3624_v28  ;;  %v5614_v60 = vld [vmem:[%s7190_s13 + $0x270] sm:$0xff]  ;;  %v3700_v50 = vadd.f32 %v3684_v4, %v3668_v34  ;;  %v11077_v12 = vld [vmem:[#allocation43_spill] sm:$0xff]  ;;  %v11079_v24 = vld [vmem:[#allocation56_spill] sm:$0xff] }
 0xa64   : > { %3744 = vmatprep.subr.mxu0 %v10905_v17  ;;  %v3699_v35 = vadd.f32 %v3683_v14, %v3667_v51  ;;  %v3698_v29 = vadd.f32 %v3682_v54, %v3666_v21  ;;  %v3663_v28 = vmul.f32 %v9319_v32, %v9194_v19  ;;  %v3662_v11 = vmul.f32 %v9331_v16, %v9190_v1  ;;  %v11078_v42 = vld [vmem:[#allocation51_spill] sm:$0xff]  ;;  %v5606_v1 = vld [vmem:[%s7190_s13 + $0x230] sm:$0xff]  ;;  %v11082_v4 = vld [vmem:[#allocation42_spill] sm:$0xff] }
 0xa65   : > { %3745 = vmatpush1.msra.mxu0 %v3643_v58  ;;  %v3701_v37 = vadd.f32 %v3685_v6, %v3669_v38  ;;  %v3718_v59 = vadd.f32 %v5614_v60, %v3702_v26  ;;  %v3716_v0 = vadd.f32 %v5612_v3, %v3700_v50  ;;  %v3678_v58 = vmul.f32 %v9328_v63, %v9192_v48  ;;  %v5607_v48 = vld [vmem:[%s7190_s13 + $0x238] sm:$0xff]  ;;  %v11086_v8 = vld [vmem:[#allocation52_spill] sm:$0xff] }
 0xa66   : > { %3746 = vmatprep.subr.mxu0 %v10905_v17  ;;  %v3715_v41 = vadd.f32 %v5611_v55, %v3699_v35  ;;  %v3714_v36 = vadd.f32 %v5610_v57, %v3698_v29  ;;  %v3713_v6 = vadd.f32 %v5609_v62, %v11077_v12  ;;  %v3676_v19 = vmul.f32 %v9352_v52, %v9184_v31  ;;  %v11084_v60 = vld [vmem:[#allocation54_spill] sm:$0xff]  ;;  %v5601_v3 = vld [vmem:[%s7190_s13 + $0x208] sm:$0xff]  ;;  %v6215_v55 = vld [vmem:[#allocation16 + $0xf0] sm:$0xff] }
 0xa67   : > { %3747 = vmatpush1.msra.mxu0 %v3642_v2  ;;  %v3717_v25 = vadd.f32 %v5613_v13, %v3701_v37  ;;  %v3695_v2 = vadd.f32 %v3679_v30, %v3663_v28  ;;  %v3661_v32 = vmul.f32 %v9343_v22, %v9186_v56  ;;  %v3694_v63 = vadd.f32 %v3678_v58, %v3662_v11  ;;  %v5605_v56 = vld [vmem:[%s7190_s13 + $0x228] sm:$0xff]  ;;  %v11080_v22 = vld [vmem:[#allocation41_spill] sm:$0xff]  ;;  %v5603_v34 = vld [vmem:[%s7190_s13 + $0x218] sm:$0xff] }
 0xa68   : > { %3748 = vmatprep.subr.mxu0 %v10905_v17  ;;  %v3712_v40 = vadd.f32 %v5608_v44, %v11078_v42  ;;  %v3675_v16 = vmul.f32 %v9364_v18, %v9180_v61  ;;  %v3660_v46 = vmul.f32 %v11079_v24, %v9182_v27  ;;  %v3674_v52 = vmul.f32 %v9376_v23, %v11080_v22  ;;  %v5604_v61 = vld [vmem:[%s7190_s13 + $0x220] sm:$0xff]  ;;  %v11083_v18 = vld [vmem:[#allocation49_spill] sm:$0xff]  ;;  %v6213_v35 = vld [vmem:[#allocation16 + $0xf8] sm:$0xff] }
 0xa69   : > { %3749 = vmatpush1.msra.mxu0 %v3641_v9  ;;  %v3693_v9 = vadd.f32 %v3677_v49, %v3661_v32  ;;  %v3711_v31 = vadd.f32 %v5607_v48, %v3695_v2  ;;  %v3659_v38 = vmul.f32 %v11082_v4, %v11081_v33  ;;  %v3673_v27 = vmul.f32 %v9388_v7, %v9172_v39  ;;  %v5602_v7 = vld [vmem:[%s7190_s13 + $0x210] sm:$0xff]  ;;  %v6216_v29 = vld [vmem:[#allocation16 + $0xe8] sm:$0xff]  ;;  %v6219_v30 = vld [vmem:[#allocation16 + $0xd8] sm:$0xff] }
 0xa6a   : > { %3750 = vmatprep.subr.mxu0 %v10905_v17  ;;  %v3692_v26 = vadd.f32 %v3676_v19, %v3660_v46  ;;  %v3658_v14 = vmul.f32 %v11084_v60, %v11083_v18  ;;  %v3672_v37 = vmul.f32 %v9400_v45, %v9168_v10  ;;  %v3656_v51 = vmul.f32 %v11086_v8, %v9166_v47  ;;  %v9511_v47 = vld [vmem:[#allocation15] sm:$0xff]  ;;  %v9517_v57 = vld [vmem:[#allocation15 + $0x10] sm:$0xff]  ;;  %v6222_v58 = vld [vmem:[#allocation16 + $0xc8] sm:$0xff] }
 0xa6b   : > { %3751 = vmatpush1.msra.mxu0 %v3640_v53  ;;  %v3710_v53 = vadd.f32 %v5606_v1, %v3694_v63  ;;  %v3691_v15 = vadd.f32 %v3675_v16, %v3659_v38  ;;  %v3709_v23 = vadd.f32 %v5605_v56, %v3693_v9  ;;  %11087 = vst [vmem:[#allocation46_spill] sm:$0xff] %v9511_v47  ;;  %11089 = vst [vmem:[#allocation47_spill] sm:$0xff] %v9517_v57  ;;  %v6221_v62 = vld [vmem:[#allocation16 + $0xd0] sm:$0xff]  ;;  %v6223_v28 = vld [vmem:[#allocation16 + $0xc0] sm:$0xff] }
 0xa6c   : > { %3752 = vmatprep.subr.mxu0 %v10905_v17  ;;  %v3690_v54 = vadd.f32 %v3674_v52, %v3658_v14  ;;  %v3708_v39 = vadd.f32 %v5604_v61, %v3692_v26  ;;  %v3688_v10 = vadd.f32 %v3672_v37, %v3656_v51  ;;  %v6225_v44 = vld [vmem:[#allocation16 + $0xb8] sm:$0xff]  ;;  %v6227_v11 = vld [vmem:[#allocation16 + $0xb0] sm:$0xff]  ;;  %v6228_v2 = vld [vmem:[#allocation16 + $0xa8] sm:$0xff] }
 0xa6d   : > { %3753 = vmatpush2.msra.mxu0 %v3719_v20  ;;  %v11085_v20 = vld [vmem:[#allocation44_spill] sm:$0xff]  ;;  %v9526_v49 = vld [vmem:[#allocation15 + $0x38] sm:$0xff]  ;;  %v6229_v12 = vld [vmem:[#allocation16 + $0xa0] sm:$0xff] }
 0xa6e   : > { %3754 = vmatprep.subr.mxu0 %v10905_v17  ;;  %v3657_v13 = vmul.f32 %v11085_v20, %v9170_v5  ;;  %v3706_v45 = vadd.f32 %v5602_v7, %v3690_v54  ;;  %v5600_v5 = vld [vmem:[%s7190_s13 + $0x200] sm:$0xff]  ;;  %11092 = vst [vmem:[#allocation60_spill] sm:$0xff] %v9526_v49  ;;  %v6231_v48 = vld [vmem:[#allocation16 + $0x98] sm:$0xff]  ;;  %v9532_v19 = vld [vmem:[#allocation15 + $0x48] sm:$0xff] }
 0xa6f   : > { %3755 = vmatpush2.msra.mxu0 %v3718_v59  ;;  %v3707_v59 = vadd.f32 %v5603_v34, %v3691_v15  ;;  %v3704_v21 = vadd.f32 %v5600_v5, %v3688_v10  ;;  %11094 = vst [vmem:[#allocation58_spill] sm:$0xff] %v9532_v19  ;;  %v6233_v32 = vld [vmem:[#allocation16 + $0x90] sm:$0xff]  ;;  %v6234_v63 = vld [vmem:[#allocation16 + $0x88] sm:$0xff]  ;;  %v6235_v42 = vld [vmem:[#allocation16 + $0x80] sm:$0xff] }
 0xa70   : > { %3756 = vmatprep.subr.mxu0 %v10905_v17  ;;  %v3689_v50 = vadd.f32 %v3673_v27, %v3657_v13  ;;  %v6237_v1 = vld [vmem:[#allocation16 + $0x78] sm:$0xff]  ;;  %v6239_v24 = vld [vmem:[#allocation16 + $0x70] sm:$0xff]  ;;  %v6240_v46 = vld [vmem:[#allocation16 + $0x68] sm:$0xff] }
 0xa71   : > { %3757 = vmatpush2.msra.mxu0 %v3717_v25  ;;  %v9514_v25 = vld [vmem:[#allocation15 + $0x18] sm:$0xff]  ;;  %v6241_v9 = vld [vmem:[#allocation16 + $0x60] sm:$0xff]  ;;  %v9544_v22 = vld [vmem:[#allocation15 + $0x68] sm:$0xff] }
 0xa72   : > { %3758 = vmatprep.subr.mxu0 %v10905_v17  ;;  %v3705_v43 = vadd.f32 %v5601_v3, %v3689_v50  ;;  %11088 = vst [vmem:[#allocation40_spill] sm:$0xff] %v9514_v25  ;;  %v9538_v16 = vld [vmem:[#allocation15 + $0x58] sm:$0xff]  ;;  %11098 = vst [vmem:[#allocation53_spill] sm:$0xff] %v9544_v22  ;;  %v6245_v52 = vld [vmem:[#allocation16 + $0x50] sm:$0xff] }
 0xa73   : > { %3759 = vmatpush2.msra.mxu0 %v3716_v0  ;;  %v6217_v0 = vld [vmem:[#allocation16 + $0xe0] sm:$0xff]  ;;  %11096 = vst [vmem:[#allocation61_spill] sm:$0xff] %v9538_v16  ;;  %v6243_v56 = vld [vmem:[#allocation16 + $0x58] sm:$0xff]  ;;  %v6246_v33 = vld [vmem:[#allocation16 + $0x48] sm:$0xff] }
 0xa74   : > { %3760 = vmatprep.subr.mxu0 %v10905_v17  ;;  %v6247_v4 = vld [vmem:[#allocation16 + $0x40] sm:$0xff]  ;;  %v6249_v26 = vld [vmem:[#allocation16 + $0x38] sm:$0xff]  ;;  %v6251_v61 = vld [vmem:[#allocation16 + $0x30] sm:$0xff] }
 0xa75   : > { %3761 = vmatpush2.msra.mxu0 %v3715_v41  ;;  %v9520_v41 = vld [vmem:[#allocation15 + $0x28] sm:$0xff]  ;;  %v9547_v38 = vld [vmem:[#allocation15 + $0x60] sm:$0xff]  ;;  %v9553_v60 = vld [vmem:[#allocation15 + $0x70] sm:$0xff] }
 0xa76   : > { %3762 = vmatprep.subr.mxu0 %v10905_v17  ;;  %11090 = vst [vmem:[#allocation55_spill] sm:$0xff] %v9520_v41  ;;  %11099 = vst [vmem:[#allocation45_spill] sm:$0xff] %v9547_v38  ;;  %v6252_v27 = vld [vmem:[#allocation16 + $0x28] sm:$0xff]  ;;  %v6253_v18 = vld [vmem:[#allocation16 + $0x20] sm:$0xff] }
 0xa77   : > { %3763 = vmatpush2.msra.mxu0 %v3714_v36  ;;  %v9523_v36 = vld [vmem:[#allocation15 + $0x20] sm:$0xff]  ;;  %11101 = vst [vmem:[#allocation43_spill] sm:$0xff] %v9553_v60  ;;  %v6255_v14 = vld [vmem:[#allocation16 + $0x18] sm:$0xff]  ;;  %v9556_v15 = vld [vmem:[#allocation15 + $0x88] sm:$0xff] }
 0xa78   : > { %3764 = vmatprep.subr.mxu0 %v10905_v17  ;;  %11091 = vst [vmem:[#allocation57_spill] sm:$0xff] %v9523_v36  ;;  %11102 = vst [vmem:[#allocation51_spill] sm:$0xff] %v9556_v15  ;;  %v6258_v34 = vld [vmem:[#allocation16 + $0x8] sm:$0xff]  ;;  %v6259_v37 = vld [vmem:[#allocation16] sm:$0xff] }
 0xa79   : > { %3765 = vmatpush2.msra.mxu0 %v3713_v6  ;;  %v9529_v6 = vld [vmem:[#allocation15 + $0x30] sm:$0xff]  ;;  %v9559_v20 = vld [vmem:[#allocation15 + $0x80] sm:$0xff]  ;;  %v6261_v13 = vld [vmem:[#allocation16 + $0x1f8] sm:$0xff] }
 0xa7a   : > { %3766 = vmatprep.subr.mxu0 %v10905_v17  ;;  %11093 = vst [vmem:[#allocation59_spill] sm:$0xff] %v9529_v6  ;;  %11103 = vst [vmem:[#allocation56_spill] sm:$0xff] %v9559_v20  ;;  %v9562_v54 = vld [vmem:[#allocation15 + $0x98] sm:$0xff]  ;;  %v6264_v7 = vld [vmem:[#allocation16 + $0x1e8] sm:$0xff] }
 0xa7b   : > { %3767 = vmatpush2.msra.mxu0 %v3712_v40  ;;  %v9535_v40 = vld [vmem:[#allocation15 + $0x40] sm:$0xff]  ;;  %11104 = vst [vmem:[#allocation41_spill] sm:$0xff] %v9562_v54  ;;  %v9565_v51 = vld [vmem:[#allocation15 + $0x90] sm:$0xff]  ;;  %v6267_v50 = vld [vmem:[#allocation16 + $0x1d8] sm:$0xff] }
 0xa7c   : > { %3768 = vmatprep.subr.mxu0 %v10905_v17  ;;  %11095 = vst [vmem:[#allocation63_spill] sm:$0xff] %v9535_v40  ;;  %v6265_v8 = vld [vmem:[#allocation16 + $0x1e0] sm:$0xff]  ;;  %11105 = vst [vmem:[#allocation39_spill] sm:$0xff] %v9565_v51  ;;  %v6269_v3 = vld [vmem:[#allocation16 + $0x1d0] sm:$0xff] }
 0xa7d   : > { %3769 = vmatpush2.msra.mxu0 %v3711_v31  ;;  %v9541_v31 = vld [vmem:[#allocation15 + $0x50] sm:$0xff]  ;;  %v6270_v10 = vld [vmem:[#allocation16 + $0x1c8] sm:$0xff]  ;;  %v9571_v5 = vld [vmem:[#allocation15 + $0xa0] sm:$0xff] }
 0xa7e   : > { %3770 = vmatprep.subr.mxu0 %v10905_v17  ;;  %11097 = vst [vmem:[#allocation62_spill] sm:$0xff] %v9541_v31  ;;  %11107 = vst [vmem:[#allocation49_spill] sm:$0xff] %v9571_v5 }
 0xa7f   : > { %3771 = vmatpush2.msra.mxu0 %v3710_v53  ;;  %v9550_v53 = vld [vmem:[#allocation15 + $0x78] sm:$0xff] }
 0xa80   : > { %3772 = vmatprep.subr.mxu0 %v10905_v17  ;;  %11100 = vst [vmem:[#allocation50_spill] sm:$0xff] %v9550_v53 }
 0xa81   : > { %3773 = vmatpush2.msra.mxu0 %v3709_v23  ;;  %v6257_v23 = vld [vmem:[#allocation16 + $0x10] sm:$0xff] }
 0xa82   : > { %3774 = vmatprep.subr.mxu0 %v10905_v17 }
 0xa83   : > { %3775 = vmatpush2.msra.mxu0 %v3708_v39  ;;  %v6263_v39 = vld [vmem:[#allocation16 + $0x1f0] sm:$0xff] }
 0xa84   : > { %3776 = vmatprep.subr.mxu0 %v10905_v17 }
 0xa85   : > { %3777 = vmatpush2.msra.mxu0 %v3707_v59  ;;  %v9568_v59 = vld [vmem:[#allocation15 + $0xa8] sm:$0xff] }
 0xa86   : > { %3778 = vmatprep.subr.mxu0 %v10905_v17  ;;  %11106 = vst [vmem:[#allocation42_spill] sm:$0xff] %v9568_v59 }
 0xa87   : > { %3779 = vmatpush2.msra.mxu0 %v3706_v45  ;;  %v6271_v45 = vld [vmem:[#allocation16 + $0x1c0] sm:$0xff] }
 0xa88   : > { %3780 = vmatprep.subr.mxu0 %v10905_v17 }
 0xa89   : > { %3781 = vmatpush2.msra.mxu0 %v3705_v43  ;;  %v6273_v43 = vld [vmem:[#allocation16 + $0x1b8] sm:$0xff] }
 0xa8a   : > { %3782 = vmatprep.subr.mxu0 %v10905_v17 }
 0xa8b   : > { %3783 = vmatpush2.msra.mxu0 %v3704_v21  ;;  %v9574_v21 = vld [vmem:[#allocation15 + $0xb8] sm:$0xff] }
 0xa8c   : > { %3785 = vmatmul.mubr.f32.vlgmr.msra.gmra.mxu0 %v9511_v47  ;;  %4527 = vmatprep.subr.mxu0 %v6213_v35  ;;  %11108 = vst [vmem:[#allocation54_spill] sm:$0xff] %v9574_v21  ;;  %v6275_v35 = vld [vmem:[#allocation16 + $0x1b0] sm:$0xff] }
 0xa8d   : > { %3789 = vmatprep.mubr.f32.mxu0 %v9514_v25  ;;  %4528 = vmatpush1.msra.mxu0 %v6215_v55  ;;  %v6276_v55 = vld [vmem:[#allocation16 + $0x1a8] sm:$0xff] }
 0xa8e   : > { %4529 = vmatprep.subr.mxu0 %v6216_v29  ;;  %v6277_v29 = vld [vmem:[#allocation16 + $0x1a0] sm:$0xff] }
 0xa8f   : > { %4530 = vmatpush1.msra.mxu0 %v6217_v0  ;;  %v9577_v0 = vld [vmem:[#allocation15 + $0xb0] sm:$0xff] }
 0xa90   : > { %3790 = vmatmul.mubr.f32.gmra.mxu0 %v9517_v57  ;;  %4531 = vmatprep.subr.mxu0 %v6219_v30  ;;  %11109 = vst [vmem:[#allocation44_spill] sm:$0xff] %v9577_v0  ;;  %v6279_v30 = vld [vmem:[#allocation16 + $0x198] sm:$0xff] }
 0xa91   : > { %3794 = vmatprep.mubr.f32.mxu0 %v9520_v41  ;;  %4532 = vmatpush1.msra.mxu0 %v6221_v62  ;;  %v9580_v62 = vld [vmem:[#allocation15 + $0xc8] sm:$0xff] }
 0xa92   : > { %4533 = vmatprep.subr.mxu0 %v6222_v58  ;;  %11110 = vst [vmem:[#allocation52_spill] sm:$0xff] %v9580_v62  ;;  %v6281_v58 = vld [vmem:[#allocation16 + $0x190] sm:$0xff] }
 0xa93   : > { %4534 = vmatpush1.msra.mxu0 %v6223_v28  ;;  %v6282_v28 = vld [vmem:[#allocation16 + $0x188] sm:$0xff] }
 0xa94   : > { %3795 = vmatmul.mubr.f32.gmra.mxu0 %v9523_v36  ;;  %4535 = vmatprep.subr.mxu0 %v6225_v44  ;;  %v6283_v44 = vld [vmem:[#allocation16 + $0x180] sm:$0xff] }
 0xa95   : > { %3799 = vmatprep.mubr.f32.mxu0 %v9526_v49  ;;  %4536 = vmatpush1.msra.mxu0 %v6227_v11  ;;  %v9583_v11 = vld [vmem:[#allocation15 + $0xc0] sm:$0xff]  ;;  %v9865_v49 = vld [vmem:[%s7182_s25 + $0x2f8] sm:$0xff] }
 0xa96   : > { %4537 = vmatprep.subr.mxu0 %v6228_v2  ;;  %11111 = vst [vmem:[#allocation64_spill] sm:$0xff] %v9583_v11  ;;  %v6285_v2 = vld [vmem:[#allocation16 + $0x178] sm:$0xff] }
 0xa97   : > { %4538 = vmatpush1.msra.mxu0 %v6229_v12  ;;  %v9586_v12 = vld [vmem:[#allocation15 + $0xd8] sm:$0xff] }
 0xa98   : > { %3800 = vmatmul.mubr.f32.gmra.mxu0 %v9529_v6  ;;  %4539 = vmatprep.subr.mxu0 %v6231_v48  ;;  %11112 = vst [vmem:[#allocation65_spill] sm:$0xff] %v9586_v12  ;;  %v6287_v48 = vld [vmem:[#allocation16 + $0x170] sm:$0xff]  ;;  %v9862_v6 = vld [vmem:[%s7182_s25 + $0x2e8] sm:$0xff] }
 0xa99   : > { %3804 = vmatprep.mubr.f32.mxu0 %v9532_v19  ;;  %4540 = vmatpush1.msra.mxu0 %v6233_v32  ;;  %v6288_v32 = vld [vmem:[#allocation16 + $0x168] sm:$0xff]  ;;  %11167 = vst [vmem:[#allocation118_spill] sm:$0xff] %v9862_v6 }
 0xa9a   : > { %4541 = vmatprep.subr.mxu0 %v6234_v63  ;;  %v6289_v63 = vld [vmem:[#allocation16 + $0x160] sm:$0xff]  ;;  %v9859_v19 = vld [vmem:[%s7176_s8 + $0x2e8] sm:$0xff] }
 0xa9b   : > { %4542 = vmatpush1.msra.mxu0 %v6235_v42  ;;  %v9589_v42 = vld [vmem:[#allocation15 + $0xd0] sm:$0xff] }
 0xa9c   : > { %3805 = vmatmul.mubr.f32.gmra.mxu0 %v9535_v40  ;;  %4543 = vmatprep.subr.mxu0 %v6237_v1  ;;  %11113 = vst [vmem:[#allocation66_spill] sm:$0xff] %v9589_v42  ;;  %v6291_v1 = vld [vmem:[#allocation16 + $0x158] sm:$0xff] }
 0xa9d   : > { %3809 = vmatprep.mubr.f32.mxu0 %v9538_v16  ;;  %4544 = vmatpush1.msra.mxu0 %v6239_v24  ;;  %v9592_v24 = vld [vmem:[#allocation15 + $0xe8] sm:$0xff]  ;;  %v9854_v16 = vld [vmem:[%s7176_s8 + $0x2f8] sm:$0xff] }
 0xa9e   : > { %4545 = vmatprep.subr.mxu0 %v6240_v46  ;;  %11114 = vst [vmem:[#allocation67_spill] sm:$0xff] %v9592_v24  ;;  %v6293_v46 = vld [vmem:[#allocation16 + $0x150] sm:$0xff] }
 0xa9f   : > { %4546 = vmatpush1.msra.mxu0 %v6241_v9  ;;  %v6294_v9 = vld [vmem:[#allocation16 + $0x148] sm:$0xff] }
 0xaa0   : > { %3810 = vmatmul.mubr.f32.gmra.mxu0 %v9541_v31  ;;  %4547 = vmatprep.subr.mxu0 %v6243_v56  ;;  %v6295_v56 = vld [vmem:[#allocation16 + $0x140] sm:$0xff] }
 0xaa1   : > { %3814 = vmatprep.mubr.f32.mxu0 %v9544_v22  ;;  %4548 = vmatpush1.msra.mxu0 %v6245_v52  ;;  %v9595_v52 = vld [vmem:[#allocation15 + $0xe0] sm:$0xff]  ;;  %v9849_v22 = vld [vmem:[%s7182_s25 + $0x2f0] sm:$0xff] }
 0xaa2   : > { %4549 = vmatprep.subr.mxu0 %v6246_v33  ;;  %11115 = vst [vmem:[#allocation68_spill] sm:$0xff] %v9595_v52  ;;  %v6297_v33 = vld [vmem:[#allocation16 + $0x138] sm:$0xff]  ;;  %11166 = vst [vmem:[#allocation117_spill] sm:$0xff] %v9849_v22 }
 0xaa3   : > { %4550 = vmatpush1.msra.mxu0 %v6247_v4  ;;  %v9598_v4 = vld [vmem:[#allocation15 + $0xf8] sm:$0xff] }
 0xaa4   : > { %3815 = vmatmul.mubr.f32.gmra.mxu0 %v9547_v38  ;;  %4551 = vmatprep.subr.mxu0 %v6249_v26  ;;  %11116 = vst [vmem:[#allocation69_spill] sm:$0xff] %v9598_v4  ;;  %v6299_v26 = vld [vmem:[#allocation16 + $0x130] sm:$0xff] }
 0xaa5   : > { %3819 = vmatprep.mubr.f32.mxu0 %v9550_v53  ;;  %4552 = vmatpush1.msra.mxu0 %v6251_v61  ;;  %v6300_v61 = vld [vmem:[#allocation16 + $0x128] sm:$0xff] }
 0xaa6   : > { %4553 = vmatprep.subr.mxu0 %v6252_v27  ;;  %v6301_v27 = vld [vmem:[#allocation16 + $0x120] sm:$0xff] }
 0xaa7   : > { %4554 = vmatpush1.msra.mxu0 %v6253_v18  ;;  %v9601_v18 = vld [vmem:[#allocation15 + $0xf0] sm:$0xff] }
 0xaa8   : > { %3820 = vmatmul.mubr.f32.gmra.mxu0 %v9553_v60  ;;  %4555 = vmatprep.subr.mxu0 %v6255_v14  ;;  %11117 = vst [vmem:[#allocation70_spill] sm:$0xff] %v9601_v18  ;;  %v6303_v14 = vld [vmem:[#allocation16 + $0x118] sm:$0xff] }
 0xaa9   : > { %3824 = vmatprep.mubr.f32.mxu0 %v9556_v15  ;;  %4556 = vmatpush1.msra.mxu0 %v6257_v23  ;;  %v9604_v23 = vld [vmem:[#allocation15 + $0x108] sm:$0xff] }
 0xaaa   : > { %4557 = vmatprep.subr.mxu0 %v6258_v34  ;;  %11118 = vst [vmem:[#allocation71_spill] sm:$0xff] %v9604_v23  ;;  %v6305_v34 = vld [vmem:[#allocation16 + $0x110] sm:$0xff] }
 0xaab   : > { %4558 = vmatpush1.msra.mxu0 %v6259_v37  ;;  %v6306_v37 = vld [vmem:[#allocation16 + $0x108] sm:$0xff] }
 0xaac   : > { %3825 = vmatmul.mubr.f32.gmra.mxu0 %v9559_v20  ;;  %4559 = vmatprep.subr.mxu0 %v6261_v13  ;;  %v6307_v13 = vld [vmem:[#allocation16 + $0x100] sm:$0xff] }
 0xaad   : > { %3829 = vmatprep.mubr.f32.mxu0 %v9562_v54  ;;  %4560 = vmatpush2.msra.mxu0 %v6263_v39  ;;  %v9607_v39 = vld [vmem:[#allocation15 + $0x100] sm:$0xff] }
 0xaae   : > { %4561 = vmatprep.subr.mxu0 %v6264_v7  ;;  %11119 = vst [vmem:[#allocation72_spill] sm:$0xff] %v9607_v39  ;;  %v9610_v7 = vld [vmem:[#allocation15 + $0x118] sm:$0xff] }
 0xaaf   : > { %4562 = vmatpush2.msra.mxu0 %v6265_v8  ;;  %11120 = vst [vmem:[#allocation73_spill] sm:$0xff] %v9610_v7  ;;  %v9613_v8 = vld [vmem:[#allocation15 + $0x110] sm:$0xff] }
 0xab0   : > { %3830 = vmatmul.mubr.f32.gmra.mxu0 %v9565_v51  ;;  %4563 = vmatprep.subr.mxu0 %v6267_v50  ;;  %11121 = vst [vmem:[#allocation74_spill] sm:$0xff] %v9613_v8  ;;  %v9616_v50 = vld [vmem:[#allocation15 + $0x128] sm:$0xff] }
 0xab1   : > { %3834 = vmatprep.mubr.f32.mxu0 %v9568_v59  ;;  %4564 = vmatpush2.msra.mxu0 %v6269_v3  ;;  %11122 = vst [vmem:[#allocation75_spill] sm:$0xff] %v9616_v50  ;;  %v9619_v3 = vld [vmem:[#allocation15 + $0x120] sm:$0xff] }
 0xab2   : > { %4565 = vmatprep.subr.mxu0 %v6270_v10  ;;  %11123 = vst [vmem:[#allocation76_spill] sm:$0xff] %v9619_v3  ;;  %v9622_v10 = vld [vmem:[#allocation15 + $0x138] sm:$0xff] }
 0xab3   : > { %4566 = vmatpush2.msra.mxu0 %v6271_v45  ;;  %11124 = vst [vmem:[#allocation77_spill] sm:$0xff] %v9622_v10  ;;  %v9625_v45 = vld [vmem:[#allocation15 + $0x130] sm:$0xff] }
 0xab4   : > { %3835 = vmatmul.mubr.f32.gmra.mxu0 %v9571_v5  ;;  %4567 = vmatprep.subr.mxu0 %v6273_v43  ;;  %11125 = vst [vmem:[#allocation78_spill] sm:$0xff] %v9625_v45  ;;  %v9628_v43 = vld [vmem:[#allocation15 + $0x148] sm:$0xff] }
 0xab5   : > { %3839 = vmatprep.mubr.f32.mxu0 %v9574_v21  ;;  %4568 = vmatpush2.msra.mxu0 %v6275_v35  ;;  %11126 = vst [vmem:[#allocation79_spill] sm:$0xff] %v9628_v43  ;;  %v9631_v35 = vld [vmem:[#allocation15 + $0x140] sm:$0xff]  ;;  %v5625_v21 = vld [vmem:[%s7176_s8 + $0x2c8] sm:$0xff] }
 0xab6   : > { %4569 = vmatprep.subr.mxu0 %v6276_v55  ;;  %11127 = vst [vmem:[#allocation80_spill] sm:$0xff] %v9631_v35  ;;  %v9634_v55 = vld [vmem:[#allocation15 + $0x158] sm:$0xff] }
 0xab7   : > { %4570 = vmatpush2.msra.mxu0 %v6277_v29  ;;  %11128 = vst [vmem:[#allocation81_spill] sm:$0xff] %v9634_v55  ;;  %v9637_v29 = vld [vmem:[#allocation15 + $0x150] sm:$0xff] }
 0xab8   : > { %3840 = vmatmul.mubr.f32.gmra.mxu0 %v9577_v0  ;;  %4571 = vmatprep.subr.mxu0 %v6279_v30  ;;  %11129 = vst [vmem:[#allocation82_spill] sm:$0xff] %v9637_v29  ;;  %v9640_v30 = vld [vmem:[#allocation15 + $0x168] sm:$0xff] }
 0xab9   : > { %3844 = vmatprep.mubr.f32.mxu0 %v9580_v62  ;;  %4572 = vmatpush2.msra.mxu0 %v6281_v58  ;;  %11130 = vst [vmem:[#allocation83_spill] sm:$0xff] %v9640_v30  ;;  %v9643_v58 = vld [vmem:[#allocation15 + $0x160] sm:$0xff]  ;;  %v5641_v62 = vld [vmem:[%s7182_s25 + $0x2c8] sm:$0xff] }
 0xaba   : > { %4573 = vmatprep.subr.mxu0 %v6282_v28  ;;  %11131 = vst [vmem:[#allocation84_spill] sm:$0xff] %v9643_v58  ;;  %v9646_v28 = vld [vmem:[#allocation15 + $0x178] sm:$0xff] }
 0xabb   : > { %4574 = vmatpush2.msra.mxu0 %v6283_v44  ;;  %11132 = vst [vmem:[#allocation85_spill] sm:$0xff] %v9646_v28  ;;  %v9649_v44 = vld [vmem:[#allocation15 + $0x170] sm:$0xff] }
 0xabc   : > { %3845 = vmatmul.mubr.f32.gmra.mxu0 %v9583_v11  ;;  %4575 = vmatprep.subr.mxu0 %v6285_v2  ;;  %11133 = vst [vmem:[#allocation86_spill] sm:$0xff] %v9649_v44  ;;  %v9652_v2 = vld [vmem:[#allocation15 + $0x188] sm:$0xff] }
 0xabd   : > { %3849 = vmatprep.mubr.f32.mxu0 %v9586_v12  ;;  %4576 = vmatpush2.msra.mxu0 %v6287_v48  ;;  %11134 = vst [vmem:[#allocation87_spill] sm:$0xff] %v9652_v2  ;;  %v9655_v48 = vld [vmem:[#allocation15 + $0x180] sm:$0xff] }
 0xabe   : > { %4577 = vmatprep.subr.mxu0 %v6288_v32  ;;  %11135 = vst [vmem:[#allocation88_spill] sm:$0xff] %v9655_v48  ;;  %v9658_v32 = vld [vmem:[#allocation15 + $0x198] sm:$0xff] }
 0xabf   : > { %4578 = vmatpush2.msra.mxu0 %v6289_v63  ;;  %11136 = vst [vmem:[#allocation89_spill] sm:$0xff] %v9658_v32  ;;  %v9661_v63 = vld [vmem:[#allocation15 + $0x190] sm:$0xff] }
 0xac0   : > { %3850 = vmatmul.mubr.f32.gmra.mxu0 %v9589_v42  ;;  %4579 = vmatprep.subr.mxu0 %v6291_v1  ;;  %11137 = vst [vmem:[#allocation90_spill] sm:$0xff] %v9661_v63  ;;  %v9664_v1 = vld [vmem:[#allocation15 + $0x1a8] sm:$0xff]  ;;  %v9808_v42 = vld [vmem:[%s7176_s8 + $0x2c0] sm:$0xff] }
 0xac1   : > { %3854 = vmatprep.mubr.f32.mxu0 %v9592_v24  ;;  %4580 = vmatpush2.msra.mxu0 %v6293_v46  ;;  %11138 = vst [vmem:[#allocation91_spill] sm:$0xff] %v9664_v1  ;;  %v9667_v46 = vld [vmem:[#allocation15 + $0x1a0] sm:$0xff] }
 0xac2   : > { %4581 = vmatprep.subr.mxu0 %v6294_v9  ;;  %11139 = vst [vmem:[#allocation92_spill] sm:$0xff] %v9667_v46  ;;  %v9670_v9 = vld [vmem:[#allocation15 + $0x1b8] sm:$0xff] }
 0xac3   : > { %4582 = vmatpush2.msra.mxu0 %v6295_v56  ;;  %11140 = vst [vmem:[#allocation93_spill] sm:$0xff] %v9670_v9  ;;  %v9673_v56 = vld [vmem:[#allocation15 + $0x1b0] sm:$0xff] }
 0xac4   : > { %3855 = vmatmul.mubr.f32.gmra.mxu0 %v9595_v52  ;;  %4583 = vmatprep.subr.mxu0 %v6297_v33  ;;  %11141 = vst [vmem:[#allocation94_spill] sm:$0xff] %v9673_v56  ;;  %v9676_v33 = vld [vmem:[#allocation15 + $0x1c8] sm:$0xff]  ;;  %v9803_v52 = vld [vmem:[%s7182_s25 + $0x2c0] sm:$0xff] }
 0xac5   : > { %3859 = vmatprep.mubr.f32.mxu0 %v9598_v4  ;;  %4584 = vmatpush2.msra.mxu0 %v6299_v26  ;;  %11142 = vst [vmem:[#allocation95_spill] sm:$0xff] %v9676_v33  ;;  %v9679_v26 = vld [vmem:[#allocation15 + $0x1c0] sm:$0xff] }
 0xac6   : > { %4585 = vmatprep.subr.mxu0 %v6300_v61  ;;  %11143 = vst [vmem:[#allocation96_spill] sm:$0xff] %v9679_v26  ;;  %v9682_v61 = vld [vmem:[#allocation15 + $0x1d8] sm:$0xff] }
 0xac7   : > { %4586 = vmatpush2.msra.mxu0 %v6301_v27  ;;  %11144 = vst [vmem:[#allocation97_spill] sm:$0xff] %v9682_v61  ;;  %v9685_v27 = vld [vmem:[#allocation15 + $0x1d0] sm:$0xff] }
 0xac8   : > { %3860 = vmatmul.mubr.f32.gmra.mxu0 %v9601_v18  ;;  %4587 = vmatprep.subr.mxu0 %v6303_v14  ;;  %11145 = vst [vmem:[#allocation98_spill] sm:$0xff] %v9685_v27  ;;  %v9688_v14 = vld [vmem:[#allocation15 + $0x1e8] sm:$0xff] }
 0xac9   : > { %3864 = vmatprep.mubr.f32.mxu0 %v9604_v23  ;;  %4588 = vmatpush2.msra.mxu0 %v6305_v34  ;;  %11146 = vst [vmem:[#allocation99_spill] sm:$0xff] %v9688_v14  ;;  %v9691_v34 = vld [vmem:[#allocation15 + $0x1e0] sm:$0xff] }
 0xaca   : > { %4589 = vmatprep.subr.mxu0 %v6306_v37  ;;  %11147 = vst [vmem:[#allocation100_spill] sm:$0xff] %v9691_v34  ;;  %v9694_v37 = vld [vmem:[#allocation15 + $0x1f8] sm:$0xff] }
 0xacb   : > { %4590 = vmatpush2.msra.mxu0 %v6307_v13  ;;  %11148 = vst [vmem:[#allocation101_spill] sm:$0xff] %v9694_v37  ;;  %v9697_v13 = vld [vmem:[#allocation15 + $0x1f0] sm:$0xff] }
 0xacc   : > { %3865 = vmatmul.mubr.f32.gmra.mxu0 %v9607_v39  ;;  %11149 = vst [vmem:[#allocation102_spill] sm:$0xff] %v9697_v13 }
 0xacd   : > { %3869 = vmatprep.mubr.f32.mxu0 %v9610_v7  ;;  %v9787_v7 = vld [vmem:[%s7182_s25 + $0x2b8] sm:$0xff] }
 0xad0   : > { %3870 = vmatmul.mubr.f32.gmra.mxu0 %v9613_v8 }
 0xad1   : > { %3874 = vmatprep.mubr.f32.mxu0 %v9616_v50 }
 0xad4   : > { %3875 = vmatmul.mubr.f32.gmra.mxu0 %v9619_v3 }
 0xad5   : > { %3879 = vmatprep.mubr.f32.mxu0 %v9622_v10 }
 0xad8   : > { %3880 = vmatmul.mubr.f32.gmra.mxu0 %v9625_v45 }
 0xad9   : > { %3884 = vmatprep.mubr.f32.mxu0 %v9628_v43 }
 0xadc   : > { %3885 = vmatmul.mubr.f32.gmra.mxu0 %v9631_v35 }
 0xadd   : > { %3889 = vmatprep.mubr.f32.mxu0 %v9634_v55 }
 0xae0   : > { %3890 = vmatmul.mubr.f32.gmra.mxu0 %v9637_v29 }
 0xae1   : > { %3894 = vmatprep.mubr.f32.mxu0 %v9640_v30 }
 0xae4   : > { %3895 = vmatmul.mubr.f32.gmra.mxu0 %v9643_v58 }
 0xae5   : > { %3899 = vmatprep.mubr.f32.mxu0 %v9646_v28 }
 0xae8   : > { %3900 = vmatmul.mubr.f32.gmra.mxu0 %v9649_v44 }
 0xae9   : > { %3904 = vmatprep.mubr.f32.mxu0 %v9652_v2 }
 0xaec   : > { %3905 = vmatmul.mubr.f32.gmra.mxu0 %v9655_v48 }
 0xaed   : > { %3909 = vmatprep.mubr.f32.mxu0 %v9658_v32 }
 0xaf0   : > { %3910 = vmatmul.mubr.f32.gmra.mxu0 %v9661_v63 }
 0xaf1   : > { %3914 = vmatprep.mubr.f32.mxu0 %v9664_v1 }
 0xaf4   : > { %3915 = vmatmul.mubr.f32.gmra.mxu0 %v9667_v46 }
 0xaf5   : > { %3919 = vmatprep.mubr.f32.mxu0 %v9670_v9 }
 0xaf8   : > { %3920 = vmatmul.mubr.f32.gmra.mxu0 %v9673_v56 }
 0xaf9   : > { %3924 = vmatprep.mubr.f32.mxu0 %v9676_v33 }
 0xafc   : > { %3925 = vmatmul.mubr.f32.gmra.mxu0 %v9679_v26 }
 0xafd   : > { %3929 = vmatprep.mubr.f32.mxu0 %v9682_v61 }
 0xb00   : > { %3930 = vmatmul.mubr.f32.gmra.mxu0 %v9685_v27 }
 0xb01   : > { %3934 = vmatprep.mubr.f32.mxu0 %v9688_v14 }
 0xb04   : > { %3935 = vmatmul.mubr.f32.gmra.mxu0 %v9691_v34 }
 0xb05   : > { %3939 = vmatprep.mubr.f32.mxu0 %v9694_v37 }
 0xb08   : > { %3940 = vmatmul.mubr.f32.gmra.mxu0 %v9697_v13 }
 0xb4c   : > { %v3786_v61 = vpop.f32.mrf.mxu0 }
 0xb4e   : > { %v3788_v26 = vpop.f32.mrf.mxu0 }
 0xb50   : > { %v3791_v33 = vpop.f32.mrf.mxu0 }
 0xb52   : > { %v3793_v27 = vpop.f32.mrf.mxu0 }
 0xb54   : > { %v3796_v56 = vpop.f32.mrf.mxu0 }
 0xb56   : > { %v3798_v9 = vpop.f32.mrf.mxu0 }
 0xb58   : > { %v3801_v46 = vpop.f32.mrf.mxu0 }
 0xb5a   : > { %v3803_v14 = vpop.f32.mrf.mxu0 }
 0xb5c   : > { %v3806_v1 = vpop.f32.mrf.mxu0 }
 0xb5e   : > { %v3808_v63 = vpop.f32.mrf.mxu0 }
 0xb60   : > { %v3811_v32 = vpop.f32.mrf.mxu0 }
 0xb62   : > { %v3813_v34 = vpop.f32.mrf.mxu0 }
 0xb64   : > { %v3816_v48 = vpop.f32.mrf.mxu0 }
 0xb66   : > { %v3818_v2 = vpop.f32.mrf.mxu0 }
 0xb68   : > { %v3821_v44 = vpop.f32.mrf.mxu0 }
 0xb6a   : > { %v3823_v37 = vpop.f32.mrf.mxu0 }
 0xb6c   : > { %v3826_v28 = vpop.f32.mrf.mxu0 }
 0xb6e   : > { %v3828_v58 = vpop.f32.mrf.mxu0 }
 0xb70   : > { %v3831_v30 = vpop.f32.mrf.mxu0 }
 0xb72   : > { %v3833_v13 = vpop.f32.mrf.mxu0 }
 0xb74   : > { %v3836_v29 = vpop.f32.mrf.mxu0 }
 0xb76   : > { %v3838_v26 = vpop.f32.mrf.mxu0 }
 0xb78   : > { %v3841_v55 = vpop.f32.mrf.mxu0 }
 0xb7a   : > { %v3843_v27 = vpop.f32.mrf.mxu0 }
 0xb7c   : > { %v3846_v35 = vpop.f32.mrf.mxu0 }
 0xb7e   : > { %v3848_v9 = vpop.f32.mrf.mxu0 }
 0xb80   : > { %v3851_v43 = vpop.f32.mrf.mxu0 }
 0xb82   : > { %v3853_v14 = vpop.f32.mrf.mxu0 }
 0xb84   : > { %v3856_v45 = vpop.f32.mrf.mxu0 }
 0xb86   : > { %v3858_v63 = vpop.f32.mrf.mxu0 }
 0xb88   : > { %v9700_v10 = vpop.f32.mrf.mxu0 }
 0xb8a   : > { %v3863_v34 = vpop.f32.mrf.mxu0 }
 0xb8c   : > { %v3866_v2 = vpop.f32.mrf.mxu0 }
 0xb8d   : > { %4009 = vmatprep.mubr.f32.mxu1 %v3866_v2 }
 0xb8e   : > { %v3868_v37 = vpop.f32.mrf.mxu0  ;;  %4010 = vmatmul.mubr.f32.vlgmr.msra.gmra.mxu1 %v3786_v61 }
 0xb90   : > { %v3871_v58 = vpop.f32.mrf.mxu0 }
 0xb91   : > { %4015 = vmatprep.mubr.f32.mxu1 %v3871_v58 }
 0xb92   : > { %v3873_v13 = vpop.f32.mrf.mxu0  ;;  %4016 = vmatmul.mubr.f32.gmra.mxu1 %v3791_v33 }
 0xb94   : > { %v3876_v26 = vpop.f32.mrf.mxu0 }
 0xb95   : > { %4021 = vmatprep.mubr.f32.mxu1 %v3876_v26 }
 0xb96   : > { %v3878_v27 = vpop.f32.mrf.mxu0  ;;  %4022 = vmatmul.mubr.f32.gmra.mxu1 %v3796_v56 }
 0xb98   : > { %v3881_v9 = vpop.f32.mrf.mxu0 }
 0xb99   : > { %4027 = vmatprep.mubr.f32.mxu1 %v3881_v9 }
 0xb9a   : > { %v3883_v14 = vpop.f32.mrf.mxu0  ;;  %4028 = vmatmul.mubr.f32.gmra.mxu1 %v3801_v46 }
 0xb9c   : > { %v3886_v63 = vpop.f32.mrf.mxu0 }
 0xb9d   : > { %4033 = vmatprep.mubr.f32.mxu1 %v3886_v63 }
 0xb9e   : > { %v3888_v3 = vpop.f32.mrf.mxu0  ;;  %4034 = vmatmul.mubr.f32.gmra.mxu1 %v3806_v1 }
 0xba0   : > { %v3891_v34 = vpop.f32.mrf.mxu0 }
 0xba1   : > { %4039 = vmatprep.mubr.f32.mxu1 %v3891_v34 }
 0xba2   : > { %v3893_v2 = vpop.f32.mrf.mxu0  ;;  %4040 = vmatmul.mubr.f32.gmra.mxu1 %v3811_v32 }
 0xba3   : > { %v5632_v2 = vld [vmem:[%s7182_s25 + $0x280] sm:$0xff] }
 0xba4   : > { %v3896_v61 = vpop.f32.mrf.mxu0 }
 0xba5   : > { %4045 = vmatprep.mubr.f32.mxu1 %v3896_v61 }
 0xba6   : > { %v3898_v37 = vpop.f32.mrf.mxu0  ;;  %4046 = vmatmul.mubr.f32.gmra.mxu1 %v3816_v48 }
 0xba8   : > { %v3901_v33 = vpop.f32.mrf.mxu0 }
 0xba9   : > { %4051 = vmatprep.mubr.f32.mxu1 %v3901_v33 }
 0xbaa   : > { %v3903_v58 = vpop.f32.mrf.mxu0  ;;  %4052 = vmatmul.mubr.f32.gmra.mxu1 %v3821_v44 }
 0xbac   : > { %v3906_v56 = vpop.f32.mrf.mxu0 }
 0xbad   : > { %4057 = vmatprep.mubr.f32.mxu1 %v3906_v56  ;;  %v5617_v56 = vld [vmem:[%s7176_s8 + $0x288] sm:$0xff] }
 0xbae   : > { %v3908_v13 = vpop.f32.mrf.mxu0  ;;  %4058 = vmatmul.mubr.f32.gmra.mxu1 %v3826_v28 }
 0xbaf   : > { %v5633_v13 = vld [vmem:[%s7182_s25 + $0x288] sm:$0xff] }
 0xbb0   : > { %v3911_v46 = vpop.f32.mrf.mxu0 }
 0xbb1   : > { %4063 = vmatprep.mubr.f32.mxu1 %v3911_v46 }
 0xbb2   : > { %v3913_v3 = vpop.f32.mrf.mxu0  ;;  %4064 = vmatmul.mubr.f32.gmra.mxu1 %v3831_v30 }
 0xbb4   : > { %v3916_v1 = vpop.f32.mrf.mxu0 }
 0xbb5   : > { %4069 = vmatprep.mubr.f32.mxu1 %v3916_v1 }
 0xbb6   : > { %v3918_v26 = vpop.f32.mrf.mxu0  ;;  %4070 = vmatmul.mubr.f32.gmra.mxu1 %v3836_v29 }
 0xbb8   : > { %v3921_v32 = vpop.f32.mrf.mxu0 }
 0xbb9   : > { %4075 = vmatprep.mubr.f32.mxu1 %v3921_v32 }
 0xbba   : > { %v3923_v27 = vpop.f32.mrf.mxu0  ;;  %4076 = vmatmul.mubr.f32.gmra.mxu1 %v3841_v55  ;;  %v11150_v55 = vld [vmem:[#allocation48_spill] sm:$0xff] }
 0xbbc   : > { %v3926_v48 = vpop.f32.mrf.mxu0 }
 0xbbd   : > { %4081 = vmatprep.mubr.f32.mxu1 %v3926_v48 }
 0xbbe   : > { %v3928_v9 = vpop.f32.mrf.mxu0  ;;  %4082 = vmatmul.mubr.f32.gmra.mxu1 %v3846_v35  ;;  %v5616_v35 = vld [vmem:[%s7176_s8 + $0x280] sm:$0xff] }
 0xbbf   : > { %v5618_v9 = vld [vmem:[%s7176_s8 + $0x290] sm:$0xff] }
 0xbc0   : > { %v3931_v44 = vpop.f32.mrf.mxu0 }
 0xbc1   : > { %4087 = vmatprep.mubr.f32.mxu1 %v3931_v44  ;;  %v5634_v44 = vld [vmem:[%s7182_s25 + $0x290] sm:$0xff] }
 0xbc2   : > { %v3933_v28 = vpop.f32.mrf.mxu0  ;;  %4088 = vmatmul.mubr.f32.gmra.mxu1 %v3851_v43 }
 0xbc4   : > { %v3936_v14 = vpop.f32.mrf.mxu0 }
 0xbc5   : > { %4093 = vmatprep.mubr.f32.mxu1 %v3936_v14 }
 0xbc6   : > { %v3938_v30 = vpop.f32.mrf.mxu0  ;;  %4094 = vmatmul.mubr.f32.gmra.mxu1 %v3856_v45 }
 0xbc8   : > { %v3941_v29 = vpop.f32.mrf.mxu0 }
 0xbc9   : > { %4099 = vmatprep.mubr.f32.mxu1 %v3941_v29 }
 0xbca   : > { %v3943_v63 = vpop.f32.mrf.mxu0  ;;  %4100 = vmatmul.mubr.f32.gmra.mxu1 %v9700_v10 }
 0xbcb   : > { %4366 = vmatprep.mubr.f32.mxu1 %v11150_v55 }
 0xc4e   : > { %v4011_v34 = vpop.f32.mrf.mxu1 }
 0xc4f   : > { %v9706_v37 = vmul.f32 %v5616_v35, %v4011_v34  ;;  %v4238_v43 = vmul.f32 %v5632_v2, %v4011_v34 }
 0xc50   : > { %v4013_v61 = vpop.f32.mrf.mxu1 }
 0xc51   : > { %11151 = vst [vmem:[#allocation48_spill] sm:$0xff] %v9706_v37  ;;  %v9708_v33 = vmul.f32 %v5632_v2, %v4013_v61  ;;  %v4254_v45 = vmul.f32 %v5616_v35, %v4013_v61  ;;  %v5619_v2 = vld [vmem:[%s7176_s8 + $0x298] sm:$0xff] }
 0xc52   : > { %v4017_v58 = vpop.f32.mrf.mxu1  ;;  %v5635_v61 = vld [vmem:[%s7182_s25 + $0x298] sm:$0xff] }
 0xc53   : > { %11152 = vst [vmem:[#allocation103_spill] sm:$0xff] %v9708_v33  ;;  %v9714_v46 = vadd.f32 %v4254_v45, %v4238_v43  ;;  %v9716_v1 = vmul.f32 %v5617_v56, %v4017_v58  ;;  %v4239_v26 = vmul.f32 %v5633_v13, %v4017_v58 }
 0xc54   : > { %v4019_v3 = vpop.f32.mrf.mxu1 }
 0xc55   : > { %11153 = vst [vmem:[#allocation104_spill] sm:$0xff] %v9714_v46  ;;  %v9718_v32 = vmul.f32 %v5633_v13, %v4019_v3  ;;  %v4255_v27 = vmul.f32 %v5617_v56, %v4019_v3  ;;  %v9878_v46 = vld [vmem:[%s7176_s8 + $0x2e0] sm:$0xff] }
 0xc56   : > { %v4023_v48 = vpop.f32.mrf.mxu1 }
 0xc57   : > { %v9724_v14 = vadd.f32 %v4255_v27, %v4239_v26  ;;  %v9726_v29 = vmul.f32 %v5618_v9, %v4023_v48  ;;  %v4240_v63 = vmul.f32 %v5634_v44, %v4023_v48  ;;  %v5620_v48 = vld [vmem:[%s7176_s8 + $0x2a0] sm:$0xff] }
 0xc58   : > { %v4025_v30 = vpop.f32.mrf.mxu1 }
 0xc59   : > { %11154 = vst [vmem:[#allocation105_spill] sm:$0xff] %v9724_v14  ;;  %v9728_v55 = vmul.f32 %v5634_v44, %v4025_v30  ;;  %v4256_v34 = vmul.f32 %v5618_v9, %v4025_v30  ;;  %v5636_v9 = vld [vmem:[%s7182_s25 + $0x2a0] sm:$0xff] }
 0xc5a   : > { %v4029_v35 = vpop.f32.mrf.mxu1  ;;  %v9881_v14 = vld [vmem:[%s7182_s25 + $0x2e0] sm:$0xff] }
 0xc5b   : > { %v9734_v45 = vadd.f32 %v4256_v34, %v4240_v63  ;;  %v9736_v56 = vmul.f32 %v5619_v2, %v4029_v35  ;;  %v4241_v13 = vmul.f32 %v5635_v61, %v4029_v35  ;;  %11168 = vst [vmem:[#allocation119_spill] sm:$0xff] %v9881_v14 }
 0xc5c   : > { %v4031_v58 = vpop.f32.mrf.mxu1 }
 0xc5d   : > { %11155 = vst [vmem:[#allocation106_spill] sm:$0xff] %v9734_v45  ;;  %v9738_v3 = vmul.f32 %v5635_v61, %v4031_v58  ;;  %v4257_v26 = vmul.f32 %v5619_v2, %v4031_v58  ;;  %v9753_v2 = vld [vmem:[%s7182_s25 + $0x2a8] sm:$0xff]  ;;  %v5663_v45 = vld [vmem:[%s7188_s18 + $0x2f8] sm:$0xff] }
 0xc5e   : > { %v4035_v27 = vpop.f32.mrf.mxu1 }
 0xc5f   : > { %v9744_v30 = vadd.f32 %v4257_v26, %v4241_v13  ;;  %v9746_v34 = vmul.f32 %v5620_v48, %v4035_v27  ;;  %v4242_v10 = vmul.f32 %v5636_v9, %v4035_v27  ;;  %v9760_v13 = vld [vmem:[%s7176_s8 + $0x2a8] sm:$0xff] }
 0xc60   : > { %v4037_v63 = vpop.f32.mrf.mxu1 }
 0xc61   : > { %11156 = vst [vmem:[#allocation107_spill] sm:$0xff] %v9744_v30  ;;  %v9748_v28 = vmul.f32 %v5636_v9, %v4037_v63  ;;  %v4258_v35 = vmul.f32 %v5620_v48, %v4037_v63  ;;  %v9771_v63 = vld [vmem:[%s7182_s25 + $0x2b0] sm:$0xff] }
 0xc62   : > { %v9750_v61 = vpop.f32.mrf.mxu1 }
 0xc63   : > { %v9757_v43 = vadd.f32 %v4258_v35, %v4242_v10  ;;  %v4243_v27 = vmul.f32 %v9753_v2, %v9750_v61  ;;  %v9776_v10 = vld [vmem:[%s7176_s8 + $0x2b0] sm:$0xff] }
 0xc64   : > { %v9762_v26 = vpop.f32.mrf.mxu1 }
 0xc65   : > { %11157 = vst [vmem:[#allocation108_spill] sm:$0xff] %v9757_v43  ;;  %v4259_v48 = vmul.f32 %v9760_v13, %v9762_v26 }
 0xc66   : > { %v9768_v9 = vpop.f32.mrf.mxu1 }
 0xc67   : > { %v9773_v44 = vadd.f32 %v4259_v48, %v4243_v27  ;;  %v4244_v58 = vmul.f32 %v9771_v63, %v9768_v9  ;;  %v9792_v27 = vld [vmem:[%s7176_s8 + $0x2b8] sm:$0xff] }
 0xc68   : > { %v9778_v35 = vpop.f32.mrf.mxu1 }
 0xc69   : > { %11158 = vst [vmem:[#allocation109_spill] sm:$0xff] %v9773_v44  ;;  %v4260_v50 = vmul.f32 %v9776_v10, %v9778_v35 }
 0xc6a   : > { %v9784_v8 = vpop.f32.mrf.mxu1 }
 0xc6b   : > { %v9789_v39 = vadd.f32 %v4260_v50, %v4244_v58  ;;  %v4245_v23 = vmul.f32 %v9787_v7, %v9784_v8 }
 0xc6c   : > { %v9794_v48 = vpop.f32.mrf.mxu1 }
 0xc6d   : > { %11159 = vst [vmem:[#allocation110_spill] sm:$0xff] %v9789_v39  ;;  %v4261_v18 = vmul.f32 %v9792_v27, %v9794_v48 }
 0xc6e   : > { %v9800_v4 = vpop.f32.mrf.mxu1 }
 0xc6f   : > { %v9805_v24 = vadd.f32 %v4261_v18, %v4245_v23  ;;  %v4246_v58 = vmul.f32 %v9803_v52, %v9800_v4 }
 0xc70   : > { %v9810_v50 = vpop.f32.mrf.mxu1 }
 0xc71   : > { %11160 = vst [vmem:[#allocation111_spill] sm:$0xff] %v9805_v24  ;;  %v4262_v12 = vmul.f32 %v9808_v42, %v9810_v50  ;;  %v9889_v24 = vld [vmem:[%s7176_s8 + $0x2d8] sm:$0xff] }
 0xc72   : > { %v9816_v11 = vpop.f32.mrf.mxu1 }
 0xc73   : > { %v9819_v0 = vadd.f32 %v4262_v12, %v4246_v58  ;;  %v4247_v23 = vmul.f32 %v5641_v62, %v9816_v11 }
 0xc74   : > { %v4067_v18 = vpop.f32.mrf.mxu1 }
 0xc75   : > { %11161 = vst [vmem:[#allocation112_spill] sm:$0xff] %v9819_v0  ;;  %v4263_v5 = vmul.f32 %v5625_v21, %v4067_v18  ;;  %v9892_v0 = vld [vmem:[%s7182_s25 + $0x2d8] sm:$0xff] }
 0xc76   : > { %v9823_v59 = vpop.f32.mrf.mxu1  ;;  %11169 = vst [vmem:[#allocation120_spill] sm:$0xff] %v9892_v0 }
 0xc77   : > { %v9825_v51 = vadd.f32 %v4263_v5, %v4247_v23  ;;  %v9846_v23 = vld [vmem:[%s7176_s8 + $0x2f0] sm:$0xff] }
 0xc78   : > { %v9827_v54 = vpop.f32.mrf.mxu1 }
 0xc79   : > { %11162 = vst [vmem:[#allocation113_spill] sm:$0xff] %v9825_v51  ;;  %v5662_v51 = vld [vmem:[%s7188_s18 + $0x2f0] sm:$0xff] }
 0xc7a   : > { %v9829_v20 = vpop.f32.mrf.mxu1 }
 0xc7c   : > { %v9831_v12 = vpop.f32.mrf.mxu1 }
 0xc7e   : > { %v9833_v58 = vpop.f32.mrf.mxu1 }
 0xc7f   : > { %11163 = vst [vmem:[#allocation114_spill] sm:$0xff] %v9833_v58  ;;  %v4186_v33 = vmul.f32 %v9878_v46, %v9833_v58  ;;  %v5659_v58 = vld [vmem:[%s7188_s18 + $0x2d8] sm:$0xff] }
 0xc80   : > { %v9835_v15 = vpop.f32.mrf.mxu1 }
 0xc81   : > { %11164 = vst [vmem:[#allocation115_spill] sm:$0xff] %v9835_v15  ;;  %v4202_v30 = vmul.f32 %v9881_v14, %v9835_v15  ;;  %v9900_v14 = vld [vmem:[%s7176_s8 + $0x2d0] sm:$0xff] }
 0xc82   : > { %v9837_v60 = vpop.f32.mrf.mxu1 }
 0xc83   : > { %11165 = vst [vmem:[#allocation116_spill] sm:$0xff] %v9837_v60  ;;  %v4187_v43 = vmul.f32 %v9859_v19, %v9837_v60  ;;  %v9903_v60 = vld [vmem:[%s7182_s25 + $0x2d0] sm:$0xff] }
 0xc84   : > { %v9839_v53 = vpop.f32.mrf.mxu1 }
 0xc85   : > { %v4203_v41 = vmul.f32 %v9862_v6, %v9839_v53  ;;  %v4201_v6 = vmul.f32 %v9892_v0, %v9831_v12  ;;  %v5660_v0 = vld [vmem:[%s7188_s18 + $0x2e0] sm:$0xff] }
 0xc86   : > { %v9841_v38 = vpop.f32.mrf.mxu1 }
 0xc87   : > { %v4188_v57 = vmul.f32 %v9846_v23, %v9841_v38  ;;  %v4219_v37 = vsub.f32 %v4187_v43, %v4203_v41  ;;  %v4199_v41 = vmul.f32 %v5641_v62, %v4067_v18  ;;  %v5658_v62 = vld [vmem:[%s7188_s18 + $0x2d0] sm:$0xff] }
 0xc88   : > { %v9843_v5 = vpop.f32.mrf.mxu1 }
 0xc89   : > { %v4204_v40 = vmul.f32 %v9849_v22, %v9843_v5 }
 0xc8a   : > { %v9851_v31 = vpop.f32.mrf.mxu1 }
 0xc8b   : > { %v4189_v25 = vmul.f32 %v9854_v16, %v9851_v31  ;;  %v4220_v44 = vsub.f32 %v4188_v57, %v4204_v40  ;;  %v4185_v57 = vmul.f32 %v9889_v24, %v9829_v20  ;;  %v4218_v40 = vsub.f32 %v4186_v33, %v4202_v30 }
 0xc8c   : > { %v9867_v36 = vpop.f32.mrf.mxu1  ;;  %v4198_v33 = vmul.f32 %v9803_v52, %v9810_v50  ;;  %v5657_v52 = vld [vmem:[%s7188_s18 + $0x2c8] sm:$0xff] }
 0xc8d   : > { %v4205_v47 = vmul.f32 %v9865_v49, %v9867_v36  ;;  %v4236_v15 = vadd.f32 %v5662_v51, %v4220_v44  ;;  %v4217_v43 = vsub.f32 %v4185_v57, %v4201_v6  ;;  %v4183_v51 = vmul.f32 %v5625_v21, %v9816_v11 }
 0xc8e   : > { %v4234_v44 = vadd.f32 %v5660_v0, %v4218_v40  ;;  %v4197_v6 = vmul.f32 %v9787_v7, %v9794_v48  ;;  %v4196_v21 = vmul.f32 %v9771_v63, %v9778_v35  ;;  %v4181_v0 = vmul.f32 %v9792_v27, %v9784_v8  ;;  %v5656_v7 = vld [vmem:[%s7188_s18 + $0x2c0] sm:$0xff]  ;;  %v5655_v63 = vld [vmem:[%s7188_s18 + $0x2b8] sm:$0xff]  ;;  %v5650_v40 = vld [vmem:[%s7188_s18 + $0x290] sm:$0xff] }
 0xc8f   : > { %v4221_v39 = vsub.f32 %v4189_v25, %v4205_v47  ;;  %v5661_v47 = vld [vmem:[%s7188_s18 + $0x2e8] sm:$0xff]  ;;  %v4200_v25 = vmul.f32 %v9903_v60, %v9827_v54  ;;  %v4233_v30 = vadd.f32 %v5659_v58, %v4217_v43  ;;  %v4179_v8 = vmul.f32 %v9760_v13, %v9750_v61  ;;  %v5654_v58 = vld [vmem:[%s7188_s18 + $0x2b0] sm:$0xff]  ;;  %v5651_v13 = vld [vmem:[%s7188_s18 + $0x298] sm:$0xff] }
 0xc90   : > { %v4213_v48 = vsub.f32 %v4181_v0, %v4197_v6  ;;  %v4269_v43 = vmul.f32 %v9854_v16, %v9867_v36  ;;  %v11173_v36 = vsub.f32 %v9716_v1, %v9718_v32  ;;  %v11179_v32 = vld [vmem:[#allocation116_spill] sm:$0xff]  ;;  %v11180_v6 = vld [vmem:[#allocation118_spill] sm:$0xff] }
 0xc91   : > { %v4237_v22 = vadd.f32 %v5663_v45, %v4221_v39  ;;  %v4184_v39 = vmul.f32 %v9900_v14, %v9823_v59  ;;  %v4235_v45 = vadd.f32 %v5661_v47, %v4219_v37  ;;  %v4215_v37 = vsub.f32 %v4183_v51, %v4199_v41  ;;  %v5652_v47 = vld [vmem:[%s7188_s18 + $0x2a0] sm:$0xff] }
 0xc92   : > { %v11171_v41 = vsub.f32 %v9736_v56, %v9738_v3  ;;  %v4253_v51 = vmul.f32 %v9865_v49, %v9851_v31  ;;  %v5648_v56 = vld [vmem:[%s7188_s18 + $0x280] sm:$0xff]  ;;  %v4267_v3 = vmul.f32 %v9859_v19, %v9839_v53  ;;  %v11175_v49 = vld [vmem:[#allocation48_spill] sm:$0xff]  ;;  %v4265_v53 = vmul.f32 %v9889_v24, %v9831_v12 }
 0xc93   : > { %4303 = vmatpush1.msra.mxu1 %v4237_v22  ;;  %v4216_v22 = vsub.f32 %v4184_v39, %v4200_v25  ;;  %v4231_v18 = vadd.f32 %v5657_v52, %v4215_v37  ;;  %v11170_v25 = vsub.f32 %v9746_v34, %v9748_v28  ;;  %v11172_v28 = vsub.f32 %v9726_v29, %v9728_v55  ;;  %v11174_v29 = vld [vmem:[#allocation117_spill] sm:$0xff]  ;;  %v11176_v31 = vld [vmem:[#allocation103_spill] sm:$0xff]  ;;  %v11181_v37 = vld [vmem:[#allocation114_spill] sm:$0xff] }
 0xc94   : > { %4304 = vmatprep.subr.mxu1 %v10905_v17  ;;  %v4225_v39 = vadd.f32 %v5651_v13, %v11171_v41  ;;  %v4252_v55 = vmul.f32 %v11174_v29, %v9841_v38  ;;  %v5678_v38 = vld [vmem:[%s7190_s13 + $0x2f0] sm:$0xff]  ;;  %v5676_v24 = vld [vmem:[%s7190_s13 + $0x2e0] sm:$0xff]  ;;  %v4248_v12 = vmul.f32 %v9903_v60, %v9823_v59  ;;  %v5669_v13 = vld [vmem:[%s7190_s13 + $0x2a8] sm:$0xff] }
 0xc95   : > { %4305 = vmatpush1.msra.mxu1 %v4236_v15  ;;  %v4182_v15 = vmul.f32 %v9808_v42, %v9800_v4  ;;  %v4232_v50 = vadd.f32 %v5658_v62, %v4216_v22  ;;  %v4195_v42 = vmul.f32 %v9753_v2, %v9762_v26  ;;  %v4180_v4 = vmul.f32 %v9776_v10, %v9768_v9  ;;  %v5653_v9 = vld [vmem:[%s7188_s18 + $0x2a8] sm:$0xff]  ;;  %v11178_v62 = vld [vmem:[#allocation115_spill] sm:$0xff]  ;;  %v11188_v41 = vld [vmem:[#allocation109_spill] sm:$0xff] }
 0xc96   : > { %4306 = vmatprep.subr.mxu1 %v10905_v17  ;;  %v4229_v26 = vadd.f32 %v5655_v63, %v4213_v48  ;;  %v4226_v57 = vadd.f32 %v5652_v47, %v11170_v25  ;;  %v4224_v34 = vadd.f32 %v5650_v40, %v11172_v28  ;;  %v4285_v22 = vadd.f32 %v4269_v43, %v4253_v51  ;;  %v5675_v63 = vld [vmem:[%s7190_s13 + $0x2d8] sm:$0xff]  ;;  %v5672_v59 = vld [vmem:[%s7190_s13 + $0x2c0] sm:$0xff]  ;;  %v11192_v29 = vld [vmem:[#allocation105_spill] sm:$0xff] }
 0xc97   : > { %4307 = vmatpush1.msra.mxu1 %v4235_v45  ;;  %v4214_v11 = vsub.f32 %v4182_v15, %v4198_v33  ;;  %v4212_v35 = vsub.f32 %v4180_v4, %v4196_v21  ;;  %v4211_v2 = vsub.f32 %v4179_v8, %v4195_v42  ;;  %v5649_v45 = vld [vmem:[%s7188_s18 + $0x288] sm:$0xff]  ;;  %v4268_v33 = vmul.f32 %v9846_v23, %v9843_v5  ;;  %v5679_v5 = vld [vmem:[%s7190_s13 + $0x2f8] sm:$0xff]  ;;  %v11186_v47 = vld [vmem:[#allocation111_spill] sm:$0xff] }
 0xc98   : > { %4308 = vmatprep.subr.mxu1 %v10905_v17  ;;  %v4223_v16 = vadd.f32 %v5649_v45, %v11173_v36  ;;  %v11177_v23 = vsub.f32 %v11175_v49, %v11176_v31  ;;  %v4266_v1 = vmul.f32 %v9878_v46, %v11178_v62  ;;  %v4251_v15 = vmul.f32 %v11180_v6, %v11179_v32  ;;  %v5677_v46 = vld [vmem:[%s7190_s13 + $0x2e8] sm:$0xff]  ;;  %v11187_v25 = vld [vmem:[#allocation110_spill] sm:$0xff]  ;;  %v5668_v40 = vld [vmem:[%s7190_s13 + $0x2a0] sm:$0xff] }
 0xc99   : > { %4309 = vmatpush1.msra.mxu1 %v4234_v44  ;;  %v4230_v27 = vadd.f32 %v5656_v7, %v4214_v11  ;;  %v4228_v10 = vadd.f32 %v5654_v58, %v4212_v35  ;;  %v4227_v61 = vadd.f32 %v5653_v9, %v4211_v2  ;;  %v4284_v19 = vadd.f32 %v4268_v33, %v4252_v55  ;;  %v5673_v35 = vld [vmem:[%s7190_s13 + $0x2c8] sm:$0xff]  ;;  %v5671_v2 = vld [vmem:[%s7190_s13 + $0x2b8] sm:$0xff]  ;;  %v11190_v33 = vld [vmem:[#allocation107_spill] sm:$0xff] }
 0xc9a   : > { %4310 = vmatprep.subr.mxu1 %v10905_v17  ;;  %v4222_v44 = vadd.f32 %v5648_v56, %v11177_v23  ;;  %v4283_v21 = vadd.f32 %v4267_v3, %v4251_v15  ;;  %v4301_v0 = vadd.f32 %v5679_v5, %v4285_v22  ;;  %v4264_v11 = vmul.f32 %v9900_v14, %v9827_v54  ;;  %v5674_v14 = vld [vmem:[%s7190_s13 + $0x2d0] sm:$0xff]  ;;  %v5667_v43 = vld [vmem:[%s7190_s13 + $0x298] sm:$0xff]  ;;  %v11189_v45 = vld [vmem:[#allocation108_spill] sm:$0xff] }
 0xc9b   : > { %4311 = vmatpush1.msra.mxu1 %v4233_v30  ;;  %v11182_v30 = vld [vmem:[#allocation119_spill] sm:$0xff]  ;;  %v4300_v4 = vadd.f32 %v5678_v38, %v4284_v19  ;;  %v4290_v28 = vadd.f32 %v5668_v40, %v11189_v45  ;;  %v4289_v51 = vadd.f32 %v5667_v43, %v11190_v33  ;;  %v5665_v56 = vld [vmem:[%s7190_s13 + $0x288] sm:$0xff]  ;;  %v11191_v36 = vld [vmem:[#allocation106_spill] sm:$0xff] }
 0xc9c   : > { %4312 = vmatprep.subr.mxu1 %v10905_v17  ;;  %v4250_v52 = vmul.f32 %v11182_v30, %v11181_v37  ;;  %v4280_v54 = vadd.f32 %v4264_v11, %v4248_v12  ;;  %v5664_v3 = vld [vmem:[%s7190_s13 + $0x280] sm:$0xff]  ;;  %v4287_v55 = vadd.f32 %v5665_v56, %v11192_v29  ;;  %v11193_v22 = vld [vmem:[#allocation104_spill] sm:$0xff]  ;;  %v11194_v49 = vld [vmem:[#allocation46_spill] sm:$0xff] }
 0xc9d   : > { %4313 = vmatpush1.msra.mxu1 %v4232_v50  ;;  %v11183_v50 = vld [vmem:[#allocation120_spill] sm:$0xff]  ;;  %v4286_v5 = vadd.f32 %v5664_v3, %v11193_v22  ;;  %v11196_v23 = vld [vmem:[#allocation47_spill] sm:$0xff]  ;;  %v11198_v62 = vld [vmem:[#allocation57_spill] sm:$0xff] }
 0xc9e   : > { %4314 = vmatprep.subr.mxu1 %v10905_v17  ;;  %v4249_v7 = vmul.f32 %v11183_v50, %v9829_v20  ;;  %v4282_v42 = vadd.f32 %v4266_v1, %v4250_v52  ;;  %v4296_v60 = vadd.f32 %v5674_v14, %v4280_v54  ;;  %v11195_v31 = vld [vmem:[#allocation40_spill] sm:$0xff]  ;;  %v11200_v32 = vld [vmem:[#allocation59_spill] sm:$0xff]  ;;  %v11201_v6 = vld [vmem:[#allocation58_spill] sm:$0xff] }
 0xc9f   : > { %4315 = vmatpush1.msra.mxu1 %v4231_v18  ;;  %v4299_v18 = vadd.f32 %v5677_v46, %v4283_v21  ;;  %v11199_v1 = vld [vmem:[#allocation60_spill] sm:$0xff]  ;;  %v11202_v15 = vld [vmem:[#allocation63_spill] sm:$0xff]  ;;  %v11204_v19 = vld [vmem:[#allocation62_spill] sm:$0xff] }
 0xca0   : > { %4316 = vmatprep.subr.mxu1 %v10905_v17  ;;  %v4281_v48 = vadd.f32 %v4265_v53, %v4249_v7  ;;  %v4298_v20 = vadd.f32 %v5676_v24, %v4282_v42  ;;  %v11205_v38 = vld [vmem:[#allocation53_spill] sm:$0xff]  ;;  %v11207_v37 = vld [vmem:[#allocation50_spill] sm:$0xff]  ;;  %v11208_v30 = vld [vmem:[#allocation43_spill] sm:$0xff] }
 0xca1   : > { %4317 = vmatpush1.msra.mxu1 %v4230_v27  ;;  %v11184_v27 = vld [vmem:[#allocation113_spill] sm:$0xff]  ;;  %v11209_v52 = vld [vmem:[#allocation51_spill] sm:$0xff]  ;;  %v11210_v21 = vld [vmem:[#allocation56_spill] sm:$0xff] }
 0xca2   : > { %4318 = vmatprep.subr.mxu1 %v10905_v17  ;;  %v4297_v8 = vadd.f32 %v5675_v63, %v4281_v48  ;;  %v4295_v58 = vadd.f32 %v5673_v35, %v11184_v27  ;;  %v11206_v53 = vld [vmem:[#allocation45_spill] sm:$0xff]  ;;  %v11212_v46 = vld [vmem:[#allocation39_spill] sm:$0xff]  ;;  %v11213_v11 = vld [vmem:[#allocation42_spill] sm:$0xff] }
 0xca3   : > { %4319 = vmatpush1.msra.mxu1 %v4229_v26  ;;  %v11185_v26 = vld [vmem:[#allocation112_spill] sm:$0xff]  ;;  %v11214_v50 = vld [vmem:[#allocation49_spill] sm:$0xff]  ;;  %v11215_v7 = vld [vmem:[#allocation54_spill] sm:$0xff] }
 0xca4   : > { %4320 = vmatprep.subr.mxu1 %v10905_v17  ;;  %v4294_v9 = vadd.f32 %v5672_v59, %v11185_v26  ;;  %v11216_v42 = vld [vmem:[#allocation44_spill] sm:$0xff]  ;;  %v11219_v12 = vld [vmem:[#allocation65_spill] sm:$0xff]  ;;  %v11220_v48 = vld [vmem:[#allocation66_spill] sm:$0xff] }
 0xca5   : > { %4321 = vmatpush1.msra.mxu1 %v4228_v10  ;;  %v5670_v10 = vld [vmem:[%s7190_s13 + $0x2b0] sm:$0xff]  ;;  %v11218_v24 = vld [vmem:[#allocation64_spill] sm:$0xff]  ;;  %v11225_v14 = vld [vmem:[#allocation71_spill] sm:$0xff] }
 0xca6   : > { %4322 = vmatprep.subr.mxu1 %v10905_v17  ;;  %v11222_v63 = vld [vmem:[#allocation68_spill] sm:$0xff]  ;;  %v11223_v54 = vld [vmem:[#allocation69_spill] sm:$0xff]  ;;  %v11229_v59 = vld [vmem:[#allocation75_spill] sm:$0xff] }
 0xca7   : > { %4323 = vmatpush1.msra.mxu1 %v4227_v61  ;;  %v4293_v61 = vadd.f32 %v5671_v2, %v11186_v47  ;;  %v11227_v35 = vld [vmem:[#allocation73_spill] sm:$0xff]  ;;  %v11230_v27 = vld [vmem:[#allocation76_spill] sm:$0xff]  ;;  %v11232_v2 = vld [vmem:[#allocation78_spill] sm:$0xff] }
 0xca8   : > { %4324 = vmatprep.subr.mxu1 %v10905_v17  ;;  %v11233_v26 = vld [vmem:[#allocation79_spill] sm:$0xff]  ;;  %v11236_v47 = vld [vmem:[#allocation82_spill] sm:$0xff]  ;;  %v11250_v56 = vld [vmem:[#allocation96_spill] sm:$0xff] }
 0xca9   : > { %4325 = vmatpush1.msra.mxu1 %v4226_v57  ;;  %v4292_v57 = vadd.f32 %v5670_v10, %v11187_v25  ;;  %v11235_v10 = vld [vmem:[#allocation81_spill] sm:$0xff]  ;;  %v11241_v40 = vld [vmem:[#allocation87_spill] sm:$0xff]  ;;  %v11244_v43 = vld [vmem:[#allocation90_spill] sm:$0xff] }
 0xcaa   : > { %4326 = vmatprep.subr.mxu1 %v10905_v17  ;;  %v11239_v25 = vld [vmem:[#allocation85_spill] sm:$0xff]  ;;  %v11245_v45 = vld [vmem:[#allocation91_spill] sm:$0xff]  ;;  %v11248_v33 = vld [vmem:[#allocation94_spill] sm:$0xff] }
 0xcab   : > { %4327 = vmatpush1.msra.mxu1 %v4225_v39  ;;  %v4291_v39 = vadd.f32 %v5669_v13, %v11188_v41  ;;  %v11238_v13 = vld [vmem:[#allocation84_spill] sm:$0xff]  ;;  %v11253_v3 = vld [vmem:[#allocation99_spill] sm:$0xff]  ;;  %v11256_v22 = vld [vmem:[#allocation102_spill] sm:$0xff] }
 0xcac   : > { %4328 = vmatprep.subr.mxu1 %v10905_v17  ;;  %v11242_v41 = vld [vmem:[#allocation88_spill] sm:$0xff] }
 0xcad   : > { %4329 = vmatpush1.msra.mxu1 %v4224_v34  ;;  %v5666_v34 = vld [vmem:[%s7190_s13 + $0x290] sm:$0xff]  ;;  %v11254_v29 = vld [vmem:[#allocation100_spill] sm:$0xff] }
 0xcae   : > { %4330 = vmatprep.subr.mxu1 %v10905_v17 }
 0xcaf   : > { %4331 = vmatpush1.msra.mxu1 %v4223_v16  ;;  %v4288_v16 = vadd.f32 %v5666_v34, %v11191_v36  ;;  %v11247_v34 = vld [vmem:[#allocation93_spill] sm:$0xff] }
 0xcb0   : > { %4332 = vmatprep.subr.mxu1 %v10905_v17  ;;  %v11251_v36 = vld [vmem:[#allocation97_spill] sm:$0xff] }
 0xcb1   : > { %4333 = vmatpush1.msra.mxu1 %v4222_v44  ;;  %v11197_v44 = vld [vmem:[#allocation55_spill] sm:$0xff] }
 0xcb2   : > { %4334 = vmatprep.subr.mxu1 %v10905_v17 }
 0xcb3   : > { %4335 = vmatpush2.msra.mxu1 %v4301_v0  ;;  %v11211_v0 = vld [vmem:[#allocation41_spill] sm:$0xff] }
 0xcb4   : > { %4336 = vmatprep.subr.mxu1 %v10905_v17 }
 0xcb5   : > { %4337 = vmatpush2.msra.mxu1 %v4300_v4  ;;  %v11217_v4 = vld [vmem:[#allocation52_spill] sm:$0xff] }
 0xcb6   : > { %4338 = vmatprep.subr.mxu1 %v10905_v17 }
 0xcb7   : > { %4339 = vmatpush2.msra.mxu1 %v4299_v18  ;;  %v11221_v18 = vld [vmem:[#allocation67_spill] sm:$0xff] }
 0xcb8   : > { %4340 = vmatprep.subr.mxu1 %v10905_v17 }
 0xcb9   : > { %4341 = vmatpush2.msra.mxu1 %v4298_v20  ;;  %v11224_v20 = vld [vmem:[#allocation70_spill] sm:$0xff] }
 0xcba   : > { %4342 = vmatprep.subr.mxu1 %v10905_v17 }
 0xcbb   : > { %4343 = vmatpush2.msra.mxu1 %v4297_v8  ;;  %v11226_v8 = vld [vmem:[#allocation72_spill] sm:$0xff] }
 0xcbc   : > { %4344 = vmatprep.subr.mxu1 %v10905_v17 }
 0xcbd   : > { %4345 = vmatpush2.msra.mxu1 %v4296_v60  ;;  %v11228_v60 = vld [vmem:[#allocation74_spill] sm:$0xff] }
 0xcbe   : > { %4346 = vmatprep.subr.mxu1 %v10905_v17 }
 0xcbf   : > { %4347 = vmatpush2.msra.mxu1 %v4295_v58  ;;  %v11231_v58 = vld [vmem:[#allocation77_spill] sm:$0xff] }
 0xcc0   : > { %4348 = vmatprep.subr.mxu1 %v10905_v17 }
 0xcc1   : > { %4349 = vmatpush2.msra.mxu1 %v4294_v9  ;;  %v11234_v9 = vld [vmem:[#allocation80_spill] sm:$0xff] }
 0xcc2   : > { %4350 = vmatprep.subr.mxu1 %v10905_v17 }
 0xcc3   : > { %4351 = vmatpush2.msra.mxu1 %v4293_v61  ;;  %v11237_v61 = vld [vmem:[#allocation83_spill] sm:$0xff] }
 0xcc4   : > { %4352 = vmatprep.subr.mxu1 %v10905_v17 }
 0xcc5   : > { %4353 = vmatpush2.msra.mxu1 %v4292_v57  ;;  %v11240_v57 = vld [vmem:[#allocation86_spill] sm:$0xff] }
 0xcc6   : > { %4354 = vmatprep.subr.mxu1 %v10905_v17 }
 0xcc7   : > { %4355 = vmatpush2.msra.mxu1 %v4291_v39  ;;  %v11243_v39 = vld [vmem:[#allocation89_spill] sm:$0xff] }
 0xcc8   : > { %4356 = vmatprep.subr.mxu1 %v10905_v17 }
 0xcc9   : > { %4357 = vmatpush2.msra.mxu1 %v4290_v28  ;;  %v11246_v28 = vld [vmem:[#allocation92_spill] sm:$0xff] }
 0xcca   : > { %4358 = vmatprep.subr.mxu1 %v10905_v17 }
 0xccb   : > { %4359 = vmatpush2.msra.mxu1 %v4289_v51  ;;  %v11249_v51 = vld [vmem:[#allocation95_spill] sm:$0xff] }
 0xccc   : > { %4360 = vmatprep.subr.mxu1 %v10905_v17 }
 0xccd   : > { %4361 = vmatpush2.msra.mxu1 %v4288_v16  ;;  %v11252_v16 = vld [vmem:[#allocation98_spill] sm:$0xff] }
 0xcce   : > { %4362 = vmatprep.subr.mxu1 %v10905_v17 }
 0xccf   : > { %4363 = vmatpush2.msra.mxu1 %v4287_v55  ;;  %v11255_v55 = vld [vmem:[#allocation101_spill] sm:$0xff] }
 0xcd0   : > { %4364 = vmatprep.subr.mxu1 %v10905_v17  ;;  %v11203_v17 = vld [vmem:[#allocation61_spill] sm:$0xff] }
 0xcd1   : > { %4365 = vmatpush2.msra.mxu1 %v4286_v5 }
 0xcd2   : > { %4367 = vmatmul.mubr.f32.vlgmr.msra.gmra.mxu1 %v11194_v49 }
 0xcd3   : > { %4371 = vmatprep.mubr.f32.mxu1 %v11195_v31 }
 0xcd6   : > { %4372 = vmatmul.mubr.f32.gmra.mxu1 %v11196_v23 }
 0xcd7   : > { %4376 = vmatprep.mubr.f32.mxu1 %v11197_v44 }
 0xcda   : > { %4377 = vmatmul.mubr.f32.gmra.mxu1 %v11198_v62 }
 0xcdb   : > { %4381 = vmatprep.mubr.f32.mxu1 %v11199_v1 }
 0xcde   : > { %4382 = vmatmul.mubr.f32.gmra.mxu1 %v11200_v32 }
 0xcdf   : > { %4386 = vmatprep.mubr.f32.mxu1 %v11201_v6 }
 0xce2   : > { %4387 = vmatmul.mubr.f32.gmra.mxu1 %v11202_v15 }
 0xce3   : > { %4391 = vmatprep.mubr.f32.mxu1 %v11203_v17 }
 0xce6   : > { %4392 = vmatmul.mubr.f32.gmra.mxu1 %v11204_v19 }
 0xce7   : > { %4396 = vmatprep.mubr.f32.mxu1 %v11205_v38 }
 0xcea   : > { %4397 = vmatmul.mubr.f32.gmra.mxu1 %v11206_v53 }
 0xceb   : > { %4401 = vmatprep.mubr.f32.mxu1 %v11207_v37 }
 0xcee   : > { %4402 = vmatmul.mubr.f32.gmra.mxu1 %v11208_v30 }
 0xcef   : > { %4406 = vmatprep.mubr.f32.mxu1 %v11209_v52 }
 0xcf2   : > { %4407 = vmatmul.mubr.f32.gmra.mxu1 %v11210_v21 }
 0xcf3   : > { %4411 = vmatprep.mubr.f32.mxu1 %v11211_v0 }
 0xcf6   : > { %4412 = vmatmul.mubr.f32.gmra.mxu1 %v11212_v46 }
 0xcf7   : > { %4416 = vmatprep.mubr.f32.mxu1 %v11213_v11 }
 0xcfa   : > { %4417 = vmatmul.mubr.f32.gmra.mxu1 %v11214_v50 }
 0xcfb   : > { %4421 = vmatprep.mubr.f32.mxu1 %v11215_v7 }
 0xcfe   : > { %4422 = vmatmul.mubr.f32.gmra.mxu1 %v11216_v42 }
 0xcff   : > { %4426 = vmatprep.mubr.f32.mxu1 %v11217_v4 }
 0xd02   : > { %4427 = vmatmul.mubr.f32.gmra.mxu1 %v11218_v24 }
 0xd03   : > { %4431 = vmatprep.mubr.f32.mxu1 %v11219_v12 }
 0xd06   : > { %4432 = vmatmul.mubr.f32.gmra.mxu1 %v11220_v48 }
 0xd07   : > { %4436 = vmatprep.mubr.f32.mxu1 %v11221_v18 }
 0xd0a   : > { %4437 = vmatmul.mubr.f32.gmra.mxu1 %v11222_v63 }
 0xd0b   : > { %4441 = vmatprep.mubr.f32.mxu1 %v11223_v54 }
 0xd0e   : > { %4442 = vmatmul.mubr.f32.gmra.mxu1 %v11224_v20 }
 0xd0f   : > { %4446 = vmatprep.mubr.f32.mxu1 %v11225_v14 }
 0xd12   : > { %4447 = vmatmul.mubr.f32.gmra.mxu1 %v11226_v8 }
 0xd13   : > { %4451 = vmatprep.mubr.f32.mxu1 %v11227_v35 }
 0xd16   : > { %4452 = vmatmul.mubr.f32.gmra.mxu1 %v11228_v60 }
 0xd17   : > { %4456 = vmatprep.mubr.f32.mxu1 %v11229_v59 }
 0xd1a   : > { %4457 = vmatmul.mubr.f32.gmra.mxu1 %v11230_v27 }
 0xd1b   : > { %4461 = vmatprep.mubr.f32.mxu1 %v11231_v58 }
 0xd1e   : > { %4462 = vmatmul.mubr.f32.gmra.mxu1 %v11232_v2 }
 0xd1f   : > { %4466 = vmatprep.mubr.f32.mxu1 %v11233_v26 }
 0xd22   : > { %4467 = vmatmul.mubr.f32.gmra.mxu1 %v11234_v9 }
 0xd23   : > { %4471 = vmatprep.mubr.f32.mxu1 %v11235_v10 }
 0xd26   : > { %4472 = vmatmul.mubr.f32.gmra.mxu1 %v11236_v47 }
 0xd27   : > { %4476 = vmatprep.mubr.f32.mxu1 %v11237_v61 }
 0xd2a   : > { %4477 = vmatmul.mubr.f32.gmra.mxu1 %v11238_v13 }
 0xd2b   : > { %4481 = vmatprep.mubr.f32.mxu1 %v11239_v25 }
 0xd2e   : > { %4482 = vmatmul.mubr.f32.gmra.mxu1 %v11240_v57 }
 0xd2f   : > { %4486 = vmatprep.mubr.f32.mxu1 %v11241_v40 }
 0xd32   : > { %4487 = vmatmul.mubr.f32.gmra.mxu1 %v11242_v41 }
 0xd33   : > { %4491 = vmatprep.mubr.f32.mxu1 %v11243_v39 }
 0xd36   : > { %4492 = vmatmul.mubr.f32.gmra.mxu1 %v11244_v43 }
 0xd37   : > { %4496 = vmatprep.mubr.f32.mxu1 %v11245_v45 }
 0xd3a   : > { %4497 = vmatmul.mubr.f32.gmra.mxu1 %v11246_v28 }
 0xd3b   : > { %4501 = vmatprep.mubr.f32.mxu1 %v11247_v34 }
 0xd3e   : > { %4502 = vmatmul.mubr.f32.gmra.mxu1 %v11248_v33 }
 0xd3f   : > { %4506 = vmatprep.mubr.f32.mxu1 %v11249_v51 }
 0xd42   : > { %4507 = vmatmul.mubr.f32.gmra.mxu1 %v11250_v56 }
 0xd43   : > { %4511 = vmatprep.mubr.f32.mxu1 %v11251_v36 }
 0xd46   : > { %4512 = vmatmul.mubr.f32.gmra.mxu1 %v11252_v16 }
 0xd47   : > { %4516 = vmatprep.mubr.f32.mxu1 %v11253_v3 }
 0xd4a   : > { %4517 = vmatmul.mubr.f32.gmra.mxu1 %v11254_v29 }
 0xd4b   : > { %4521 = vmatprep.mubr.f32.mxu1 %v11255_v55 }
 0xd4e   : > { %4522 = vmatmul.mubr.f32.gmra.mxu1 %v11256_v22 }
 0xd92   : > { %v4368_v5 = vpop.f32.mrf.mxu1 }
 0xd94   : > { %v4370_v49 = vpop.f32.mrf.mxu1 }
 0xd96   : > { %v4373_v31 = vpop.f32.mrf.mxu1 }
 0xd98   : > { %v4375_v23 = vpop.f32.mrf.mxu1 }
 0xd9a   : > { %v4378_v44 = vpop.f32.mrf.mxu1 }
 0xd9c   : > { %v4380_v62 = vpop.f32.mrf.mxu1 }
 0xd9e   : > { %v4383_v1 = vpop.f32.mrf.mxu1 }
 0xda0   : > { %v4385_v32 = vpop.f32.mrf.mxu1 }
 0xda2   : > { %v4388_v6 = vpop.f32.mrf.mxu1 }
 0xda4   : > { %v4390_v15 = vpop.f32.mrf.mxu1 }
 0xda6   : > { %v4393_v17 = vpop.f32.mrf.mxu1 }
 0xda8   : > { %v4395_v19 = vpop.f32.mrf.mxu1 }
 0xdaa   : > { %v4398_v38 = vpop.f32.mrf.mxu1 }
 0xdac   : > { %v4400_v53 = vpop.f32.mrf.mxu1 }
 0xdae   : > { %v4403_v37 = vpop.f32.mrf.mxu1 }
 0xdb0   : > { %v4405_v30 = vpop.f32.mrf.mxu1 }
 0xdb2   : > { %v4408_v52 = vpop.f32.mrf.mxu1 }
 0xdb4   : > { %v4410_v21 = vpop.f32.mrf.mxu1 }
 0xdb6   : > { %v4413_v0 = vpop.f32.mrf.mxu1 }
 0xdb8   : > { %v4415_v46 = vpop.f32.mrf.mxu1 }
 0xdba   : > { %v4418_v11 = vpop.f32.mrf.mxu1 }
 0xdbc   : > { %v4420_v50 = vpop.f32.mrf.mxu1 }
 0xdbe   : > { %v4423_v7 = vpop.f32.mrf.mxu1 }
 0xdc0   : > { %v4425_v42 = vpop.f32.mrf.mxu1 }
 0xdc1   : > { %v6349_v42 = vld [vmem:[%s7213_s24 + $0x70] sm:$0xff] }
 0xdc2   : > { %v4428_v4 = vpop.f32.mrf.mxu1 }
 0xdc4   : > { %v4430_v24 = vpop.f32.mrf.mxu1 }
 0xdc5   : > { %v6350_v24 = vld [vmem:[%s7218_s1 + $0x70] sm:$0xff] }
 0xdc6   : > { %v4433_v12 = vpop.f32.mrf.mxu1 }
 0xdc8   : > { %v4435_v48 = vpop.f32.mrf.mxu1 }
 0xdc9   : > { %v6351_v48 = vld [vmem:[%s7213_s24 + $0x68] sm:$0xff] }
 0xdca   : > { %v4438_v18 = vpop.f32.mrf.mxu1 }
 0xdcc   : > { %v4440_v63 = vpop.f32.mrf.mxu1 }
 0xdcd   : > { %v6352_v63 = vld [vmem:[%s7218_s1 + $0x68] sm:$0xff] }
 0xdce   : > { %v10101_v54 = vpop.f32.mrf.mxu1 }
 0xdd0   : > { %v4445_v20 = vpop.f32.mrf.mxu1 }
 0xdd2   : > { %v4448_v14 = vpop.f32.mrf.mxu1 }
 0xdd3   : > { %4591 = vmatprep.mubr.f32.mxu0 %v4448_v14 }
 0xdd4   : > { %v4450_v8 = vpop.f32.mrf.mxu1  ;;  %4592 = vmatmul.mubr.f32.vlgmr.msra.gmra.mxu0 %v4368_v5  ;;  %v6339_v5 = vld [vmem:[%s7213_s24] sm:$0xff] }
 0xdd5   : > { %v4848_v49 = vmul.f32 %v6339_v5, %v6339_v5 }
 0xdd6   : > { %v4453_v35 = vpop.f32.mrf.mxu1 }
 0xdd7   : > { %4597 = vmatprep.mubr.f32.mxu0 %v4453_v35 }
 0xdd8   : > { %v4455_v60 = vpop.f32.mrf.mxu1  ;;  %4598 = vmatmul.mubr.f32.gmra.mxu0 %v4373_v31  ;;  %v6340_v31 = vld [vmem:[%s7218_s1] sm:$0xff] }
 0xdd9   : > { %v4864_v23 = vmul.f32 %v6340_v31, %v6340_v31 }
 0xdda   : > { %v4458_v59 = vpop.f32.mrf.mxu1 }
 0xddb   : > { %4603 = vmatprep.mubr.f32.mxu0 %v4458_v59 }
 0xddc   : > { %v4460_v27 = vpop.f32.mrf.mxu1  ;;  %4604 = vmatmul.mubr.f32.gmra.mxu0 %v4378_v44  ;;  %v6341_v44 = vld [vmem:[%s7213_s24 + $0x8] sm:$0xff] }
 0xddd   : > { %v4849_v62 = vmul.f32 %v6341_v44, %v6341_v44 }
 0xdde   : > { %v4463_v58 = vpop.f32.mrf.mxu1 }
 0xddf   : > { %4609 = vmatprep.mubr.f32.mxu0 %v4463_v58 }
 0xde0   : > { %v4465_v2 = vpop.f32.mrf.mxu1  ;;  %4610 = vmatmul.mubr.f32.gmra.mxu0 %v4383_v1  ;;  %v6342_v1 = vld [vmem:[%s7218_s1 + $0x8] sm:$0xff] }
 0xde1   : > { %v4865_v32 = vmul.f32 %v6342_v1, %v6342_v1  ;;  %v6353_v2 = vld [vmem:[%s7213_s24 + $0x20] sm:$0xff] }
 0xde2   : > { %v4468_v26 = vpop.f32.mrf.mxu1 }
 0xde3   : > { %4615 = vmatprep.mubr.f32.mxu0 %v4468_v26  ;;  %v10110_v15 = vadd.f32 %v4865_v32, %v4849_v62  ;;  %v4852_v26 = vmul.f32 %v6353_v2, %v6353_v2  ;;  %v6365_v32 = vld [vmem:[%s7213_s24 + $0x38] sm:$0xff] }
 0xde4   : > { %v4470_v9 = vpop.f32.mrf.mxu1  ;;  %4616 = vmatmul.mubr.f32.gmra.mxu0 %v4388_v6  ;;  %v10108_v6 = vadd.f32 %v4864_v23, %v4848_v49  ;;  %v6363_v49 = vld [vmem:[%s7213_s24 + $0x40] sm:$0xff] }
 0xde5   : > { %v6354_v9 = vld [vmem:[%s7218_s1 + $0x20] sm:$0xff]  ;;  %v4856_v31 = vmul.f32 %v6363_v49, %v6363_v49  ;;  %vm4905_vm1 = vcmp.eq.f32.partialorder %v10110_v15, inf  ;;  %vm4907_vm3 = vcmp.eq.f32.partialorder %v10110_v15, 0.0 }
 0xde6   : > { %v4473_v10 = vpop.f32.mrf.mxu1  ;;  %5893 = vrsqrt.f32 %v10108_v6  ;;  %v6364_v23 = vld [vmem:[%s7218_s1 + $0x40] sm:$0xff]  ;;  %vm4898_vm0 = vcmp.eq.f32.partialorder %v10108_v6, inf  ;;  %vm4900_vm2 = vcmp.eq.f32.partialorder %v10108_v6, 0.0 }
 0xde7   : > { %4621 = vmatprep.mubr.f32.mxu0 %v4473_v10  ;;  %5895 = vrsqrt.f32 %v10110_v15  ;;  %v4868_v10 = vmul.f32 %v6354_v9, %v6354_v9  ;;  %v4872_v44 = vmul.f32 %v6364_v23, %v6364_v23 }
 0xde8   : > { %v4475_v47 = vpop.f32.mrf.mxu1  ;;  %4622 = vmatmul.mubr.f32.gmra.mxu0 %v4393_v17  ;;  %v6343_v17 = vld [vmem:[%s7213_s24 + $0x10] sm:$0xff] }
 0xde9   : > { %v4850_v19 = vmul.f32 %v6343_v17, %v6343_v17  ;;  %v10167_v62 = vadd.f32 %v4868_v10, %v4852_v26  ;;  %v4855_v17 = vmul.f32 %v6365_v32, %v6365_v32  ;;  %v10197_v26 = vadd.f32 %v4872_v44, %v4856_v31 }
 0xdea   : > { %v4478_v61 = vpop.f32.mrf.mxu1 }
 0xdeb   : > { %4627 = vmatprep.mubr.f32.mxu0 %v4478_v61  ;;  %v6355_v61 = vld [vmem:[%s7213_s24 + $0x60] sm:$0xff]  ;;  %vm4926_vm8 = vcmp.eq.f32.partialorder %v10167_v62, inf  ;;  %vm4928_vm10 = vcmp.eq.f32.partialorder %v10167_v62, 0.0 }
 0xdec   : > { %v4480_v13 = vpop.f32.mrf.mxu1  ;;  %4628 = vmatmul.mubr.f32.gmra.mxu0 %v4398_v38  ;;  %v6344_v38 = vld [vmem:[%s7218_s1 + $0x10] sm:$0xff] }
 0xded   : > { %v4866_v53 = vmul.f32 %v6344_v38, %v6344_v38  ;;  %v4860_v13 = vmul.f32 %v6355_v61, %v6355_v61 }
 0xdee   : > { %v4483_v25 = vpop.f32.mrf.mxu1 }
 0xdef   : > { %4633 = vmatprep.mubr.f32.mxu0 %v4483_v25  ;;  %v6356_v25 = vld [vmem:[%s7218_s1 + $0x60] sm:$0xff] }
 0xdf0   : > { %v4485_v57 = vpop.f32.mrf.mxu1  ;;  %4634 = vmatmul.mubr.f32.gmra.mxu0 %v4403_v37  ;;  %v6345_v37 = vld [vmem:[%s7213_s24 + $0x18] sm:$0xff] }
 0xdf1   : > { %v4851_v30 = vmul.f32 %v6345_v37, %v6345_v37  ;;  %v4876_v57 = vmul.f32 %v6356_v25, %v6356_v25 }
 0xdf2   : > { %v4488_v40 = vpop.f32.mrf.mxu1 }
 0xdf3   : > { %4639 = vmatprep.mubr.f32.mxu0 %v4488_v40  ;;  %v5894_v37 = vpop.eup %5893 }
 0xdf4   : > { %v4490_v41 = vpop.f32.mrf.mxu1  ;;  %4640 = vmatmul.mubr.f32.gmra.mxu0 %v4408_v52  ;;  %v6346_v52 = vld [vmem:[%s7218_s1 + $0x18] sm:$0xff] }
 0xdf5   : > { %v4867_v21 = vmul.f32 %v6346_v52, %v6346_v52  ;;  %v6357_v41 = vld [vmem:[%s7213_s24 + $0x58] sm:$0xff] }
 0xdf6   : > { %v4493_v39 = vpop.f32.mrf.mxu1 }
 0xdf7   : > { %4645 = vmatprep.mubr.f32.mxu0 %v4493_v39  ;;  %v10128_v14 = vadd.f32 %v4867_v21, %v4851_v30  ;;  %v4859_v39 = vmul.f32 %v6357_v41, %v6357_v41  ;;  %v10175_v30 = vadd.f32 %v4876_v57, %v4860_v13  ;;  %v6367_v21 = vld [vmem:[%s7213_s24 + $0x28] sm:$0xff]  ;;  %v4897_v13 = vmul.f32 %v5894_v37, %v10108_v6 }
 0xdf8   : > { %v4495_v43 = vpop.f32.mrf.mxu1  ;;  %4646 = vmatmul.mubr.f32.gmra.mxu0 %v4413_v0  ;;  %v6347_v0 = vld [vmem:[%s7213_s24 + $0x78] sm:$0xff] }
 0xdf9   : > { %v4863_v46 = vmul.f32 %v6347_v0, %v6347_v0  ;;  %v6358_v43 = vld [vmem:[%s7218_s1 + $0x58] sm:$0xff]  ;;  %v4853_v0 = vmul.f32 %v6367_v21, %v6367_v21  ;;  %vm4919_vm6 = vcmp.eq.f32.partialorder %v10128_v14, inf  ;;  %vm4921_vm7 = vcmp.eq.f32.partialorder %v10128_v14, 0.0 }
 0xdfa   : > { %v4498_v45 = vpop.f32.mrf.mxu1 }
 0xdfb   : > { %4651 = vmatprep.mubr.f32.mxu0 %v4498_v45  ;;  %v4875_v45 = vmul.f32 %v6358_v43, %v6358_v43 }
 0xdfc   : > { %v4500_v28 = vpop.f32.mrf.mxu1  ;;  %4652 = vmatmul.mubr.f32.gmra.mxu0 %v4418_v11  ;;  %v6348_v11 = vld [vmem:[%s7218_s1 + $0x78] sm:$0xff] }
 0xdfd   : > { %v4879_v50 = vmul.f32 %v6348_v11, %v6348_v11  ;;  %v6359_v28 = vld [vmem:[%s7213_s24 + $0x50] sm:$0xff]  ;;  %v10177_v52 = vadd.f32 %v4875_v45, %v4859_v39 }
 0xdfe   : > { %v4503_v34 = vpop.f32.mrf.mxu1 }
 0xdff   : > { %4657 = vmatprep.mubr.f32.mxu0 %v4503_v34  ;;  %v10132_v35 = vadd.f32 %v4879_v50, %v4863_v46  ;;  %v4858_v34 = vmul.f32 %v6359_v28, %v6359_v28  ;;  %v6368_v46 = vld [vmem:[%s7218_s1 + $0x28] sm:$0xff] }
 0xe00   : > { %v4505_v33 = vpop.f32.mrf.mxu1  ;;  %4658 = vmatmul.mubr.f32.gmra.mxu0 %v4423_v7  ;;  %v10120_v7 = vadd.f32 %v4866_v53, %v4850_v19  ;;  %v6366_v19 = vld [vmem:[%s7218_s1 + $0x38] sm:$0xff]  ;;  %v4869_v11 = vmul.f32 %v6368_v46, %v6368_v46 }
 0xe01   : > { %v6360_v33 = vld [vmem:[%s7218_s1 + $0x50] sm:$0xff]  ;;  %v4871_v38 = vmul.f32 %v6366_v19, %v6366_v19 }
 0xe02   : > { %v4508_v51 = vpop.f32.mrf.mxu1  ;;  %5897 = vrsqrt.f32 %v10120_v7  ;;  %v10203_v61 = vadd.f32 %v4869_v11, %v4853_v0  ;;  %vm4912_vm4 = vcmp.eq.f32.partialorder %v10120_v7, inf  ;;  %vm4914_vm5 = vcmp.eq.f32.partialorder %v10120_v7, 0.0 }
 0xe03   : > { %4663 = vmatprep.mubr.f32.mxu0 %v4508_v51  ;;  %5899 = vrsqrt.f32 %v10128_v14  ;;  %v4874_v51 = vmul.f32 %v6360_v33, %v6360_v33  ;;  %v10199_v9 = vadd.f32 %v4871_v38, %v4855_v17  ;;  %v4915_v23 = vand.u32 2147483648, %v10120_v7 }
 0xe04   : > { %v4510_v56 = vpop.f32.mrf.mxu1  ;;  %4664 = vmatmul.mubr.f32.gmra.mxu0 %v4428_v4  ;;  %v4862_v4 = vmul.f32 %v6349_v42, %v6349_v42  ;;  %v5896_v42 = vpop.eup %5895  ;;  %v4922_v17 = vand.u32 2147483648, %v10128_v14  ;;  %v4929_v0 = vand.u32 2147483648, %v10167_v62  ;;  %v4936_v11 = vand.u32 2147483648, %v10203_v61 }
 0xe05   : > { %v4904_v25 = vmul.f32 %v5896_v42, %v10110_v15  ;;  %vm4933_vm12 = vcmp.eq.f32.partialorder %v10203_v61, inf  ;;  %vm4935_vm15 = vcmp.eq.f32.partialorder %v10203_v61, 0.0 }
 0xe06   : > { %v4513_v36 = vpop.f32.mrf.mxu1 }
 0xe07   : > { %4669 = vmatprep.mubr.f32.mxu0 %v4513_v36  ;;  %v6361_v36 = vld [vmem:[%s7213_s24 + $0x48] sm:$0xff] }
 0xe08   : > { %v4515_v16 = vpop.f32.mrf.mxu1  ;;  %4670 = vmatmul.mubr.f32.gmra.mxu0 %v4433_v12  ;;  %v4878_v12 = vmul.f32 %v6350_v24, %v6350_v24 }
 0xe09   : > { %v4857_v16 = vmul.f32 %v6361_v36, %v6361_v36 }
 0xe0a   : > { %v4518_v3 = vpop.f32.mrf.mxu1  ;;  %v10139_v27 = vadd.f32 %v4878_v12, %v4862_v4  ;;  %v10183_v4 = vadd.f32 %v4874_v51, %v4858_v34  ;;  %v4901_v34 = vand.u32 2147483648, %v10108_v6  ;;  %v4908_v51 = vand.u32 2147483648, %v10110_v15 }
 0xe0b   : > { %4675 = vmatprep.mubr.f32.mxu0 %v4518_v3 }
 0xe0c   : > { %v4520_v29 = vpop.f32.mrf.mxu1  ;;  %4676 = vmatmul.mubr.f32.gmra.mxu0 %v4438_v18  ;;  %v4861_v18 = vmul.f32 %v6351_v48, %v6351_v48 }
 0xe0e   : > { %v4523_v55 = vpop.f32.mrf.mxu1 }
 0xe0f   : > { %4681 = vmatprep.mubr.f32.mxu0 %v4523_v55  ;;  %v5898_v45 = vpop.eup %5897 }
 0xe10   : > { %v4525_v22 = vpop.f32.mrf.mxu1  ;;  %4682 = vmatmul.mubr.f32.gmra.mxu0 %v10101_v54  ;;  %v4877_v54 = vmul.f32 %v6352_v63, %v6352_v63  ;;  %v6369_v63 = vld [vmem:[%s7213_s24 + $0x30] sm:$0xff] }
 0xe11   : > { %v6362_v22 = vld [vmem:[%s7218_s1 + $0x48] sm:$0xff] }
 0xe12   : > { %v10141_v58 = vadd.f32 %v4877_v54, %v4861_v18  ;;  %v4873_v5 = vmul.f32 %v6362_v22, %v6362_v22  ;;  %v4854_v54 = vmul.f32 %v6369_v63, %v6369_v63  ;;  %v4911_v22 = vmul.f32 %v5898_v45, %v10120_v7 }
 0xe14   : > { %v10190_v18 = vadd.f32 %v4873_v5, %v4857_v16  ;;  %v5900_v16 = vpop.eup %5899 }
 0xe15   : > { %v4918_v32 = vmul.f32 %v5900_v16, %v10128_v14 }
 0xe94   : > { %v10126_v20 = vpop.f32.mrf.mxu0 }
 0xe95   : > { %v4688_v60 = vmul.f32 %v10126_v20, %v10126_v20 }
 0xe96   : > { %v10130_v8 = vpop.f32.mrf.mxu0 }
 0xe97   : > { %v4704_v59 = vmul.f32 %v10130_v8, %v10130_v8 }
 0xe98   : > { %v10145_v47 = vpop.f32.mrf.mxu0 }
 0xe99   : > { %v10149_v40 = vadd.f32 %v4704_v59, %v4688_v60  ;;  %v4689_v29 = vmul.f32 %v10145_v47, %v10145_v47  ;;  %v6370_v60 = vld [vmem:[%s7218_s1 + $0x30] sm:$0xff] }
 0xe9a   : > { %v10156_v56 = vpop.f32.mrf.mxu0  ;;  %v4870_v59 = vmul.f32 %v6370_v60, %v6370_v60  ;;  %v4920_v60 = vsel %vm4919_vm6, %v10128_v14, %v4918_v32  ;;  %vm4956_vm6 = vcmp.eq.f32.partialorder %v10197_v26, 0.0 }
 0xe9b   : > { %v4736_v3 = vmax.f32 %v10149_v40, 1e-30  ;;  %v4705_v55 = vmul.f32 %v10156_v56, %v10156_v56  ;;  %vm4768_vm9 = vcmp.lt.f32.partialorder %v10149_v40, 1e-30 }
 0xe9c   : > { %v10169_v1 = vpop.f32.mrf.mxu0  ;;  %v10216_v28 = vadd.f32 %v4870_v59, %v4854_v54 }
 0xe9d   : > { %5901 = vrsqrt.f32 %v4736_v3  ;;  %v10173_v53 = vadd.f32 %v4705_v55, %v4689_v29  ;;  %v4690_v12 = vmul.f32 %v10169_v1, %v10169_v1  ;;  %v4899_v3 = vsel %vm4898_vm0, %v10108_v6, %v4897_v13 }
 0xe9e   : > { %v10181_v50 = vpop.f32.mrf.mxu0  ;;  %5903 = vrsqrt.f32 %v10167_v62  ;;  %v4906_v29 = vsel %vm4905_vm1, %v10110_v15, %v4904_v25  ;;  %v4902_v37 = vsel %vm4900_vm2, %v4901_v34, %v4899_v3  ;;  %v4913_v6 = vsel %vm4912_vm4, %v10120_v7, %v4911_v22 }
 0xe9f   : > { %v4737_v24 = vmax.f32 %v10173_v53, 1e-30  ;;  %v4706_v48 = vmul.f32 %v10181_v50, %v10181_v50  ;;  %v4909_v21 = vsel %vm4907_vm3, %v4908_v51, %v4906_v29  ;;  %vm4769_vm11 = vcmp.lt.f32.partialorder %v10173_v53, 1e-30 }
 0xea0   : > { %v10194_v2 = vpop.f32.mrf.mxu0  ;;  %v4916_v51 = vsel %vm4914_vm5, %v4915_v23, %v4913_v6  ;;  %vm4940_vm13 = vcmp.eq.f32.partialorder %v10216_v28, inf  ;;  %vm4942_vm0 = vcmp.eq.f32.partialorder %v10216_v28, 0.0  ;;  %vm4947_vm1 = vcmp.eq.f32.partialorder %v10199_v9, inf }
 0xea1   : > { %5905 = vrsqrt.f32 %v4737_v24  ;;  %v10201_v10 = vadd.f32 %v4706_v48, %v4690_v12  ;;  %v4691_v39 = vmul.f32 %v10194_v2, %v10194_v2  ;;  %vm4954_vm2 = vcmp.eq.f32.partialorder %v10197_v26, inf }
 0xea2   : > { %v10208_v57 = vpop.f32.mrf.mxu0  ;;  %vm4949_vm5 = vcmp.eq.f32.partialorder %v10199_v9, 0.0 }
 0xea3   : > { %v4738_v41 = vmax.f32 %v10201_v10, 1e-30  ;;  %v4707_v43 = vmul.f32 %v10208_v57, %v10208_v57  ;;  %vm4770_vm14 = vcmp.lt.f32.partialorder %v10201_v10, 1e-30 }
 0xea4   : > { %v10221_v33 = vpop.f32.mrf.mxu0 }
 0xea5   : > { %5907 = vrsqrt.f32 %v4738_v41  ;;  %v10225_v36 = vadd.f32 %v4707_v43, %v4691_v39  ;;  %v4692_v49 = vmul.f32 %v10221_v33, %v10221_v33 }
 0xea6   : > { %v10234_v55 = vpop.f32.mrf.mxu0  ;;  %5909 = vrsqrt.f32 %v10203_v61 }
 0xea7   : > { %v4739_v5 = vmax.f32 %v10225_v36, 1e-30  ;;  %v4708_v31 = vmul.f32 %v10234_v55, %v10234_v55  ;;  %5911 = vrsqrt.f32 %v10216_v28  ;;  %vm4771_vm3 = vcmp.lt.f32.partialorder %v10225_v36, 1e-30 }
 0xea8   : > { %v10246_v44 = vpop.f32.mrf.mxu0 }
 0xea9   : > { %5913 = vrsqrt.f32 %v4739_v5  ;;  %v10251_v19 = vadd.f32 %v4708_v31, %v4692_v49  ;;  %v4693_v15 = vmul.f32 %v10246_v44, %v10246_v44  ;;  %v4923_v31 = vsel %vm4921_vm7, %v4922_v17, %v4920_v60 }
 0xeaa   : > { %v5902_v38 = vpop.eup %5901  ;;  %v10259_v46 = vpop.f32.mrf.mxu0  ;;  %5915 = vrsqrt.f32 %v10199_v9  ;;  %vm4961_vm7 = vcmp.eq.f32.partialorder %v10190_v18, inf }
 0xeab   : > { %v4784_v42 = vmul.f32 %v5902_v38, %v10126_v20  ;;  %v4816_v24 = vmul.f32 %v5902_v38, %v10130_v8  ;;  %v4740_v12 = vmax.f32 %v10251_v19, 1e-30  ;;  %v4709_v48 = vmul.f32 %v10259_v46, %v10259_v46  ;;  %v5904_v20 = vpop.eup %5903 }
 0xeac   : > { %v10273_v63 = vpop.f32.mrf.mxu0  ;;  %v4925_v22 = vmul.f32 %v5904_v20, %v10167_v62  ;;  %vm4772_vm4 = vcmp.lt.f32.partialorder %v10251_v19, 1e-30 }
 0xead   : > { %v4800_v8 = vsel %vm4768_vm9, 1.0, %v4784_v42  ;;  %v4832_v54 = vsel %vm4768_vm9, 0.0, %v4816_v24  ;;  %5917 = vrsqrt.f32 %v4740_v12  ;;  %v10280_v25 = vadd.f32 %v4709_v48, %v4693_v15 }
 0xeae   : > { %v5906_v40 = vpop.eup %5905  ;;  %v5008_v59 = vmul.f32 %v4902_v37, %v4800_v8  ;;  %v5040_v13 = vmul.f32 %v4902_v37, %v4832_v54  ;;  %v10282_v41 = vpop.f32.mrf.mxu0  ;;  %5919 = vrsqrt.f32 %v10197_v26  ;;  %v4694_v45 = vmul.f32 %v10273_v63, %v10273_v63 }
 0xeaf   : > { %v4785_v39 = vmul.f32 %v5906_v40, %v10145_v47  ;;  %v4817_v43 = vmul.f32 %v5906_v40, %v10156_v56  ;;  %v4710_v34 = vmul.f32 %v10282_v41, %v10282_v41  ;;  %v4741_v16 = vmax.f32 %v10280_v25, 1e-30 }
 0xeb0   : > { %5024 = vst [vmem:[%s7213_s24] sm:$0xff] %v5008_v59  ;;  %5056 = vst [vmem:[%s7218_s1] sm:$0xff] %v5040_v13  ;;  %v4943_v47 = vand.u32 2147483648, %v10216_v28  ;;  %v10299_v56 = vpop.f32.mrf.mxu0  ;;  %v4950_v24 = vand.u32 2147483648, %v10199_v9  ;;  %v4927_v10 = vsel %vm4926_vm8, %v10167_v62, %v4925_v22  ;;  %v4957_v62 = vand.u32 2147483648, %v10197_v26 }
 0xeb1   : > { %v4801_v3 = vsel %vm4769_vm11, 1.0, %v4785_v39  ;;  %v4833_v29 = vsel %vm4769_vm11, 0.0, %v4817_v43  ;;  %v10302_v5 = vadd.f32 %v4710_v34, %v4694_v45  ;;  %5921 = vrsqrt.f32 %v4741_v16 }
 0xeb2   : > { %v5908_v7 = vpop.eup %5907  ;;  %v5009_v53 = vmul.f32 %v4909_v21, %v4801_v3  ;;  %v5041_v49 = vmul.f32 %v4909_v21, %v4833_v29  ;;  %v10307_v23 = vpop.f32.mrf.mxu0  ;;  %v4695_v14 = vmul.f32 %v10299_v56, %v10299_v56  ;;  %5923 = vrsqrt.f32 %v10190_v18 }
 0xeb3   : > { %v5910_v32 = vpop.eup %5909  ;;  %v4786_v38 = vmul.f32 %v5908_v7, %v10169_v1  ;;  %v4818_v37 = vmul.f32 %v5908_v7, %v10181_v50  ;;  %v4742_v42 = vmax.f32 %v10302_v5, 1e-30  ;;  %v4711_v17 = vmul.f32 %v10307_v23, %v10307_v23 }
 0xeb4   : > { %5025 = vst [vmem:[%s7213_s24 + $0x8] sm:$0xff] %v5009_v53  ;;  %5057 = vst [vmem:[%s7218_s1 + $0x8] sm:$0xff] %v5041_v49  ;;  %v10321_v21 = vpop.f32.mrf.mxu0  ;;  %v5912_v1 = vpop.eup %5911  ;;  %v4932_v20 = vmul.f32 %v5910_v32, %v10203_v61  ;;  %v4930_v39 = vsel %vm4928_vm10, %v4929_v0, %v4927_v10  ;;  %vm4773_vm8 = vcmp.lt.f32.partialorder %v10280_v25, 1e-30  ;;  %vm4774_vm9 = vcmp.lt.f32.partialorder %v10302_v5, 1e-30 }
 0xeb5   : > { %v4802_v50 = vsel %vm4770_vm14, 1.0, %v4786_v38  ;;  %v4834_v6 = vsel %vm4770_vm14, 0.0, %v4818_v37  ;;  %5925 = vrsqrt.f32 %v4742_v42  ;;  %v10329_v8 = vadd.f32 %v4711_v17, %v4695_v14 }
 0xeb6   : > { %v5914_v12 = vpop.eup %5913  ;;  %v5010_v15 = vmul.f32 %v4916_v51, %v4802_v50  ;;  %v5042_v48 = vmul.f32 %v4916_v51, %v4834_v6  ;;  %v10332_v54 = vpop.f32.mrf.mxu0  ;;  %v4696_v59 = vmul.f32 %v10321_v21, %v10321_v21  ;;  %5927 = vrsqrt.f32 %v10183_v4 }
 0xeb7   : > { %v4787_v60 = vmul.f32 %v5914_v12, %v10194_v2  ;;  %v4819_v40 = vmul.f32 %v5914_v12, %v10208_v57  ;;  %v4712_v13 = vmul.f32 %v10332_v54, %v10332_v54  ;;  %v4939_v2 = vmul.f32 %v5912_v1, %v10216_v28  ;;  %v5916_v45 = vpop.eup %5915 }
 0xeb8   : > { %5026 = vst [vmem:[%s7213_s24 + $0x10] sm:$0xff] %v5010_v15  ;;  %5058 = vst [vmem:[%s7218_s1 + $0x10] sm:$0xff] %v5042_v48  ;;  %v4743_v57 = vmax.f32 %v10329_v8, 1e-30  ;;  %v10350_v43 = vpop.f32.mrf.mxu0  ;;  %v4934_v49 = vsel %vm4933_vm12, %v10203_v61, %v4932_v20  ;;  %v4946_v42 = vmul.f32 %v5916_v45, %v10199_v9  ;;  %v4964_v15 = vand.u32 2147483648, %v10190_v18 }
 0xeb9   : > { %v4803_v34 = vsel %vm4771_vm3, 1.0, %v4787_v60  ;;  %v4835_v51 = vsel %vm4771_vm3, 0.0, %v4819_v40  ;;  %v10352_v16 = vadd.f32 %v4712_v13, %v4696_v59  ;;  %v4937_v12 = vsel %vm4935_vm15, %v4936_v11, %v4934_v49 }
 0xeba   : > { %v5918_v36 = vpop.eup %5917  ;;  %v5011_v3 = vmul.f32 %v4923_v31, %v4803_v34  ;;  %v5043_v29 = vmul.f32 %v4923_v31, %v4835_v51  ;;  %5929 = vrsqrt.f32 %v4743_v57  ;;  %v10356_v0 = vpop.f32.mrf.mxu0  ;;  %v4941_v31 = vsel %vm4940_vm13, %v10216_v28, %v4939_v2 }
 0xebb   : > { %v5920_v22 = vpop.eup %5919  ;;  %v4788_v7 = vmul.f32 %v5918_v36, %v10221_v33  ;;  %v4820_v53 = vmul.f32 %v5918_v36, %v10234_v55  ;;  %v4744_v32 = vmax.f32 %v10352_v16, 1e-30  ;;  %v4697_v33 = vmul.f32 %v10350_v43, %v10350_v43 }
 0xebc   : > { %5027 = vst [vmem:[%s7213_s24 + $0x18] sm:$0xff] %v5011_v3  ;;  %5059 = vst [vmem:[%s7218_s1 + $0x18] sm:$0xff] %v5043_v29  ;;  %v4713_v55 = vmul.f32 %v10356_v0, %v10356_v0  ;;  %v10376_v38 = vpop.f32.mrf.mxu0  ;;  %v4953_v1 = vmul.f32 %v5920_v22, %v10197_v26  ;;  %v4944_v61 = vsel %vm4942_vm0, %v4943_v47, %v4941_v31  ;;  %vm4963_vm10 = vcmp.eq.f32.partialorder %v10190_v18, 0.0 }
 0xebd   : > { %v4804_v37 = vsel %vm4772_vm4, 1.0, %v4788_v7  ;;  %v4836_v19 = vsel %vm4772_vm4, 0.0, %v4820_v53  ;;  %5931 = vrsqrt.f32 %v4744_v32  ;;  %v4698_v48 = vmul.f32 %v10376_v38, %v10376_v38 }
 0xebe   : > { %v5012_v14 = vmul.f32 %v4930_v39, %v4804_v37  ;;  %v5044_v17 = vmul.f32 %v4930_v39, %v4836_v19  ;;  %v10380_v50 = vadd.f32 %v4713_v55, %v4697_v33  ;;  %v10383_v6 = vpop.f32.mrf.mxu0  ;;  %v5922_v10 = vpop.eup %5921  ;;  %v4948_v39 = vsel %vm4947_vm1, %v10199_v9, %v4946_v42 }
 0xebf   : > { %v4714_v20 = vmul.f32 %v10383_v6, %v10383_v6  ;;  %v4789_v60 = vmul.f32 %v5922_v10, %v10246_v44  ;;  %v4821_v40 = vmul.f32 %v5922_v10, %v10259_v46  ;;  %v5924_v13 = vpop.eup %5923  ;;  %5933 = vrsqrt.f32 %v10177_v52 }
 0xec0   : > { %5028 = vst [vmem:[%s7213_s24 + $0x20] sm:$0xff] %v5012_v14  ;;  %5060 = vst [vmem:[%s7218_s1 + $0x20] sm:$0xff] %v5044_v17  ;;  %v4745_v11 = vmax.f32 %v10380_v50, 1e-30  ;;  %v10403_v59 = vpop.f32.mrf.mxu0  ;;  %v4955_v47 = vsel %vm4954_vm2, %v10197_v26, %v4953_v1  ;;  %vm4968_vm11 = vcmp.eq.f32.partialorder %v10183_v4, inf  ;;  %v4951_v55 = vsel %vm4949_vm5, %v4950_v24, %v4948_v39 }
 0xec1   : > { %v10409_v2 = vadd.f32 %v4714_v20, %v4698_v48  ;;  %v4805_v46 = vsel %vm4773_vm8, 1.0, %v4789_v60  ;;  %v4837_v28 = vsel %vm4773_vm8, 0.0, %v4821_v40  ;;  %v4699_v3 = vmul.f32 %v10403_v59, %v10403_v59 }
 0xec2   : > { %v5926_v44 = vpop.eup %5925  ;;  %5935 = vrsqrt.f32 %v4745_v11  ;;  %v10415_v57 = vpop.f32.mrf.mxu0  ;;  %v5013_v25 = vmul.f32 %v4937_v12, %v4805_v46  ;;  %v5045_v45 = vmul.f32 %v4937_v12, %v4837_v28  ;;  %v4958_v37 = vsel %vm4956_vm6, %v4957_v62, %v4955_v47 }
 0xec3   : > { %v4790_v34 = vmul.f32 %v5926_v44, %v10273_v63  ;;  %v4822_v51 = vmul.f32 %v5926_v44, %v10282_v41  ;;  %v4746_v36 = vmax.f32 %v10409_v2, 1e-30  ;;  %v4715_v29 = vmul.f32 %v10415_v57, %v10415_v57  ;;  %v5928_v5 = vpop.eup %5927 }
 0xec4   : > { %v10426_v22 = vpop.f32.mrf.mxu0  ;;  %5029 = vst [vmem:[%s7213_s24 + $0x28] sm:$0xff] %v5013_v25  ;;  %5061 = vst [vmem:[%s7218_s1 + $0x28] sm:$0xff] %v5045_v45  ;;  %v4960_v41 = vmul.f32 %v5924_v13, %v10190_v18  ;;  %5937 = vrsqrt.f32 %v10175_v30  ;;  %vm4970_vm12 = vcmp.eq.f32.partialorder %v10183_v4, 0.0  ;;  %vm4775_vm13 = vcmp.lt.f32.partialorder %v10329_v8, 1e-30 }
 0xec5   : > { %v4806_v7 = vsel %vm4774_vm9, 1.0, %v4790_v34  ;;  %v4838_v63 = vsel %vm4774_vm9, 0.0, %v4822_v51  ;;  %5939 = vrsqrt.f32 %v4746_v36  ;;  %v10433_v32 = vadd.f32 %v4715_v29, %v4699_v3 }
 0xec6   : > { %v5014_v53 = vmul.f32 %v4944_v61, %v4806_v7  ;;  %v5046_v49 = vmul.f32 %v4944_v61, %v4838_v63  ;;  %v10435_v31 = vpop.f32.mrf.mxu0  ;;  %v4700_v19 = vmul.f32 %v10426_v22, %v10426_v22  ;;  %5941 = vrsqrt.f32 %v10141_v58 }
 0xec7   : > { %v5930_v33 = vpop.eup %5929  ;;  %v4716_v42 = vmul.f32 %v10435_v31, %v10435_v31  ;;  %v4747_v9 = vmax.f32 %v10433_v32, 1e-30  ;;  %v4962_v26 = vsel %vm4961_vm7, %v10190_v18, %v4960_v41  ;;  %5943 = vrsqrt.f32 %v10139_v27 }
 0xec8   : > { %5030 = vst [vmem:[%s7213_s24 + $0x30] sm:$0xff] %v5014_v53  ;;  %5062 = vst [vmem:[%s7218_s1 + $0x30] sm:$0xff] %v5046_v49  ;;  %v4791_v14 = vmul.f32 %v5930_v33, %v10299_v56  ;;  %v4823_v17 = vmul.f32 %v5930_v33, %v10307_v23  ;;  %v10455_v24 = vpop.f32.mrf.mxu0  ;;  %v4967_v10 = vmul.f32 %v5928_v5, %v10183_v4  ;;  %vm4776_vm14 = vcmp.lt.f32.partialorder %v10352_v16, 1e-30 }
 0xec9   : > { %v10462_v62 = vadd.f32 %v4716_v42, %v4700_v19  ;;  %5945 = vrsqrt.f32 %v4747_v9  ;;  %v4701_v61 = vmul.f32 %v10455_v24, %v10455_v24  ;;  %vm4975_vm15 = vcmp.eq.f32.partialorder %v10177_v52, inf }
 0xeca   : > { %v5932_v56 = vpop.eup %5931  ;;  %v4807_v23 = vsel %vm4775_vm13, 1.0, %v4791_v14  ;;  %v4839_v1 = vsel %vm4775_vm13, 0.0, %v4823_v17  ;;  %v10466_v12 = vpop.f32.mrf.mxu0  ;;  %v4965_v45 = vsel %vm4963_vm10, %v4964_v15, %v4962_v26  ;;  %vm4977_vm0 = vcmp.eq.f32.partialorder %v10177_v52, 0.0 }
 0xecb   : > { %v5015_v48 = vmul.f32 %v4951_v55, %v4807_v23  ;;  %v5047_v8 = vmul.f32 %v4951_v55, %v4839_v1  ;;  %v4792_v20 = vmul.f32 %v5932_v56, %v10321_v21  ;;  %v4824_v60 = vmul.f32 %v5932_v56, %v10332_v54 }
 0xecc   : > { %v4748_v40 = vmax.f32 %v10462_v62, 1e-30  ;;  %v4717_v11 = vmul.f32 %v10466_v12, %v10466_v12  ;;  %v10476_v13 = vpop.f32.mrf.mxu0  ;;  %v4971_v54 = vand.u32 2147483648, %v10183_v4  ;;  %v5934_v16 = vpop.eup %5933  ;;  %v4969_v29 = vsel %vm4968_vm11, %v10183_v4, %v4967_v10 }
 0xecd   : > { %5031 = vst [vmem:[%s7213_s24 + $0x38] sm:$0xff] %v5015_v48  ;;  %5063 = vst [vmem:[%s7218_s1 + $0x38] sm:$0xff] %v5047_v8  ;;  %v4808_v39 = vsel %vm4776_vm14, 1.0, %v4792_v20  ;;  %v4840_v21 = vsel %vm4776_vm14, 0.0, %v4824_v60  ;;  %v4702_v34 = vmul.f32 %v10476_v13, %v10476_v13  ;;  %vm4777_vm1 = vcmp.lt.f32.partialorder %v10380_v50, 1e-30 }
 0xece   : > { %v5016_v44 = vmul.f32 %v4958_v37, %v4808_v39  ;;  %v5048_v46 = vmul.f32 %v4958_v37, %v4840_v21  ;;  %5947 = vrsqrt.f32 %v4748_v40  ;;  %v10482_v28 = vadd.f32 %v4717_v11, %v4701_v61  ;;  %v10484_v47 = vpop.f32.mrf.mxu0 }
 0xecf   : > { %v5936_v25 = vpop.eup %5935  ;;  %v4718_v51 = vmul.f32 %v10484_v47, %v10484_v47  ;;  %v4974_v7 = vmul.f32 %v5934_v16, %v10177_v52  ;;  %5949 = vrsqrt.f32 %v10132_v35  ;;  %v4978_v5 = vand.u32 2147483648, %v10177_v52 }
 0xed0   : > { %5032 = vst [vmem:[%s7213_s24 + $0x40] sm:$0xff] %v5016_v44  ;;  %5064 = vst [vmem:[%s7218_s1 + $0x40] sm:$0xff] %v5048_v46  ;;  %v4793_v36 = vmul.f32 %v5936_v25, %v10350_v43  ;;  %v4825_v3 = vmul.f32 %v5936_v25, %v10356_v0  ;;  %v4749_v18 = vmax.f32 %v10482_v28, 1e-30  ;;  %v10503_v15 = vpop.f32.mrf.mxu0  ;;  %v4972_v50 = vsel %vm4970_vm12, %v4971_v54, %v4969_v29 }
 0xed1   : > { %v10507_v63 = vadd.f32 %v4718_v51, %v4702_v34  ;;  %v5938_v41 = vpop.eup %5937  ;;  %v4703_v14 = vmul.f32 %v10503_v15, %v10503_v15  ;;  %vm4778_vm2 = vcmp.lt.f32.partialorder %v10409_v2, 1e-30  ;;  %v4976_v4 = vsel %vm4975_vm15, %v10177_v52, %v4974_v7 }
 0xed2   : > { %v4809_v43 = vsel %vm4777_vm1, 1.0, %v4793_v36  ;;  %v4841_v0 = vsel %vm4777_vm1, 0.0, %v4825_v3  ;;  %5951 = vrsqrt.f32 %v4749_v18  ;;  %v10511_v53 = vpop.f32.mrf.mxu0  ;;  %v5940_v49 = vpop.eup %5939  ;;  %vm4982_vm3 = vcmp.eq.f32.partialorder %v10175_v30, inf }
 0xed3   : > { %v5017_v33 = vmul.f32 %v4965_v45, %v4809_v43  ;;  %v5049_v55 = vmul.f32 %v4965_v45, %v4841_v0  ;;  %v4750_v37 = vmax.f32 %v10507_v63, 1e-30  ;;  %v4794_v19 = vmul.f32 %v5940_v49, %v10376_v38  ;;  %v5942_v9 = vpop.eup %5941 }
 0xed4   : > { %v4826_v42 = vmul.f32 %v5940_v49, %v10383_v6  ;;  %v4719_v17 = vmul.f32 %v10511_v53, %v10511_v53  ;;  %v4981_v38 = vmul.f32 %v5938_v41, %v10175_v30  ;;  %v5944_v6 = vpop.eup %5943  ;;  %v4985_v2 = vand.u32 2147483648, %v10175_v30 }
 0xed5   : > { %5033 = vst [vmem:[%s7213_s24 + $0x48] sm:$0xff] %v5017_v33  ;;  %5065 = vst [vmem:[%s7218_s1 + $0x48] sm:$0xff] %v5049_v55  ;;  %5953 = vrsqrt.f32 %v4750_v37  ;;  %v4810_v26 = vsel %vm4778_vm2, 1.0, %v4794_v19  ;;  %v4979_v60 = vsel %vm4977_vm0, %v4978_v5, %v4976_v4  ;;  %vm4779_vm4 = vcmp.lt.f32.partialorder %v10433_v32, 1e-30 }
 0xed6   : > { %v4842_v56 = vsel %vm4778_vm2, 0.0, %v4826_v42  ;;  %v10530_v23 = vadd.f32 %v4719_v17, %v4703_v14  ;;  %v5946_v1 = vpop.eup %5945  ;;  %v5018_v10 = vmul.f32 %v4972_v50, %v4810_v26  ;;  %v4983_v61 = vsel %vm4982_vm3, %v10175_v30, %v4981_v38 }
 0xed7   : > { %v5050_v48 = vmul.f32 %v4972_v50, %v4842_v56  ;;  %v4795_v8 = vmul.f32 %v5946_v1, %v10403_v59  ;;  %v4827_v20 = vmul.f32 %v5946_v1, %v10415_v57  ;;  %vm4984_vm5 = vcmp.eq.f32.partialorder %v10175_v30, 0.0 }
 0xed8   : > { %v4751_v40 = vmax.f32 %v10530_v23, 1e-30  ;;  %5034 = vst [vmem:[%s7213_s24 + $0x50] sm:$0xff] %v5018_v10  ;;  %v4988_v11 = vmul.f32 %v5942_v9, %v10141_v58  ;;  %vm4989_vm6 = vcmp.eq.f32.partialorder %v10141_v58, inf  ;;  %v4992_v54 = vand.u32 2147483648, %v10141_v58 }
 0xed9   : > { %5066 = vst [vmem:[%s7218_s1 + $0x50] sm:$0xff] %v5050_v48  ;;  %v4811_v59 = vsel %vm4779_vm4, 1.0, %v4795_v8  ;;  %v4843_v39 = vsel %vm4779_vm4, 0.0, %v4827_v20  ;;  %v4995_v32 = vmul.f32 %v5944_v6, %v10139_v27  ;;  %v4986_v30 = vsel %vm4984_vm5, %v4985_v2, %v4983_v61 }
 0xeda   : > { %5955 = vrsqrt.f32 %v4751_v40  ;;  %v5019_v57 = vmul.f32 %v4979_v60, %v4811_v59  ;;  %v5051_v21 = vmul.f32 %v4979_v60, %v4843_v39  ;;  %vm4996_vm7 = vcmp.eq.f32.partialorder %v10139_v27, inf }
 0xedb   : > { %v5948_v52 = vpop.eup %5947  ;;  %vm4780_vm8 = vcmp.lt.f32.partialorder %v10462_v62, 1e-30  ;;  %v4990_v46 = vsel %vm4989_vm6, %v10141_v58, %v4988_v11  ;;  %vm4991_vm9 = vcmp.eq.f32.partialorder %v10141_v58, 0.0  ;;  %v4997_v3 = vsel %vm4996_vm7, %v10139_v27, %v4995_v32 }
 0xedc   : > { %v4796_v16 = vmul.f32 %v5948_v52, %v10426_v22  ;;  %v4828_v44 = vmul.f32 %v5948_v52, %v10435_v31  ;;  %5035 = vst [vmem:[%s7213_s24 + $0x58] sm:$0xff] %v5019_v57  ;;  %5067 = vst [vmem:[%s7218_s1 + $0x58] sm:$0xff] %v5051_v21  ;;  %v5950_v25 = vpop.eup %5949  ;;  %v4999_v22 = vand.u32 2147483648, %v10139_v27  ;;  %vm4998_vm10 = vcmp.eq.f32.partialorder %v10139_v27, 0.0 }
 0xedd   : > { %v4993_v18 = vsel %vm4991_vm9, %v4992_v54, %v4990_v46  ;;  %vm4781_vm11 = vcmp.lt.f32.partialorder %v10482_v28, 1e-30  ;;  %v5002_v58 = vmul.f32 %v5950_v25, %v10132_v35  ;;  %vm5003_vm12 = vcmp.eq.f32.partialorder %v10132_v35, inf }
 0xede   : > { %v4812_v45 = vsel %vm4780_vm8, 1.0, %v4796_v16  ;;  %v4844_v34 = vsel %vm4780_vm8, 0.0, %v4828_v44  ;;  %v5000_v0 = vsel %vm4998_vm10, %v4999_v22, %v4997_v3  ;;  %vm4782_vm13 = vcmp.lt.f32.partialorder %v10507_v63, 1e-30 }
 0xedf   : > { %v5952_v51 = vpop.eup %5951  ;;  %v5020_v31 = vmul.f32 %v4986_v30, %v4812_v45  ;;  %v5052_v36 = vmul.f32 %v4986_v30, %v4844_v34  ;;  %v5006_v28 = vand.u32 2147483648, %v10132_v35  ;;  %v5004_v55 = vsel %vm5003_vm12, %v10132_v35, %v5002_v58 }
 0xee0   : > { %v4797_v29 = vmul.f32 %v5952_v51, %v10455_v24  ;;  %v4829_v62 = vmul.f32 %v5952_v51, %v10466_v12  ;;  %vm5005_vm14 = vcmp.eq.f32.partialorder %v10132_v35, 0.0  ;;  %vm4783_vm15 = vcmp.lt.f32.partialorder %v10530_v23, 1e-30 }
 0xee1   : > { %5036 = vst [vmem:[%s7213_s24 + $0x60] sm:$0xff] %v5020_v31  ;;  %5068 = vst [vmem:[%s7218_s1 + $0x60] sm:$0xff] %v5052_v36  ;;  %v5007_v63 = vsel %vm5005_vm14, %v5006_v28, %v5004_v55 }
 0xee2   : > { %v5954_v7 = vpop.eup %5953  ;;  %v4813_v41 = vsel %vm4781_vm11, 1.0, %v4797_v29  ;;  %v4845_v43 = vsel %vm4781_vm11, 0.0, %v4829_v62 }
 0xee3   : > { %v5021_v27 = vmul.f32 %v4993_v18, %v4813_v41  ;;  %v5053_v24 = vmul.f32 %v4993_v18, %v4845_v43  ;;  %v4798_v12 = vmul.f32 %v5954_v7, %v10476_v13  ;;  %v4830_v5 = vmul.f32 %v5954_v7, %v10484_v47 }
 0xee5   : > { %5037 = vst [vmem:[%s7213_s24 + $0x68] sm:$0xff] %v5021_v27  ;;  %5069 = vst [vmem:[%s7218_s1 + $0x68] sm:$0xff] %v5053_v24  ;;  %v4814_v49 = vsel %vm4782_vm13, 1.0, %v4798_v12  ;;  %v4846_v33 = vsel %vm4782_vm13, 0.0, %v4830_v5 }
 0xee6   : > { %v5022_v50 = vmul.f32 %v5000_v0, %v4814_v49  ;;  %v5054_v37 = vmul.f32 %v5000_v0, %v4846_v33 }
 0xee7   : > { %v5956_v19 = vpop.eup %5955 }
 0xee8   : > { %5038 = vst [vmem:[%s7213_s24 + $0x70] sm:$0xff] %v5022_v50  ;;  %5070 = vst [vmem:[%s7218_s1 + $0x70] sm:$0xff] %v5054_v37  ;;  %v4799_v13 = vmul.f32 %v5956_v19, %v10503_v15  ;;  %v4831_v47 = vmul.f32 %v5956_v19, %v10511_v53 }
 0xeea   : > { %v4815_v42 = vsel %vm4783_vm15, 1.0, %v4799_v13  ;;  %v4847_v14 = vsel %vm4783_vm15, 0.0, %v4831_v47 }
 0xeeb   : > { %v5023_v17 = vmul.f32 %v5007_v63, %v4815_v42  ;;  %v5055_v9 = vmul.f32 %v5007_v63, %v4847_v14 }
 0xeed   : > { %5039 = vst [vmem:[%s7213_s24 + $0x78] sm:$0xff] %v5023_v17  ;;  %5071 = vst [vmem:[%s7218_s1 + $0x78] sm:$0xff] %v5055_v9 }
 0xeee PF: > { %s36_s27 = sadd.s32 1, %s6761_s27   ;;  %s11257_s17 = sld [smem:[#allocation26_spill]] }
 0xeef   : > { %p33_p9 = scmp.ge.s32.totalorder %s36_s27, 22   ;;  %s11258_s18 = sld [smem:[#allocation27_spill]] }
 0xef0   : > { %s11259_s19 = sld [smem:[#allocation38_spill]]  ;;  %s11265_s21 = smov %s6741_s22 }
 0xef1   : > { %s11260_s20 = sld [smem:[#allocation28_spill]]  ;;  %s11267_s24 = smov %s6757_s26 }
 0xef2   : > { %s11261_s6 = sld [smem:[#allocation37_spill]] }
 0xef3   : > { %s11262_s23 = sld [smem:[#allocation31_spill]] }
 0xef4   : > { %s11263_s25 = sld [smem:[#allocation34_spill]] }
 0xef5   : > { %s11264_s12 = sld [smem:[#allocation36_spill]] }
 0xef7   :  { %35 = sbr.rel (!%p33_p9) target bundleno = 24 (0x18), region = 213 }
 0xef8   : > { %s11266_s22 = smov %s11261_s6 }
 0xefb   : > { %s11268_s26 = smov %s11264_s12 }
 0xefc   :  { %5109 = vsyncpa [#allocation3], 1 }
 0xefd   :  { %5111 = vsyncpa [#allocation3 + $0x1], 1 }
 0xefe   :  { %5112 = vsyncpa [#allocation5], 1 }
 0xeff   :  { %5114 = vsyncpa [#allocation5 + $0x1], 1 }
 0xf00   :  { %5115 = vsyncpa [#allocation8], 1 }
 0xf01   :  { %5117 = vsyncpa [#allocation8 + $0x1], 1 }
 0xf02   :  { %5118 = vsyncpa [#allocation11], 1 }
 0xf03   :  { %5120 = vsyncpa [#allocation11 + $0x1], 1 }
 0xf04   :  { %5121 = vsyncpa [#allocation14], 1 }
 0xf05   :  { %5122 = vsyncpa [#allocation17], 1 }

</bundles_post_ra>
